<compile_context>
chip_gen: v6e
topology: v6e:2x2x1
jax: 0.10.0
libtpu: 0.0.40
codegen_flags: <defaults>
</compile_context>

<pallas_src>
import jax
import jax.numpy as jnp
from jax.experimental import pallas as pl
from jax.experimental.pallas import tpu as pltpu

EPS = 1e-5
_DIV_SHIFT = 18


def _make_udiv(d, max_x):
    """Exact floor-division by a small positive constant via int32 multiply+shift.

    Avoids vector integer division; exact for 0 <= x <= max_x (checked in Python).
    """
    m = ((1 << _DIV_SHIFT) + d - 1) // d                       # ceil(2^S / d)
    assert max_x * (m * d - (1 << _DIV_SHIFT)) < (1 << _DIV_SHIFT), "udiv range too large"
    assert max_x * m < 2 ** 31, "int32 overflow in udiv"
    return lambda x: (x * m) >> _DIV_SHIFT


def _fold_weight(w):
    """torch (Cout, Cin, 3, 3) -> folded-K (9*Cin, Cout) bf16, tap-major rows."""
    cout, cin = w.shape[0], w.shape[1]
    return jnp.transpose(w, (2, 3, 1, 0)).reshape(9 * cin, cout).astype(jnp.bfloat16)


# ------------------------------ Pallas kernel -------------------------------

def _make_fused_kernel(N, H, W, Cin, C1, C2):
    Hp, Wp = H + 2, W + 2              # zero-padded plane of layer 1
    Hs, Ws = Hp // 2, Wp // 2          # 2x2 parity ("space-to-depth") grid of that plane
    Ho, Wo = H // 2, W // 2            # layer-2 output spatial dims
    Mg = N * Hs * Ws                   # rows per parity slab == layer-2 anchor rows
    G = Ws + 1                         # guard rows so shifted tap slices stay in bounds
    inv_cnt1 = 1.0 / float(N * H * W)  # valid layer-1 outputs (BN1 count)
    inv_cnt2 = 1.0 / float(N * Ho * Wo)  # valid layer-2 outputs (BN2 count)

    div_ws = _make_udiv(Ws, Mg - 1)
    div_hs = _make_udiv(Hs, (Mg - 1) // Ws)

    def kernel(xs_ref, w1_ref, b1_ref, g1_ref, be1_ref,
               w2_ref, b2_ref, g2_ref, be2_ref, out_ref):
        # Per-row (n, i, j) coordinates on the parity grid, from an in-kernel iota
        # (review: no (M, 1) f32 mask operands DMA'd from HBM).
        r = jax.lax.broadcasted_iota(jnp.int32, (Mg, 1), 0)
        q = div_ws(r)                  # == n*Hs + i
        j = r - q * Ws
        i = q - div_hs(q) * Hs

        w1 = w1_ref[...]
        b1 = b1_ref[...]
        w2 = w2_ref[...]
        b2 = b2_ref[...]

        # ---- layer 1: Conv2d(Cin->C1, 3x3, pad=1) + bias + ReLU (folded K) -----
        # One im2col slab per parity group (tap shifts paid once), one K=9*Cin
        # MXU matmul per group instead of nine K=Cin dots + VPU adds.
        z1, m1 = [], []
        for grp in range(4):
            ph, pw = grp // 2, grp % 2
            cols = []
            for kh in range(3):
                for kw in range(3):
                    dh, dw = ph + kh - 1, pw + kw - 1
                    src = 2 * (dh % 2) + (dw % 2)                 # source parity slab
                    off = G + (dh // 2) * Ws + (dw // 2)          # row shift (in bounds)
                    cols.append(xs_ref[src, off:off + Mg, :])
            col = jnp.concatenate(cols, axis=1)                   # (Mg, 9*Cin) bf16
            z = jnp.dot(col, w1, preferred_element_type=jnp.float32)
            z = jnp.maximum(z + b1, 0.0)                          # (Mg, C1) f32
            ah, aw = 2 * i + ph, 2 * j + pw                       # padded-grid coords
            m = (ah >= 1) & (ah <= H) & (aw >= 1) & (aw <= W)     # (Mg, 1) bool
            z1.append(z)
            m1.append(m)

        # ---- BatchNorm2d(C1), training mode, two-pass centered variance --------
        mean1 = sum(jnp.sum(jnp.where(m, z, 0.0), axis=0, keepdims=True)
                    for z, m in zip(z1, m1)) * inv_cnt1
        d1 = [jnp.where(m, z - mean1, 0.0) for z, m in zip(z1, m1)]
        var1 = sum(jnp.sum(d * d, axis=0, keepdims=True) for d in d1) * inv_cnt1
        scale1 = jax.lax.rsqrt(var1 + EPS) * g1_ref[...]
        be1 = be1_ref[...]
        # Normalized layer-1 output per parity slab; border anchors re-zeroed so
        # these slabs ARE the stride-2 conv's zero-padded input.  Trailing guard.
        zg = jnp.zeros((G, C1), jnp.bfloat16)
        y1 = [jnp.concatenate(
                  [jnp.where(m, d * scale1 + be1, 0.0).astype(jnp.bfloat16), zg],
                  axis=0)
              for d, m in zip(d1, m1)]                            # 4 x (Mg+G, C1)

        # ---- layer 2: Conv2d(C1->C2, 3x3, stride=2, pad=1) + bias + ReLU --------
        # Stride 2 == unstrided shifted slices of the parity slabs; one K=9*C1 dot.
        cols2 = []
        for kh in range(3):
            for kw in range(3):
                src = 2 * (kh % 2) + (kw % 2)
                off = (kh // 2) * Ws + (kw // 2)
                cols2.append(y1[src][off:off + Mg, :])
        col2 = jnp.concatenate(cols2, axis=1)                     # (Mg, 9*C1) bf16
        z2 = jnp.dot(col2, w2, preferred_element_type=jnp.float32)
        z2 = jnp.maximum(z2 + b2, 0.0)                            # (Mg, C2) f32

        # ---- BatchNorm2d(C2), training mode, two-pass centered variance --------
        m2 = (i < Ho) & (j < Wo)                                  # valid output anchors
        mean2 = jnp.sum(jnp.where(m2, z2, 0.0), axis=0, keepdims=True) * inv_cnt2
        d2 = jnp.where(m2, z2 - mean2, 0.0)
        var2 = jnp.sum(d2 * d2, axis=0, keepdims=True) * inv_cnt2
        scale2 = jax.lax.rsqrt(var2 + EPS) * g2_ref[...]
        # Review: no post-BN re-zero here -- the wrapper slices off invalid anchors.
        out_ref[...] = d2 * scale2 + be2_ref[...]

    return kernel


# ------------------------------ JAX wrapper ---------------------------------

def _vmem_limit_bytes():
    # Per-generation VMEM budget (64 MiB per TensorCore on v7x, 128 MiB on v5e/v6e).
    try:
        cap = pltpu.get_tpu_info().vmem_capacity_bytes
    except Exception:
        cap = 64 * 1024 * 1024
    return int(min(cap // 2, 64 * 1024 * 1024))


def conv_block_forward(x_nchw, params):
    """Forward of ConvolutionBlock(input_c, output_c) in NCHW, train-mode BN."""
    (w1, b1, g1, be1), (w2, b2, g2, be2) = params
    N, Cin, H, W = x_nchw.shape
    assert H % 2 == 0 and W % 2 == 0, "even spatial dims assumed by the parity split"
    C1, C2 = w1.shape[0], w2.shape[0]
    Hp, Wp = H + 2, W + 2
    Hs, Ws = Hp // 2, Wp // 2
    Ho, Wo = H // 2, W // 2
    Mg = N * Hs * Ws
    G = Ws + 1

    # Single cheap input-prep pass (pad once + 2x2 space-to-depth of the SMALL
    # input); everything downstream happens inside one fused kernel.
    x = jnp.transpose(x_nchw, (0, 2, 3, 1))                       # NHWC
    xp = jnp.pad(x, ((0, 0), (1, 1), (1, 1), (0, 0))).astype(jnp.bfloat16)
    slabs = [jnp.pad(xp[:, ph::2, pw::2, :].reshape(Mg, Cin), ((G, G), (0, 0)))
             for ph in (0, 1) for pw in (0, 1)]
    xs = jnp.stack(slabs, axis=0)                                 # (4, Mg+2G, Cin) bf16

    kernel = _make_fused_kernel(N, H, W, Cin, C1, C2)
    vspec = pl.BlockSpec(memory_space=pltpu.MemorySpace.VMEM)
    out = pl.pallas_call(
        kernel,
        out_shape=jax.ShapeDtypeStruct((Mg, C2), jnp.float32),
        in_specs=[vspec] * 9,
        out_specs=vspec,
        compiler_params=pltpu.CompilerParams(vmem_limit_bytes=_vmem_limit_bytes()),
    )(xs,
      _fold_weight(w1), b1.reshape(1, -1).astype(jnp.float32),
      g1.reshape(1, -1).astype(jnp.float32), be1.reshape(1, -1).astype(jnp.float32),
      _fold_weight(w2), b2.reshape(1, -1).astype(jnp.float32),
      g2.reshape(1, -1).astype(jnp.float32), be2.reshape(1, -1).astype(jnp.float32))

    out = out.reshape(N, Hs, Ws, C2)[:, :Ho, :Wo, :]              # drop invalid anchors
    return jnp.transpose(out, (0, 3, 1, 2))                       # NHWC -> NCHW


conv_block_forward = jax.jit(conv_block_forward)


# ------------------------- pure-JAX f32 reference ----------------------------

def reference_block(x, params):
    def layer(x, w, b, g, be, stride):
        y = jax.lax.conv_general_dilated(
            x, w, window_strides=(stride, stride), padding=((1, 1), (1, 1)),
            dimension_numbers=("NCHW", "OIHW", "NCHW"))
        y = jnp.maximum(y + b.reshape(1, -1, 1, 1), 0.0)
        mean = jnp.mean(y, axis=(0, 2, 3), keepdims=True)
        var = jnp.mean(jnp.square(y - mean), axis=(0, 2, 3), keepdims=True)
        return ((y - mean) * jax.lax.rsqrt(var + EPS) * g.reshape(1, -1, 1, 1)
                + be.reshape(1, -1, 1, 1))

    (w1, b1, g1, be1), (w2, b2, g2, be2) = params
    return layer(layer(x, w1, b1, g1, be1, 1), w2, b2, g2, be2, 2)


# ---------------------------------- main -------------------------------------

if __name__ == "__main__":
    key = jax.random.PRNGKey(0)
    N, Cin, H, W = 2, 4, 16, 16
    Cout = 32

    key, kx = jax.random.split(key)
    x = jax.random.normal(kx, (N, Cin, H, W), jnp.float32)

    def conv_layer_params(k, cin, cout):
        k1, k2, k3, k4 = jax.random.split(k, 4)
        w = jax.random.normal(k1, (cout, cin, 3, 3), jnp.float32) * (2.0 / (cin * 9)) ** 0.5
        b = 0.01 * jax.random.normal(k2, (cout,), jnp.float32)
        g = 1.0 + 0.1 * jax.random.normal(k3, (cout,), jnp.float32)
        be = 0.1 * jax.random.normal(k4, (cout,), jnp.float32)
        return (w, b, g, be)

    key, ka, kb = jax.random.split(key, 3)
    params = (conv_layer_params(ka, Cin, Cout),      # Conv2d(Cin -> Cout), stride 1
              conv_layer_params(kb, Cout, Cout))     # Conv2d(Cout -> Cout), stride 2

    y = conv_block_forward(x, params)
    y = jax.block_until_ready(y)

    assert y.shape == (N, Cout, H // 2, W // 2)
    assert bool(jnp.all(jnp.isfinite(y)))

    # Train-mode BN fixes the per-channel mean of the output to beta exactly.
    be2 = params[1][3]
    ch_mean = jnp.mean(y, axis=(0, 2, 3))
    assert bool(jnp.allclose(ch_mean, be2, atol=2e-3))

    # Cross-check against the plain-JAX f32 reference (bf16 matmuls -> loose tol).
    ref = reference_block(x, params)
    assert bool(jnp.allclose(y, ref, atol=0.15, rtol=0.05))

    print("KERNEL_OK")
</pallas_src>

<mosaic_0001>
module attributes {stable_mosaic.version = 11 : i64} {
  func.func @kernel(%arg0: memref<4x182x4xbf16, #tpu.memory_space<vmem>>, %arg1: memref<36x32xbf16, #tpu.memory_space<vmem>>, %arg2: memref<1x32xf32, #tpu.memory_space<vmem>>, %arg3: memref<1x32xf32, #tpu.memory_space<vmem>>, %arg4: memref<1x32xf32, #tpu.memory_space<vmem>>, %arg5: memref<288x32xbf16, #tpu.memory_space<vmem>>, %arg6: memref<1x32xf32, #tpu.memory_space<vmem>>, %arg7: memref<1x32xf32, #tpu.memory_space<vmem>>, %arg8: memref<1x32xf32, #tpu.memory_space<vmem>>, %arg9: memref<162x32xf32, #tpu.memory_space<vmem>>) attributes {dimension_semantics = [], scalar_prefetch = 0 : i64, scratch_operands = 0 : i64, tpu.core_type = #tpu.core_type<tc>} {
    %0 = tpu.iota {dimensions = array<i32: 0>} : vector<162x1xi32>
    %c29128_i32 = arith.constant 29128 : i32
    %1 = vector.broadcast %c29128_i32 : i32 to vector<162x1xi32>
    %2 = arith.muli %0, %1 : vector<162x1xi32>
    %c18_i32 = arith.constant 18 : i32
    %3 = vector.broadcast %c18_i32 : i32 to vector<162x1xi32>
    %4 = arith.shrsi %2, %3 : vector<162x1xi32>
    %c9_i32 = arith.constant 9 : i32
    %5 = vector.broadcast %c9_i32 : i32 to vector<162x1xi32>
    %6 = arith.muli %4, %5 : vector<162x1xi32>
    %7 = arith.subi %0, %6 : vector<162x1xi32>
    %c29128_i32_0 = arith.constant 29128 : i32
    %8 = vector.broadcast %c29128_i32_0 : i32 to vector<162x1xi32>
    %9 = arith.muli %4, %8 : vector<162x1xi32>
    %c18_i32_1 = arith.constant 18 : i32
    %10 = vector.broadcast %c18_i32_1 : i32 to vector<162x1xi32>
    %11 = arith.shrsi %9, %10 : vector<162x1xi32>
    %c9_i32_2 = arith.constant 9 : i32
    %12 = vector.broadcast %c9_i32_2 : i32 to vector<162x1xi32>
    %13 = arith.muli %11, %12 : vector<162x1xi32>
    %14 = arith.subi %4, %13 : vector<162x1xi32>
    %c0 = arith.constant 0 : index
    %c0_3 = arith.constant 0 : index
    %15 = vector.load %arg1[%c0, %c0_3] : memref<36x32xbf16, #tpu.memory_space<vmem>>, vector<36x32xbf16>
    %c0_4 = arith.constant 0 : index
    %c0_5 = arith.constant 0 : index
    %16 = vector.load %arg2[%c0_4, %c0_5] : memref<1x32xf32, #tpu.memory_space<vmem>>, vector<1x32xf32>
    %c0_6 = arith.constant 0 : index
    %c0_7 = arith.constant 0 : index
    %17 = vector.load %arg5[%c0_6, %c0_7] : memref<288x32xbf16, #tpu.memory_space<vmem>>, vector<288x32xbf16>
    %c0_8 = arith.constant 0 : index
    %c0_9 = arith.constant 0 : index
    %18 = vector.load %arg6[%c0_8, %c0_9] : memref<1x32xf32, #tpu.memory_space<vmem>>, vector<1x32xf32>
    %c3 = arith.constant 3 : index
    %c0_10 = arith.constant 0 : index
    %c0_11 = arith.constant 0 : index
    %19 = vector.load %arg0[%c3, %c0_10, %c0_11] : memref<4x182x4xbf16, #tpu.memory_space<vmem>>, vector<1x162x4xbf16>
    %20 = vector.shape_cast %19 : vector<1x162x4xbf16> to vector<162x4xbf16>
    %c2 = arith.constant 2 : index
    %c1 = arith.constant 1 : index
    %c0_12 = arith.constant 0 : index
    %21 = vector.load %arg0[%c2, %c1, %c0_12] : memref<4x182x4xbf16, #tpu.memory_space<vmem>>, vector<1x162x4xbf16>
    %22 = vector.shape_cast %21 : vector<1x162x4xbf16> to vector<162x4xbf16>
    %c3_13 = arith.constant 3 : index
    %c1_14 = arith.constant 1 : index
    %c0_15 = arith.constant 0 : index
    %23 = vector.load %arg0[%c3_13, %c1_14, %c0_15] : memref<4x182x4xbf16, #tpu.memory_space<vmem>>, vector<1x162x4xbf16>
    %24 = vector.shape_cast %23 : vector<1x162x4xbf16> to vector<162x4xbf16>
    %c1_16 = arith.constant 1 : index
    %c9 = arith.constant 9 : index
    %c0_17 = arith.constant 0 : index
    %25 = vector.load %arg0[%c1_16, %c9, %c0_17] : memref<4x182x4xbf16, #tpu.memory_space<vmem>>, vector<1x162x4xbf16>
    %26 = vector.shape_cast %25 : vector<1x162x4xbf16> to vector<162x4xbf16>
    %c0_18 = arith.constant 0 : index
    %c10 = arith.constant 10 : index
    %c0_19 = arith.constant 0 : index
    %27 = vector.load %arg0[%c0_18, %c10, %c0_19] : memref<4x182x4xbf16, #tpu.memory_space<vmem>>, vector<1x162x4xbf16>
    %28 = vector.shape_cast %27 : vector<1x162x4xbf16> to vector<162x4xbf16>
    %c1_20 = arith.constant 1 : index
    %c10_21 = arith.constant 10 : index
    %c0_22 = arith.constant 0 : index
    %29 = vector.load %arg0[%c1_20, %c10_21, %c0_22] : memref<4x182x4xbf16, #tpu.memory_space<vmem>>, vector<1x162x4xbf16>
    %30 = vector.shape_cast %29 : vector<1x162x4xbf16> to vector<162x4xbf16>
    %c3_23 = arith.constant 3 : index
    %c9_24 = arith.constant 9 : index
    %c0_25 = arith.constant 0 : index
    %31 = vector.load %arg0[%c3_23, %c9_24, %c0_25] : memref<4x182x4xbf16, #tpu.memory_space<vmem>>, vector<1x162x4xbf16>
    %32 = vector.shape_cast %31 : vector<1x162x4xbf16> to vector<162x4xbf16>
    %c2_26 = arith.constant 2 : index
    %c10_27 = arith.constant 10 : index
    %c0_28 = arith.constant 0 : index
    %33 = vector.load %arg0[%c2_26, %c10_27, %c0_28] : memref<4x182x4xbf16, #tpu.memory_space<vmem>>, vector<1x162x4xbf16>
    %34 = vector.shape_cast %33 : vector<1x162x4xbf16> to vector<162x4xbf16>
    %c3_29 = arith.constant 3 : index
    %c10_30 = arith.constant 10 : index
    %c0_31 = arith.constant 0 : index
    %35 = vector.load %arg0[%c3_29, %c10_30, %c0_31] : memref<4x182x4xbf16, #tpu.memory_space<vmem>>, vector<1x162x4xbf16>
    %36 = vector.shape_cast %35 : vector<1x162x4xbf16> to vector<162x4xbf16>
    %37 = tpu.concatenate %20, %22, %24, %26, %28, %30, %32, %34, %36 in 1 : vector<162x4xbf16>, vector<162x4xbf16>, vector<162x4xbf16>, vector<162x4xbf16>, vector<162x4xbf16>, vector<162x4xbf16>, vector<162x4xbf16>, vector<162x4xbf16>, vector<162x4xbf16> -> vector<162x36xbf16>
    %cst = arith.constant dense<0.000000e+00> : vector<162x32xf32>
    %38 = tpu.matmul %37, %15, %cst {dimension_numbers = #tpu.dot_dimension_numbers<[1], [0], [0], [1], [0, 0, 1, 1], [], []>} : vector<162x36xbf16>, vector<36x32xbf16>, vector<162x32xf32> -> vector<162x32xf32>
    %39 = vector.broadcast %16 : vector<1x32xf32> to vector<162x32xf32>
    %40 = arith.addf %38, %39 : vector<162x32xf32>
    %cst_32 = arith.constant 0.000000e+00 : f32
    %41 = vector.broadcast %cst_32 : f32 to vector<162x32xf32>
    %42 = arith.maximumf %40, %41 : vector<162x32xf32>
    %c2_i32 = arith.constant 2 : i32
    %43 = vector.broadcast %c2_i32 : i32 to vector<162x1xi32>
    %44 = arith.muli %43, %14 : vector<162x1xi32>
    %c0_i32 = arith.constant 0 : i32
    %45 = vector.broadcast %c0_i32 : i32 to vector<162x1xi32>
    %46 = arith.addi %44, %45 : vector<162x1xi32>
    %c2_i32_33 = arith.constant 2 : i32
    %47 = vector.broadcast %c2_i32_33 : i32 to vector<162x1xi32>
    %48 = arith.muli %47, %7 : vector<162x1xi32>
    %c0_i32_34 = arith.constant 0 : i32
    %49 = vector.broadcast %c0_i32_34 : i32 to vector<162x1xi32>
    %50 = arith.addi %48, %49 : vector<162x1xi32>
    %c1_i32 = arith.constant 1 : i32
    %51 = vector.broadcast %c1_i32 : i32 to vector<162x1xi32>
    %52 = arith.cmpi sge, %46, %51 : vector<162x1xi32>
    %c16_i32 = arith.constant 16 : i32
    %53 = vector.broadcast %c16_i32 : i32 to vector<162x1xi32>
    %54 = arith.cmpi sle, %46, %53 : vector<162x1xi32>
    %55 = arith.andi %52, %54 : vector<162x1xi1>
    %c1_i32_35 = arith.constant 1 : i32
    %56 = vector.broadcast %c1_i32_35 : i32 to vector<162x1xi32>
    %57 = arith.cmpi sge, %50, %56 : vector<162x1xi32>
    %58 = arith.andi %55, %57 : vector<162x1xi1>
    %c16_i32_36 = arith.constant 16 : i32
    %59 = vector.broadcast %c16_i32_36 : i32 to vector<162x1xi32>
    %60 = arith.cmpi sle, %50, %59 : vector<162x1xi32>
    %61 = arith.andi %58, %60 : vector<162x1xi1>
    %c2_37 = arith.constant 2 : index
    %c1_38 = arith.constant 1 : index
    %c0_39 = arith.constant 0 : index
    %62 = vector.load %arg0[%c2_37, %c1_38, %c0_39] : memref<4x182x4xbf16, #tpu.memory_space<vmem>>, vector<1x162x4xbf16>
    %63 = vector.shape_cast %62 : vector<1x162x4xbf16> to vector<162x4xbf16>
    %c3_40 = arith.constant 3 : index
    %c1_41 = arith.constant 1 : index
    %c0_42 = arith.constant 0 : index
    %64 = vector.load %arg0[%c3_40, %c1_41, %c0_42] : memref<4x182x4xbf16, #tpu.memory_space<vmem>>, vector<1x162x4xbf16>
    %65 = vector.shape_cast %64 : vector<1x162x4xbf16> to vector<162x4xbf16>
    %c2_43 = arith.constant 2 : index
    %c2_44 = arith.constant 2 : index
    %c0_45 = arith.constant 0 : index
    %66 = vector.load %arg0[%c2_43, %c2_44, %c0_45] : memref<4x182x4xbf16, #tpu.memory_space<vmem>>, vector<1x162x4xbf16>
    %67 = vector.shape_cast %66 : vector<1x162x4xbf16> to vector<162x4xbf16>
    %c0_46 = arith.constant 0 : index
    %c10_47 = arith.constant 10 : index
    %c0_48 = arith.constant 0 : index
    %68 = vector.load %arg0[%c0_46, %c10_47, %c0_48] : memref<4x182x4xbf16, #tpu.memory_space<vmem>>, vector<1x162x4xbf16>
    %69 = vector.shape_cast %68 : vector<1x162x4xbf16> to vector<162x4xbf16>
    %c1_49 = arith.constant 1 : index
    %c10_50 = arith.constant 10 : index
    %c0_51 = arith.constant 0 : index
    %70 = vector.load %arg0[%c1_49, %c10_50, %c0_51] : memref<4x182x4xbf16, #tpu.memory_space<vmem>>, vector<1x162x4xbf16>
    %71 = vector.shape_cast %70 : vector<1x162x4xbf16> to vector<162x4xbf16>
    %c0_52 = arith.constant 0 : index
    %c11 = arith.constant 11 : index
    %c0_53 = arith.constant 0 : index
    %72 = vector.load %arg0[%c0_52, %c11, %c0_53] : memref<4x182x4xbf16, #tpu.memory_space<vmem>>, vector<1x162x4xbf16>
    %73 = vector.shape_cast %72 : vector<1x162x4xbf16> to vector<162x4xbf16>
    %c2_54 = arith.constant 2 : index
    %c10_55 = arith.constant 10 : index
    %c0_56 = arith.constant 0 : index
    %74 = vector.load %arg0[%c2_54, %c10_55, %c0_56] : memref<4x182x4xbf16, #tpu.memory_space<vmem>>, vector<1x162x4xbf16>
    %75 = vector.shape_cast %74 : vector<1x162x4xbf16> to vector<162x4xbf16>
    %c3_57 = arith.constant 3 : index
    %c10_58 = arith.constant 10 : index
    %c0_59 = arith.constant 0 : index
    %76 = vector.load %arg0[%c3_57, %c10_58, %c0_59] : memref<4x182x4xbf16, #tpu.memory_space<vmem>>, vector<1x162x4xbf16>
    %77 = vector.shape_cast %76 : vector<1x162x4xbf16> to vector<162x4xbf16>
    %c2_60 = arith.constant 2 : index
    %c11_61 = arith.constant 11 : index
    %c0_62 = arith.constant 0 : index
    %78 = vector.load %arg0[%c2_60, %c11_61, %c0_62] : memref<4x182x4xbf16, #tpu.memory_space<vmem>>, vector<1x162x4xbf16>
    %79 = vector.shape_cast %78 : vector<1x162x4xbf16> to vector<162x4xbf16>
    %80 = tpu.concatenate %63, %65, %67, %69, %71, %73, %75, %77, %79 in 1 : vector<162x4xbf16>, vector<162x4xbf16>, vector<162x4xbf16>, vector<162x4xbf16>, vector<162x4xbf16>, vector<162x4xbf16>, vector<162x4xbf16>, vector<162x4xbf16>, vector<162x4xbf16> -> vector<162x36xbf16>
    %cst_63 = arith.constant dense<0.000000e+00> : vector<162x32xf32>
    %81 = tpu.matmul %80, %15, %cst_63 {dimension_numbers = #tpu.dot_dimension_numbers<[1], [0], [0], [1], [0, 0, 1, 1], [], []>} : vector<162x36xbf16>, vector<36x32xbf16>, vector<162x32xf32> -> vector<162x32xf32>
    %82 = vector.broadcast %16 : vector<1x32xf32> to vector<162x32xf32>
    %83 = arith.addf %81, %82 : vector<162x32xf32>
    %cst_64 = arith.constant 0.000000e+00 : f32
    %84 = vector.broadcast %cst_64 : f32 to vector<162x32xf32>
    %85 = arith.maximumf %83, %84 : vector<162x32xf32>
    %c2_i32_65 = arith.constant 2 : i32
    %86 = vector.broadcast %c2_i32_65 : i32 to vector<162x1xi32>
    %87 = arith.muli %86, %14 : vector<162x1xi32>
    %c0_i32_66 = arith.constant 0 : i32
    %88 = vector.broadcast %c0_i32_66 : i32 to vector<162x1xi32>
    %89 = arith.addi %87, %88 : vector<162x1xi32>
    %c2_i32_67 = arith.constant 2 : i32
    %90 = vector.broadcast %c2_i32_67 : i32 to vector<162x1xi32>
    %91 = arith.muli %90, %7 : vector<162x1xi32>
    %c1_i32_68 = arith.constant 1 : i32
    %92 = vector.broadcast %c1_i32_68 : i32 to vector<162x1xi32>
    %93 = arith.addi %91, %92 : vector<162x1xi32>
    %c1_i32_69 = arith.constant 1 : i32
    %94 = vector.broadcast %c1_i32_69 : i32 to vector<162x1xi32>
    %95 = arith.cmpi sge, %89, %94 : vector<162x1xi32>
    %c16_i32_70 = arith.constant 16 : i32
    %96 = vector.broadcast %c16_i32_70 : i32 to vector<162x1xi32>
    %97 = arith.cmpi sle, %89, %96 : vector<162x1xi32>
    %98 = arith.andi %95, %97 : vector<162x1xi1>
    %c1_i32_71 = arith.constant 1 : i32
    %99 = vector.broadcast %c1_i32_71 : i32 to vector<162x1xi32>
    %100 = arith.cmpi sge, %93, %99 : vector<162x1xi32>
    %101 = arith.andi %98, %100 : vector<162x1xi1>
    %c16_i32_72 = arith.constant 16 : i32
    %102 = vector.broadcast %c16_i32_72 : i32 to vector<162x1xi32>
    %103 = arith.cmpi sle, %93, %102 : vector<162x1xi32>
    %104 = arith.andi %101, %103 : vector<162x1xi1>
    %c1_73 = arith.constant 1 : index
    %c9_74 = arith.constant 9 : index
    %c0_75 = arith.constant 0 : index
    %105 = vector.load %arg0[%c1_73, %c9_74, %c0_75] : memref<4x182x4xbf16, #tpu.memory_space<vmem>>, vector<1x162x4xbf16>
    %106 = vector.shape_cast %105 : vector<1x162x4xbf16> to vector<162x4xbf16>
    %c0_76 = arith.constant 0 : index
    %c10_77 = arith.constant 10 : index
    %c0_78 = arith.constant 0 : index
    %107 = vector.load %arg0[%c0_76, %c10_77, %c0_78] : memref<4x182x4xbf16, #tpu.memory_space<vmem>>, vector<1x162x4xbf16>
    %108 = vector.shape_cast %107 : vector<1x162x4xbf16> to vector<162x4xbf16>
    %c1_79 = arith.constant 1 : index
    %c10_80 = arith.constant 10 : index
    %c0_81 = arith.constant 0 : index
    %109 = vector.load %arg0[%c1_79, %c10_80, %c0_81] : memref<4x182x4xbf16, #tpu.memory_space<vmem>>, vector<1x162x4xbf16>
    %110 = vector.shape_cast %109 : vector<1x162x4xbf16> to vector<162x4xbf16>
    %c3_82 = arith.constant 3 : index
    %c9_83 = arith.constant 9 : index
    %c0_84 = arith.constant 0 : index
    %111 = vector.load %arg0[%c3_82, %c9_83, %c0_84] : memref<4x182x4xbf16, #tpu.memory_space<vmem>>, vector<1x162x4xbf16>
    %112 = vector.shape_cast %111 : vector<1x162x4xbf16> to vector<162x4xbf16>
    %c2_85 = arith.constant 2 : index
    %c10_86 = arith.constant 10 : index
    %c0_87 = arith.constant 0 : index
    %113 = vector.load %arg0[%c2_85, %c10_86, %c0_87] : memref<4x182x4xbf16, #tpu.memory_space<vmem>>, vector<1x162x4xbf16>
    %114 = vector.shape_cast %113 : vector<1x162x4xbf16> to vector<162x4xbf16>
    %c3_88 = arith.constant 3 : index
    %c10_89 = arith.constant 10 : index
    %c0_90 = arith.constant 0 : index
    %115 = vector.load %arg0[%c3_88, %c10_89, %c0_90] : memref<4x182x4xbf16, #tpu.memory_space<vmem>>, vector<1x162x4xbf16>
    %116 = vector.shape_cast %115 : vector<1x162x4xbf16> to vector<162x4xbf16>
    %c1_91 = arith.constant 1 : index
    %c18 = arith.constant 18 : index
    %c0_92 = arith.constant 0 : index
    %117 = vector.load %arg0[%c1_91, %c18, %c0_92] : memref<4x182x4xbf16, #tpu.memory_space<vmem>>, vector<1x162x4xbf16>
    %118 = vector.shape_cast %117 : vector<1x162x4xbf16> to vector<162x4xbf16>
    %c0_93 = arith.constant 0 : index
    %c19 = arith.constant 19 : index
    %c0_94 = arith.constant 0 : index
    %119 = vector.load %arg0[%c0_93, %c19, %c0_94] : memref<4x182x4xbf16, #tpu.memory_space<vmem>>, vector<1x162x4xbf16>
    %120 = vector.shape_cast %119 : vector<1x162x4xbf16> to vector<162x4xbf16>
    %c1_95 = arith.constant 1 : index
    %c19_96 = arith.constant 19 : index
    %c0_97 = arith.constant 0 : index
    %121 = vector.load %arg0[%c1_95, %c19_96, %c0_97] : memref<4x182x4xbf16, #tpu.memory_space<vmem>>, vector<1x162x4xbf16>
    %122 = vector.shape_cast %121 : vector<1x162x4xbf16> to vector<162x4xbf16>
    %123 = tpu.concatenate %106, %108, %110, %112, %114, %116, %118, %120, %122 in 1 : vector<162x4xbf16>, vector<162x4xbf16>, vector<162x4xbf16>, vector<162x4xbf16>, vector<162x4xbf16>, vector<162x4xbf16>, vector<162x4xbf16>, vector<162x4xbf16>, vector<162x4xbf16> -> vector<162x36xbf16>
    %cst_98 = arith.constant dense<0.000000e+00> : vector<162x32xf32>
    %124 = tpu.matmul %123, %15, %cst_98 {dimension_numbers = #tpu.dot_dimension_numbers<[1], [0], [0], [1], [0, 0, 1, 1], [], []>} : vector<162x36xbf16>, vector<36x32xbf16>, vector<162x32xf32> -> vector<162x32xf32>
    %125 = vector.broadcast %16 : vector<1x32xf32> to vector<162x32xf32>
    %126 = arith.addf %124, %125 : vector<162x32xf32>
    %cst_99 = arith.constant 0.000000e+00 : f32
    %127 = vector.broadcast %cst_99 : f32 to vector<162x32xf32>
    %128 = arith.maximumf %126, %127 : vector<162x32xf32>
    %c2_i32_100 = arith.constant 2 : i32
    %129 = vector.broadcast %c2_i32_100 : i32 to vector<162x1xi32>
    %130 = arith.muli %129, %14 : vector<162x1xi32>
    %c1_i32_101 = arith.constant 1 : i32
    %131 = vector.broadcast %c1_i32_101 : i32 to vector<162x1xi32>
    %132 = arith.addi %130, %131 : vector<162x1xi32>
    %c2_i32_102 = arith.constant 2 : i32
    %133 = vector.broadcast %c2_i32_102 : i32 to vector<162x1xi32>
    %134 = arith.muli %133, %7 : vector<162x1xi32>
    %c0_i32_103 = arith.constant 0 : i32
    %135 = vector.broadcast %c0_i32_103 : i32 to vector<162x1xi32>
    %136 = arith.addi %134, %135 : vector<162x1xi32>
    %c1_i32_104 = arith.constant 1 : i32
    %137 = vector.broadcast %c1_i32_104 : i32 to vector<162x1xi32>
    %138 = arith.cmpi sge, %132, %137 : vector<162x1xi32>
    %c16_i32_105 = arith.constant 16 : i32
    %139 = vector.broadcast %c16_i32_105 : i32 to vector<162x1xi32>
    %140 = arith.cmpi sle, %132, %139 : vector<162x1xi32>
    %141 = arith.andi %138, %140 : vector<162x1xi1>
    %c1_i32_106 = arith.constant 1 : i32
    %142 = vector.broadcast %c1_i32_106 : i32 to vector<162x1xi32>
    %143 = arith.cmpi sge, %136, %142 : vector<162x1xi32>
    %144 = arith.andi %141, %143 : vector<162x1xi1>
    %c16_i32_107 = arith.constant 16 : i32
    %145 = vector.broadcast %c16_i32_107 : i32 to vector<162x1xi32>
    %146 = arith.cmpi sle, %136, %145 : vector<162x1xi32>
    %147 = arith.andi %144, %146 : vector<162x1xi1>
    %c0_108 = arith.constant 0 : index
    %c10_109 = arith.constant 10 : index
    %c0_110 = arith.constant 0 : index
    %148 = vector.load %arg0[%c0_108, %c10_109, %c0_110] : memref<4x182x4xbf16, #tpu.memory_space<vmem>>, vector<1x162x4xbf16>
    %149 = vector.shape_cast %148 : vector<1x162x4xbf16> to vector<162x4xbf16>
    %c1_111 = arith.constant 1 : index
    %c10_112 = arith.constant 10 : index
    %c0_113 = arith.constant 0 : index
    %150 = vector.load %arg0[%c1_111, %c10_112, %c0_113] : memref<4x182x4xbf16, #tpu.memory_space<vmem>>, vector<1x162x4xbf16>
    %151 = vector.shape_cast %150 : vector<1x162x4xbf16> to vector<162x4xbf16>
    %c0_114 = arith.constant 0 : index
    %c11_115 = arith.constant 11 : index
    %c0_116 = arith.constant 0 : index
    %152 = vector.load %arg0[%c0_114, %c11_115, %c0_116] : memref<4x182x4xbf16, #tpu.memory_space<vmem>>, vector<1x162x4xbf16>
    %153 = vector.shape_cast %152 : vector<1x162x4xbf16> to vector<162x4xbf16>
    %c2_117 = arith.constant 2 : index
    %c10_118 = arith.constant 10 : index
    %c0_119 = arith.constant 0 : index
    %154 = vector.load %arg0[%c2_117, %c10_118, %c0_119] : memref<4x182x4xbf16, #tpu.memory_space<vmem>>, vector<1x162x4xbf16>
    %155 = vector.shape_cast %154 : vector<1x162x4xbf16> to vector<162x4xbf16>
    %c3_120 = arith.constant 3 : index
    %c10_121 = arith.constant 10 : index
    %c0_122 = arith.constant 0 : index
    %156 = vector.load %arg0[%c3_120, %c10_121, %c0_122] : memref<4x182x4xbf16, #tpu.memory_space<vmem>>, vector<1x162x4xbf16>
    %157 = vector.shape_cast %156 : vector<1x162x4xbf16> to vector<162x4xbf16>
    %c2_123 = arith.constant 2 : index
    %c11_124 = arith.constant 11 : index
    %c0_125 = arith.constant 0 : index
    %158 = vector.load %arg0[%c2_123, %c11_124, %c0_125] : memref<4x182x4xbf16, #tpu.memory_space<vmem>>, vector<1x162x4xbf16>
    %159 = vector.shape_cast %158 : vector<1x162x4xbf16> to vector<162x4xbf16>
    %c0_126 = arith.constant 0 : index
    %c19_127 = arith.constant 19 : index
    %c0_128 = arith.constant 0 : index
    %160 = vector.load %arg0[%c0_126, %c19_127, %c0_128] : memref<4x182x4xbf16, #tpu.memory_space<vmem>>, vector<1x162x4xbf16>
    %161 = vector.shape_cast %160 : vector<1x162x4xbf16> to vector<162x4xbf16>
    %c1_129 = arith.constant 1 : index
    %c19_130 = arith.constant 19 : index
    %c0_131 = arith.constant 0 : index
    %162 = vector.load %arg0[%c1_129, %c19_130, %c0_131] : memref<4x182x4xbf16, #tpu.memory_space<vmem>>, vector<1x162x4xbf16>
    %163 = vector.shape_cast %162 : vector<1x162x4xbf16> to vector<162x4xbf16>
    %c0_132 = arith.constant 0 : index
    %c20 = arith.constant 20 : index
    %c0_133 = arith.constant 0 : index
    %164 = vector.load %arg0[%c0_132, %c20, %c0_133] : memref<4x182x4xbf16, #tpu.memory_space<vmem>>, vector<1x162x4xbf16>
    %165 = vector.shape_cast %164 : vector<1x162x4xbf16> to vector<162x4xbf16>
    %166 = tpu.concatenate %149, %151, %153, %155, %157, %159, %161, %163, %165 in 1 : vector<162x4xbf16>, vector<162x4xbf16>, vector<162x4xbf16>, vector<162x4xbf16>, vector<162x4xbf16>, vector<162x4xbf16>, vector<162x4xbf16>, vector<162x4xbf16>, vector<162x4xbf16> -> vector<162x36xbf16>
    %cst_134 = arith.constant dense<0.000000e+00> : vector<162x32xf32>
    %167 = tpu.matmul %166, %15, %cst_134 {dimension_numbers = #tpu.dot_dimension_numbers<[1], [0], [0], [1], [0, 0, 1, 1], [], []>} : vector<162x36xbf16>, vector<36x32xbf16>, vector<162x32xf32> -> vector<162x32xf32>
    %168 = vector.broadcast %16 : vector<1x32xf32> to vector<162x32xf32>
    %169 = arith.addf %167, %168 : vector<162x32xf32>
    %cst_135 = arith.constant 0.000000e+00 : f32
    %170 = vector.broadcast %cst_135 : f32 to vector<162x32xf32>
    %171 = arith.maximumf %169, %170 : vector<162x32xf32>
    %c2_i32_136 = arith.constant 2 : i32
    %172 = vector.broadcast %c2_i32_136 : i32 to vector<162x1xi32>
    %173 = arith.muli %172, %14 : vector<162x1xi32>
    %c1_i32_137 = arith.constant 1 : i32
    %174 = vector.broadcast %c1_i32_137 : i32 to vector<162x1xi32>
    %175 = arith.addi %173, %174 : vector<162x1xi32>
    %c2_i32_138 = arith.constant 2 : i32
    %176 = vector.broadcast %c2_i32_138 : i32 to vector<162x1xi32>
    %177 = arith.muli %176, %7 : vector<162x1xi32>
    %c1_i32_139 = arith.constant 1 : i32
    %178 = vector.broadcast %c1_i32_139 : i32 to vector<162x1xi32>
    %179 = arith.addi %177, %178 : vector<162x1xi32>
    %c1_i32_140 = arith.constant 1 : i32
    %180 = vector.broadcast %c1_i32_140 : i32 to vector<162x1xi32>
    %181 = arith.cmpi sge, %175, %180 : vector<162x1xi32>
    %c16_i32_141 = arith.constant 16 : i32
    %182 = vector.broadcast %c16_i32_141 : i32 to vector<162x1xi32>
    %183 = arith.cmpi sle, %175, %182 : vector<162x1xi32>
    %184 = arith.andi %181, %183 : vector<162x1xi1>
    %c1_i32_142 = arith.constant 1 : i32
    %185 = vector.broadcast %c1_i32_142 : i32 to vector<162x1xi32>
    %186 = arith.cmpi sge, %179, %185 : vector<162x1xi32>
    %187 = arith.andi %184, %186 : vector<162x1xi1>
    %c16_i32_143 = arith.constant 16 : i32
    %188 = vector.broadcast %c16_i32_143 : i32 to vector<162x1xi32>
    %189 = arith.cmpi sle, %179, %188 : vector<162x1xi32>
    %190 = arith.andi %187, %189 : vector<162x1xi1>
    %cst_144 = arith.constant 0.000000e+00 : f32
    %191 = vector.shape_cast %61 : vector<162x1xi1> to vector<162x1xi1>
    %192 = vector.broadcast %191 : vector<162x1xi1> to vector<162x32xi1>
    %193 = vector.broadcast %cst_144 : f32 to vector<162x32xf32>
    %194 = arith.select %192, %42, %193 : vector<162x32xi1>, vector<162x32xf32>
    %cst_145 = arith.constant dense<0.000000e+00> : vector<32xf32>
    %195 = vector.multi_reduction <add>, %194, %cst_145 [0] : vector<162x32xf32> to vector<32xf32>
    %196 = vector.shape_cast %195 : vector<32xf32> to vector<1x32xf32>
    %cst_146 = arith.constant 0.000000e+00 : f32
    %197 = vector.broadcast %cst_146 : f32 to vector<1x32xf32>
    %198 = arith.addf %197, %196 : vector<1x32xf32>
    %cst_147 = arith.constant 0.000000e+00 : f32
    %199 = vector.shape_cast %104 : vector<162x1xi1> to vector<162x1xi1>
    %200 = vector.broadcast %199 : vector<162x1xi1> to vector<162x32xi1>
    %201 = vector.broadcast %cst_147 : f32 to vector<162x32xf32>
    %202 = arith.select %200, %85, %201 : vector<162x32xi1>, vector<162x32xf32>
    %cst_148 = arith.constant dense<0.000000e+00> : vector<32xf32>
    %203 = vector.multi_reduction <add>, %202, %cst_148 [0] : vector<162x32xf32> to vector<32xf32>
    %204 = vector.shape_cast %203 : vector<32xf32> to vector<1x32xf32>
    %205 = arith.addf %198, %204 : vector<1x32xf32>
    %cst_149 = arith.constant 0.000000e+00 : f32
    %206 = vector.shape_cast %147 : vector<162x1xi1> to vector<162x1xi1>
    %207 = vector.broadcast %206 : vector<162x1xi1> to vector<162x32xi1>
    %208 = vector.broadcast %cst_149 : f32 to vector<162x32xf32>
    %209 = arith.select %207, %128, %208 : vector<162x32xi1>, vector<162x32xf32>
    %cst_150 = arith.constant dense<0.000000e+00> : vector<32xf32>
    %210 = vector.multi_reduction <add>, %209, %cst_150 [0] : vector<162x32xf32> to vector<32xf32>
    %211 = vector.shape_cast %210 : vector<32xf32> to vector<1x32xf32>
    %212 = arith.addf %205, %211 : vector<1x32xf32>
    %cst_151 = arith.constant 0.000000e+00 : f32
    %213 = vector.shape_cast %190 : vector<162x1xi1> to vector<162x1xi1>
    %214 = vector.broadcast %213 : vector<162x1xi1> to vector<162x32xi1>
    %215 = vector.broadcast %cst_151 : f32 to vector<162x32xf32>
    %216 = arith.select %214, %171, %215 : vector<162x32xi1>, vector<162x32xf32>
    %cst_152 = arith.constant dense<0.000000e+00> : vector<32xf32>
    %217 = vector.multi_reduction <add>, %216, %cst_152 [0] : vector<162x32xf32> to vector<32xf32>
    %218 = vector.shape_cast %217 : vector<32xf32> to vector<1x32xf32>
    %219 = arith.addf %212, %218 : vector<1x32xf32>
    %cst_153 = arith.constant 0.001953125 : f32
    %220 = vector.broadcast %cst_153 : f32 to vector<1x32xf32>
    %221 = arith.mulf %219, %220 : vector<1x32xf32>
    %222 = vector.broadcast %221 : vector<1x32xf32> to vector<162x32xf32>
    %223 = arith.subf %42, %222 : vector<162x32xf32>
    %cst_154 = arith.constant 0.000000e+00 : f32
    %224 = vector.shape_cast %61 : vector<162x1xi1> to vector<162x1xi1>
    %225 = vector.broadcast %224 : vector<162x1xi1> to vector<162x32xi1>
    %226 = vector.broadcast %cst_154 : f32 to vector<162x32xf32>
    %227 = arith.select %225, %223, %226 : vector<162x32xi1>, vector<162x32xf32>
    %228 = vector.broadcast %221 : vector<1x32xf32> to vector<162x32xf32>
    %229 = arith.subf %85, %228 : vector<162x32xf32>
    %cst_155 = arith.constant 0.000000e+00 : f32
    %230 = vector.shape_cast %104 : vector<162x1xi1> to vector<162x1xi1>
    %231 = vector.broadcast %230 : vector<162x1xi1> to vector<162x32xi1>
    %232 = vector.broadcast %cst_155 : f32 to vector<162x32xf32>
    %233 = arith.select %231, %229, %232 : vector<162x32xi1>, vector<162x32xf32>
    %234 = vector.broadcast %221 : vector<1x32xf32> to vector<162x32xf32>
    %235 = arith.subf %128, %234 : vector<162x32xf32>
    %cst_156 = arith.constant 0.000000e+00 : f32
    %236 = vector.shape_cast %147 : vector<162x1xi1> to vector<162x1xi1>
    %237 = vector.broadcast %236 : vector<162x1xi1> to vector<162x32xi1>
    %238 = vector.broadcast %cst_156 : f32 to vector<162x32xf32>
    %239 = arith.select %237, %235, %238 : vector<162x32xi1>, vector<162x32xf32>
    %240 = vector.broadcast %221 : vector<1x32xf32> to vector<162x32xf32>
    %241 = arith.subf %171, %240 : vector<162x32xf32>
    %cst_157 = arith.constant 0.000000e+00 : f32
    %242 = vector.shape_cast %190 : vector<162x1xi1> to vector<162x1xi1>
    %243 = vector.broadcast %242 : vector<162x1xi1> to vector<162x32xi1>
    %244 = vector.broadcast %cst_157 : f32 to vector<162x32xf32>
    %245 = arith.select %243, %241, %244 : vector<162x32xi1>, vector<162x32xf32>
    %246 = arith.mulf %227, %227 : vector<162x32xf32>
    %cst_158 = arith.constant dense<0.000000e+00> : vector<32xf32>
    %247 = vector.multi_reduction <add>, %246, %cst_158 [0] : vector<162x32xf32> to vector<32xf32>
    %248 = vector.shape_cast %247 : vector<32xf32> to vector<1x32xf32>
    %cst_159 = arith.constant 0.000000e+00 : f32
    %249 = vector.broadcast %cst_159 : f32 to vector<1x32xf32>
    %250 = arith.addf %249, %248 : vector<1x32xf32>
    %251 = arith.mulf %233, %233 : vector<162x32xf32>
    %cst_160 = arith.constant dense<0.000000e+00> : vector<32xf32>
    %252 = vector.multi_reduction <add>, %251, %cst_160 [0] : vector<162x32xf32> to vector<32xf32>
    %253 = vector.shape_cast %252 : vector<32xf32> to vector<1x32xf32>
    %254 = arith.addf %250, %253 : vector<1x32xf32>
    %255 = arith.mulf %239, %239 : vector<162x32xf32>
    %cst_161 = arith.constant dense<0.000000e+00> : vector<32xf32>
    %256 = vector.multi_reduction <add>, %255, %cst_161 [0] : vector<162x32xf32> to vector<32xf32>
    %257 = vector.shape_cast %256 : vector<32xf32> to vector<1x32xf32>
    %258 = arith.addf %254, %257 : vector<1x32xf32>
    %259 = arith.mulf %245, %245 : vector<162x32xf32>
    %cst_162 = arith.constant dense<0.000000e+00> : vector<32xf32>
    %260 = vector.multi_reduction <add>, %259, %cst_162 [0] : vector<162x32xf32> to vector<32xf32>
    %261 = vector.shape_cast %260 : vector<32xf32> to vector<1x32xf32>
    %262 = arith.addf %258, %261 : vector<1x32xf32>
    %cst_163 = arith.constant 0.001953125 : f32
    %263 = vector.broadcast %cst_163 : f32 to vector<1x32xf32>
    %264 = arith.mulf %262, %263 : vector<1x32xf32>
    %cst_164 = arith.constant 9.99999974E-6 : f32
    %265 = vector.broadcast %cst_164 : f32 to vector<1x32xf32>
    %266 = arith.addf %264, %265 : vector<1x32xf32>
    %267 = math.rsqrt %266 : vector<1x32xf32>
    %c0_165 = arith.constant 0 : index
    %c0_166 = arith.constant 0 : index
    %268 = vector.load %arg3[%c0_165, %c0_166] : memref<1x32xf32, #tpu.memory_space<vmem>>, vector<1x32xf32>
    %269 = arith.mulf %267, %268 : vector<1x32xf32>
    %c0_167 = arith.constant 0 : index
    %c0_168 = arith.constant 0 : index
    %270 = vector.load %arg4[%c0_167, %c0_168] : memref<1x32xf32, #tpu.memory_space<vmem>>, vector<1x32xf32>
    %cst_169 = arith.constant 0.000000e+00 : bf16
    %271 = vector.broadcast %cst_169 : bf16 to vector<10x32xbf16>
    %272 = vector.broadcast %269 : vector<1x32xf32> to vector<162x32xf32>
    %273 = arith.mulf %227, %272 : vector<162x32xf32>
    %274 = vector.broadcast %270 : vector<1x32xf32> to vector<162x32xf32>
    %275 = arith.addf %273, %274 : vector<162x32xf32>
    %cst_170 = arith.constant 0.000000e+00 : f32
    %276 = vector.shape_cast %61 : vector<162x1xi1> to vector<162x1xi1>
    %277 = vector.broadcast %276 : vector<162x1xi1> to vector<162x32xi1>
    %278 = vector.broadcast %cst_170 : f32 to vector<162x32xf32>
    %279 = arith.select %277, %275, %278 : vector<162x32xi1>, vector<162x32xf32>
    %280 = arith.truncf %279 : vector<162x32xf32> to vector<162x32xbf16>
    %281 = tpu.concatenate %280, %271 in 0 : vector<162x32xbf16>, vector<10x32xbf16> -> vector<172x32xbf16>
    %282 = vector.broadcast %269 : vector<1x32xf32> to vector<162x32xf32>
    %283 = arith.mulf %233, %282 : vector<162x32xf32>
    %284 = vector.broadcast %270 : vector<1x32xf32> to vector<162x32xf32>
    %285 = arith.addf %283, %284 : vector<162x32xf32>
    %cst_171 = arith.constant 0.000000e+00 : f32
    %286 = vector.shape_cast %104 : vector<162x1xi1> to vector<162x1xi1>
    %287 = vector.broadcast %286 : vector<162x1xi1> to vector<162x32xi1>
    %288 = vector.broadcast %cst_171 : f32 to vector<162x32xf32>
    %289 = arith.select %287, %285, %288 : vector<162x32xi1>, vector<162x32xf32>
    %290 = arith.truncf %289 : vector<162x32xf32> to vector<162x32xbf16>
    %291 = tpu.concatenate %290, %271 in 0 : vector<162x32xbf16>, vector<10x32xbf16> -> vector<172x32xbf16>
    %292 = vector.broadcast %269 : vector<1x32xf32> to vector<162x32xf32>
    %293 = arith.mulf %239, %292 : vector<162x32xf32>
    %294 = vector.broadcast %270 : vector<1x32xf32> to vector<162x32xf32>
    %295 = arith.addf %293, %294 : vector<162x32xf32>
    %cst_172 = arith.constant 0.000000e+00 : f32
    %296 = vector.shape_cast %147 : vector<162x1xi1> to vector<162x1xi1>
    %297 = vector.broadcast %296 : vector<162x1xi1> to vector<162x32xi1>
    %298 = vector.broadcast %cst_172 : f32 to vector<162x32xf32>
    %299 = arith.select %297, %295, %298 : vector<162x32xi1>, vector<162x32xf32>
    %300 = arith.truncf %299 : vector<162x32xf32> to vector<162x32xbf16>
    %301 = tpu.concatenate %300, %271 in 0 : vector<162x32xbf16>, vector<10x32xbf16> -> vector<172x32xbf16>
    %302 = vector.broadcast %269 : vector<1x32xf32> to vector<162x32xf32>
    %303 = arith.mulf %245, %302 : vector<162x32xf32>
    %304 = vector.broadcast %270 : vector<1x32xf32> to vector<162x32xf32>
    %305 = arith.addf %303, %304 : vector<162x32xf32>
    %cst_173 = arith.constant 0.000000e+00 : f32
    %306 = vector.shape_cast %190 : vector<162x1xi1> to vector<162x1xi1>
    %307 = vector.broadcast %306 : vector<162x1xi1> to vector<162x32xi1>
    %308 = vector.broadcast %cst_173 : f32 to vector<162x32xf32>
    %309 = arith.select %307, %305, %308 : vector<162x32xi1>, vector<162x32xf32>
    %310 = arith.truncf %309 : vector<162x32xf32> to vector<162x32xbf16>
    %311 = tpu.concatenate %310, %271 in 0 : vector<162x32xbf16>, vector<10x32xbf16> -> vector<172x32xbf16>
    %312 = vector.extract_strided_slice %281 {offsets = [0, 0], sizes = [162, 32], strides = [1, 1]} : vector<172x32xbf16> to vector<162x32xbf16>
    %313 = vector.extract_strided_slice %291 {offsets = [0, 0], sizes = [162, 32], strides = [1, 1]} : vector<172x32xbf16> to vector<162x32xbf16>
    %314 = vector.extract_strided_slice %281 {offsets = [1, 0], sizes = [162, 32], strides = [1, 1]} : vector<172x32xbf16> to vector<162x32xbf16>
    %315 = vector.extract_strided_slice %301 {offsets = [0, 0], sizes = [162, 32], strides = [1, 1]} : vector<172x32xbf16> to vector<162x32xbf16>
    %316 = vector.extract_strided_slice %311 {offsets = [0, 0], sizes = [162, 32], strides = [1, 1]} : vector<172x32xbf16> to vector<162x32xbf16>
    %317 = vector.extract_strided_slice %301 {offsets = [1, 0], sizes = [162, 32], strides = [1, 1]} : vector<172x32xbf16> to vector<162x32xbf16>
    %318 = vector.extract_strided_slice %281 {offsets = [9, 0], sizes = [162, 32], strides = [1, 1]} : vector<172x32xbf16> to vector<162x32xbf16>
    %319 = vector.extract_strided_slice %291 {offsets = [9, 0], sizes = [162, 32], strides = [1, 1]} : vector<172x32xbf16> to vector<162x32xbf16>
    %320 = vector.extract_strided_slice %281 {offsets = [10, 0], sizes = [162, 32], strides = [1, 1]} : vector<172x32xbf16> to vector<162x32xbf16>
    %321 = tpu.concatenate %312, %313, %314, %315, %316, %317, %318, %319, %320 in 1 : vector<162x32xbf16>, vector<162x32xbf16>, vector<162x32xbf16>, vector<162x32xbf16>, vector<162x32xbf16>, vector<162x32xbf16>, vector<162x32xbf16>, vector<162x32xbf16>, vector<162x32xbf16> -> vector<162x288xbf16>
    %cst_174 = arith.constant dense<0.000000e+00> : vector<162x32xf32>
    %322 = tpu.matmul %321, %17, %cst_174 {dimension_numbers = #tpu.dot_dimension_numbers<[1], [0], [0], [1], [0, 0, 1, 1], [], []>} : vector<162x288xbf16>, vector<288x32xbf16>, vector<162x32xf32> -> vector<162x32xf32>
    %323 = vector.broadcast %18 : vector<1x32xf32> to vector<162x32xf32>
    %324 = arith.addf %322, %323 : vector<162x32xf32>
    %cst_175 = arith.constant 0.000000e+00 : f32
    %325 = vector.broadcast %cst_175 : f32 to vector<162x32xf32>
    %326 = arith.maximumf %324, %325 : vector<162x32xf32>
    %c8_i32 = arith.constant 8 : i32
    %327 = vector.broadcast %c8_i32 : i32 to vector<162x1xi32>
    %328 = arith.cmpi slt, %14, %327 : vector<162x1xi32>
    %c8_i32_176 = arith.constant 8 : i32
    %329 = vector.broadcast %c8_i32_176 : i32 to vector<162x1xi32>
    %330 = arith.cmpi slt, %7, %329 : vector<162x1xi32>
    %331 = arith.andi %328, %330 : vector<162x1xi1>
    %cst_177 = arith.constant 0.000000e+00 : f32
    %332 = vector.shape_cast %331 : vector<162x1xi1> to vector<162x1xi1>
    %333 = vector.broadcast %332 : vector<162x1xi1> to vector<162x32xi1>
    %334 = vector.broadcast %cst_177 : f32 to vector<162x32xf32>
    %335 = arith.select %333, %326, %334 : vector<162x32xi1>, vector<162x32xf32>
    %cst_178 = arith.constant dense<0.000000e+00> : vector<32xf32>
    %336 = vector.multi_reduction <add>, %335, %cst_178 [0] : vector<162x32xf32> to vector<32xf32>
    %337 = vector.shape_cast %336 : vector<32xf32> to vector<1x32xf32>
    %cst_179 = arith.constant 7.812500e-03 : f32
    %338 = vector.broadcast %cst_179 : f32 to vector<1x32xf32>
    %339 = arith.mulf %337, %338 : vector<1x32xf32>
    %340 = vector.broadcast %339 : vector<1x32xf32> to vector<162x32xf32>
    %341 = arith.subf %326, %340 : vector<162x32xf32>
    %cst_180 = arith.constant 0.000000e+00 : f32
    %342 = vector.shape_cast %331 : vector<162x1xi1> to vector<162x1xi1>
    %343 = vector.broadcast %342 : vector<162x1xi1> to vector<162x32xi1>
    %344 = vector.broadcast %cst_180 : f32 to vector<162x32xf32>
    %345 = arith.select %343, %341, %344 : vector<162x32xi1>, vector<162x32xf32>
    %346 = arith.mulf %345, %345 : vector<162x32xf32>
    %cst_181 = arith.constant dense<0.000000e+00> : vector<32xf32>
    %347 = vector.multi_reduction <add>, %346, %cst_181 [0] : vector<162x32xf32> to vector<32xf32>
    %348 = vector.shape_cast %347 : vector<32xf32> to vector<1x32xf32>
    %cst_182 = arith.constant 7.812500e-03 : f32
    %349 = vector.broadcast %cst_182 : f32 to vector<1x32xf32>
    %350 = arith.mulf %348, %349 : vector<1x32xf32>
    %cst_183 = arith.constant 9.99999974E-6 : f32
    %351 = vector.broadcast %cst_183 : f32 to vector<1x32xf32>
    %352 = arith.addf %350, %351 : vector<1x32xf32>
    %353 = math.rsqrt %352 : vector<1x32xf32>
    %c0_184 = arith.constant 0 : index
    %c0_185 = arith.constant 0 : index
    %354 = vector.load %arg7[%c0_184, %c0_185] : memref<1x32xf32, #tpu.memory_space<vmem>>, vector<1x32xf32>
    %355 = arith.mulf %353, %354 : vector<1x32xf32>
    %356 = vector.broadcast %355 : vector<1x32xf32> to vector<162x32xf32>
    %357 = arith.mulf %345, %356 : vector<162x32xf32>
    %c0_186 = arith.constant 0 : index
    %c0_187 = arith.constant 0 : index
    %358 = vector.load %arg8[%c0_186, %c0_187] : memref<1x32xf32, #tpu.memory_space<vmem>>, vector<1x32xf32>
    %359 = vector.broadcast %358 : vector<1x32xf32> to vector<162x32xf32>
    %360 = arith.addf %357, %359 : vector<162x32xf32>
    %c0_188 = arith.constant 0 : index
    %c0_189 = arith.constant 0 : index
    %361 = vector.load %arg9[%c0_188, %c0_189] : memref<162x32xf32, #tpu.memory_space<vmem>>, vector<162x32xf32>
    tpu.vector_store %arg9[%c0_188, %c0_189], %360 {strides = array<i32>} : memref<162x32xf32, #tpu.memory_space<vmem>>, vector<162x32xf32>,
    return
  }
}

</mosaic_0001>

<bundles_post_ra>
// kernel: conv_block_forward.1
= control target key start
LH: loop header
LB: loop body
LE: loop exit
PB: predicated region body
PF: predicated region fallthrough
CT: control target
= control target key end

     0   :  { %s7925_s17 = smov 4   ;;  %vm17691_vm0 = vsmask.f32 7424  ;;  %s7926_s11 = smov 12   ;;  %vm17725_vm1 = vcmask 1046528   ;;  %vm1453_vm2 = vcmask 1041408   ;;  %s17523_s0 = inlined_call_operand.vmem [shape: bf16[4,182,4], index: 0, kind: input, shape index: {}]   ;;  %s17524_s1 = inlined_call_operand.vmem [shape: bf16[36,32], index: 1, kind: input, shape index: {}]   ;;  %s17525_s2 = inlined_call_operand.vmem [shape: f32[1,32], index: 2, kind: input, shape index: {}]   ;;  %s17526_s5 = inlined_call_operand.vmem [shape: bf16[288,32], index: 5, kind: input, shape index: {}]   ;;  %s17527_s3 = inlined_call_operand.vmem [shape: f32[1,32], index: 3, kind: input, shape index: {}]   ;;  %s17528_s4 = inlined_call_operand.vmem [shape: f32[1,32], index: 4, kind: input, shape index: {}]   ;;  %s17529_s6 = inlined_call_operand.vmem [shape: f32[1,32], index: 6, kind: input, shape index: {}]   ;;  %s17530_s7 = inlined_call_operand.vmem [shape: f32[1,32], index: 7, kind: input, shape index: {}]   ;;  %s17531_s8 = inlined_call_operand.vmem [shape: f32[1,32], index: 8, kind: input, shape index: {}]   ;;  %s17532_s9 = inlined_call_operand.vmem [shape: f32[162,32], index: 9, kind: output, shape index: {}]  }
   0x1   :  { %v7990_v0 = vld [vmem:[%s17523_s0 + $0x11c] sm:$0xf]  ;;  %v7090_v1 = vld [vmem:[%s17523_s0 + $0x120] sm:$0xf]  ;;  %v7087_v3 = vld [vmem:[%s17523_s0 + $0x114] sm:$0xf] }
   0x2   :  { %v7996_v2 = vcombine.low %v7990_v0, %v7090_v1  ;;  %v8004_v4 = vld [vmem:[%s17523_s0 + $0x118] sm:$0xf]  ;;  %v8014_v6 = vld [vmem:[%s17523_s0 + $0x4] sm:$0xfe]   ;;  %v8019_v7 = vld [vmem:[%s17523_s0 + $0xc] sm:$0xff]   ;;  %s7927_s12 = smov 8  }
   0x3   :  { %v8007_v5 = vcombine.low %v7087_v3, %v8004_v4  ;;  %v7109_v8 = vld [vmem:[%s17523_s0 + $0xbc] sm:$0xf]  ;;  %v7110_v9 = vld [vmem:[%s17523_s0 + $0xc0] sm:$0xf]  ;;  %v1846_v10 = vshrl.u32 %v8014_v6, 16  ;;  %v1848_v11 = vshll.u32 %v8014_v6, 16 }
   0x4   :  { %1792 = vrot.lane.b32.xlu1 %v7996_v2, %s7925_s17  ;;  %v1853_v12 = vshll.u32 %v8019_v7, 16  ;;  %v7111_v13 = vld [vmem:[%s17523_s0 + $0xc4] sm:$0xf]  ;;  %v8038_v14 = vld [vmem:[%s17523_s0 + $0x68] sm:$0xff]   ;;  %v7108_v15 = vld [vmem:[%s17523_s0 + $0xb8] sm:$0xf] }
   0x5   :  { %1790 = vrot.lane.b32.xlu0 %v8007_v5, %s7925_s17  ;;  %v8043_v16 = vcombine.low %v7110_v9, %v7111_v13  ;;  %v7242_v17 = vld [vmem:[%s17523_s0 + $0xb8] sm:$0xe]  ;;  %v8051_v18 = vld [vmem:[%s17523_s0 + $0x64] sm:$0xf]  ;;  %v1850_v19 = vrot.slane %v1848_v11, 1  ;;  %v750_v25 = vshll.u32 %v8038_v14, 16  ;;  %v8076_v34 = vcombine.low %v7108_v15, %v7109_v8 }
   0x6   :  { %v1855_v20 = vrot.slane %v1853_v12, 1  ;;  %v7154_v21 = vld [vmem:[%s17523_s0 + $0xbc] sm:$0xe]  ;;  %v7244_v22 = vcombine.low %v7242_v17, %v7109_v8  ;;  %v7151_v24 = vld [vmem:[%s17523_s0 + $0x60] sm:$0xe]  ;;  %v8087_v38 = vld [vmem:[%s17523_s0 + $0x14] sm:$0xff]  }
   0x7   :  { %v476_v23 = vshll.u32 %v8043_v16, 16  ;;  %v480_v26 = vshrl.u32 %v8043_v16, 16  ;;  %v1851_v27 = vor.u32 %v1850_v19, %v1846_v10  ;;  %v8063_v30 = vcombine.low %v7151_v24, %v8051_v18  ;;  %v7112_v31 = vld [vmem:[%s17523_s0 + $0xc8] sm:$0xf]  ;;  %v7113_v32 = vld [vmem:[%s17523_s0 + $0xcc] sm:$0xf] }
   0x8   :  { %v1816_v28 = vshrl.u32 %v7244_v22, 16  ;;  %v1818_v29 = vshll.u32 %v7244_v22, 16  ;;  %v8074_v33 = vld [vmem:[%s17523_s0 + $0x124] sm:$0xf]  ;;  %v8080_v36 = vrot.slane %v750_v25, 1  ;;  %v8082_v37 = vcombine.low %v7112_v31, %v7113_v32  ;;  %v8100_v44 = vld [vmem:[%s17523_s0 + $0x70] sm:$0xff]  }
   0x9   :  { %18408 = vst [vmem:[#allocation2_spill] sm:$0xff] %v8063_v30  ;;  %v8078_v35 = vrot.slane %v476_v23, 1  ;;  %v7157_v39 = vld [vmem:[%s17523_s0 + $0x118] sm:$0xe]  ;;  %v8093_v40 = vsel %vm17691_vm0, %v1851_v27, %v1855_v20  ;;  %v1955_v42 = vshrl.u32 %v8063_v30, 16  ;;  %v1957_v43 = vshll.u32 %v8063_v30, 16 }
   0xa   :  { %18409 = vst [vmem:[#allocation3_spill] sm:$0xff] %v8093_v40  ;;  %v1820_v41 = vrot.slane %v1818_v29, 1  ;;  %1932 = vrot.lane.b32.xlu1 %v8093_v40, %s7926_s11  ;;  %v8104_v45 = vcombine.low %v7154_v21, %v7110_v9  ;;  %v484_v47 = vshll.u32 %v8082_v37, 16  ;;  %v905_v48 = vrot.slane %v8014_v6, 1  ;;  %v8136_v3 = vld [vmem:[%s17523_s0 + $0xd0] sm:$0xf] }
   0xb   :  { %v482_v46 = vor.u32 %v480_v26, %v8078_v35  ;;  %v1959_v50 = vrot.slane %v1957_v43, 1  ;;  %v906_v51 = vrot.slane %v8019_v7, 1  ;;  %v1857_v52 = vshrl.u32 %v8019_v7, 16  ;;  %s7928_s15 = smov 16   ;;  %v7130_v23 = vld [vmem:[%s17523_s0 + $0x60] sm:$0xf] }
   0xc   :  { %18410 = vst [vmem:[#allocation4_spill] sm:$0xff] %v8104_v45  ;;  %v1821_v49 = vor.u32 %v1820_v41, %v1816_v28  ;;  %v8111_v53 = vrot.slane %v484_v47, 1  ;;  %v1861_v54 = vshll.u32 %v8087_v38, 16  ;;  %v754_v55 = vshrl.u32 %v8038_v14, 16  ;;  %s7929_s19 = smov 20   ;;  %s7930_s24 = smov 24  }
   0xd   :  { %v758_v56 = vshll.u32 %v8100_v44, 16  ;;  %v8117_v57 = vcombine.low %v7090_v1, %v8074_v33  ;;  %v1960_v59 = vor.u32 %v1959_v50, %v1955_v42  ;;  %v8122_v60 = vcombine.low %v7157_v39, %v7990_v0  ;;  %s7931_s25 = smov 28   ;;  %s7932_s28 = smov 32  }
   0xe   :  { %v1822_v58 = vsel %vm17691_vm0, %v1821_v49, %v8078_v35  ;;  %v8125_v61 = vcombine.low %v7111_v13, %v7112_v31  ;;  %v1859_v62 = vor.u32 %v1857_v52, %v1855_v20  ;;  %v8127_v63 = vrot.slane %v1861_v54, 1 }
   0xf   :  { %18411 = vst [vmem:[#allocation5_spill] sm:$0xff] %v8117_v57  ;;  %18412 = vst [vmem:[#allocation6_spill] sm:$0xff] %v8122_v60  ;;  %1823 = vrot.lane.b32.xlu0 %v1822_v58, %s7927_s12  ;;  %v8131_v1 = vsel %vm17691_vm0, %v1960_v59, %v8080_v36  ;;  %v8140_v6 = vsel %vm17691_vm0, %v482_v46, %v8111_v53  ;;  %v469_v8 = vshrl.u32 %v8076_v34, 16  ;;  %v471_v9 = vshll.u32 %v8076_v34, 16 }
  0x10   :  { %18413 = vst [vmem:[#allocation7_spill] sm:$0xff] %v8125_v61  ;;  %18414 = vst [vmem:[#allocation8_spill] sm:$0xff] %v8131_v1  ;;  %1962 = vrot.lane.b32.xlu1 %v8131_v1, %s7928_s15  ;;  %v8149_v10 = vsel %vm17725_vm1, %v905_v48, %v906_v51  ;;  %v756_v11 = vor.u32 %v754_v55, %v8080_v36  ;;  %v8152_v12 = vrot.slane %v758_v56, 1  ;;  %v2014_v13 = vshll.u32 %v8104_v45, 16 }
  0x11   :  { %v473_v15 = vrot.slane %v471_v9, 1  ;;  %v581_v17 = vshrl.u32 %v8007_v5, 16  ;;  %v583_v19 = vshll.u32 %v8007_v5, 16  ;;  %v588_v20 = vshll.u32 %v7996_v2, 16  ;;  %v8210_v9 = vld [vmem:[%s17523_s0 + $0x12c] sm:$0xf] }
  0x12   :  { %v8162_v21 = vsel %vm17691_vm0, %v1859_v62, %v8127_v63  ;;  %v2012_v22 = vshrl.u32 %v8104_v45, 16  ;;  %v2016_v25 = vrot.slane %v2014_v13, 1  ;;  %v2019_v26 = vshll.u32 %v8125_v61, 16 }
  0x13   :  { %1825 = vrot.lane.b32.xlu0 %v8140_v6, %s7927_s12  ;;  %18415 = vst [vmem:[#allocation9_spill] sm:$0xff] %v8162_v21  ;;  %v474_v24 = vor.u32 %v473_v15, %v469_v8  ;;  %v585_v27 = vrot.slane %v583_v19, 1  ;;  %v8170_v28 = vcombine.low %v7113_v32, %v8136_v3  ;;  %v8176_v29 = vsel %vm17691_vm0, %v756_v11, %v8152_v12  ;;  %v7092_v8 = vld [vmem:[%s17523_s0 + $0x128] sm:$0xf] }
  0x14   :  { %1989 = vrot.lane.b32.xlu1 %v8149_v10, %s7929_s19  ;;  %18417 = vst [vmem:[#allocation11_spill] sm:$0xff] %v8176_v29  ;;  %v1017_v31 = vshll.u32 %v8117_v57, 16  ;;  %v2123_v39 = vshll.u32 %v8122_v60, 16  ;;  %v8180_v42 = vrot.slane %v588_v20, 1  ;;  %v2121_v43 = vshrl.u32 %v8122_v60, 16 }
  0x15   :  { %18416 = vst [vmem:[#allocation10_spill] sm:$0xff] %v8170_v28  ;;  %v586_v41 = vor.u32 %v585_v27, %v581_v17  ;;  %v8184_v32 = vcombine.low %v7130_v23, %v8051_v18  ;;  %v479_v47 = vsel %vm17691_vm0, %v474_v24, %v8078_v35  ;;  %v2017_v48 = vor.u32 %v2016_v25, %v2012_v22 }
  0x16   :  { %v2125_v46 = vrot.slane %v2123_v39, 1  ;;  %v2021_v49 = vrot.slane %v2019_v26, 1  ;;  %v1019_v52 = vrot.slane %v1017_v31, 1  ;;  %v2023_v55 = vshrl.u32 %v8125_v61, 16 }
  0x17   :  { %18418 = vst [vmem:[#allocation12_spill] sm:$0xff] %v8184_v32  ;;  %1934 = vrot.lane.b32.xlu0 %v8162_v21, %s7926_s11  ;;  %v745_v50 = vshll.u32 %v8184_v32, 16  ;;  %v591_v54 = vsel %vm17691_vm0, %v586_v41, %v8180_v42  ;;  %v2027_v56 = vshll.u32 %v8170_v28, 16  ;;  %v908_v35 = vrot.slane %v8087_v38, 1 }
  0x18   :  { %1964 = vrot.lane.b32.xlu1 %v8176_v29, %s7928_s15  ;;  %v2126_v18 = vor.u32 %v2125_v46, %v2121_v43  ;;  %v8200_v58 = vsel %vm17691_vm0, %v2017_v48, %v2021_v49  ;;  %v743_v59 = vshrl.u32 %v8184_v32, 16  ;;  %v8214_v11 = vcombine.low %v8004_v4, %v7990_v0  ;;  %v7115_v46 = vld [vmem:[%s17523_s0 + $0xd4] sm:$0xf] }
  0x19   :  { %18419 = vst [vmem:[#allocation13_spill] sm:$0xff] %v8200_v58  ;;  %v747_v62 = vrot.slane %v745_v50, 1  ;;  %v2025_v15 = vor.u32 %v2023_v55, %v2021_v49  ;;  %v8219_v17 = vrot.slane %v2027_v56, 1  ;;  %v8228_v19 = vsel %vm17725_vm1, %v906_v51, %v908_v35 }
  0x1a   :  { %18420 = vst [vmem:[#allocation14_spill] sm:$0xff] %v8214_v11  ;;  %v8217_v13 = vsel %vm17691_vm0, %v2126_v18, %v1019_v52  ;;  %v8231_v0 = vcombine.low %v7092_v8, %v8210_v9  ;;  %v1012_v22 = vshll.u32 %v8214_v11, 16  ;;  %v1135_v7 = vrot.slane %v8104_v45, 1  ;;  %v8281_v18 = vld [vmem:[%s17523_s0 + $0x1c] sm:$0xff]  }
  0x1b   :  { %555 = vrot.lane.b32.xlu0 %v479_v47, %s7925_s17  ;;  %18421 = vst [vmem:[#allocation15_spill] sm:$0xff] %v8217_v13  ;;  %v748_v20 = vor.u32 %v747_v62, %v743_v59  ;;  %v8237_v4 = vsel %vm17691_vm0, %v2025_v15, %v8219_v17  ;;  %v1136_v51 = vrot.slane %v8125_v61, 1  ;;  %v1021_v24 = vshrl.u32 %v8117_v57, 16 }
  0x1c   :  { %667 = vrot.lane.b32.xlu1 %v591_v54, %s7927_s12  ;;  %18422 = vst [vmem:[#allocation16_spill] sm:$0xff] %v8231_v0  ;;  %18423 = vst [vmem:[#allocation17_spill] sm:$0xff] %v8237_v4  ;;  %v1025_v25 = vshll.u32 %v8231_v0, 16  ;;  %v951_v26 = vrot.slane %v8063_v30, 1  ;;  %v952_v27 = vrot.slane %v8038_v14, 1  ;;  %v1010_v31 = vshrl.u32 %v8214_v11, 16 }
  0x1d   :  { %v753_v23 = vsel %vm17691_vm0, %v748_v20, %v8080_v36  ;;  %v1014_v39 = vrot.slane %v1012_v22, 1  ;;  %v1137_v41 = vsel %vm17725_vm1, %v1135_v7, %v1136_v51  ;;  %v1023_v43 = vor.u32 %v1021_v24, %v1019_v52  ;;  %v8302_v20 = vld [vmem:[%s17523_s0 + $0x78] sm:$0xff]  }
  0x1e   :  { %v8255_v36 = vrot.slane %v1025_v25, 1  ;;  %v953_v47 = vsel %vm17725_vm1, %v951_v26, %v952_v27  ;;  %v1138_v50 = vrot.slane %v8170_v28, 1  ;;  %v8272_v54 = vcombine.low %v8136_v3, %v7115_v46 }
  0x1f   :  { %2098 = vrot.lane.b32.xlu0 %v8200_v58, %s7930_s24  ;;  %v1015_v48 = vor.u32 %v1014_v39, %v1010_v31  ;;  %v488_v3 = vshrl.u32 %v8082_v37, 16  ;;  %v1182_v59 = vrot.slane %v8117_v57, 1  ;;  %v8296_v62 = vcombine.low %v8074_v33, %v7092_v8  ;;  %v7116_v39 = vld [vmem:[%s17523_s0 + $0xd8] sm:$0xf] }
  0x20   :  { %2128 = vrot.lane.b32.xlu1 %v8217_v13, %s7931_s25  ;;  %v8268_v49 = vsel %vm17691_vm0, %v1023_v43, %v8255_v36  ;;  %v8286_v55 = vsel %vm17725_vm1, %v1136_v51, %v1138_v50  ;;  %v492_v56 = vshll.u32 %v8272_v54, 16  ;;  %v1865_v15 = vshrl.u32 %v8087_v38, 16  ;;  %v8398_v38 = vld [vmem:[%s17524_s1 + $0x8] sm:$0xff]  }
  0x21   :  { %18424 = vst [vmem:[#allocation18_spill] sm:$0xff] %v8268_v49  ;;  %v490_v22 = vor.u32 %v488_v3, %v8111_v53  ;;  %v1869_v51 = vshll.u32 %v8281_v18, 16  ;;  %v592_v8 = vshrl.u32 %v7996_v2, 16  ;;  %v762_v24 = vshrl.u32 %v8100_v44, 16 }
  0x22   :  { %v8305_v7 = vrot.slane %v492_v56, 1  ;;  %v1867_v25 = vor.u32 %v1865_v15, %v8127_v63  ;;  %v766_v31 = vshll.u32 %v8302_v20, 16  ;;  %v8337_v63 = vld [vmem:[%s17523_s0 + $0x130] sm:$0xf]  ;;  %vm17651_vm3 = vmmov 0  }
  0x23   :  { %1991 = vrot.lane.b32.xlu0 %v8228_v19, %s7929_s19  ;;  %v8322_v26 = vrot.slane %v1869_v51, 1  ;;  %v7811_v56 = vld [vmem:[%s17524_s1 + $0x10] ss:$0 sps:$4 sm:$0x33]   ;;  %v1029_v51 = vshrl.u32 %v8231_v0, 16  ;;  %vm17688_vm4 = vcmask 31744  }
  0x24   :  { %2100 = vrot.lane.b32.xlu1 %v8237_v4, %s7930_s24  ;;  %v8319_v53 = vsel %vm17691_vm0, %v490_v22, %v8305_v7  ;;  %v8346_v3 = vrot.slane %v766_v31, 1  ;;  %v8389_v31 = vsel %vm1453_vm2, %v7811_v56, 0  ;;  %vm17687_vm5 = vcmask 64512  }
  0x25   :  { %vm17634_vm6 = vcmask 97280   ;;  %vm17636_vm7 = vcmask 130048   ;;  %vm17635_vm8 = vcmask 162816   ;;  %vm17640_vm9 = vcmask 195584  }
  0x26   :  { %vm17638_vm10 = vcmask 228352   ;;  %vm17727_vm11 = vcmask 261120   ;;  %vm17726_vm12 = vcmask 293888  }
  0x27   :  { %829 = vrot.lane.b32.xlu0 %v753_v23, %s7926_s11  ;;  %v596_v23 = vshll.u32 %v8296_v62, 16 }
  0x28   :  { %926 = vrot.lane.b32.xlu1 %v8149_v10, %s7928_s15  ;;  %v1020_v10 = vsel %vm17691_vm0, %v1015_v48, %v1019_v52  ;;  %v1181_v52 = vrot.slane %v8122_v60, 1  ;;  %v8343_v48 = vsel %vm17691_vm0, %v1867_v25, %v8322_v26  ;;  %v17533_v25 = vmov 0.0  }
  0x29   :  { %v8330_v43 = vrot.slane %v596_v23, 1  ;;  %18426 = vst [vmem:[#allocation20_spill] sm:$0xff] %v8343_v48  ;;  %7559 = vmatprep.subr.bf16.mxu1 %v17533_v25  ;;  %7509 = vmatprep.subr.bf16.mxu0 %v17533_v25 }
  0x2a   :  { %v1183_v33 = vsel %vm17725_vm1, %v1181_v52, %v1182_v59  ;;  %v2031_v52 = vshrl.u32 %v8170_v28, 16  ;;  %7560 = vmatpush3.bf16.msra.mxu1 %v8389_v31  ;;  %7510 = vmatpush3.bf16.msra.mxu0 %v8389_v31 }
  0x2b   :  { %2155 = vrot.lane.b32.xlu0 %v1137_v41, %s7932_s28  ;;  %7561 = vmatprep.subr.bf16.mxu1 %v17533_v25 }
  0x2c   :  { %972 = vrot.lane.b32.xlu1 %v953_v47, %s7929_s19  ;;  %v8339_v47 = vcombine.low %v7115_v46, %v7116_v39  ;;  %7511 = vmatprep.subr.bf16.mxu0 %v17533_v25 }
  0x2d   :  { %7565 = vmatprep.mubr.msk.bf16.mxu1 %vm17651_vm3, %v17533_v25  ;;  %7515 = vmatprep.mubr.msk.bf16.mxu0 %vm17651_vm3, %v17533_v25 }
  0x2e   :  { %18425 = vst [vmem:[#allocation19_spill] sm:$0xff] %v8339_v47  ;;  %v2035_v15 = vshll.u32 %v8339_v47, 16  ;;  %7562 = vmatpush3.bf16.msra.mxu1 %v8398_v38  ;;  %7512 = vmatpush3.bf16.msra.mxu0 %v8398_v38 }
  0x2f   :  { %2130 = vrot.lane.b32.xlu0 %v8268_v49, %s7931_s25  ;;  %7563 = vmatprep.subr.bf16.mxu1 %v17533_v25 }
  0x30   :  { %1096 = vrot.lane.b32.xlu1 %v1020_v10, %s7930_s24  ;;  %v764_v10 = vor.u32 %v762_v24, %v8152_v12  ;;  %v17537_v12 = vrot.slane %v8281_v18, 1  ;;  %v8385_v23 = vrot.slane %v2035_v15, 1  ;;  %7513 = vmatprep.subr.bf16.mxu0 %v17533_v25 }
  0x33   :  { %2157 = vrot.lane.b32.xlu0 %v8286_v55, %s7932_s28 }
  0x34   :  { %1156 = vrot.lane.b32.xlu1 %v1137_v41, %s7931_s25  ;;  %v594_v41 = vor.u32 %v592_v8, %v8180_v42  ;;  %v8353_v42 = vld [vmem:[%s17523_s0 + $0x134] sm:$0xf]  ;;  %v2033_v8 = vor.u32 %v2031_v52, %v8219_v17  ;;  %v17535_v52 = vrot.slane %v8339_v47, 1 }
  0x35   :  { %v8371_v22 = vcombine.low %v8337_v63, %v8353_v42 }
  0x36   :  { %v599_v46 = vsel %vm17691_vm0, %v594_v41, %v8330_v43  ;;  %v8408_v17 = vsel %vm17691_vm0, %v2033_v8, %v8385_v23  ;;  %v1031_v41 = vor.u32 %v1029_v51, %v8255_v36  ;;  %v8426_v36 = vld [vmem:[%s17524_s1] sm:$0xff]   ;;  %v8457_v14 = vsel %vm17725_vm1, %v1138_v50, %v17535_v52 }
  0x37   :  { %1794 = vrot.lane.b32.xlu0 %v8296_v62, %s7925_s17  ;;  %18428 = vst [vmem:[#allocation22_spill] sm:$0xff] %v8371_v22  ;;  %v1033_v24 = vshll.u32 %v8371_v22, 16  ;;  %18429 = vst [vmem:[#allocation23_spill] sm:$0xff] %v8408_v17  ;;  %7564 = vmatpush3.bf16.msra.mxu1 %v8426_v36  ;;  %v8464_v51 = vld [vmem:[%s17523_s0 + $0x24] sm:$0xff]   ;;  %v17538_v8 = vrot.slane %v8231_v0, 1  ;;  %v8473_v50 = vcombine.low %v8210_v9, %v8337_v63 }
  0x38   :  { %1202 = vrot.lane.b32.xlu1 %v1183_v33, %s7932_s28  ;;  %v8382_v33 = vsel %vm17725_vm1, %v908_v35, %v17537_v12  ;;  %v17536_v35 = vrot.slane %v8100_v44, 1  ;;  %7514 = vmatpush3.bf16.msra.mxu0 %v8426_v36  ;;  %v8483_v52 = vld [vmem:[%s17523_s0 + $0x80] sm:$0xff]  }
  0x39   :  { %7659 = vmatprep.subr.bf16.mxu1 %v17533_v25  ;;  %7609 = vmatprep.subr.bf16.mxu0 %v17533_v25  ;;  %v1877_v25 = vshll.u32 %v8464_v51, 16  ;;  %v1185_v9 = vsel %vm17725_vm1, %v1182_v59, %v17538_v8  ;;  %v604_v63 = vshll.u32 %v8473_v50, 16  ;;  %v774_v12 = vshll.u32 %v8483_v52, 16  ;;  %v7118_v59 = vld [vmem:[%s17523_s0 + $0xe0] sm:$0xf] }
  0x3a   :  { %v955_v56 = vsel %vm17725_vm1, %v952_v27, %v17536_v35  ;;  %v496_v27 = vshrl.u32 %v8272_v54, 16  ;;  %v17571_v4 = vrot.slane %v8483_v52, 1 }
  0x3b   :  { %1827 = vrot.lane.b32.xlu0 %v8319_v53, %s7927_s12  ;;  %v8502_v35 = vrot.slane %v1877_v25, 1  ;;  %v8510_v32 = vrot.slane %v604_v63, 1 }
  0x3c   :  { %557 = vrot.lane.b32.xlu1 %v8140_v6, %s7925_s17  ;;  %v8365_v6 = vsel %vm17691_vm0, %v764_v10, %v8346_v3  ;;  %v8411_v10 = vrot.slane %v1033_v24, 1  ;;  %v498_v24 = vor.u32 %v496_v27, %v8305_v7  ;;  %v600_v7 = vshrl.u32 %v8296_v62, 16 }
  0x3d   :  { %18427 = vst [vmem:[#allocation21_spill] sm:$0xff] %v8365_v6  ;;  %v770_v27 = vshrl.u32 %v8302_v20, 16 }
  0x3e   :  { %v602_v8 = vor.u32 %v600_v7, %v8330_v43  ;;  %v7096_v43 = vld [vmem:[%s17523_s0 + $0x138] sm:$0xf] }
  0x3f   :  { %1936 = vrot.lane.b32.xlu0 %v8343_v48, %s7926_s11  ;;  %v772_v25 = vor.u32 %v770_v27, %v8346_v3  ;;  %v17543_v3 = vrot.slane %v8464_v51, 1 }
  0x40   :  { %669 = vrot.lane.b32.xlu1 %v599_v46, %s7927_s12  ;;  %v7117_v46 = vld [vmem:[%s17523_s0 + $0xdc] sm:$0xf] }
  0x41   :  { %v8443_v15 = vcombine.low %v7116_v39, %v7117_v46 }
  0x43   :  { %1966 = vrot.lane.b32.xlu0 %v8365_v6, %s7928_s15  ;;  %v500_v39 = vshll.u32 %v8443_v15, 16 }
  0x44   :  { %831 = vrot.lane.b32.xlu1 %v8176_v29, %s7926_s11 }
  0x47   :  { %1993 = vrot.lane.b32.xlu0 %v8382_v33, %s7929_s19 }
  0x48   :  { %928 = vrot.lane.b32.xlu1 %v8228_v19, %s7928_s15  ;;  %v8440_v19 = vsel %vm17691_vm0, %v1031_v41, %v8411_v10  ;;  %v8476_v41 = vrot.slane %v500_v39, 1 }
  0x49   :  { %18430 = vst [vmem:[#allocation24_spill] sm:$0xff] %v8440_v19 }
  0x4a   :  { %v8499_v39 = vsel %vm17691_vm0, %v498_v24, %v8476_v41  ;;  %v8514_v24 = vcombine.low %v7117_v46, %v7118_v59  ;;  %v8531_v46 = vld [vmem:[%s17523_s0 + $0x13c] sm:$0xf] }
  0x4b   :  { %2102 = vrot.lane.b32.xlu0 %v8408_v17, %s7930_s24  ;;  %v8545_v63 = vcombine.low %v7096_v43, %v8531_v46 }
  0x4c   :  { %974 = vrot.lane.b32.xlu1 %v955_v56, %s7929_s19  ;;  %v1873_v56 = vshrl.u32 %v8281_v18, 16  ;;  %18431 = vst [vmem:[#allocation25_spill] sm:$0xff] %v8514_v24  ;;  %v2043_v7 = vshll.u32 %v8514_v24, 16 }
  0x4d   :  { %v1041_v28 = vshll.u32 %v8545_v63, 16  ;;  %v1045_v30 = vshrl.u32 %v8545_v63, 16 }
  0x4f   :  { %2132 = vrot.lane.b32.xlu0 %v8440_v19, %s7931_s25 }
  0x50   :  { %1098 = vrot.lane.b32.xlu1 %v8268_v49, %s7930_s24 }
  0x53   :  { %2159 = vrot.lane.b32.xlu0 %v8457_v14, %s7932_s28 }
  0x54   :  { %1158 = vrot.lane.b32.xlu1 %v8286_v55, %s7931_s25  ;;  %v1875_v55 = vor.u32 %v1873_v56, %v8322_v26  ;;  %v8521_v56 = vrot.slane %v774_v12, 1  ;;  %v2039_v12 = vshrl.u32 %v8339_v47, 16 }
  0x56   :  { %v8518_v26 = vsel %vm17691_vm0, %v1875_v55, %v8502_v35  ;;  %v2041_v55 = vor.u32 %v2039_v12, %v8385_v23  ;;  %v8572_v12 = vrot.slane %v1041_v28, 1 }
  0x57   :  { %1796 = vrot.lane.b32.xlu0 %v8473_v50, %s7925_s17  ;;  %18432 = vst [vmem:[#allocation26_spill] sm:$0xff] %v8518_v26 }
  0x58   :  { %1204 = vrot.lane.b32.xlu1 %v1185_v9, %s7932_s28  ;;  %v607_v9 = vsel %vm17691_vm0, %v602_v8, %v8510_v32  ;;  %v18434_v8 = vrot.slane %v8281_v18, 1 }
  0x5a   :  { %v8555_v27 = vsel %vm17725_vm1, %v18434_v8, %v17543_v3  ;;  %v18436_v8 = vrot.slane %v8100_v44, 1  ;;  %v18438_v44 = vrot.slane %v8339_v47, 1 }
  0x5b   :  { %1829 = vrot.lane.b32.xlu0 %v8499_v39, %s7927_s12 }
  0x5c   :  { %559 = vrot.lane.b32.xlu1 %v8319_v53, %s7925_s17  ;;  %v8540_v53 = vsel %vm17691_vm0, %v772_v25, %v8521_v56  ;;  %v8558_v25 = vrot.slane %v2043_v7, 1  ;;  %v7119_v7 = vld [vmem:[%s17523_s0 + $0xe4] sm:$0xf] }
  0x5d   :  { %18433 = vst [vmem:[#allocation27_spill] sm:$0xff] %v8540_v53 }
  0x5e   :  { %v8569_v18 = vsel %vm17691_vm0, %v2041_v55, %v8558_v25  ;;  %v504_v55 = vshrl.u32 %v8443_v15, 16 }
  0x5f   :  { %1938 = vrot.lane.b32.xlu0 %v8518_v26, %s7926_s11  ;;  %v1037_v26 = vshrl.u32 %v8371_v22, 16  ;;  %18435 = vst [vmem:[#allocation28_spill] sm:$0xff] %v8569_v18 }
  0x60   :  { %671 = vrot.lane.b32.xlu1 %v607_v9, %s7927_s12  ;;  %v17545_v9 = vrot.slane %v8302_v20, 1 }
  0x61   :  { %v1039_v23 = vor.u32 %v1037_v26, %v8411_v10  ;;  %v17544_v10 = vrot.slane %v8514_v24, 1 }
  0x62   :  { %v957_v3 = vsel %vm17725_vm1, %v18436_v8, %v17545_v9  ;;  %v8616_v8 = vcombine.low %v8353_v42, %v7096_v43  ;;  %v1881_v9 = vshrl.u32 %v8464_v51, 16  ;;  %v18439_v42 = vrot.slane %v8231_v0, 1 }
  0x63   :  { %1968 = vrot.lane.b32.xlu0 %v8540_v53, %s7928_s15  ;;  %v8588_v28 = vsel %vm17691_vm0, %v1039_v23, %v8572_v12  ;;  %v8601_v26 = vsel %vm17725_vm1, %v18438_v44, %v17544_v10  ;;  %v506_v44 = vor.u32 %v504_v55, %v8476_v41  ;;  %v608_v43 = vshrl.u32 %v8473_v50, 16 }
  0x64   :  { %833 = vrot.lane.b32.xlu1 %v8365_v6, %s7926_s11  ;;  %18437 = vst [vmem:[#allocation29_spill] sm:$0xff] %v8588_v28  ;;  %v612_v55 = vshll.u32 %v8616_v8, 16  ;;  %v1883_v17 = vor.u32 %v1881_v9, %v8502_v35 }
  0x65   :  { %v610_v6 = vor.u32 %v608_v43, %v8510_v32 }
  0x66   :  { %v8655_v48 = vrot.slane %v612_v55, 1 }
  0x67   :  { %1995 = vrot.lane.b32.xlu0 %v8555_v27, %s7929_s19 }
  0x68   :  { %930 = vrot.lane.b32.xlu1 %v8382_v33, %s7928_s15  ;;  %v8591_v33 = vcombine.low %v7118_v59, %v7119_v7  ;;  %v8608_v59 = vld [vmem:[%s17523_s0 + $0x2c] sm:$0xff]  }
  0x69   :  { %v1885_v47 = vshll.u32 %v8608_v59, 16  ;;  %v1889_v58 = vshrl.u32 %v8608_v59, 16 }
  0x6a   :  { %v508_v23 = vshll.u32 %v8591_v33, 16 }
  0x6b   :  { %2104 = vrot.lane.b32.xlu0 %v8569_v18, %s7930_s24  ;;  %v8626_v18 = vld [vmem:[%s17523_s0 + $0x88] sm:$0xff]   ;;  %v8647_v0 = vrot.slane %v1885_v47, 1 }
  0x6c   :  { %976 = vrot.lane.b32.xlu1 %v957_v3, %s7929_s19  ;;  %v17554_v3 = vrot.slane %v8371_v22, 1  ;;  %v8619_v10 = vrot.slane %v508_v23, 1 }
  0x6d   :  { %v8663_v47 = vsel %vm17691_vm0, %v1883_v17, %v8647_v0  ;;  %v615_v17 = vsel %vm17691_vm0, %v610_v6, %v8655_v48 }
  0x6e   :  { %v1187_v41 = vsel %vm17725_vm1, %v18439_v42, %v17554_v3  ;;  %v782_v42 = vshll.u32 %v8626_v18, 16  ;;  %v7120_v3 = vld [vmem:[%s17523_s0 + $0xe8] sm:$0xf]  ;;  %18441 = vst [vmem:[#allocation31_spill] sm:$0xff] %v8663_v47 }
  0x6f   :  { %2134 = vrot.lane.b32.xlu0 %v8588_v28, %s7931_s25  ;;  %v8659_v60 = vcombine.low %v7119_v7, %v7120_v3  ;;  %v8678_v7 = vld [vmem:[%s17523_s0 + $0x144] sm:$0xf] }
  0x70   :  { %1100 = vrot.lane.b32.xlu1 %v8440_v19, %s7930_s24  ;;  %v778_v19 = vshrl.u32 %v8483_v52, 16  ;;  %v8666_v9 = vrot.slane %v782_v42, 1 }
  0x71   :  { %18440 = vst [vmem:[#allocation30_spill] sm:$0xff] %v8659_v60  ;;  %v2051_v43 = vshll.u32 %v8659_v60, 16 }
  0x72   :  { %v780_v35 = vor.u32 %v778_v19, %v8521_v56  ;;  %v17567_v19 = vrot.slane %v8608_v59, 1  ;;  %v2047_v56 = vshrl.u32 %v8514_v24, 16 }
  0x73   :  { %2161 = vrot.lane.b32.xlu0 %v8601_v26, %s7932_s28  ;;  %v8707_v45 = vrot.slane %v2051_v43, 1 }
  0x74   :  { %1160 = vrot.lane.b32.xlu1 %v8457_v14, %s7931_s25  ;;  %v8644_v14 = vsel %vm17691_vm0, %v506_v44, %v8619_v10  ;;  %v2049_v61 = vor.u32 %v2047_v56, %v8558_v25  ;;  %v1047_v56 = vor.u32 %v1045_v30, %v8572_v12 }
  0x76   :  { %v8639_v23 = vpop.permute.xlu1 %1792  ;;  %v8720_v25 = vsel %vm17691_vm0, %v2049_v61, %v8707_v45 }
  0x77   :  { %1798 = vrot.lane.b32.xlu0 %v8616_v8, %s7925_s17  ;;  %v1791_v44 = vpop.permute.xlu0 %1790  ;;  %18444 = vst [vmem:[#allocation33_spill] sm:$0xff] %v8720_v25 }
  0x78   :  { %1206 = vrot.lane.b32.xlu1 %v1187_v41, %s7932_s28  ;;  %v7098_v41 = vld [vmem:[%s17523_s0 + $0x140] sm:$0xf] }
  0x79   :  { %v8692_v55 = vcombine.low %v7098_v41, %v8678_v7 }
  0x7b   :  { %1831 = vrot.lane.b32.xlu0 %v8644_v14, %s7927_s12  ;;  %18442 = vst [vmem:[#allocation32_spill] sm:$0xff] %v8692_v55 }
  0x7c   :  { %561 = vrot.lane.b32.xlu1 %v8499_v39, %s7925_s17  ;;  %v8670_v32 = vpop.permute.xlu1 %1932  ;;  %v8687_v39 = vsel %vm17691_vm0, %v780_v35, %v8666_v9  ;;  %v18443_v35 = vrot.slane %v8464_v51, 1 }
  0x7f   :  { %1940 = vrot.lane.b32.xlu0 %v8663_v47, %s7926_s11  ;;  %v8704_v47 = vsel %vm17725_vm1, %v18443_v35, %v17567_v19  ;;  %v7121_v19 = vld [vmem:[%s17523_s0 + $0xec] sm:$0xf] }
  0x80   :  { %673 = vrot.lane.b32.xlu1 %v615_v17, %s7927_s12  ;;  %v1049_v17 = vshll.u32 %v8692_v55, 16 }
  0x81   :  { %v1824_v42 = vpop.permute.xlu0 %1823 }
  0x82   :  { %v8697_v6 = vpop.permute.xlu1 %1962  ;;  %v8723_v43 = vrot.slane %v1049_v17, 1  ;;  %v8746_v17 = vcombine.low %v7120_v3, %v7121_v19  ;;  %v512_v3 = vshrl.u32 %v8591_v33, 16 }
  0x83   :  { %1970 = vrot.lane.b32.xlu0 %v8687_v39, %s7928_s15 }
  0x84   :  { %835 = vrot.lane.b32.xlu1 %v8540_v53, %s7926_s11  ;;  %v18445_v53 = vrot.slane %v8302_v20, 1  ;;  %v8743_v12 = vsel %vm17691_vm0, %v1047_v56, %v8723_v43  ;;  %v514_v21 = vor.u32 %v512_v3, %v8619_v10 }
  0x85   :  { %v8711_v49 = vpop.permute.xlu0 %1825 }
  0x86   :  { %v1990_v51 = vpop.permute.xlu1 %1989  ;;  %v959_v61 = vsel %vm17725_vm1, %v18445_v53, %v17571_v4  ;;  %v18446_v53 = vrot.slane %v8514_v24, 1  ;;  %v516_v4 = vshll.u32 %v8746_v17, 16  ;;  %v8777_v24 = vcombine.low %v8531_v46, %v7098_v41 }
  0x87   :  { %1997 = vrot.lane.b32.xlu0 %v8704_v47, %s7929_s19  ;;  %v18447_v46 = vrot.slane %v8545_v63, 1  ;;  %v18448_v41 = vrot.slane %v8371_v22, 1  ;;  %v8807_v22 = vld [vmem:[%s17523_s0 + $0xf0] sm:$0xf] }
  0x88   :  { %932 = vrot.lane.b32.xlu1 %v8555_v27, %s7928_s15  ;;  %v17575_v27 = vrot.slane %v8659_v60, 1  ;;  %v620_v10 = vshll.u32 %v8777_v24, 16 }
  0x89   :  { %v8725_v35 = vpop.permute.xlu0 %1934 }
  0x8a   :  { %v8739_v30 = vpop.permute.xlu1 %1964  ;;  %v8760_v56 = vsel %vm17725_vm1, %v18446_v53, %v17575_v27  ;;  %v2178_v53 = vsel %vm17688_vm4, %v8076_v34, %v1791_v44  ;;  %v8788_v34 = vld [vmem:[%s17523_s0 + $0x90] sm:$0xff]   ;;  %v8821_v1 = vrot.slane %v620_v10, 1 }
  0x8b   :  { %2106 = vrot.lane.b32.xlu0 %v8720_v25, %s7930_s24  ;;  %v2200_v29 = vsel %vm17687_vm5, %v2178_v53, %v1824_v42  ;;  %v1189_v42 = vsel %vm17725_vm1, %v18448_v41, %v18447_v46 }
  0x8c   :  { %978 = vrot.lane.b32.xlu1 %v959_v61, %s7929_s19  ;;  %v8767_v61 = vld [vmem:[%s17523_s0 + $0x34] sm:$0xff]   ;;  %v2222_v3 = vsel %vm17634_vm6, %v2200_v29, %v8670_v32  ;;  %v786_v29 = vshrl.u32 %v8626_v18, 16  ;;  %v790_v32 = vshll.u32 %v8788_v34, 16 }
  0x8d   :  { %v8748_v57 = vpop.permute.xlu0 %555  ;;  %v1893_v13 = vshll.u32 %v8767_v61, 16 }
  0x8e   :  { %v8753_v20 = vpop.permute.xlu1 %667 }
  0x8f   :  { %2136 = vrot.lane.b32.xlu0 %v8743_v12, %s7931_s25  ;;  %v8813_v41 = vrot.slane %v1893_v13, 1  ;;  %v8825_v13 = vcombine.low %v7121_v19, %v8807_v22  ;;  %v8843_v19 = vld [vmem:[%s17523_s0 + $0x148] sm:$0xf] }
  0x90   :  { %1102 = vrot.lane.b32.xlu1 %v8588_v28, %s7930_s24  ;;  %v8782_v28 = vrot.slane %v516_v4, 1  ;;  %v616_v4 = vshrl.u32 %v8616_v8, 16 }
  0x91   :  { %v2099_v25 = vpop.permute.xlu0 %2098  ;;  %18449 = vst [vmem:[#allocation34_spill] sm:$0xff] %v8825_v13 }
  0x92   :  { %v2129_v27 = vpop.permute.xlu1 %2128  ;;  %v8811_v46 = vsel %vm17691_vm0, %v514_v21, %v8782_v28 }
  0x93   :  { %2163 = vrot.lane.b32.xlu0 %v8760_v56, %s7932_s28 }
  0x94   :  { %1162 = vrot.lane.b32.xlu1 %v8601_v26, %s7931_s25  ;;  %v1891_v26 = vor.u32 %v1889_v58, %v8647_v0  ;;  %v2244_v58 = vsel %vm17636_vm7, %v2222_v3, %v8697_v6  ;;  %v618_v0 = vor.u32 %v616_v4, %v8655_v48  ;;  %v788_v48 = vor.u32 %v786_v29, %v8666_v9 }
  0x95   :  { %v1992_v44 = vpop.permute.xlu0 %1991  ;;  %v2266_v21 = vsel %vm17635_vm8, %v2244_v58, %v1990_v51  ;;  %v8835_v4 = vrot.slane %v790_v32, 1  ;;  %v2055_v29 = vshrl.u32 %v8659_v60, 16 }
  0x96   :  { %v2101_v53 = vpop.permute.xlu1 %2100  ;;  %v8832_v6 = vsel %vm17691_vm0, %v1891_v26, %v8813_v41  ;;  %v623_v3 = vsel %vm17691_vm0, %v618_v0, %v8821_v1  ;;  %v17594_v26 = vrot.slane %v8767_v61, 1  ;;  %v2059_v0 = vshll.u32 %v8825_v13, 16 }
  0x97   :  { %1800 = vrot.lane.b32.xlu0 %v8777_v24, %s7925_s17  ;;  %18450 = vst [vmem:[#allocation35_spill] sm:$0xff] %v8832_v6  ;;  %v8864_v58 = vsel %vm17691_vm0, %v788_v48, %v8835_v4 }
  0x98   :  { %1208 = vrot.lane.b32.xlu1 %v1189_v42, %s7932_s28  ;;  %v2288_v42 = vsel %vm17640_vm9, %v2266_v21, %v2099_v25  ;;  %v8848_v25 = vld [vmem:[%s17523_s0 + $0x14c] sm:$0xf]  ;;  %18451 = vst [vmem:[#allocation36_spill] sm:$0xff] %v8864_v58 }
  0x99   :  { %v830_v11 = vpop.permute.xlu0 %829  ;;  %v2310_v51 = vsel %vm17638_vm10, %v2288_v42, %v2129_v27  ;;  %v2180_v27 = vsel %vm17688_vm4, %v8043_v16, %v8639_v23  ;;  %v8869_v16 = vcombine.low %v8843_v19, %v8848_v25 }
  0x9a   :  { %v927_v40 = vpop.permute.xlu1 %926  ;;  %v2202_v32 = vsel %vm17687_vm5, %v2180_v27, %v8711_v49 }
  0x9b   :  { %1833 = vrot.lane.b32.xlu0 %v8811_v46, %s7927_s12  ;;  %18452 = vst [vmem:[#allocation37_spill] sm:$0xff] %v8869_v16  ;;  %v2224_v23 = vsel %vm17634_vm6, %v2202_v32, %v8725_v35  ;;  %v1053_v35 = vshrl.u32 %v8692_v55, 16  ;;  %v2057_v32 = vor.u32 %v2055_v29, %v8707_v45  ;;  %v17593_v29 = vrot.slane %v8626_v18, 1 }
  0x9c   :  { %563 = vrot.lane.b32.xlu1 %v8644_v14, %s7925_s17  ;;  %v2246_v49 = vsel %vm17636_vm7, %v2224_v23, %v8739_v30  ;;  %v8889_v30 = vrot.slane %v2059_v0, 1  ;;  %v1226_v23 = vsel %vm17688_vm4, %v8007_v5, %v8748_v57 }
  0x9d   :  { %v2156_v10 = vpop.permute.xlu0 %2155 }
  0x9e   :  { %v2332_v9 = vsel %vm17727_vm11, %v2310_v51, %v2156_v10  ;;  %v973_v14 = vpop.permute.xlu1 %972  ;;  %v2268_v51 = vsel %vm17635_vm8, %v2246_v49, %v1992_v44  ;;  %v18453_v10 = vrot.slane %v8608_v59, 1  ;;  %v1057_v44 = vshll.u32 %v8869_v16, 16 }
  0x9f   :  { %1942 = vrot.lane.b32.xlu0 %v8832_v6, %s7926_s11  ;;  %v2355_v21 = vshll.u32 %v2332_v9, 16 }
  0xa0   :  { %675 = vrot.lane.b32.xlu1 %v623_v3, %s7927_s12  ;;  %v8884_v27 = vsel %vm17725_vm1, %v18453_v10, %v17594_v26  ;;  %v2290_v3 = vsel %vm17640_vm9, %v2268_v51, %v2101_v53  ;;  %v1250_v53 = vsel %vm17687_vm5, %v1226_v23, %v8753_v20  ;;  %v2353_v51 = vshrl.u32 %v2332_v9, 16 }
  0xa1   :  { %v2131_v42 = vpop.permute.xlu0 %2130  ;;  %v2357_v49 = vrot.slane %v2355_v21, 1  ;;  %v1273_v0 = vsel %vm17634_vm6, %v1250_v53, %v830_v11  ;;  %v1055_v20 = vor.u32 %v1053_v35, %v8723_v43  ;;  %v18455_v35 = vrot.slane %v8483_v52, 1 }
  0xa2   :  { %v1097_v48 = vpop.permute.xlu1 %1096  ;;  %v2312_v59 = vsel %vm17638_vm10, %v2290_v3, %v2131_v42  ;;  %v1296_v21 = vsel %vm17636_vm7, %v1273_v0, %v927_v40  ;;  %v8911_v42 = vsel %vm17691_vm0, %v2057_v32, %v8889_v30  ;;  %v8926_v40 = vld [vmem:[%s17523_s0 + $0xf4] sm:$0xf]  ;;  %v17592_v52 = vrot.slane %v8825_v13, 1 }
  0xa3   :  { %1972 = vrot.lane.b32.xlu0 %v8864_v58, %s7928_s15  ;;  %18454 = vst [vmem:[#allocation38_spill] sm:$0xff] %v8911_v42  ;;  %v2358_v10 = vor.u32 %v2357_v49, %v2353_v51  ;;  %v1319_v11 = vsel %vm17635_vm8, %v1296_v21, %v973_v14  ;;  %v961_v14 = vsel %vm17725_vm1, %v18455_v35, %v17593_v29  ;;  %v18457_v53 = vmov 0.0   ;;  %v8975_v21 = vld [vmem:[%s17523_s0 + $0x3c] sm:$0xff]  }
  0xa4   :  { %837 = vrot.lane.b32.xlu1 %v8687_v39, %s7926_s11  ;;  %v1342_v43 = vsel %vm17640_vm9, %v1319_v11, %v1097_v48  ;;  %v8948_v49 = vcombine.low %v8807_v22, %v8926_v40  ;;  %v18458_v22 = vrot.slane %v8659_v60, 1  ;;  %v18462_v60 = vrot.slane %v8975_v21, 1 }
  0xa5   :  { %v2158_v6 = vpop.permute.xlu0 %2157 }
  0xa6   :  { %v8901_v45 = vsel %vm17727_vm11, %v2312_v59, %v2158_v6  ;;  %v1157_v57 = vpop.permute.xlu1 %1156  ;;  %v8914_v6 = vrot.slane %v1057_v44, 1  ;;  %v8968_v51 = vsel %vm17725_vm1, %v18458_v22, %v17592_v52  ;;  %v794_v22 = vshrl.u32 %v8788_v34, 16  ;;  %v9030_v52 = vld [vmem:[%s17523_s0 + $0xf8] sm:$0xf] }
  0xa7   :  { %v2359_v5 = vshll.u32 %v8901_v45, 16  ;;  %1999 = vrot.lane.b32.xlu0 %v8884_v27, %s7929_s19  ;;  %v1365_v32 = vsel %vm17638_vm10, %v1342_v43, %v1157_v57  ;;  %v524_v57 = vshll.u32 %v8948_v49, 16  ;;  %v8989_v43 = vcombine.low %v8678_v7, %v8843_v19 }
  0xa8   :  { %934 = vrot.lane.b32.xlu1 %v8704_v47, %s7928_s15  ;;  %v8943_v48 = vsel %vm17691_vm0, %v1055_v20, %v8914_v6 }
  0xa9   :  { %v8917_v9 = vrot.slane %v2359_v5, 1  ;;  %v8919_v3 = vpop.permute.xlu0 %1794  ;;  %18456 = vst [vmem:[#allocation39_spill] sm:$0xff] %v8943_v48  ;;  %v520_v5 = vshrl.u32 %v8746_v17, 16  ;;  %v8993_v35 = vrot.slane %v524_v57, 1 }
  0xaa   :  { %v1203_v44 = vpop.permute.xlu1 %1202 }
  0xab   :  { %2108 = vrot.lane.b32.xlu0 %v8911_v42, %s7930_s24  ;;  %v2362_v47 = vsel %vm17691_vm0, %v2358_v10, %v8917_v9  ;;  %v1388_v23 = vsel %vm17727_vm11, %v1365_v32, %v1203_v44  ;;  %v17591_v10 = vrot.slane %v8692_v55, 1  ;;  %v1901_v32 = vshll.u32 %v8975_v21, 16 }
  0xac   :  { %7566 = vmatmul.mubr.msk.bf16.vlgmr.msra.gmra.mxu1 %vm17726_vm12, %v2362_v47  ;;  %980 = vrot.lane.b32.xlu1 %v961_v14, %s7929_s19  ;;  %v1897_v14 = vshrl.u32 %v8767_v61, 16  ;;  %v9000_v47 = vld [vmem:[%s17523_s0 + $0x98] sm:$0xff]   ;;  %v624_v44 = vshrl.u32 %v8777_v24, 16  ;;  %v18463_v42 = vrot.slane %v8767_v61, 1 }
  0xad   :  { %v8950_v59 = vpop.permute.xlu0 %1827  ;;  %7516 = vmatmul.mubr.msk.bf16.vlgmr.msra.gmra.mxu0 %vm17726_vm12, %v1388_v23  ;;  %7569 = vmatprep.mubr.msk.bf16.mxu1 %vm17651_vm3, %v18457_v53  ;;  %v628_v23 = vshll.u32 %v8989_v43, 16  ;;  %v9023_v57 = vrot.slane %v1901_v32, 1  ;;  %v796_v32 = vor.u32 %v794_v22, %v8835_v4  ;;  %v2182_v4 = vsel %vm17688_vm4, %v8082_v37, %v8919_v3 }
  0xae   :  { %7519 = vmatprep.mubr.msk.bf16.mxu0 %vm17651_vm3, %v18457_v53  ;;  %v8960_v0 = vpop.permute.xlu1 %557  ;;  %7610 = vmatpush3.bf16.msra.mxu0 %v8389_v31  ;;  %v2063_v22 = vshrl.u32 %v8825_v13, 16 }
  0xaf   :  { %2138 = vrot.lane.b32.xlu0 %v8943_v48, %s7931_s25  ;;  %7611 = vmatprep.subr.bf16.mxu0 %v18457_v53  ;;  %v9035_v29 = vrot.slane %v628_v23, 1 }
  0xb0   :  { %7660 = vmatpush3.bf16.msra.mxu1 %v8389_v31  ;;  %1104 = vrot.lane.b32.xlu1 %v8743_v12, %s7930_s24  ;;  %v522_v31 = vor.u32 %v520_v5, %v8782_v28  ;;  %v18459_v28 = vrot.slane %v8545_v63, 1  ;;  %v1899_v5 = vor.u32 %v1897_v14, %v8813_v41 }
  0xb1   :  { %v1937_v20 = vpop.permute.xlu0 %1936  ;;  %7661 = vmatprep.subr.bf16.mxu1 %v18457_v53 }
  0xb2   :  { %v8985_v11 = vpop.permute.xlu1 %669  ;;  %7612 = vmatpush3.bf16.msra.mxu0 %v8398_v38  ;;  %v1191_v19 = vsel %vm17725_vm1, %v18459_v28, %v17591_v10  ;;  %v798_v28 = vshll.u32 %v9000_v47, 16  ;;  %v9045_v14 = vsel %vm17691_vm0, %v1899_v5, %v9023_v57  ;;  %v2204_v5 = vsel %vm17687_vm5, %v2182_v4, %v8950_v59 }
  0xb3   :  { %2165 = vrot.lane.b32.xlu0 %v8968_v51, %s7932_s28  ;;  %7613 = vmatprep.subr.bf16.mxu0 %v18457_v53  ;;  %18461 = vst [vmem:[#allocation41_spill] sm:$0xff] %v9045_v14  ;;  %v2226_v3 = vsel %vm17634_vm6, %v2204_v5, %v1937_v20  ;;  %v1228_v59 = vsel %vm17688_vm4, %v7996_v2, %v8960_v0  ;;  %v1061_v2 = vshrl.u32 %v8869_v16, 16 }
  0xb4   :  { %7662 = vmatpush3.bf16.msra.mxu1 %v8398_v38  ;;  %1164 = vrot.lane.b32.xlu1 %v8760_v56, %s7931_s25  ;;  %v9020_v56 = vsel %vm17691_vm0, %v522_v31, %v8993_v35  ;;  %v626_v31 = vor.u32 %v624_v44, %v8821_v1  ;;  %v9055_v1 = vld [vmem:[%s17523_s0 + $0x150] sm:$0xf]  ;;  %v9096_v20 = vsel %vm17725_vm1, %v18463_v42, %v18462_v60 }
  0xb5   :  { %v1967_v7 = vpop.permute.xlu0 %1966  ;;  %7663 = vmatprep.subr.bf16.mxu1 %v18457_v53  ;;  %v1252_v60 = vsel %vm17687_vm5, %v1228_v59, %v8985_v11 }
  0xb6   :  { %v832_v38 = vpop.permute.xlu1 %831  ;;  %7614 = vmatpush3.bf16.msra.mxu0 %v8426_v36  ;;  %v631_v44 = vsel %vm17691_vm0, %v626_v31, %v9035_v29  ;;  %v2248_v23 = vsel %vm17636_vm7, %v2226_v3, %v1967_v7  ;;  %v1063_v3 = vor.u32 %v1061_v2, %v8914_v6  ;;  %v18465_v6 = vrot.slane %v8626_v18, 1 }
  0xb7   :  { %1802 = vrot.lane.b32.xlu0 %v8989_v43, %s7925_s17  ;;  %v1275_v42 = vsel %vm17634_vm6, %v1252_v60, %v832_v38  ;;  %v528_v60 = vshrl.u32 %v8948_v49, 16 }
  0xb8   :  { %7664 = vmatpush3.bf16.msra.mxu1 %v8426_v36  ;;  %1210 = vrot.lane.b32.xlu1 %v1191_v19, %s7932_s28  ;;  %v9041_v36 = vcombine.low %v8926_v40, %v9030_v52  ;;  %v9048_v19 = vrot.slane %v798_v28, 1  ;;  %v9060_v40 = vld [vmem:[%s17523_s0 + $0x154] sm:$0xf] }
  0xb9   :  { %v1994_v10 = vpop.permute.xlu0 %1993  ;;  %7709 = vmatprep.subr.bf16.mxu1 %v18457_v53  ;;  %v9080_v37 = vcombine.low %v9055_v1, %v9060_v40 }
  0xba   :  { %v929_v41 = vpop.permute.xlu1 %928  ;;  %18460 = vst [vmem:[#allocation40_spill] sm:$0xff] %v9041_v36  ;;  %v9075_v28 = vsel %vm17691_vm0, %v796_v32, %v9048_v19  ;;  %v2067_v31 = vshll.u32 %v9041_v36, 16  ;;  %v2270_v32 = vsel %vm17635_vm8, %v2248_v23, %v1994_v10 }
  0xbb   :  { %1835 = vrot.lane.b32.xlu0 %v9020_v56, %s7927_s12  ;;  %v1065_v0 = vshll.u32 %v9080_v37, 16 }
  0xbc   :  { %565 = vrot.lane.b32.xlu1 %v8811_v46, %s7925_s17  ;;  %v9100_v5 = vrot.slane %v2067_v31, 1  ;;  %v1298_v31 = vsel %vm17636_vm7, %v1275_v42, %v929_v41  ;;  %v18467_v42 = vrot.slane %v8825_v13, 1 }
  0xbd   :  { %v2103_v26 = vpop.permute.xlu0 %2102  ;;  %v9124_v59 = vrot.slane %v1065_v0, 1 }
  0xbe   :  { %v975_v46 = vpop.permute.xlu1 %974  ;;  %v2292_v7 = vsel %vm17640_vm9, %v2270_v32, %v2103_v26  ;;  %v17602_v26 = vrot.slane %v8788_v34, 1 }
  0xbf   :  { %1944 = vrot.lane.b32.xlu0 %v9045_v14, %s7926_s11  ;;  %v1321_v32 = vsel %vm17635_vm8, %v1298_v31, %v975_v46  ;;  %v9155_v18 = vsel %vm17691_vm0, %v1063_v3, %v9124_v59  ;;  %v17601_v3 = vrot.slane %v8869_v16, 1 }
  0xc0   :  { %677 = vrot.lane.b32.xlu1 %v631_v44, %s7927_s12  ;;  %v2065_v44 = vor.u32 %v2063_v22, %v8889_v30  ;;  %v2363_v30 = vshrl.u32 %v8901_v45, 16  ;;  %v7125_v45 = vld [vmem:[%s17523_s0 + $0xfc] sm:$0xf]  ;;  %18466 = vst [vmem:[#allocation43_spill] sm:$0xff] %v9155_v18 }
  0xc1   :  { %v2133_v14 = vpop.permute.xlu0 %2132  ;;  %v9149_v0 = vcombine.low %v9030_v52, %v7125_v45 }
  0xc2   :  { %v1099_v4 = vpop.permute.xlu1 %1098  ;;  %v2314_v10 = vsel %vm17638_vm10, %v2292_v7, %v2133_v14  ;;  %v9121_v11 = vsel %vm17691_vm0, %v2065_v44, %v9100_v5  ;;  %v2365_v38 = vor.u32 %v2363_v30, %v8917_v9  ;;  %v963_v44 = vsel %vm17725_vm1, %v18465_v6, %v17602_v26  ;;  %v9222_v26 = vld [vmem:[%s17523_s0 + $0x100] sm:$0xf] }
  0xc3   :  { %1974 = vrot.lane.b32.xlu0 %v9075_v28, %s7928_s15  ;;  %18464 = vst [vmem:[#allocation42_spill] sm:$0xff] %v9121_v11  ;;  %v1344_v41 = vsel %vm17640_vm9, %v1321_v32, %v1099_v4  ;;  %v17600_v4 = vrot.slane %v9041_v36, 1  ;;  %v532_v30 = vshll.u32 %v9149_v0, 16  ;;  %v9187_v32 = vcombine.low %v8848_v25, %v9055_v1 }
  0xc4   :  { %839 = vrot.lane.b32.xlu1 %v8864_v58, %s7926_s11  ;;  %v18468_v25 = vrot.slane %v8692_v55, 1  ;;  %v632_v1 = vshrl.u32 %v8989_v43, 16  ;;  %v18472_v58 = vrot.slane %v8975_v21, 1 }
  0xc5   :  { %v2160_v23 = vpop.permute.xlu0 %2159  ;;  %v9190_v6 = vrot.slane %v532_v30, 1 }
  0xc6   :  { %v9110_v61 = vsel %vm17727_vm11, %v2314_v10, %v2160_v23  ;;  %v1159_v14 = vpop.permute.xlu1 %1158  ;;  %v634_v13 = vor.u32 %v632_v1, %v9035_v29  ;;  %v9245_v29 = vld [vmem:[%s17523_s0 + $0x158] sm:$0xf] }
  0xc7   :  { %v2366_v22 = vshll.u32 %v9110_v61, 16  ;;  %2001 = vrot.lane.b32.xlu0 %v9096_v20, %s7929_s19  ;;  %v1367_v2 = vsel %vm17638_vm10, %v1344_v41, %v1159_v14  ;;  %v9178_v14 = vld [vmem:[%s17523_s0 + $0x44] sm:$0xff]   ;;  %v530_v41 = vor.u32 %v528_v60, %v8993_v35  ;;  %v1193_v35 = vsel %vm17725_vm1, %v18468_v25, %v17601_v3 }
  0xc8   :  { %936 = vrot.lane.b32.xlu1 %v8884_v27, %s7928_s15 }
  0xc9   :  { %v9131_v7 = vrot.slane %v2366_v22, 1  ;;  %v9133_v10 = vpop.permute.xlu0 %1796  ;;  %v9173_v22 = vsel %vm17725_vm1, %v18467_v42, %v17600_v4  ;;  %v9212_v30 = vsel %vm17691_vm0, %v530_v41, %v9190_v6  ;;  %v802_v4 = vshrl.u32 %v9000_v47, 16 }
  0xca   :  { %v1205_v46 = vpop.permute.xlu1 %1204 }
  0xcb   :  { %2110 = vrot.lane.b32.xlu0 %v9121_v11, %s7930_s24  ;;  %v2369_v9 = vsel %vm17691_vm0, %v2365_v38, %v9131_v7  ;;  %v1390_v27 = vsel %vm17727_vm11, %v1367_v2, %v1205_v46  ;;  %v1909_v2 = vshll.u32 %v9178_v14, 16  ;;  %v804_v11 = vor.u32 %v802_v4, %v9048_v19 }
  0xcc   :  { %7570 = vmatmul.mubr.msk.bf16.gmra.mxu1 %vm17726_vm12, %v2369_v9  ;;  %982 = vrot.lane.b32.xlu1 %v963_v44, %s7929_s19  ;;  %v1905_v44 = vshrl.u32 %v8975_v21, 16  ;;  %v9197_v9 = vld [vmem:[%s17523_s0 + $0xa0] sm:$0xff]   ;;  %v2184_v19 = vsel %vm17688_vm4, %v8272_v54, %v9133_v10 }
  0xcd   :  { %v1830_v23 = vpop.permute.xlu0 %1829  ;;  %7520 = vmatmul.mubr.msk.bf16.gmra.mxu0 %vm17726_vm12, %v1390_v27  ;;  %7573 = vmatprep.mubr.msk.bf16.mxu1 %vm17651_vm3, %v18457_v53  ;;  %v636_v27 = vshll.u32 %v9187_v32, 16  ;;  %v9215_v42 = vrot.slane %v1909_v2, 1  ;;  %v806_v25 = vshll.u32 %v9197_v9, 16 }
  0xce   :  { %7523 = vmatprep.mubr.msk.bf16.mxu0 %vm17651_vm3, %v18457_v53  ;;  %v560_v52 = vpop.permute.xlu1 %559 }
  0xcf   :  { %2140 = vrot.lane.b32.xlu0 %v9155_v18, %s7931_s25  ;;  %v9226_v41 = vrot.slane %v636_v27, 1  ;;  %v2071_v27 = vshrl.u32 %v9041_v36, 16 }
  0xd0   :  { %1106 = vrot.lane.b32.xlu1 %v8943_v48, %s7930_s24  ;;  %v9238_v48 = vrot.slane %v806_v25, 1 }
  0xd1   :  { %v1939_v31 = vpop.permute.xlu0 %1938  ;;  %v639_v1 = vsel %vm17691_vm0, %v634_v13, %v9226_v41 }
  0xd2   :  { %v672_v38 = vpop.permute.xlu1 %671  ;;  %v9264_v25 = vsel %vm17691_vm0, %v804_v11, %v9238_v48 }
  0xd3   :  { %2167 = vrot.lane.b32.xlu0 %v9173_v22, %s7932_s28 }
  0xd4   :  { %1166 = vrot.lane.b32.xlu1 %v8968_v51, %s7931_s25  ;;  %v1907_v51 = vor.u32 %v1905_v44, %v9023_v57  ;;  %v9231_v44 = vcombine.low %v7125_v45, %v9222_v26  ;;  %v9250_v45 = vld [vmem:[%s17523_s0 + $0x15c] sm:$0xf] }
  0xd5   :  { %v1969_v46 = vpop.permute.xlu0 %1968  ;;  %v9269_v55 = vcombine.low %v9245_v29, %v9250_v45 }
  0xd6   :  { %v834_v60 = vpop.permute.xlu1 %833  ;;  %18469 = vst [vmem:[#allocation44_spill] sm:$0xff] %v9231_v44  ;;  %v9235_v2 = vsel %vm17691_vm0, %v1907_v51, %v9215_v42  ;;  %v2206_v51 = vsel %vm17687_vm5, %v2184_v19, %v1830_v23  ;;  %v2075_v13 = vshll.u32 %v9231_v44, 16  ;;  %v1230_v23 = vsel %vm17688_vm4, %v8296_v62, %v560_v52 }
  0xd7   :  { %1804 = vrot.lane.b32.xlu0 %v9187_v32, %s7925_s17  ;;  %18470 = vst [vmem:[#allocation45_spill] sm:$0xff] %v9235_v2  ;;  %v2228_v54 = vsel %vm17634_vm6, %v2206_v51, %v1939_v31  ;;  %v1069_v62 = vshrl.u32 %v9080_v37, 16  ;;  %v1073_v52 = vshll.u32 %v9269_v55, 16  ;;  %v1254_v21 = vsel %vm17687_vm5, %v1230_v23, %v672_v38 }
  0xd8   :  { %1212 = vrot.lane.b32.xlu1 %v1193_v35, %s7932_s28  ;;  %v2250_v4 = vsel %vm17636_vm7, %v2228_v54, %v1969_v46  ;;  %v9288_v51 = vrot.slane %v2075_v13, 1 }
  0xd9   :  { %v1996_v3 = vpop.permute.xlu0 %1995  ;;  %v9311_v23 = vrot.slane %v1073_v52, 1 }
  0xda   :  { %v931_v57 = vpop.permute.xlu1 %930  ;;  %v2272_v19 = vsel %vm17635_vm8, %v2250_v4, %v1996_v3 }
  0xdb   :  { %1837 = vrot.lane.b32.xlu0 %v9212_v30, %s7927_s12 }
  0xdc   :  { %567 = vrot.lane.b32.xlu1 %v9020_v56, %s7925_s17 }
  0xdd   :  { %v2105_v35 = vpop.permute.xlu0 %2104 }
  0xde   :  { %v977_v56 = vpop.permute.xlu1 %976  ;;  %v2294_v46 = vsel %vm17640_vm9, %v2272_v19, %v2105_v35  ;;  %v1277_v35 = vsel %vm17634_vm6, %v1254_v21, %v834_v60  ;;  %v536_v21 = vshrl.u32 %v9149_v0, 16 }
  0xdf   :  { %1946 = vrot.lane.b32.xlu0 %v9235_v2, %s7926_s11  ;;  %v18471_v2 = vrot.slane %v9178_v14, 1  ;;  %v1300_v54 = vsel %vm17636_vm7, %v1277_v35, %v931_v57  ;;  %v18476_v35 = vrot.slane %v9041_v36, 1 }
  0xe0   :  { %679 = vrot.lane.b32.xlu1 %v639_v1, %s7927_s12  ;;  %v2073_v1 = vor.u32 %v2071_v27, %v9100_v5  ;;  %v17614_v5 = vrot.slane %v9000_v47, 1  ;;  %v1323_v19 = vsel %vm17635_vm8, %v1300_v54, %v977_v56 }
  0xe1   :  { %v2135_v10 = vpop.permute.xlu0 %2134  ;;  %v9284_v31 = vsel %vm17725_vm1, %v18472_v58, %v18471_v2  ;;  %v2370_v2 = vshrl.u32 %v9110_v61, 16  ;;  %v7127_v61 = vld [vmem:[%s17523_s0 + $0x104] sm:$0xf] }
  0xe2   :  { %v1101_v11 = vpop.permute.xlu1 %1100  ;;  %v2316_v3 = vsel %vm17638_vm10, %v2294_v46, %v2135_v10  ;;  %v9308_v38 = vsel %vm17691_vm0, %v2073_v1, %v9288_v51  ;;  %v1071_v10 = vor.u32 %v1069_v62, %v9124_v59  ;;  %v18474_v59 = vrot.slane %v8788_v34, 1 }
  0xe3   :  { %1976 = vrot.lane.b32.xlu0 %v9264_v25, %s7928_s15  ;;  %18473 = vst [vmem:[#allocation46_spill] sm:$0xff] %v9308_v38  ;;  %v2372_v60 = vor.u32 %v2370_v2, %v9131_v7  ;;  %v1346_v57 = vsel %vm17640_vm9, %v1323_v19, %v1101_v11  ;;  %v9336_v52 = vcombine.low %v9222_v26, %v7127_v61  ;;  %v17612_v11 = vrot.slane %v9231_v44, 1 }
  0xe4   :  { %841 = vrot.lane.b32.xlu1 %v9075_v28, %s7926_s11  ;;  %v965_v1 = vsel %vm17725_vm1, %v18474_v59, %v17614_v5  ;;  %v9342_v34 = vsel %vm17691_vm0, %v1071_v10, %v9311_v23  ;;  %v17613_v10 = vrot.slane %v9080_v37, 1  ;;  %v9374_v19 = vcombine.low %v9060_v40, %v9245_v29  ;;  %v7155_v5 = vld [vmem:[%s17523_s0 + $0x108] sm:$0xf] }
  0xe5   :  { %v2162_v4 = vpop.permute.xlu0 %2161  ;;  %18475 = vst [vmem:[#allocation47_spill] sm:$0xff] %v9342_v34  ;;  %v540_v2 = vshll.u32 %v9336_v52, 16  ;;  %v18477_v40 = vrot.slane %v8869_v16, 1  ;;  %v640_v29 = vshrl.u32 %v9187_v32, 16 }
  0xe6   :  { %v9297_v58 = vsel %vm17727_vm11, %v2316_v3, %v2162_v4  ;;  %v1161_v13 = vpop.permute.xlu1 %1160 }
  0xe7   :  { %v2373_v27 = vshll.u32 %v9297_v58, 16  ;;  %2003 = vrot.lane.b32.xlu0 %v9284_v31, %s7929_s19  ;;  %v1369_v62 = vsel %vm17638_vm10, %v1346_v57, %v1161_v13  ;;  %v9365_v13 = vld [vmem:[%s17523_s0 + $0x4c] sm:$0xff]   ;;  %v538_v57 = vor.u32 %v536_v21, %v9190_v6  ;;  %v9377_v59 = vrot.slane %v540_v2, 1 }
  0xe8   :  { %938 = vrot.lane.b32.xlu1 %v9096_v20, %s7928_s15  ;;  %v1195_v6 = vsel %vm17725_vm1, %v18477_v40, %v17613_v10  ;;  %v642_v36 = vor.u32 %v640_v29, %v9226_v41  ;;  %v9429_v41 = vld [vmem:[%s17523_s0 + $0x160] sm:$0xf] }
  0xe9   :  { %v9318_v46 = vrot.slane %v2373_v27, 1  ;;  %v9320_v3 = vpop.permute.xlu0 %1798  ;;  %v9360_v27 = vsel %vm17725_vm1, %v18476_v35, %v17612_v11  ;;  %v9399_v2 = vsel %vm17691_vm0, %v538_v57, %v9377_v59  ;;  %v810_v11 = vshrl.u32 %v9197_v9, 16 }
  0xea   :  { %v1207_v56 = vpop.permute.xlu1 %1206  ;;  %v9415_v57 = vcombine.low %v7127_v61, %v7155_v5  ;;  %v7152_v5 = vld [vmem:[%s17523_s0 + $0x164] sm:$0xf] }
  0xeb   :  { %2112 = vrot.lane.b32.xlu0 %v9308_v38, %s7930_s24  ;;  %v2376_v7 = vsel %vm17691_vm0, %v2372_v60, %v9318_v46  ;;  %v1392_v20 = vsel %vm17727_vm11, %v1369_v62, %v1207_v56  ;;  %v1917_v62 = vshll.u32 %v9365_v13, 16 }
  0xec   :  { %7574 = vmatmul.mubr.msk.bf16.gmra.mxu1 %vm17726_vm12, %v2376_v7  ;;  %984 = vrot.lane.b32.xlu1 %v965_v1, %s7929_s19  ;;  %v1913_v1 = vshrl.u32 %v9178_v14, 16  ;;  %v9384_v7 = vld [vmem:[%s17523_s0 + $0xa8] sm:$0xff]   ;;  %18478 = vst [vmem:[#allocation48_spill] sm:$0xff] %v9415_v57 }
  0xed   :  { %v1832_v4 = vpop.permute.xlu0 %1831  ;;  %7524 = vmatmul.mubr.msk.bf16.gmra.mxu0 %vm17726_vm12, %v1392_v20  ;;  %7577 = vmatprep.mubr.msk.bf16.mxu1 %vm17651_vm3, %v18457_v53  ;;  %v644_v20 = vshll.u32 %v9374_v19, 16  ;;  %v9402_v35 = vrot.slane %v1917_v62, 1  ;;  %v814_v40 = vshll.u32 %v9384_v7, 16  ;;  %v812_v62 = vor.u32 %v810_v11, %v9238_v48 }
  0xee   :  { %7527 = vmatprep.mubr.msk.bf16.mxu0 %vm17651_vm3, %v18457_v53  ;;  %v562_v26 = vpop.permute.xlu1 %561  ;;  %v2186_v48 = vsel %vm17688_vm4, %v8443_v15, %v9320_v3  ;;  %v9442_v11 = vrot.slane %v9365_v13, 1 }
  0xef   :  { %2142 = vrot.lane.b32.xlu0 %v9342_v34, %s7931_s25  ;;  %v9411_v38 = vrot.slane %v644_v20, 1  ;;  %v2208_v29 = vsel %vm17687_vm5, %v2186_v48, %v1832_v4 }
  0xf0   :  { %1108 = vrot.lane.b32.xlu1 %v9155_v18, %s7930_s24  ;;  %v9422_v18 = vrot.slane %v814_v40, 1 }
  0xf1   :  { %v1941_v54 = vpop.permute.xlu0 %1940  ;;  %v647_v61 = vsel %vm17691_vm0, %v642_v36, %v9411_v38  ;;  %v2083_v36 = vshll.u32 %v9415_v57, 16 }
  0xf2   :  { %v674_v60 = vpop.permute.xlu1 %673  ;;  %v9448_v20 = vsel %vm17691_vm0, %v812_v62, %v9422_v18  ;;  %v2230_v15 = vsel %vm17634_vm6, %v2208_v29, %v1941_v54 }
  0xf3   :  { %2169 = vrot.lane.b32.xlu0 %v9360_v27, %s7932_s28 }
  0xf4   :  { %1168 = vrot.lane.b32.xlu1 %v9173_v22, %s7931_s25  ;;  %v1915_v22 = vor.u32 %v1913_v1, %v9215_v42 }
  0xf5   :  { %v1971_v56 = vpop.permute.xlu0 %1970 }
  0xf6   :  { %v836_v21 = vpop.permute.xlu1 %835  ;;  %v9419_v1 = vsel %vm17691_vm0, %v1915_v22, %v9402_v35  ;;  %v9452_v22 = vcombine.low %v9429_v41, %v7152_v5  ;;  %v2252_v40 = vsel %vm17636_vm7, %v2230_v15, %v1971_v56  ;;  %v18481_v5 = vrot.slane %v9178_v14, 1 }
  0xf7   :  { %1806 = vrot.lane.b32.xlu0 %v9374_v19, %s7925_s17  ;;  %18479 = vst [vmem:[#allocation49_spill] sm:$0xff] %v9419_v1  ;;  %v9470_v56 = vrot.slane %v2083_v36, 1 }
  0xf8   :  { %1214 = vrot.lane.b32.xlu1 %v1195_v6, %s7932_s28  ;;  %v2079_v6 = vshrl.u32 %v9231_v44, 16  ;;  %18480 = vst [vmem:[#allocation50_spill] sm:$0xff] %v9452_v22  ;;  %v9466_v48 = vsel %vm17725_vm1, %v18481_v5, %v9442_v11 }
  0xf9   :  { %v1998_v10 = vpop.permute.xlu0 %1997 }
  0xfa   :  { %v933_v42 = vpop.permute.xlu1 %932  ;;  %v2274_v4 = vsel %vm17635_vm8, %v2252_v40, %v1998_v10  ;;  %v2081_v54 = vor.u32 %v2079_v6, %v9288_v51  ;;  %v17624_v51 = vrot.slane %v9197_v9, 1 }
  0xfb   :  { %1839 = vrot.lane.b32.xlu0 %v9399_v2, %s7927_s12 }
  0xfc   :  { %569 = vrot.lane.b32.xlu1 %v9212_v30, %s7925_s17 }
  0xfd   :  { %v2107_v16 = vpop.permute.xlu0 %2106 }
  0xfe   :  { %v979_v30 = vpop.permute.xlu1 %978 }
  0xff   :  { %1948 = vrot.lane.b32.xlu0 %v9419_v1, %s7926_s11  ;;  %v1232_v1 = vsel %vm17688_vm4, %v8473_v50, %v562_v26  ;;  %v1077_v50 = vshrl.u32 %v9269_v55, 16  ;;  %v1081_v26 = vshll.u32 %v9452_v22, 16 }
 0x100   :  { %681 = vrot.lane.b32.xlu1 %v647_v61, %s7927_s12  ;;  %v2296_v61 = vsel %vm17640_vm9, %v2274_v4, %v2107_v16  ;;  %v1256_v14 = vsel %vm17687_vm5, %v1232_v1, %v674_v60  ;;  %v2377_v16 = vshrl.u32 %v9297_v58, 16  ;;  %v9490_v60 = vsel %vm17691_vm0, %v2081_v54, %v9470_v56 }
 0x101   :  { %v2137_v3 = vpop.permute.xlu0 %2136  ;;  %v1279_v6 = vsel %vm17634_vm6, %v1256_v14, %v836_v21  ;;  %18482 = vst [vmem:[#allocation51_spill] sm:$0xff] %v9490_v60  ;;  %v1079_v1 = vor.u32 %v1077_v50, %v9311_v23  ;;  %v9493_v4 = vrot.slane %v1081_v26, 1  ;;  %v18483_v54 = vrot.slane %v9000_v47, 1 }
 0x102   :  { %v1103_v62 = vpop.permute.xlu1 %1102  ;;  %v2318_v10 = vsel %vm17638_vm10, %v2296_v61, %v2137_v3  ;;  %v1302_v40 = vsel %vm17636_vm7, %v1279_v6, %v933_v42  ;;  %v2379_v58 = vor.u32 %v2377_v16, %v9318_v46  ;;  %v9524_v26 = vrot.slane %v9415_v57, 1 }
 0x103   :  { %1978 = vrot.lane.b32.xlu0 %v9448_v20, %s7928_s15  ;;  %v1325_v21 = vsel %vm17635_vm8, %v1302_v40, %v979_v30  ;;  %v967_v23 = vsel %vm17725_vm1, %v18483_v54, %v17624_v51  ;;  %v544_v14 = vshrl.u32 %v9336_v52, 16  ;;  %v18484_v6 = vrot.slane %v9231_v44, 1 }
 0x104   :  { %843 = vrot.lane.b32.xlu1 %v9264_v25, %s7926_s11  ;;  %v1348_v42 = vsel %vm17640_vm9, %v1325_v21, %v1103_v62  ;;  %v9521_v62 = vsel %vm17691_vm0, %v1079_v1, %v9493_v4  ;;  %v17623_v1 = vrot.slane %v9269_v55, 1  ;;  %v9554_v21 = vcombine.low %v9250_v45, %v9429_v41 }
 0x105   :  { %v2164_v29 = vpop.permute.xlu0 %2163  ;;  %v18485_v45 = vrot.slane %v9080_v37, 1  ;;  %v648_v41 = vshrl.u32 %v9374_v19, 16 }
 0x106   :  { %v9479_v15 = vsel %vm17727_vm11, %v2318_v10, %v2164_v29  ;;  %v1163_v3 = vpop.permute.xlu1 %1162 }
 0x107   :  { %v2380_v36 = vshll.u32 %v9479_v15, 16  ;;  %2005 = vrot.lane.b32.xlu0 %v9466_v48, %s7929_s19  ;;  %v1371_v50 = vsel %vm17638_vm10, %v1348_v42, %v1163_v3  ;;  %v9545_v3 = vld [vmem:[%s17523_s0 + $0x54] ss:$0 sps:$4 sm:$0x33]   ;;  %v546_v42 = vor.u32 %v544_v14, %v9377_v59  ;;  %v1197_v59 = vsel %vm17725_vm1, %v18485_v45, %v17623_v1 }
 0x108   :  { %940 = vrot.lane.b32.xlu1 %v9284_v31, %s7928_s15  ;;  %v9515_v31 = vld [vmem:[%s17523_s0 + $0x108] ss:$0 sps:$4 sm:$0x33]   ;;  %v650_v51 = vor.u32 %v648_v41, %v9411_v38  ;;  %v9610_v38 = vld [vmem:[%s17523_s0 + $0x10c] ss:$0 sps:$4 sm:$0x33]  }
 0x109   :  { %v9497_v5 = vrot.slane %v2380_v36, 1  ;;  %v1801_v61 = vpop.permute.xlu0 %1800  ;;  %v548_v16 = vshll.u32 %v9515_v31, 16  ;;  %v9540_v36 = vsel %vm17725_vm1, %v18484_v6, %v9524_v26  ;;  %v818_v6 = vshrl.u32 %v9384_v7, 16 }
 0x10a   :  { %v1209_v30 = vpop.permute.xlu1 %1208 }
 0x10b   :  { %2114 = vrot.lane.b32.xlu0 %v9490_v60, %s7930_s24  ;;  %v2383_v46 = vsel %vm17691_vm0, %v2379_v58, %v9497_v5  ;;  %v1394_v47 = vsel %vm17727_vm11, %v1371_v50, %v1209_v30  ;;  %v9557_v54 = vrot.slane %v548_v16, 1  ;;  %v1925_v50 = vshll.u32 %v9545_v3, 16 }
 0x10c   :  { %7578 = vmatmul.mubr.msk.bf16.gmra.mxu1 %vm17726_vm12, %v2383_v46  ;;  %986 = vrot.lane.b32.xlu1 %v967_v23, %s7929_s19  ;;  %v1921_v23 = vshrl.u32 %v9365_v13, 16  ;;  %v9564_v46 = vld [vmem:[%s17523_s0 + $0xb0] ss:$0 sps:$4 sm:$0x33]   ;;  %v652_v13 = vshll.u32 %v9554_v21, 16 }
 0x10d   :  { %v1834_v10 = vpop.permute.xlu0 %1833  ;;  %7528 = vmatmul.mubr.msk.bf16.gmra.mxu0 %vm17726_vm12, %v1394_v47  ;;  %7581 = vmatprep.mubr.msk.bf16.mxu1 %vm17651_vm3, %v18457_v53  ;;  %v9579_v14 = vsel %vm17691_vm0, %v546_v42, %v9557_v54  ;;  %v9584_v16 = vrot.slane %v1925_v50, 1  ;;  %v822_v45 = vshll.u32 %v9564_v46, 16  ;;  %v820_v50 = vor.u32 %v818_v6, %v9422_v18 }
 0x10e   :  { %7531 = vmatprep.mubr.msk.bf16.mxu0 %vm17651_vm3, %v18457_v53  ;;  %v564_v29 = vpop.permute.xlu1 %563  ;;  %v9590_v44 = vrot.slane %v652_v13, 1 }
 0x10f   :  { %2144 = vrot.lane.b32.xlu0 %v9521_v62, %s7931_s25 }
 0x110   :  { %1110 = vrot.lane.b32.xlu1 %v9342_v34, %s7930_s24  ;;  %v655_v13 = vsel %vm17691_vm0, %v650_v51, %v9590_v44 }
 0x111   :  { %v1943_v40 = vpop.permute.xlu0 %1942 }
 0x112   :  { %v676_v58 = vpop.permute.xlu1 %675 }
 0x113   :  { %2171 = vrot.lane.b32.xlu0 %v9540_v36, %s7932_s28 }
 0x114   :  { %1170 = vrot.lane.b32.xlu1 %v9360_v27, %s7931_s25  ;;  %v9582_v27 = vor.u32 %v1921_v23, %v9402_v35  ;;  %v9597_v35 = vld [vmem:[%s17523_s0 + $0x54] ss:$0 sps:$4 sm:$0x77]  }
 0x115   :  { %v1973_v30 = vpop.permute.xlu0 %1972 }
 0x116   :  { %v838_v47 = vpop.permute.xlu1 %837  ;;  %18486 = vst [vmem:[#allocation52_spill] sm:$0xff] %v9582_v27  ;;  %v9602_v23 = vsel %vm17691_vm0, %v9582_v27, %v9584_v16  ;;  %v2188_v27 = vsel %vm17688_vm4, %v8591_v33, %v1801_v61  ;;  %v9631_v33 = vld [vmem:[%s17523_s0 + $0x168] ss:$0 sps:$4 sm:$0x33]  }
 0x117   :  { %1808 = vrot.lane.b32.xlu0 %v9554_v21, %s7925_s17  ;;  %18487 = vst [vmem:[#allocation53_spill] sm:$0xff] %v9602_v23  ;;  %v2210_v60 = vsel %vm17687_vm5, %v2188_v27, %v1834_v10  ;;  %v1234_v10 = vsel %vm17688_vm4, %v8616_v8, %v564_v29  ;;  %v1085_v8 = vshrl.u32 %v9452_v22, 16  ;;  %v1089_v29 = vshll.u32 %v9631_v33, 16 }
 0x118   :  { %1216 = vrot.lane.b32.xlu1 %v1197_v59, %s7932_s28  ;;  %v9605_v59 = vrot.slane %v822_v45, 1  ;;  %v2087_v45 = vshrl.u32 %v9415_v57, 16  ;;  %v2232_v51 = vsel %vm17634_vm6, %v2210_v60, %v1943_v40  ;;  %v18488_v57 = vrot.slane %v9597_v35, 1 }
 0x119   :  { %v2000_v1 = vpop.permute.xlu0 %1999  ;;  %v2254_v6 = vsel %vm17636_vm7, %v2232_v51, %v1973_v30 }
 0x11a   :  { %v935_v42 = vpop.permute.xlu1 %934  ;;  %v9625_v34 = vsel %vm17691_vm0, %v820_v50, %v9605_v59  ;;  %v2276_v27 = vsel %vm17635_vm8, %v2254_v6, %v2000_v1  ;;  %v9646_v60 = vor.u32 %v2087_v45, %v9470_v56  ;;  %v1258_v6 = vsel %vm17687_vm5, %v1234_v10, %v676_v58 }
 0x11b   :  { %1841 = vrot.lane.b32.xlu0 %v9579_v14, %s7927_s12  ;;  %v968_v56 = vrot.slane %v9384_v7, 1  ;;  %v1281_v45 = vsel %vm17634_vm6, %v1258_v6, %v838_v47  ;;  %v1087_v10 = vor.u32 %v1085_v8, %v9493_v4  ;;  %v18491_v4 = vrot.slane %v9197_v9, 1 }
 0x11c   :  { %571 = vrot.lane.b32.xlu1 %v9399_v2, %s7925_s17  ;;  %v2091_v2 = vshll.u32 %v9610_v38, 16  ;;  %18489 = vst [vmem:[#allocation54_spill] sm:$0xff] %v9646_v60 }
 0x11d   :  { %v2109_v41 = vpop.permute.xlu0 %2108  ;;  %v969_v8 = vsel %vm17725_vm1, %v18491_v4, %v968_v56  ;;  %v656_v4 = vshrl.u32 %v9554_v21, 16 }
 0x11e   :  { %v981_v18 = vpop.permute.xlu1 %980  ;;  %v2298_v40 = vsel %vm17640_vm9, %v2276_v27, %v2109_v41  ;;  %v9649_v30 = vrot.slane %v2091_v2, 1  ;;  %v2384_v41 = vshrl.u32 %v9479_v15, 16  ;;  %v9672_v27 = vrot.slane %v1089_v29, 1  ;;  %v9677_v15 = vld [vmem:[%s17523_s0 + $0x10c] ss:$0 sps:$4 sm:$0x77]  }
 0x11f   :  { %1950 = vrot.lane.b32.xlu0 %v9602_v23, %s7926_s11  ;;  %v1988_v23 = vsel %vm17725_vm1, %v9442_v11, %v18488_v57  ;;  %v17632_v9 = vrot.slane %v9677_v15, 1 }
 0x120   :  { %683 = vrot.lane.b32.xlu1 %v655_v13, %s7927_s12  ;;  %v9669_v58 = vsel %vm17691_vm0, %v9646_v60, %v9649_v30  ;;  %v2386_v47 = vor.u32 %v2384_v41, %v9497_v5 }
 0x121   :  { %v2139_v61 = vpop.permute.xlu0 %2138  ;;  %18490 = vst [vmem:[#allocation55_spill] sm:$0xff] %v9669_v58  ;;  %v2154_v41 = vsel %vm17725_vm1, %v9524_v26, %v17632_v9  ;;  %v826_v9 = vshrl.u32 %v9564_v46, 16 }
 0x122   :  { %v1105_v50 = vpop.permute.xlu1 %1104  ;;  %v2320_v1 = vsel %vm17638_vm10, %v2298_v40, %v2139_v61  ;;  %v1304_v61 = vsel %vm17636_vm7, %v1281_v45, %v935_v42 }
 0x123   :  { %1980 = vrot.lane.b32.xlu0 %v9625_v34, %s7928_s15 }
 0x124   :  { %845 = vrot.lane.b32.xlu1 %v9448_v20, %s7926_s11 }
 0x125   :  { %v2166_v13 = vpop.permute.xlu0 %2165 }
 0x126   :  { %v9658_v57 = vsel %vm17727_vm11, %v2320_v1, %v2166_v13  ;;  %v1165_v51 = vpop.permute.xlu1 %1164 }
 0x127   :  { %v2387_v2 = vshll.u32 %v9658_v57, 16  ;;  %2007 = vrot.lane.b32.xlu0 %v1988_v23, %s7929_s19  ;;  %v1327_v23 = vsel %vm17635_vm8, %v1304_v61, %v981_v18  ;;  %v9722_v61 = vld [vmem:[%s17523_s0 + $0x164] ss:$0 sps:$4 sm:$0x33]  }
 0x128   :  { %942 = vrot.lane.b32.xlu1 %v9466_v48, %s7928_s15  ;;  %v1350_v1 = vsel %vm17640_vm9, %v1327_v23, %v1105_v50  ;;  %v9700_v50 = vsel %vm17691_vm0, %v1087_v10, %v9672_v27  ;;  %v552_v10 = vshrl.u32 %v9515_v31, 16  ;;  %v18493_v23 = vrot.slane %v9269_v55, 1 }
 0x129   :  { %v9681_v40 = vrot.slane %v2387_v2, 1  ;;  %v1803_v42 = vpop.permute.xlu0 %1802  ;;  %v1373_v29 = vsel %vm17638_vm10, %v1350_v1, %v1165_v51  ;;  %18492 = vst [vmem:[#allocation56_spill] sm:$0xff] %v9700_v50  ;;  %v17633_v2 = vrot.slane %v9452_v22, 1 }
 0x12a   :  { %v1211_v18 = vpop.permute.xlu1 %1210  ;;  %v9737_v31 = vor.u32 %v552_v10, %v9557_v54 }
 0x12b   :  { %2116 = vrot.lane.b32.xlu0 %v9669_v58, %s7930_s24  ;;  %v2390_v5 = vsel %vm17691_vm0, %v2386_v47, %v9681_v40  ;;  %v1396_v48 = vsel %vm17727_vm11, %v1373_v29, %v1211_v18  ;;  %v1199_v1 = vsel %vm17725_vm1, %v18493_v23, %v17633_v2  ;;  %v658_v18 = vor.u32 %v656_v4, %v9590_v44 }
 0x12c   :  { %7582 = vmatmul.mubr.msk.bf16.gmra.mxu1 %vm17726_vm12, %v2390_v5  ;;  %988 = vrot.lane.b32.xlu1 %v969_v8, %s7929_s19  ;;  %v660_v8 = vshll.u32 %v9722_v61, 16  ;;  %v1929_v5 = vshrl.u32 %v9545_v3, 16  ;;  %v2190_v44 = vsel %vm17688_vm4, %v8746_v17, %v1803_v42  ;;  %v9759_v4 = vor.u32 %v826_v9, %v9605_v59 }
 0x12d   :  { %v1836_v13 = vpop.permute.xlu0 %1835  ;;  %7532 = vmatmul.mubr.msk.bf16.gmra.mxu0 %vm17726_vm12, %v1396_v48  ;;  %7585 = vmatprep.mubr.msk.bf16.mxu1 %vm17651_vm3, %v18457_v53 }
 0x12e   :  { %7535 = vmatprep.mubr.msk.bf16.mxu0 %vm17651_vm3, %v18457_v53  ;;  %v566_v6 = vpop.permute.xlu1 %565  ;;  %v9742_v48 = vrot.slane %v660_v8, 1  ;;  %v9747_v23 = vor.u32 %v1929_v5, %v9584_v16  ;;  %18495 = vst [vmem:[#allocation58_spill] sm:$0xff] %v9759_v4  ;;  %v33_v16 = vlaneseq  ;;  %v2212_v8 = vsel %vm17687_vm5, %v2190_v44, %v1836_v13 }
 0x12f   :  { %2146 = vrot.lane.b32.xlu0 %v9700_v50, %s7931_s25  ;;  %v1236_v42 = vsel %vm17688_vm4, %v8777_v24, %v566_v6 }
 0x130   :  { %1112 = vrot.lane.b32.xlu1 %v9521_v62, %s7930_s24  ;;  %18494 = vst [vmem:[#allocation57_spill] sm:$0xff] %v9747_v23  ;;  %v663_v10 = vsel %vm17691_vm0, %v658_v18, %v9742_v48  ;;  %v924_v18 = vrot.slane %v9545_v3, 1  ;;  %v9772_v13 = vshrl.u32 %v33_v16, 7  ;;  %v2391_v16 = vshrl.u32 %v9658_v57, 16 }
 0x131   :  { %v1945_v45 = vpop.permute.xlu0 %1944 }
 0x132   :  { %v678_v51 = vpop.permute.xlu1 %677  ;;  %v2234_v5 = vsel %vm17634_vm6, %v2212_v8, %v1945_v45  ;;  %18496 = vst [vmem:[#allocation59_spill] sm:$0xff] %v9772_v13  ;;  %v925_v24 = vsel %vm17725_vm1, %v9442_v11, %v924_v18 }
 0x133   :  { %2173 = vrot.lane.b32.xlu0 %v2154_v41, %s7932_s28  ;;  %v1260_v6 = vsel %vm17687_vm5, %v1236_v42, %v678_v51  ;;  %v55_v51 = vmul.u32 29128, %v9772_v13  ;;  %v2393_v42 = vor.u32 %v2391_v16, %v9681_v40 }
 0x134   :  { %1172 = vrot.lane.b32.xlu1 %v9540_v36, %s7931_s25 }
 0x135   :  { %v1975_v47 = vpop.permute.xlu0 %1974 }
 0x136   :  { %v840_v29 = vpop.permute.xlu1 %839  ;;  %v2256_v17 = vsel %vm17636_vm7, %v2234_v5, %v1975_v47  ;;  %v18498_v5 = vrot.slane %v9597_v35, 1 }
 0x137   :  { %1810 = vrot.lane.b32.xlu0 %v9722_v61, %s7925_s17  ;;  %v1283_v8 = vsel %vm17634_vm6, %v1260_v6, %v840_v29 }
 0x138   :  { %1218 = vrot.lane.b32.xlu1 %v1199_v1, %s7932_s28 }
 0x139   :  { %v2002_v36 = vpop.permute.xlu0 %2001 }
 0x13a   :  { %v937_v41 = vpop.permute.xlu1 %936  ;;  %v2278_v59 = vsel %vm17635_vm8, %v2256_v17, %v2002_v36  ;;  %v35_v17 = vadd.s32 8, %v9772_v13 }
 0x13b   :  { %1843 = vrot.lane.b32.xlu0 %v9737_v31, %s7927_s12 }
 0x13c   :  { %573 = vrot.lane.b32.xlu1 %v9579_v14, %s7925_s17  ;;  %v2095_v14 = vshrl.u32 %v9610_v38, 16  ;;  %v56_v7 = vmul.u32 29128, %v35_v17 }
 0x13d   :  { %v2111_v54 = vpop.permute.xlu0 %2110 }
 0x13e   :  { %v983_v1 = vpop.permute.xlu1 %982  ;;  %v2300_v45 = vsel %vm17640_vm9, %v2278_v59, %v2111_v54  ;;  %v9779_v47 = vor.u32 %v2095_v14, %v9649_v30  ;;  %v1093_v54 = vshrl.u32 %v9631_v33, 16  ;;  %v1306_v14 = vsel %vm17636_vm7, %v1283_v8, %v937_v41 }
 0x13f   :  { %1952 = vrot.lane.b32.xlu0 %v9747_v23, %s7926_s11  ;;  %v1329_v59 = vsel %vm17635_vm8, %v1306_v14, %v983_v1  ;;  %v77_v16 = vshra.s32 %v56_v7, 18 }
 0x140   :  { %685 = vrot.lane.b32.xlu1 %v663_v10, %s7927_s12  ;;  %18497 = vst [vmem:[#allocation60_spill] sm:$0xff] %v9779_v47 }
 0x141   :  { %v2141_v2 = vpop.permute.xlu0 %2140 }
 0x142   :  { %v1107_v9 = vpop.permute.xlu1 %1106  ;;  %v2322_v10 = vsel %vm17638_vm10, %v2300_v45, %v2141_v2  ;;  %v970_v2 = vrot.slane %v9564_v46, 1 }
 0x143   :  { %1982 = vrot.lane.b32.xlu0 %v9759_v4, %s7928_s15  ;;  %v1352_v45 = vsel %vm17640_vm9, %v1329_v59, %v1107_v9 }
 0x144   :  { %847 = vrot.lane.b32.xlu1 %v9625_v34, %s7926_s11  ;;  %v971_v35 = vsel %vm17725_vm1, %v968_v56, %v970_v2  ;;  %v17641_v56 = vrot.slane %v9631_v33, 1 }
 0x145   :  { %v2168_v44 = vpop.permute.xlu0 %2167 }
 0x146   :  { %v9787_v36 = vsel %vm17727_vm11, %v2322_v10, %v2168_v44  ;;  %v1167_v11 = vpop.permute.xlu1 %1166  ;;  %v9817_v10 = vor.u32 %v1093_v54, %v9672_v27  ;;  %v76_v44 = vshra.s32 %v55_v51, 18  ;;  %v17642_v54 = vrot.slane %v9610_v38, 1 }
 0x147   :  { %v2394_v30 = vshll.u32 %v9787_v36, 16  ;;  %2009 = vrot.lane.b32.xlu0 %v18498_v5, %s7929_s19  ;;  %v1375_v41 = vsel %vm17638_vm10, %v1352_v45, %v1167_v11  ;;  %v18500_v5 = vrot.slane %v9452_v22, 1  ;;  %v18501_v51 = vrot.slane %v9677_v15, 1 }
 0x148   :  { %944 = vrot.lane.b32.xlu1 %v925_v24, %s7928_s15  ;;  %18499 = vst [vmem:[#allocation61_spill] sm:$0xff] %v9817_v10  ;;  %v139_v6 = vmul.u32 29128, %v76_v44  ;;  %v1155_v59 = vsel %vm17725_vm1, %v9524_v26, %v17642_v54  ;;  %v140_v45 = vmul.u32 29128, %v77_v16 }
 0x149   :  { %v9802_v57 = vrot.slane %v2394_v30, 1  ;;  %v1805_v29 = vpop.permute.xlu0 %1804  ;;  %v664_v30 = vshrl.u32 %v9722_v61, 16  ;;  %v1201_v11 = vsel %vm17725_vm1, %v18500_v5, %v17641_v56  ;;  %v98_v5 = vmul.u32 9, %v77_v16 }
 0x14a   :  { %v1213_v1 = vpop.permute.xlu1 %1212  ;;  %v161_v15 = vshra.s32 %v140_v45, 18 }
 0x14b   :  { %2118 = vrot.lane.b32.xlu0 %v9779_v47, %s7930_s24  ;;  %v2397_v40 = vsel %vm17691_vm0, %v2393_v42, %v9802_v57  ;;  %v1398_v9 = vsel %vm17727_vm11, %v1375_v41, %v1213_v1  ;;  %v160_v42 = vshra.s32 %v139_v6, 18  ;;  %v666_v61 = vor.u32 %v664_v30, %v9742_v48 }
 0x14c   :  { %7586 = vmatmul.mubr.msk.bf16.gmra.mxu1 %vm17726_vm12, %v2397_v40  ;;  %990 = vrot.lane.b32.xlu1 %v971_v35, %s7929_s19  ;;  %v97_v41 = vmul.u32 9, %v76_v44  ;;  %v182_v48 = vmul.u32 9, %v161_v15  ;;  %v9870_v45 = vsub.s32 %v35_v17, %v98_v5 }
 0x14d   :  { %v1838_v24 = vpop.permute.xlu0 %1837  ;;  %7536 = vmatmul.mubr.msk.bf16.gmra.mxu0 %vm17726_vm12, %v1398_v9  ;;  %7589 = vmatprep.mubr.msk.bf16.mxu1 %vm17651_vm3, %v18457_v53  ;;  %v181_v1 = vmul.u32 9, %v160_v42  ;;  %v18505_v42 = vld [vmem:[#allocation3_spill] sm:$0xff] }
 0x14e   :  { %7539 = vmatprep.mubr.msk.bf16.mxu0 %vm17651_vm3, %v18457_v53  ;;  %v568_v27 = vpop.permute.xlu1 %567  ;;  %v9851_v7 = vsub.s32 %v9772_v13, %v97_v41  ;;  %18507 = vst [vmem:[#allocation65_spill] sm:$0xff] %v9870_v45 }
 0x14f   :  { %2148 = vrot.lane.b32.xlu0 %v9817_v10, %s7931_s25  ;;  %v9855_v6 = vsub.s32 %v76_v44, %v181_v1  ;;  %v1238_v15 = vsel %vm17688_vm4, %v8989_v43, %v568_v27  ;;  %v9897_v43 = vmul.u32 2, %v9870_v45 }
 0x150   :  { %1114 = vrot.lane.b32.xlu1 %v9700_v50, %s7930_s24  ;;  %18502 = vst [vmem:[#allocation62_spill] sm:$0xff] %v9851_v7  ;;  %v18551_v50 = vld [vmem:[#allocation17_spill] sm:$0xff] }
 0x151   :  { %v1947_v8 = vpop.permute.xlu0 %1946  ;;  %18503 = vst [vmem:[#allocation63_spill] sm:$0xff] %v9855_v6  ;;  %18512 = vst [vmem:[#allocation68_spill] sm:$0xff] %v9897_v43 }
 0x152   :  { %v680_v14 = vpop.permute.xlu1 %679 }
 0x153   :  { %2175 = vrot.lane.b32.xlu0 %v18501_v51, %s7932_s28  ;;  %v2192_v51 = vsel %vm17688_vm4, %v8948_v49, %v1805_v29  ;;  %v1262_v5 = vsel %vm17687_vm5, %v1238_v15, %v680_v14  ;;  %v9929_v15 = vadd.s32 1, %v9897_v43 }
 0x154   :  { %1220 = vrot.lane.b32.xlu1 %v1201_v11, %s7932_s28  ;;  %v9860_v11 = vmul.u32 2, %v9851_v7  ;;  %v2214_v44 = vsel %vm17687_vm5, %v2192_v51, %v1838_v24  ;;  %v18510_v24 = vld [vmem:[#allocation8_spill] sm:$0xff] }
 0x155   :  { %v1977_v35 = vpop.permute.xlu0 %1976  ;;  %v2236_v41 = vsel %vm17634_vm6, %v2214_v44, %v1947_v8  ;;  %v9889_v8 = vadd.s32 16, %v9772_v13 }
 0x156   :  { %v842_v40 = vpop.permute.xlu1 %841  ;;  %18504 = vst [vmem:[#allocation64_spill] sm:$0xff] %v9860_v11  ;;  %v2258_v49 = vsel %vm17636_vm7, %v2236_v41, %v1977_v35  ;;  %v9880_v29 = vadd.s32 1, %v9860_v11  ;;  %v18514_v41 = vld [vmem:[#allocation9_spill] sm:$0xff] }
 0x157   :  { %1174 = vrot.lane.b32.xlu0 %v1155_v59, %s7931_s25  ;;  %v1285_v51 = vsel %vm17634_vm6, %v1262_v5, %v842_v40  ;;  %v57_v40 = vmul.u32 29128, %v9889_v8  ;;  %v9947_v5 = vld [vmem:[%s17525_s2] ss:$0 sm:$0xff] }
 0x158   :  { %687 = vrot.lane.b32.xlu1 %v666_v61, %s7927_s12  ;;  %v9872_v61 = vsub.s32 %v77_v16, %v182_v48  ;;  %18509 = vst [vmem:[#allocation67_spill] sm:$0xff] %v9880_v29  ;;  %vm17637_vm15 = vcmp.ge.s32.totalorder %v9880_v29, 1 }
 0x159   :  { %v2004_v9 = vpop.permute.xlu0 %2003 }
 0x15a   :  { %v939_v26 = vpop.permute.xlu1 %938  ;;  %18508 = vst [vmem:[#allocation66_spill] sm:$0xff] %v9872_v61  ;;  %v2280_v17 = vsel %vm17635_vm8, %v2258_v49, %v2004_v9  ;;  %v18513_v9 = vld [vmem:[#allocation14_spill] sm:$0xff] }
 0x15b   :  { %575 = vrot.lane.b32.xlu0 %v9737_v31, %s7925_s17  ;;  %v9867_v31 = vmul.u32 2, %v9855_v6  ;;  %v1308_v49 = vsel %vm17636_vm7, %v1285_v51, %v939_v26  ;;  %18517 = vst [vmem:[#allocation14_spill] sm:$0xff] %v9929_v15  ;;  %vm17646_vm7 = vcmp.ge.s32.totalorder %v9860_v11, 1 }
 0x15c   :  { %849 = vrot.lane.b32.xlu1 %v9759_v4, %s7926_s11  ;;  %v18545_v4 = vld [vmem:[#allocation5_spill] sm:$0xff] }
 0x15d   :  { %v2113_v30 = vpop.permute.xlu0 %2112  ;;  %18506 = vst [vmem:[#allocation3_spill] sm:$0xff] %v9867_v31  ;;  %vm1640_vm13 = vcmp.ge.s32.totalorder %v9867_v31, 1  ;;  %vm1661_vm14 = vcmp.le.s32.totalorder %v9867_v31, 16  ;;  %v18539_v31 = vld [vmem:[#allocation15_spill] sm:$0xff] }
 0x15e   :  { %v985_v59 = vpop.permute.xlu1 %984  ;;  %v2302_v3 = vsel %vm17640_vm9, %v2280_v17, %v2113_v30  ;;  %v2398_v30 = vshrl.u32 %v9787_v36, 16  ;;  %vm9916_vm2 = vmand %vm1640_vm13, %vm1661_vm14  ;;  %v9923_v36 = vld [vmem:[%s17523_s0 + $0x64] sm:$0xfe]   ;;  %v9932_v17 = vadd.s32 24, %v9772_v13 }
 0x15f   :  { %2751 = vrot.lane.b32.xlu0 %v18505_v42, %s7925_s17  ;;  %vm9953_vm14 = vmand %vm9916_vm2, %vm17637_vm15  ;;  %v2917_v51 = vshll.u32 %v9923_v36, 16  ;;  %v2915_v54 = vshrl.u32 %v9923_v36, 16 }
 0x160   :  { %946 = vrot.lane.b32.xlu1 %v924_v18, %s7928_s15  ;;  %v9894_v18 = vmul.u32 2, %v9872_v61 }
 0x161   :  { %v2143_v1 = vpop.permute.xlu0 %2142  ;;  %v2919_v45 = vrot.slane %v2917_v51, 1  ;;  %v18535_v51 = vmov 0 }
 0x162   :  { %v1109_v16 = vpop.permute.xlu1 %1108  ;;  %18511 = vst [vmem:[#allocation8_spill] sm:$0xff] %v9894_v18  ;;  %v2324_v27 = vsel %vm17638_vm10, %v2302_v3, %v2143_v1  ;;  %vm1641_vm6 = vcmp.ge.s32.totalorder %v9894_v18, 1  ;;  %v1331_v3 = vsel %vm17635_vm8, %v1308_v49, %v985_v59  ;;  %vm1662_vm13 = vcmp.le.s32.totalorder %v9894_v18, 16 }
 0x163   :  { %2773 = vrot.lane.b32.xlu0 %v18510_v24, %s7927_s12  ;;  %v2400_v24 = vor.u32 %v2398_v30, %v9802_v57  ;;  %v1354_v26 = vsel %vm17640_vm9, %v1331_v3, %v1109_v16  ;;  %vm17639_vm8 = vcmp.le.s32.totalorder %v9880_v29, 16  ;;  %vm9974_vm15 = vmand %vm1641_vm6, %vm1662_vm13  ;;  %vm17686_vm13 = vcmp.ge.s32.totalorder %v9897_v43, 1  ;;  %v10076_v57 = vld [vmem:[%s17523_s0 + $0x10] sm:$0xff]  }
 0x164   :  { %2795 = vrot.lane.b32.xlu1 %v18513_v9, %s7926_s11  ;;  %v18518_v9 = vld [vmem:[#allocation11_spill] sm:$0xff]  ;;  %vm9992_vm6 = vmand %vm9953_vm14, %vm17639_vm8  ;;  %vm17685_vm8 = vcmp.le.s32.totalorder %v9860_v11, 16  ;;  %vm17683_vm9 = vcmp.le.s32.totalorder %v9929_v15, 16 }
 0x165   :  { %v2170_v35 = vpop.permute.xlu0 %2169  ;;  %vm10009_vm14 = vmand %vm9916_vm2, %vm17646_vm7 }
 0x166   :  { %v9904_v48 = vsel %vm17727_vm11, %v2324_v27, %v2170_v35  ;;  %v1169_v1 = vpop.permute.xlu1 %1168  ;;  %vm10047_vm7 = vmand %vm9974_vm15, %vm17686_vm13  ;;  %vm18567_vm13 = vcmask 97280  }
 0x167   :  { %v2401_v44 = vshll.u32 %v9904_v48, 16  ;;  %2753 = vrot.lane.b32.xlu0 %v18514_v41, %s7925_s17  ;;  %v1377_v59 = vsel %vm17638_vm10, %v1354_v26, %v1169_v1  ;;  %vm17648_vm10 = vcmp.ge.s32.totalorder %v9929_v15, 1  ;;  %v58_v1 = vmul.u32 29128, %v9932_v17 }
 0x168   :  { %2775 = vrot.lane.b32.xlu1 %v18518_v9, %s7927_s12  ;;  %vm10034_vm2 = vmand %vm9974_vm15, %vm17648_vm10  ;;  %vm17684_vm10 = vcmp.le.s32.totalorder %v9897_v43, 16 }
 0x169   :  { %v9936_v27 = vrot.slane %v2401_v44, 1  ;;  %v9938_v35 = vpop.permute.xlu0 %1806  ;;  %v9966_v44 = vshra.s32 %v57_v40, 18  ;;  %v10053_v29 = vshra.s32 %v58_v1, 18  ;;  %vm10082_vm15 = vmand %vm10034_vm2, %vm17683_vm9  ;;  %vm18560_vm2 = vcmask 130048  }
 0x16a   :  { %v1215_v30 = vpop.permute.xlu1 %1214  ;;  %vm18564_vm9 = vcmask 195584  }
 0x16b   :  { %992 = vrot.lane.b32.xlu0 %v970_v2, %s7929_s19  ;;  %v2404_v16 = vsel %vm17691_vm0, %v2400_v24, %v9936_v27  ;;  %v1400_v3 = vsel %vm17727_vm11, %v1377_v59, %v1215_v30  ;;  %v9982_v2 = vld [vmem:[%s17523_s0 + $0x6c] sm:$0xff]   ;;  %v18524_v24 = vmov 0  ;;  %v2729_v30 = vld [vmem:[%s17523_s0 + $0x8] sm:$0xe]  ;;  %v141_v61 = vmul.u32 29128, %v9966_v44 }
 0x16c   :  { %v2496_v49 = vpop.f32.mrf.mxu1  ;;  %7590 = vmatmul.mubr.msk.bf16.gmra.mxu1 %vm17726_vm12, %v2404_v16  ;;  %v18525_v24 = vsel %vm9992_vm6, 4294967295, %v18524_v24  ;;  %1116 = vrot.lane.b32.xlu1 %v9817_v10, %s7930_s24  ;;  %v142_v43 = vmul.u32 29128, %v10053_v29 }
 0x16d   :  { %v9986_v40 = vadd.f32 %v9947_v5, %v2496_v49  ;;  %18526 = vst [vmem:[#allocation11_spill] sm:$0xff] %v18525_v24  ;;  %v9996_v9 = vpop.permute.xlu0 %1839  ;;  %v1491_v26 = vpop.f32.mrf.mxu0  ;;  %7540 = vmatmul.mubr.msk.bf16.gmra.mxu0 %vm17726_vm12, %v1400_v3  ;;  %v10021_v49 = vld [vmem:[%s17523_s0 + $0xc] sm:$0xf]  ;;  %7593 = vmatprep.mubr.msk.bf16.mxu1 %vm17651_vm3, %v18457_v53  ;;  %v18530_v3 = vld [vmem:[#allocation13_spill] sm:$0xff]  ;;  %v162_v15 = vshra.s32 %v141_v61, 18 }
 0x16e   :  { %v7567_v59 = vpop.f32.mrf.mxu1  ;;  %v10003_v16 = vadd.f32 %v9947_v5, %v1491_v26  ;;  %7543 = vmatprep.mubr.msk.bf16.mxu0 %vm17651_vm3, %v18457_v53  ;;  %v10038_v56 = vpop.permute.xlu1 %569  ;;  %vm10059_vm3 = vmand %vm10009_vm14, %vm17685_vm8  ;;  %v10071_v1 = vcombine.low %v2729_v30, %v10021_v49  ;;  %v18546_v26 = vmov 0  ;;  %v163_v58 = vshra.s32 %v142_v43, 18 }
 0x16f   :  { %18523 = vst [vmem:[#allocation9_spill] sm:$0xff] %v9986_v40  ;;  %2817 = vrot.lane.b32.xlu0 %v18530_v3, %s7928_s15  ;;  %v7517_v59 = vpop.f32.mrf.mxu0  ;;  %v18536_v51 = vsel %vm10059_vm3, 4294967295, %v18535_v51  ;;  %vm10100_vm14 = vmand %vm10047_vm7, %vm17684_vm10  ;;  %vm18559_vm7 = vcmask 97280  }
 0x170   :  { %18527 = vst [vmem:[#allocation69_spill] sm:$0xff] %v10003_v16  ;;  %v2499_v7 = vpop.f32.mrf.mxu1  ;;  %v2922_v59 = vshll.u32 %v9982_v2, 16  ;;  %18537 = vst [vmem:[#allocation13_spill] sm:$0xff] %v18536_v51  ;;  %2839 = vrot.lane.b32.xlu1 %v18539_v31, %s7929_s19  ;;  %v18544_v31 = vmax.f32 %v9986_v40, 0.0  ;;  %v18547_v26 = vsel %vm10100_vm14, 4294967295, %v18546_v26  ;;  %v2920_v40 = vor.u32 %v2919_v45, %v2915_v54 }
 0x171   :  { %v10064_v46 = vadd.f32 %v9947_v5, %v2499_v7  ;;  %v10066_v14 = vpop.permute.xlu0 %1948  ;;  %v1494_v18 = vpop.f32.mrf.mxu0  ;;  %v18540_v7 = vmov 0  ;;  %18548 = vst [vmem:[#allocation5_spill] sm:$0xff] %v18547_v26  ;;  %v3076_v54 = vrot.slane %v10071_v1, 1  ;;  %v10120_v45 = vrot.slane %v10076_v57, 1 }
 0x172   :  { %v18541_v7 = vsel %vm10082_vm15, 4294967295, %v18540_v7  ;;  %v7568_v11 = vpop.f32.mrf.mxu1  ;;  %v10087_v10 = vadd.f32 %v9947_v5, %v1494_v18  ;;  %v4588_v30 = vsel %vm9992_vm6, %v18544_v31, 0.0  ;;  %v10104_v18 = vpop.permute.xlu1 %681  ;;  %v18549_v31 = vmax.f32 %v10003_v16, 0.0 }
 0x173   :  { %18538 = vst [vmem:[#allocation70_spill] sm:$0xff] %v10064_v46  ;;  %18542 = vst [vmem:[#allocation15_spill] sm:$0xff] %v18541_v7  ;;  %2797 = vrot.lane.b32.xlu0 %v18545_v4, %s7926_s11  ;;  %v7518_v11 = vpop.f32.mrf.mxu0  ;;  %v2924_v23 = vrot.slane %v2922_v59, 1  ;;  %v18550_v6 = vmax.f32 %v10064_v46, 0.0  ;;  %v4609_v61 = vsel %vm17727_vm11, %v4588_v30, 0.0  ;;  %v99_v7 = vmul.u32 9, %v9966_v44 }
 0x174   :  { %18543 = vst [vmem:[#allocation71_spill] sm:$0xff] %v10087_v10  ;;  %v4476_v47 = vsel %vm10059_vm3, %v18549_v31, 0.0  ;;  %v17678_v24 = vmax.f32 %v10087_v10, 0.0  ;;  %2819 = vrot.lane.b32.xlu1 %v18551_v50, %s7928_s15  ;;  %v183_v26 = vmul.u32 9, %v162_v15 }
 0x175   :  { %v4589_v60 = vsel %vm10082_vm15, %v18550_v6, 0.0  ;;  %v1979_v11 = vpop.permute.xlu0 %1978  ;;  %v10131_v6 = vld [vmem:[%s17523_s0 + $0x74] sm:$0xff]   ;;  %v4497_v51 = vsel %vm17727_vm11, %v4476_v47, 0.0  ;;  %v10144_v16 = vsel %vm17691_vm0, %v2920_v40, %v2924_v23  ;;  %v18553_v47 = vrot.slane %v9631_v33, 1 }
 0x176   :  { %v4610_v59 = vsel %vm17727_vm11, %v4589_v60, 0.0  ;;  %v4477_v31 = vsel %vm10100_vm14, %v17678_v24, 0.0  ;;  %v18552_v60 = vrot.slane %v9610_v38, 1  ;;  %v844_v10 = vpop.permute.xlu1 %843  ;;  %v2930_v38 = vshll.u32 %v10131_v6, 16 }
 0x177   :  { %v10135_v46 = vadd.f32 %v4610_v59, %v4609_v61  ;;  %v4498_v30 = vsel %vm17727_vm11, %v4477_v31, 0.0  ;;  %v3078_v61 = vsel %vm17725_vm1, %v3076_v54, %v10120_v45  ;;  %v2926_v59 = vshrl.u32 %v9982_v2, 16 }
 0x178   :  { %1176 = vrot.lane.b32.xlu0 %v18552_v60, %s7931_s25  ;;  %v10141_v24 = vadd.f32 %v4498_v30, %v4497_v51  ;;  %1222 = vrot.lane.b32.xlu1 %v18553_v47, %s7932_s28  ;;  %v10154_v15 = vsub.s32 %v9889_v8, %v99_v7  ;;  %v10159_v43 = vsub.s32 %v9966_v44, %v183_v26  ;;  %v100_v33 = vmul.u32 9, %v10053_v29  ;;  %v18556_v26 = vld [vmem:[#allocation18_spill] sm:$0xff] }
 0x179   :  { %v2006_v22 = vpop.permute.xlu0 %2005  ;;  %v184_v51 = vmul.u32 9, %v163_v58  ;;  %v3122_v54 = vrot.slane %v9923_v36, 1  ;;  %v2928_v30 = vor.u32 %v2926_v59, %v2924_v23  ;;  %v10164_v60 = vrot.slane %v2930_v38, 1 }
 0x17a   :  { %18554 = vst [vmem:[#allocation17_spill] sm:$0xff] %v10154_v15  ;;  %v941_v40 = vpop.permute.xlu1 %940  ;;  %18555 = vst [vmem:[#allocation72_spill] sm:$0xff] %v10159_v43  ;;  %v3123_v8 = vrot.slane %v9982_v2, 1  ;;  %v10168_v7 = vmul.u32 2, %v10154_v15  ;;  %v2194_v44 = vsel %vm17688_vm4, %v9149_v0, %v9938_v35  ;;  %v10176_v47 = vmul.u32 2, %v10159_v43  ;;  %v7890_v35 = vld [vmem:[%s17523_s0 + $0x68] sm:$0xff]  }
 0x17b   :  { %v2216_v23 = vsel %vm17687_vm5, %v2194_v44, %v9996_v9  ;;  %v10181_v36 = vsub.s32 %v9932_v17, %v100_v33  ;;  %v10195_v9 = vld [vmem:[%s17523_s0 + $0x18] sm:$0xff]   ;;  %v1240_v33 = vsel %vm17688_vm4, %v9187_v32, %v10038_v56  ;;  %v18563_v44 = vld [vmem:[#allocation2_spill] sm:$0xff]  ;;  %vm18572_vm4 = vcmask 162816  }
 0x17c   :  { %3001 = vrot.lane.b32.xlu0 %v10144_v16, %s7930_s24  ;;  %3097 = vrot.lane.b32.xlu1 %v3078_v61, %s7931_s25  ;;  %v10184_v61 = vsub.s32 %v10053_v29, %v184_v51  ;;  %v2238_v59 = vsel %vm18559_vm7, %v2216_v23, %v10066_v14  ;;  %v10200_v29 = vsel %vm17691_vm0, %v2928_v30, %v10164_v60  ;;  %v10206_v38 = vadd.s32 1, %v10168_v7 }
 0x17d   :  { %v2115_v31 = vpop.permute.xlu0 %2114  ;;  %18557 = vst [vmem:[#allocation18_spill] sm:$0xff] %v10181_v36  ;;  %v2260_v17 = vsel %vm18560_vm2, %v2238_v59, %v1979_v11  ;;  %v3124_v14 = vsel %vm17725_vm1, %v3122_v54, %v3123_v8  ;;  %vm18562_vm7 = vcmask 162816   ;;  %vm1642_vm2 = vcmp.ge.s32.totalorder %v10176_v47, 1 }
 0x17e   :  { %v987_v58 = vpop.permute.xlu1 %986  ;;  %18558 = vst [vmem:[#allocation73_spill] sm:$0xff] %v10184_v61  ;;  %18561 = vst [vmem:[#allocation74_spill] sm:$0xff] %v10206_v38  ;;  %v2282_v51 = vsel %vm18562_vm7, %v2260_v17, %v2006_v22  ;;  %v10216_v30 = vadd.s32 32, %v9772_v13  ;;  %vm1663_vm10 = vcmp.le.s32.totalorder %v10176_v47, 16  ;;  %v10224_v32 = vmul.u32 2, %v10181_v36 }
 0x17f   :  { %v2304_v54 = vsel %vm18564_vm9, %v2282_v51, %v2115_v31  ;;  %vm18566_vm7 = vcmask 228352   ;;  %v17696_v23 = vrot.slane %v10195_v9, 1  ;;  %v1264_v59 = vsel %vm17687_vm5, %v1240_v33, %v10104_v18 }
 0x180   :  { %2841 = vrot.lane.b32.xlu0 %v18556_v26, %s7929_s19  ;;  %3720 = vrot.lane.b32.xlu1 %v7890_v35, %s7925_s17  ;;  %v10221_v26 = vmul.u32 2, %v10184_v61  ;;  %18565 = vst [vmem:[#allocation2_spill] sm:$0xff] %v10224_v32  ;;  %vm17689_vm9 = vcmp.ge.s32.totalorder %v10206_v38, 1  ;;  %vm17690_vm8 = vcmp.ge.s32.totalorder %v10168_v7, 1  ;;  %v2405_v35 = vshrl.u32 %v9904_v48, 16 }
 0x181   :  { %v2145_v0 = vpop.permute.xlu0 %2144  ;;  %v1287_v17 = vsel %vm18567_vm13, %v1264_v59, %v844_v10  ;;  %v59_v33 = vmul.u32 29128, %v10216_v30  ;;  %vm18570_vm5 = vcmask 130048   ;;  %v10253_v10 = vadd.s32 1, %v10224_v32 }
 0x182   :  { %v1111_v11 = vpop.permute.xlu1 %1110  ;;  %v2326_v22 = vsel %vm18566_vm7, %v2304_v54, %v2145_v0  ;;  %vm10245_vm7 = vmand %vm1642_vm2, %vm1663_vm10  ;;  %v1310_v48 = vsel %vm18570_vm5, %v1287_v17, %v941_v40  ;;  %v10256_v51 = vadd.s32 40, %v9772_v13  ;;  %vm1664_vm5 = vcmp.le.s32.totalorder %v10221_v26, 16 }
 0x183   :  { %18571 = vst [vmem:[#allocation75_spill] sm:$0xff] %v10253_v10  ;;  %v1333_v54 = vsel %vm18572_vm4, %v1310_v48, %v987_v58  ;;  %vm18573_vm10 = vcmask 195584   ;;  %vm10272_vm2 = vmand %vm10245_vm7, %vm17689_vm9  ;;  %vm17692_vm4 = vcmp.le.s32.totalorder %v10206_v38, 16  ;;  %vm18576_vm13 = vcmask 228352  }
 0x184   :  { %3718 = vrot.lane.b32.xlu0 %v18563_v44, %s7925_s17  ;;  %3143 = vrot.lane.b32.xlu1 %v3124_v14, %s7932_s28  ;;  %v2407_v44 = vor.u32 %v2405_v35, %v9936_v27  ;;  %v1356_v40 = vsel %vm18573_vm10, %v1333_v54, %v1111_v11  ;;  %v17694_v27 = vrot.slane %v10131_v6, 1  ;;  %vm10287_vm10 = vmand %vm10245_vm7, %vm17690_vm8  ;;  %vm17693_vm9 = vcmp.le.s32.totalorder %v10168_v7, 16 }
 0x185   :  { %v2172_v56 = vpop.permute.xlu0 %2171  ;;  %v10292_v17 = vshra.s32 %v59_v33, 18  ;;  %vm18579_vm7 = vcmp.ge.s32.totalorder %v10221_v26, 1  ;;  %vm17695_vm8 = vcmp.ge.s32.totalorder %v10253_v10, 1  ;;  %v60_v33 = vmul.u32 29128, %v10256_v51 }
 0x186   :  { %v10232_v31 = vsel %vm17727_vm11, %v2326_v22, %v2172_v56  ;;  %v1171_v14 = vpop.permute.xlu1 %1170  ;;  %v18588_v59 = vmov 0  ;;  %v3852_v18 = vshll.u32 %v10076_v57, 16  ;;  %v18603_v35 = vmov 0 }
 0x187   :  { %v2408_v0 = vshll.u32 %v10232_v31, 16  ;;  %v1379_v58 = vsel %vm18576_vm13, %v1356_v40, %v1171_v14  ;;  %v10300_v14 = vsel %vm17725_vm1, %v10120_v45, %v17696_v23  ;;  %vm10306_vm13 = vmand %vm18579_vm7, %vm1664_vm5  ;;  %vm17724_vm5 = vcmp.ge.s32.totalorder %v10224_v32, 1 }
 0x188   :  { %3003 = vrot.lane.b32.xlu0 %v10200_v29, %s7930_s24  ;;  %3750 = vrot.lane.b32.xlu1 %v18514_v41, %s7927_s12  ;;  %vm18591_vm7 = vmmov 0   ;;  %v10374_v23 = vshra.s32 %v60_v33, 18 }
 0x189   :  { %v10260_v22 = vrot.slane %v2408_v0, 1  ;;  %v10262_v56 = vpop.permute.xlu0 %1808 }
 0x18a   :  { %v1217_v11 = vpop.permute.xlu1 %1216 }
 0x18b   :  { %v2411_v41 = vsel %vm17691_vm0, %v2407_v44, %v10260_v22  ;;  %vm10319_vm0 = vmand %vm10272_vm2, %vm17692_vm4  ;;  %v18583_v44 = vmov 0  ;;  %vm17722_vm4 = vcmp.le.s32.totalorder %v10253_v10, 16  ;;  %v3860_v10 = vshll.u32 %v10195_v9, 16 }
 0x18c   :  { %3748 = vrot.lane.b32.xlu0 %v18505_v42, %s7927_s12  ;;  %v2504_v0 = vpop.f32.mrf.mxu1  ;;  %7594 = vmatmul.mubr.msk.bf16.gmra.mxu1 %vm17726_vm12, %v2411_v41  ;;  %v1402_v42 = vsel %vm17727_vm11, %v1379_v58, %v1217_v11  ;;  %v18584_v44 = vsel %vm10319_vm0, 4294967295, %v18583_v44  ;;  %v18586_v58 = vld [vmem:[#allocation4_spill] sm:$0xff]  ;;  %vm10336_vm2 = vmand %vm10287_vm10, %vm17693_vm9 }
 0x18d   :  { %v10313_v48 = vadd.f32 %v9947_v5, %v2504_v0  ;;  %18585 = vst [vmem:[#allocation77_spill] sm:$0xff] %v18584_v44  ;;  %v10323_v54 = vpop.permute.xlu0 %1841  ;;  %v1499_v40 = vpop.f32.mrf.mxu0  ;;  %3770 = vrot.lane.b32.xlu1 %v18586_v58, %s7926_s11  ;;  %7544 = vmatmul.mubr.msk.bf16.gmra.mxu0 %vm17726_vm12, %v1402_v42  ;;  %v18589_v59 = vsel %vm10336_vm2, 4294967295, %v18588_v59  ;;  %v3126_v0 = vsel %vm17725_vm1, %v3123_v8, %v17694_v27  ;;  %vm10356_vm10 = vmand %vm10306_vm13, %vm17695_vm8  ;;  %vm17723_vm8 = vcmp.le.s32.totalorder %v10224_v32, 16 }
 0x18e   :  { %v7571_v41 = vpop.f32.mrf.mxu1  ;;  %v10330_v11 = vadd.f32 %v9947_v5, %v1499_v40  ;;  %18590 = vst [vmem:[#allocation78_spill] sm:$0xff] %v18589_v59  ;;  %7597 = vmatprep.mubr.msk.bf16.mxu1 %vm18591_vm7, %v18457_v53  ;;  %7547 = vmatprep.mubr.msk.bf16.mxu0 %vm18591_vm7, %v18457_v53  ;;  %v10361_v8 = vpop.permute.xlu1 %571  ;;  %v143_v40 = vmul.u32 29128, %v10292_v17  ;;  %vm10369_vm9 = vmand %vm10306_vm13, %vm17724_vm5  ;;  %vm18618_vm5 = vcmask 130048   ;;  %vm18622_vm1 = vcmask 195584  }
 0x18f   :  { %18582 = vst [vmem:[#allocation76_spill] sm:$0xff] %v10313_v48  ;;  %v17701_v42 = vmax.f32 %v10313_v48, 0.0  ;;  %v7521_v2 = vpop.f32.mrf.mxu0  ;;  %vm10396_vm13 = vmand %vm10356_vm10, %vm17722_vm4  ;;  %vm18612_vm4 = vcmask 31744   ;;  %vm18632_vm12 = vcmask 162816  }
 0x190   :  { %18587 = vst [vmem:[#allocation4_spill] sm:$0xff] %v10330_v11  ;;  %3099 = vrot.lane.b32.xlu0 %v10300_v14, %s7931_s25  ;;  %v2507_v41 = vpop.f32.mrf.mxu1  ;;  %v18597_v33 = vmax.f32 %v10330_v11, 0.0  ;;  %vm10412_vm10 = vmand %vm10369_vm9, %vm17723_vm8  ;;  %v164_v59 = vshra.s32 %v143_v40, 18  ;;  %v3856_v40 = vshrl.u32 %v10076_v57, 16  ;;  %vm18611_vm9 = vsmask.f32 7424 }
 0x191   :  { %v4590_v2 = vsel %vm10319_vm0, %v17701_v42, 0.0  ;;  %v10381_v58 = vadd.f32 %v9947_v5, %v2507_v41  ;;  %v10383_v36 = vpop.permute.xlu0 %1950  ;;  %v1502_v61 = vpop.f32.mrf.mxu0  ;;  %3145 = vrot.lane.b32.xlu1 %v3126_v0, %s7932_s28  ;;  %v18598_v41 = vmov 0  ;;  %v18604_v35 = vsel %vm10412_vm10, 4294967295, %v18603_v35 }
 0x192   :  { %v4612_v15 = vsel %vm17727_vm11, %v4590_v2, 0.0  ;;  %v4478_v43 = vsel %vm10336_vm2, %v18597_v33, 0.0  ;;  %v18599_v41 = vsel %vm10396_vm13, 4294967295, %v18598_v41  ;;  %v7572_v42 = vpop.f32.mrf.mxu1  ;;  %v10401_v0 = vadd.f32 %v9947_v5, %v1502_v61  ;;  %v18602_v33 = vld [vmem:[#allocation7_spill] sm:$0xff]  ;;  %v10416_v61 = vpop.permute.xlu1 %683 }
 0x193   :  { %18596 = vst [vmem:[#allocation79_spill] sm:$0xff] %v10381_v58  ;;  %18600 = vst [vmem:[#allocation80_spill] sm:$0xff] %v18599_v41  ;;  %v4613_v44 = vadd.f32 %v4612_v15, %v10135_v46  ;;  %v4500_v2 = vsel %vm17727_vm11, %v4478_v43, 0.0  ;;  %v17713_v48 = vmax.f32 %v10381_v58, 0.0  ;;  %v7522_v42 = vpop.f32.mrf.mxu0  ;;  %v3847_v43 = vshll.u32 %v10071_v1, 16 }
 0x194   :  { %18601 = vst [vmem:[#allocation81_spill] sm:$0xff] %v10401_v0  ;;  %3772 = vrot.lane.b32.xlu0 %v18602_v33, %s7926_s11  ;;  %18605 = vst [vmem:[#allocation7_spill] sm:$0xff] %v18604_v35  ;;  %v4501_v46 = vadd.f32 %v4500_v2, %v10141_v24  ;;  %v17719_v15 = vmax.f32 %v10401_v0, 0.0  ;;  %v144_v33 = vmul.u32 29128, %v10374_v23  ;;  %v3854_v42 = vrot.slane %v3852_v18, 1 }
 0x195   :  { %v4591_v27 = vsel %vm10396_vm13, %v17713_v48, 0.0  ;;  %v1981_v11 = vpop.permute.xlu0 %1980  ;;  %3794 = vrot.lane.b32.xlu1 %v18545_v4, %s7928_s15  ;;  %v101_v58 = vmul.u32 9, %v10292_v17  ;;  %v18606_v4 = vld [vmem:[#allocation6_spill] sm:$0xff]  ;;  %v185_v57 = vmul.u32 9, %v164_v59  ;;  %v3849_v0 = vrot.slane %v3847_v43, 1 }
 0x196   :  { %v4614_v24 = vsel %vm17727_vm11, %v4591_v27, 0.0  ;;  %v4479_v2 = vsel %vm10412_vm10, %v17719_v15, 0.0  ;;  %v846_v18 = vpop.permute.xlu1 %845  ;;  %v3845_v27 = vshrl.u32 %v10071_v1, 16  ;;  %v165_v35 = vshra.s32 %v144_v33, 18 }
 0x197   :  { %v10436_v41 = vadd.f32 %v4614_v24, %v4613_v44  ;;  %v4502_v48 = vsel %vm17727_vm11, %v4479_v2, 0.0  ;;  %v3858_v32 = vor.u32 %v3856_v40, %v3854_v42  ;;  %v10446_v44 = vrot.slane %v3860_v10, 1  ;;  %v18608_v2 = vld [vmem:[#allocation20_spill] sm:$0xff] }
 0x198   :  { %3792 = vrot.lane.b32.xlu0 %v18606_v4, %s7928_s15  ;;  %v10441_v38 = vadd.f32 %v4502_v48, %v4501_v46  ;;  %v10449_v24 = vsub.s32 %v10216_v30, %v101_v58  ;;  %v10454_v48 = vsub.s32 %v10292_v17, %v185_v57  ;;  %v3850_v1 = vor.u32 %v3849_v0, %v3845_v27  ;;  %v3717_v58 = vld [vmem:[%s17523_s0 + $0x8] sm:$0xc] }
 0x199   :  { %v2008_v15 = vpop.permute.xlu0 %2007  ;;  %3822 = vrot.lane.b32.xlu1 %v18530_v3, %s7929_s19  ;;  %v102_v46 = vmul.u32 9, %v10374_v23  ;;  %v186_v43 = vmul.u32 9, %v165_v35  ;;  %v18610_v3 = vld [vmem:[#allocation21_spill] sm:$0xff]  ;;  %v3863_v10 = vsel %vm18611_vm9, %v3858_v32, %v10446_v44  ;;  %v2196_v17 = vsel %vm18612_vm4, %v9336_v52, %v10262_v56 }
 0x19a   :  { %18607 = vst [vmem:[#allocation6_spill] sm:$0xff] %v10449_v24  ;;  %v943_v59 = vpop.permute.xlu1 %942  ;;  %18609 = vst [vmem:[#allocation20_spill] sm:$0xff] %v10454_v48  ;;  %v10462_v30 = vmul.u32 2, %v10449_v24  ;;  %v10473_v35 = vmul.u32 2, %v10454_v48  ;;  %vm18613_vm9 = vcmask 64512   ;;  %vm18617_vm4 = vcmask 97280  }
 0x19b   :  { %v2218_v32 = vsel %vm18613_vm9, %v2196_v17, %v10323_v54  ;;  %vm18614_vm8 = vsmask.f32 7424  ;;  %v10479_v4 = vsub.s32 %v10256_v51, %v102_v46  ;;  %v10482_v57 = vsub.s32 %v10374_v23, %v186_v43 }
 0x19c   :  { %2755 = vrot.lane.b32.xlu0 %v18608_v2, %s7925_s17  ;;  %v3855_v40 = vsel %vm18614_vm8, %v3850_v1, %v3854_v42  ;;  %v2240_v52 = vsel %vm18617_vm4, %v2218_v32, %v10383_v36  ;;  %v10490_v54 = vadd.s32 1, %v10462_v30  ;;  %vm18620_vm8 = vcmask 31744  }
 0x19d   :  { %v2117_v33 = vpop.permute.xlu0 %2116  ;;  %2777 = vrot.lane.b32.xlu1 %v18610_v3, %s7927_s12  ;;  %18615 = vst [vmem:[#allocation21_spill] sm:$0xff] %v10479_v4  ;;  %18616 = vst [vmem:[#allocation82_spill] sm:$0xff] %v10482_v57  ;;  %v2262_v27 = vsel %vm18618_vm5, %v2240_v52, %v1981_v11  ;;  %v1242_v51 = vsel %vm18620_vm8, %v9374_v19, %v10361_v8  ;;  %vm18621_vm9 = vcmask 162816   ;;  %vm1644_vm4 = vcmp.ge.s32.totalorder %v10473_v35, 1 }
 0x19e   :  { %v989_v0 = vpop.permute.xlu1 %988  ;;  %18619 = vst [vmem:[#allocation83_spill] sm:$0xff] %v10490_v54  ;;  %v2284_v23 = vsel %vm18621_vm9, %v2262_v27, %v2008_v15  ;;  %v10499_v36 = vadd.s32 48, %v9772_v13  ;;  %vm1665_vm5 = vcmp.le.s32.totalorder %v10473_v35, 16  ;;  %v10504_v11 = vmul.u32 2, %v10482_v57 }
 0x19f   :  { %v10507_v1 = vmul.u32 2, %v10479_v4  ;;  %vm18624_vm8 = vcmask 228352   ;;  %vm18625_vm9 = vcmask 64512   ;;  %v2412_v3 = vshrl.u32 %v10232_v31, 16 }
 0x1a0   :  { %3824 = vrot.lane.b32.xlu0 %v18551_v50, %s7929_s19  ;;  %v7314_v50 = vcombine.low %v3717_v58, %v10021_v49  ;;  %v2306_v49 = vsel %vm18622_vm1, %v2284_v23, %v2117_v33  ;;  %v1266_v46 = vsel %vm18625_vm9, %v1242_v51, %v10416_v61  ;;  %vm17728_vm1 = vcmp.ge.s32.totalorder %v10490_v54, 1  ;;  %v10522_v33 = vld [vmem:[%s17523_s0 + $0x7c] sm:$0xff]   ;;  %v18627_v61 = vld [vmem:[#allocation16_spill] sm:$0xff]  ;;  %vm10533_vm9 = vmand %vm1644_vm4, %vm1665_vm5 }
 0x1a1   :  { %v2147_v56 = vpop.permute.xlu0 %2146  ;;  %3933 = vrot.lane.b32.xlu1 %v3863_v10, %s7930_s24  ;;  %18623 = vst [vmem:[#allocation84_spill] sm:$0xff] %v10507_v1  ;;  %v61_v32 = vmul.u32 29128, %v10499_v36  ;;  %v2414_v52 = vor.u32 %v2412_v3, %v10260_v22  ;;  %v18633_v51 = vld [vmem:[#allocation23_spill] sm:$0xff]  ;;  %vm18634_vm4 = vcmask 195584   ;;  %vm10560_vm5 = vmand %vm10533_vm9, %vm17728_vm1  ;;  %v2934_v22 = vshrl.u32 %v10131_v6, 16 }
 0x1a2   :  { %v1113_v42 = vpop.permute.xlu1 %1112  ;;  %v2328_v19 = vsel %vm18624_vm8, %v2306_v49, %v2147_v56  ;;  %v3986_v15 = vrot.slane %v7314_v50, 1  ;;  %vm18626_vm8 = vcmask 97280   ;;  %vm18639_vm1 = vcmp.ge.s32.totalorder %v10462_v30, 1 }
 0x1a3   :  { %vm18643_vm13 = vcmask 261120   ;;  %vm18645_vm0 = vcmp.le.s32.totalorder %v10504_v11, 16  ;;  %vm18646_vm15 = vcmp.ge.s32.totalorder %v10504_v11, 1 }
 0x1a4   :  { %3931 = vrot.lane.b32.xlu0 %v3855_v40, %s7930_s24  ;;  %v10544_v40 = vadd.s32 56, %v9772_v13 }
 0x1a5   :  { %v2174_v8 = vpop.permute.xlu0 %2173  ;;  %3961 = vrot.lane.b32.xlu1 %v10144_v16, %s7931_s25  ;;  %v1289_v16 = vsel %vm18626_vm8, %v1266_v46, %v846_v18  ;;  %v10541_v18 = vadd.s32 1, %v10507_v1  ;;  %vm18637_vm8 = vcmask 228352   ;;  %v10581_v46 = vshra.s32 %v61_v32, 18 }
 0x1a6   :  { %v10515_v43 = vsel %vm17727_vm11, %v2328_v19, %v2174_v8  ;;  %v1173_v58 = vpop.permute.xlu1 %1172  ;;  %vm18630_vm11 = vcmask 130048  }
 0x1a7   :  { %v2415_v10 = vshll.u32 %v10515_v43, 16  ;;  %v1312_v31 = vsel %vm18630_vm11, %v1289_v16, %v943_v59  ;;  %18631 = vst [vmem:[#allocation16_spill] sm:$0xff] %v10541_v18  ;;  %vm10576_vm11 = vmand %vm10533_vm9, %vm18639_vm1  ;;  %vm17736_vm9 = vcmp.ge.s32.totalorder %v10541_v18, 1 }
 0x1a8   :  { %2799 = vrot.lane.b32.xlu0 %v18627_v61, %s7926_s11  ;;  %v1335_v56 = vsel %vm18632_vm12, %v1312_v31, %v989_v0  ;;  %v2938_v0 = vshll.u32 %v10522_v33, 16  ;;  %vm17756_vm12 = vcmp.le.s32.totalorder %v10462_v30, 16  ;;  %vm10591_vm1 = vmand %vm18646_vm15, %vm18645_vm0  ;;  %vm18654_vm0 = vcmask 293888  }
 0x1a9   :  { %v10548_v50 = vrot.slane %v2415_v10, 1  ;;  %v10550_v27 = vpop.permute.xlu0 %1810  ;;  %2821 = vrot.lane.b32.xlu1 %v18633_v51, %s7928_s15  ;;  %v1358_v59 = vsel %vm18634_vm4, %v1335_v56, %v1113_v42  ;;  %vm18638_vm4 = vsmask.f32 7424  ;;  %vm17739_vm15 = vcmp.ge.s32.totalorder %v10507_v1, 1 }
 0x1aa   :  { %v1381_v49 = vsel %vm18637_vm8, %v1358_v59, %v1173_v58  ;;  %v1219_v19 = vpop.permute.xlu1 %1218  ;;  %vm18642_vm8 = vcmask 293888   ;;  %v62_v58 = vmul.u32 29128, %v10544_v40  ;;  %v18656_v56 = vmov 0 }
 0x1ab   :  { %v2418_v42 = vsel %vm18638_vm4, %v2414_v52, %v10548_v50  ;;  %vm18644_vm4 = vcmask 1046528   ;;  %v2936_v59 = vor.u32 %v2934_v22, %v10164_v60  ;;  %v10626_v23 = vrot.slane %v2938_v0, 1 }
 0x1ac   :  { %3963 = vrot.lane.b32.xlu0 %v10200_v29, %s7931_s25  ;;  %v2512_v3 = vpop.f32.mrf.mxu1  ;;  %7598 = vmatmul.mubr.msk.bf16.gmra.mxu1 %vm18642_vm8, %v2418_v42  ;;  %v1404_v29 = vsel %vm18643_vm13, %v1381_v49, %v1219_v19  ;;  %v3987_v16 = vsel %vm18644_vm4, %v3986_v15, %v10120_v45  ;;  %vm18650_vm13 = vcmp.le.s32.totalorder %v10490_v54, 16  ;;  %v18651_v45 = vmov 0  ;;  %v18671_v49 = vld [vmem:[#allocation24_spill] sm:$0xff] }
 0x1ad   :  { %v10598_v17 = vadd.f32 %v9947_v5, %v2512_v3  ;;  %vm10604_vm8 = vmand %vm10560_vm5, %vm18650_vm13  ;;  %v10608_v15 = vpop.permute.xlu0 %1843  ;;  %v1507_v32 = vpop.f32.mrf.mxu0  ;;  %3990 = vrot.lane.b32.xlu1 %v10300_v14, %s7932_s28  ;;  %7548 = vmatmul.mubr.msk.bf16.gmra.mxu0 %vm18654_vm0, %v1404_v29  ;;  %vm17754_vm4 = vcmp.le.s32.totalorder %v10541_v18, 16  ;;  %v145_v0 = vmul.u32 29128, %v10581_v46  ;;  %vm17755_vm0 = vcmp.le.s32.totalorder %v10507_v1, 16  ;;  %v10659_v3 = vld [vmem:[%s17523_s0 + $0x20] sm:$0xff]   ;;  %v7897_v1 = vld [vmem:[%s17523_s0 + $0x88] sm:$0xff]  }
 0x1ae   :  { %v18652_v45 = vsel %vm10604_vm8, 4294967295, %v18651_v45  ;;  %v7575_v31 = vpop.f32.mrf.mxu1  ;;  %v10615_v52 = vadd.f32 %v9947_v5, %v1507_v32  ;;  %vm10621_vm5 = vmand %vm10576_vm11, %vm17756_vm12  ;;  %7601 = vmatprep.mubr.msk.bf16.mxu1 %vm18591_vm7, %v18457_v53  ;;  %7551 = vmatprep.mubr.msk.bf16.mxu0 %vm18591_vm7, %v18457_v53  ;;  %v10643_v22 = vpop.permute.xlu1 %573  ;;  %v10661_v29 = vshra.s32 %v62_v58, 18 }
 0x1af   :  { %18649 = vst [vmem:[#allocation23_spill] sm:$0xff] %v10598_v17  ;;  %18653 = vst [vmem:[#allocation85_spill] sm:$0xff] %v18652_v45  ;;  %v18657_v56 = vsel %vm10621_vm5, 4294967295, %v18656_v56  ;;  %v17737_v14 = vmax.f32 %v10598_v17, 0.0  ;;  %v7525_v60 = vpop.f32.mrf.mxu0  ;;  %v166_v48 = vshra.s32 %v145_v0, 18  ;;  %v103_v0 = vmul.u32 9, %v10581_v46 }
 0x1b0   :  { %18655 = vst [vmem:[#allocation86_spill] sm:$0xff] %v10615_v52  ;;  %18658 = vst [vmem:[#allocation87_spill] sm:$0xff] %v18657_v56  ;;  %3988 = vrot.lane.b32.xlu0 %v3987_v16, %s7932_s28  ;;  %v2515_v19 = vpop.f32.mrf.mxu1  ;;  %v7891_v60 = vld [vmem:[%s17523_s0 + $0x70] sm:$0xff]   ;;  %v18665_v58 = vmax.f32 %v10615_v52, 0.0  ;;  %v146_v24 = vmul.u32 29128, %v10661_v29 }
 0x1b1   :  { %vm10638_vm11 = vmand %vm10591_vm1, %vm17736_vm9  ;;  %v4592_v16 = vsel %vm10604_vm8, %v17737_v14, 0.0  ;;  %v10668_v10 = vadd.f32 %v9947_v5, %v2515_v19  ;;  %v1953_v32 = vpop.permute.xlu0 %1952  ;;  %v1510_v31 = vpop.f32.mrf.mxu0  ;;  %3722 = vrot.lane.b32.xlu1 %v7891_v60, %s7925_s17  ;;  %v18666_v19 = vmov 0  ;;  %vm18719_vm8 = vsmask.f32 7424 }
 0x1b2   :  { %vm10651_vm13 = vmand %vm10591_vm1, %vm17739_vm15  ;;  %vm18664_vm1 = vcmask 261120   ;;  %v4480_v4 = vsel %vm10621_vm5, %v18665_v58, 0.0  ;;  %v7576_v14 = vpop.f32.mrf.mxu1  ;;  %v10688_v57 = vadd.f32 %v9947_v5, %v1510_v31  ;;  %vm18670_vm15 = vsmask.f32 7424 }
 0x1b3   :  { %18663 = vst [vmem:[#allocation88_spill] sm:$0xff] %v10668_v10  ;;  %v4616_v42 = vsel %vm18664_vm1, %v4592_v16, 0.0  ;;  %vm10683_vm9 = vmand %vm10638_vm11, %vm17754_vm4  ;;  %v10692_v16 = vsel %vm18670_vm15, %v2936_v59, %v10626_v23  ;;  %v4504_v58 = vsel %vm18664_vm1, %v4480_v4, 0.0  ;;  %v18672_v14 = vmov 0  ;;  %v7526_v31 = vpop.f32.mrf.mxu0  ;;  %v686_v59 = vpop.permute.xlu1 %685 }
 0x1b4   :  { %v18667_v19 = vsel %vm10683_vm9, 4294967295, %v18666_v19  ;;  %18669 = vst [vmem:[#allocation90_spill] sm:$0xff] %v10688_v57  ;;  %v4617_v60 = vadd.f32 %v4616_v42, %v10436_v41  ;;  %2843 = vrot.lane.b32.xlu0 %v18671_v49, %s7929_s19  ;;  %vm10703_vm11 = vmand %vm10651_vm13, %vm17755_vm0  ;;  %v4505_v41 = vadd.f32 %v4504_v58, %v10441_v38  ;;  %v17750_v4 = vmax.f32 %v10688_v57, 0.0  ;;  %v7893_v57 = vld [vmem:[%s17523_s0 + $0x78] sm:$0xff]  }
 0x1b5   :  { %18668 = vst [vmem:[#allocation89_spill] sm:$0xff] %v18667_v19  ;;  %v18673_v14 = vsel %vm10703_vm11, 4294967295, %v18672_v14  ;;  %v18675_v49 = vmax.f32 %v10668_v10, 0.0  ;;  %v1983_v45 = vpop.permute.xlu0 %1982  ;;  %3752 = vrot.lane.b32.xlu1 %v18608_v2, %s7927_s12  ;;  %vm18676_vm15 = vmmov %vm18664_vm1  ;;  %v187_v19 = vmul.u32 9, %v166_v48  ;;  %v18678_v2 = vrot.slane %v10659_v3, 1 }
 0x1b6   :  { %18674 = vst [vmem:[#allocation24_spill] sm:$0xff] %v18673_v14  ;;  %v4481_v38 = vsel %vm10703_vm11, %v17750_v4, 0.0  ;;  %vm18677_vm13 = vmmov %vm18664_vm1  ;;  %vm18680_vm1 = vcmask 1046528   ;;  %v17753_v4 = vrot.slane %v10522_v33, 1  ;;  %v3864_v10 = vshrl.u32 %v10195_v9, 16 }
 0x1b7   :  { %v4593_v8 = vsel %vm10683_vm9, %v18675_v49, 0.0  ;;  %v4506_v42 = vsel %vm18677_vm13, %v4481_v38, 0.0  ;;  %v848_v49 = vpop.permute.xlu1 %847  ;;  %v18681_v38 = vld [vmem:[#allocation10_spill] sm:$0xff]  ;;  %v3868_v48 = vshll.u32 %v10659_v3, 16  ;;  %vm18687_vm13 = vcmask 31744  }
 0x1b8   :  { %v4618_v31 = vsel %vm18676_vm15, %v4593_v8, 0.0  ;;  %3005 = vrot.lane.b32.xlu0 %v10692_v16, %s7930_s24  ;;  %v10728_v56 = vadd.f32 %v4506_v42, %v4505_v41  ;;  %v18679_v8 = vrot.slane %v10195_v9, 1  ;;  %v10743_v41 = vsub.s32 %v10499_v36, %v103_v0  ;;  %vm18685_vm15 = vmmov %vm18680_vm1 }
 0x1b9   :  { %v10723_v58 = vadd.f32 %v4618_v31, %v4617_v60  ;;  %v167_v60 = vshra.s32 %v146_v24, 18  ;;  %v2010_v31 = vpop.permute.xlu0 %2009  ;;  %3774 = vrot.lane.b32.xlu1 %v18681_v38, %s7926_s11  ;;  %v104_v24 = vmul.u32 9, %v10661_v29  ;;  %v3866_v36 = vor.u32 %v3864_v10, %v10446_v44 }
 0x1ba   :  { %v10735_v14 = vsel %vm18680_vm1, %v18679_v8, %v18678_v2  ;;  %18682 = vst [vmem:[#allocation10_spill] sm:$0xff] %v10743_v41  ;;  %v10748_v2 = vsub.s32 %v10581_v46, %v187_v19  ;;  %v18684_v8 = vrot.slane %v10131_v6, 1  ;;  %v10759_v0 = vrot.slane %v3868_v48, 1  ;;  %v7892_v19 = vld [vmem:[%s17523_s0 + $0x108] ss:$0 sps:$4 sm:$0x33]  }
 0x1bb   :  { %v945_v42 = vpop.permute.xlu1 %944  ;;  %v188_v38 = vmul.u32 9, %v167_v60  ;;  %v10762_v46 = vmul.u32 2, %v10743_v41  ;;  %v2198_v6 = vsel %vm18687_vm13, %v7892_v19, %v10550_v27  ;;  %v10774_v44 = vsub.s32 %v10544_v40, %v104_v24 }
 0x1bc   :  { %3101 = vrot.lane.b32.xlu0 %v10735_v14, %s7931_s25  ;;  %18683 = vst [vmem:[#allocation91_spill] sm:$0xff] %v10748_v2  ;;  %v3128_v9 = vsel %vm18685_vm15, %v18684_v8, %v17753_v4  ;;  %v10771_v8 = vmul.u32 2, %v10748_v2  ;;  %vm18690_vm1 = vcmask 64512   ;;  %vm18692_vm15 = vcmask 97280  }
 0x1bd   :  { %v2119_v17 = vpop.permute.xlu0 %2118  ;;  %3796 = vrot.lane.b32.xlu1 %v18627_v61, %s7928_s15  ;;  %18686 = vst [vmem:[#allocation92_spill] sm:$0xff] %v10762_v46  ;;  %18689 = vst [vmem:[#allocation94_spill] sm:$0xff] %v10774_v44  ;;  %v2220_v61 = vsel %vm18690_vm1, %v2198_v6, %v10608_v15  ;;  %v10779_v10 = vsub.s32 %v10661_v29, %v188_v38  ;;  %v1244_v27 = vsel %vm18687_vm13, %v9554_v21, %v10643_v22  ;;  %vm18693_vm4 = vcmask 130048  }
 0x1be   :  { %18688 = vst [vmem:[#allocation93_spill] sm:$0xff] %v10771_v8  ;;  %v2242_v48 = vsel %vm18692_vm15, %v2220_v61, %v1953_v32  ;;  %vm18694_vm0 = vsmask.f32 7424  ;;  %v10791_v15 = vadd.s32 1, %v10762_v46  ;;  %vm18696_vm1 = vcmask 162816   ;;  %v18697_v32 = vld [vmem:[#allocation26_spill] sm:$0xff]  ;;  %vm18703_vm12 = vmmov %vm18692_vm15 }
 0x1bf   :  { %v991_v60 = vpop.permute.xlu1 %990  ;;  %18691 = vst [vmem:[#allocation95_spill] sm:$0xff] %v10779_v10  ;;  %v3871_v40 = vsel %vm18694_vm0, %v3866_v36, %v10759_v0  ;;  %vm18699_vm13 = vcmask 195584   ;;  %v10806_v22 = vadd.s32 64, %v9772_v13  ;;  %vm18701_vm0 = vcmask 64512   ;;  %vm18705_vm9 = vmmov %vm18693_vm4 }
 0x1c0   :  { %3147 = vrot.lane.b32.xlu0 %v3128_v9, %s7932_s28  ;;  %v2264_v9 = vsel %vm18693_vm4, %v2242_v48, %v1983_v45  ;;  %18695 = vst [vmem:[#allocation96_spill] sm:$0xff] %v10791_v15  ;;  %v10803_v45 = vmul.u32 2, %v10779_v10  ;;  %vm18704_vm15 = vcmask 261120   ;;  %vm18717_vm4 = vcmask 261120  }
 0x1c1   :  { %v2149_v4 = vpop.permute.xlu0 %2148  ;;  %3826 = vrot.lane.b32.xlu1 %v18633_v51, %s7929_s19  ;;  %v2286_v29 = vsel %vm18696_vm1, %v2264_v9, %v2010_v31  ;;  %v10798_v51 = vmul.u32 2, %v10774_v44  ;;  %v1268_v31 = vsel %vm18701_vm0, %v1244_v27, %v686_v59  ;;  %vm18702_vm1 = vcmask 228352  }
 0x1c2   :  { %v2308_v21 = vsel %vm18699_vm13, %v2286_v29, %v2119_v17  ;;  %18700 = vst [vmem:[#allocation97_spill] sm:$0xff] %v10803_v45  ;;  %v1291_v19 = vsel %vm18703_vm12, %v1268_v31, %v848_v49  ;;  %vm17761_vm13 = vcmp.ge.s32.totalorder %v10791_v15, 1  ;;  %v2419_v17 = vshrl.u32 %v10515_v43, 16  ;;  %v10836_v43 = vld [vmem:[%s17523_s0 + $0x84] sm:$0xff]  }
 0x1c3   :  { %v1115_v24 = vpop.permute.xlu1 %1114  ;;  %18698 = vst [vmem:[#allocation26_spill] sm:$0xff] %v10798_v51  ;;  %v2330_v38 = vsel %vm18702_vm1, %v2308_v21, %v2149_v4  ;;  %v1314_v61 = vsel %vm18705_vm9, %v1291_v19, %v945_v42  ;;  %v18706_v4 = vld [vmem:[#allocation27_spill] sm:$0xff]  ;;  %vm18707_vm0 = vcmp.le.s32.totalorder %v10771_v8, 16  ;;  %vm18708_vm12 = vcmp.ge.s32.totalorder %v10771_v8, 1 }
 0x1c4   :  { %2757 = vrot.lane.b32.xlu0 %v18697_v32, %s7925_s17  ;;  %v10831_v27 = vadd.s32 1, %v10798_v51  ;;  %vm18712_vm9 = vcmask 162816   ;;  %v63_v9 = vmul.u32 29128, %v10806_v22 }
 0x1c5   :  { %v2176_v36 = vpop.permute.xlu0 %2175  ;;  %3935 = vrot.lane.b32.xlu1 %v3871_v40, %s7930_s24  ;;  %v1337_v42 = vsel %vm18712_vm9, %v1314_v61, %v991_v60  ;;  %v2421_v40 = vor.u32 %v2419_v17, %v10548_v50  ;;  %v2942_v61 = vshrl.u32 %v10522_v33, 16 }
 0x1c6   :  { %v10813_v6 = vsel %vm18704_vm15, %v2330_v38, %v2176_v36  ;;  %vm10826_vm15 = vmand %vm18708_vm12, %vm18707_vm0  ;;  %18711 = vst [vmem:[#allocation27_spill] sm:$0xff] %v10831_v27  ;;  %vm18713_vm0 = vcmask 195584   ;;  %v10847_v38 = vadd.s32 72, %v9772_v13  ;;  %v10887_v49 = vshra.s32 %v63_v9, 18 }
 0x1c7   :  { %v2422_v59 = vshll.u32 %v10813_v6, 16  ;;  %v1221_v48 = vpop.permute.xlu1 %1220  ;;  %v1360_v21 = vsel %vm18713_vm0, %v1337_v42, %v1115_v24  ;;  %vm18714_vm12 = vmmov %vm18702_vm1  ;;  %vm18726_vm1 = vcmp.ge.s32.totalorder %v10803_v45, 1 }
 0x1c8   :  { %2779 = vrot.lane.b32.xlu0 %v18706_v4, %s7927_s12  ;;  %vm10854_vm9 = vmand %vm10826_vm15, %vm17761_vm13  ;;  %v64_v9 = vmul.u32 29128, %v10847_v38 }
 0x1c9   :  { %v2424_v29 = vrot.slane %v2422_v59, 1  ;;  %v1175_v31 = vpop.permute.xlu0 %1174  ;;  %3965 = vrot.lane.b32.xlu1 %v10692_v16, %s7931_s25  ;;  %v18718_v16 = vld [vmem:[#allocation22_spill] sm:$0xff]  ;;  %v2946_v59 = vshll.u32 %v10836_v43, 16 }
 0x1ca   :  { %v1383_v60 = vsel %vm18714_vm12, %v1360_v21, %v1175_v31  ;;  %vm18720_vm12 = vcmp.ge.s32.totalorder %v10762_v46, 1  ;;  %v85_v52 = vshra.s32 %v64_v9, 18 }
 0x1cb   :  { %v1406_v50 = vsel %vm18717_vm4, %v1383_v60, %v1221_v48  ;;  %v2425_v24 = vsel %vm18719_vm8, %v2421_v40, %v2424_v29  ;;  %v10864_v19 = vpop.permute.xlu1 %687  ;;  %vm10870_vm13 = vmand %vm10826_vm15, %vm18720_vm12  ;;  %vm18723_vm4 = vcmask 293888   ;;  %vm18725_vm8 = vcmp.le.s32.totalorder %v10803_v45, 16 }
 0x1cc   :  { %2801 = vrot.lane.b32.xlu0 %v18718_v16, %s7926_s11  ;;  %7552 = vmatmul.mubr.msk.bf16.gmra.mxu0 %vm18723_vm4, %v1406_v50  ;;  %v2520_v4 = vpop.f32.mrf.mxu1  ;;  %vm18724_vm0 = vmmov %vm18723_vm4  ;;  %vm17779_vm15 = vcmp.ge.s32.totalorder %v10831_v27, 1  ;;  %vm18730_vm12 = vcmp.le.s32.totalorder %v10791_v15, 16  ;;  %v18731_v40 = vmov 0  ;;  %v18736_v50 = vmov 0 }
 0x1cd   :  { %7602 = vmatmul.mubr.msk.bf16.gmra.mxu1 %vm18724_vm0, %v2425_v24  ;;  %vm10882_vm6 = vmand %vm18726_vm1, %vm18725_vm8  ;;  %v10890_v42 = vadd.f32 %v9947_v5, %v2520_v4  ;;  %v10900_v21 = vpop.permute.xlu0 %575  ;;  %v1515_v31 = vpop.f32.mrf.mxu0  ;;  %3992 = vrot.lane.b32.xlu1 %v10735_v14, %s7932_s28  ;;  %vm17795_vm1 = vcmp.ge.s32.totalorder %v10798_v51, 1  ;;  %v18739_v24 = vld [vmem:[#allocation28_spill] sm:$0xff]  ;;  %v10936_v44 = vrot.slane %v2946_v59, 1  ;;  %v2426_v14 = vshrl.u32 %v10813_v6, 16 }
 0x1ce   :  { %vm10896_vm0 = vmand %vm10854_vm9, %vm18730_vm12  ;;  %7605 = vmatprep.mubr.msk.bf16.mxu1 %vm18591_vm7, %v18457_v53  ;;  %v7579_v60 = vpop.f32.mrf.mxu1  ;;  %v10909_v36 = vadd.f32 %v9947_v5, %v1515_v31  ;;  %vm18735_vm9 = vcmp.le.s32.totalorder %v10762_v46, 16  ;;  %7555 = vmatprep.mubr.msk.bf16.mxu0 %vm18591_vm7, %v18457_v53  ;;  %v147_v6 = vmul.u32 29128, %v10887_v49  ;;  %v18753_v4 = vmov 0 }
 0x1cf   :  { %18729 = vst [vmem:[#allocation22_spill] sm:$0xff] %v10890_v42  ;;  %v18732_v40 = vsel %vm10896_vm0, 4294967295, %v18731_v40  ;;  %vm10915_vm4 = vmand %vm10870_vm13, %vm18735_vm9  ;;  %vm17782_vm13 = vcmp.le.s32.totalorder %v10831_v27, 16  ;;  %v7529_v17 = vpop.f32.mrf.mxu0  ;;  %v10933_v31 = vpop.permute.xlu1 %849  ;;  %v2944_v60 = vor.u32 %v2942_v61, %v10626_v23  ;;  %vm17794_vm9 = vcmp.le.s32.totalorder %v10798_v51, 16  ;;  %v10952_v23 = vld [vmem:[%s17523_s0 + $0x28] sm:$0xff]  }
 0x1d0   :  { %18733 = vst [vmem:[#allocation98_spill] sm:$0xff] %v18732_v40  ;;  %18734 = vst [vmem:[#allocation99_spill] sm:$0xff] %v10909_v36  ;;  %v18737_v50 = vsel %vm10915_vm4, 4294967295, %v18736_v50  ;;  %2823 = vrot.lane.b32.xlu0 %v18739_v24, %s7928_s15  ;;  %v2523_v41 = vpop.f32.mrf.mxu1  ;;  %v18744_v61 = vmax.f32 %v10890_v42, 0.0  ;;  %v2428_v15 = vor.u32 %v2426_v14, %v2424_v29  ;;  %v18747_v42 = vmax.f32 %v10909_v36, 0.0 }
 0x1d1   :  { %18738 = vst [vmem:[#allocation100_spill] sm:$0xff] %v18737_v50  ;;  %vm10928_vm8 = vmand %vm10882_vm6, %vm17779_vm15  ;;  %v10960_v48 = vadd.f32 %v9947_v5, %v2523_v41  ;;  %v10962_v17 = vpop.permute.xlu0 %2751  ;;  %v1518_v10 = vpop.f32.mrf.mxu0  ;;  %3724 = vrot.lane.b32.xlu1 %v7893_v57, %s7925_s17  ;;  %v18748_v41 = vmov 0  ;;  %v168_v2 = vshra.s32 %v147_v6, 18  ;;  %v3872_v50 = vshrl.u32 %v10659_v3, 16 }
 0x1d2   :  { %vm10944_vm12 = vmand %vm10882_vm6, %vm17795_vm1  ;;  %v4594_v59 = vsel %vm10896_vm0, %v18744_v61, 0.0  ;;  %vm18746_vm6 = vcmask 261120   ;;  %v4482_v61 = vsel %vm10915_vm4, %v18747_v42, 0.0  ;;  %v7580_v40 = vpop.f32.mrf.mxu1  ;;  %v10982_v57 = vadd.f32 %v9947_v5, %v1518_v10  ;;  %v18752_v42 = vld [vmem:[#allocation29_spill] sm:$0xff] }
 0x1d3   :  { %18745 = vst [vmem:[#allocation28_spill] sm:$0xff] %v10960_v48  ;;  %v4620_v46 = vsel %vm18746_vm6, %v4594_v59, 0.0  ;;  %vm10977_vm15 = vmand %vm10928_vm8, %vm17782_vm13  ;;  %v4508_v9 = vsel %vm18746_vm6, %v4482_v61, 0.0  ;;  %v17783_v14 = vmax.f32 %v10960_v48, 0.0  ;;  %v7530_v40 = vpop.f32.mrf.mxu0  ;;  %v10997_v5 = vpop.permute.xlu1 %946  ;;  %vm18756_vm13 = vsmask.f32 7424 }
 0x1d4   :  { %v18749_v41 = vsel %vm10977_vm15, 4294967295, %v18748_v41  ;;  %18751 = vst [vmem:[#allocation102_spill] sm:$0xff] %v10982_v57  ;;  %v4621_v29 = vadd.f32 %v4620_v46, %v10723_v58  ;;  %2845 = vrot.lane.b32.xlu0 %v18752_v42, %s7929_s19  ;;  %vm10993_vm8 = vmand %vm10944_vm12, %vm17794_vm9  ;;  %v11001_v58 = vsel %vm18756_vm13, %v2944_v60, %v10936_v44  ;;  %v4509_v46 = vadd.f32 %v4508_v9, %v10728_v56 }
 0x1d5   :  { %18750 = vst [vmem:[#allocation101_spill] sm:$0xff] %v18749_v41  ;;  %v18754_v4 = vsel %vm10993_vm8, 4294967295, %v18753_v4  ;;  %v17786_v10 = vmax.f32 %v10982_v57, 0.0  ;;  %vm18757_vm6 = vcmask 293888   ;;  %v17791_v59 = vrot.slane %v10952_v23, 1  ;;  %v11011_v42 = vpop.permute.xlu0 %2773  ;;  %3754 = vrot.lane.b32.xlu1 %v18697_v32, %s7927_s12 }
 0x1d6   :  { %18755 = vst [vmem:[#allocation29_spill] sm:$0xff] %v18754_v4  ;;  %7606 = vmatmul.mubr.msk.bf16.gmra.mxu1 %vm18757_vm6, %v2428_v15  ;;  %v4595_v61 = vsel %vm10977_vm15, %v17783_v14, 0.0  ;;  %v148_v60 = vmul.u32 29128, %v85_v52  ;;  %vm18758_vm13 = vcmask 261120   ;;  %v105_v32 = vmul.u32 9, %v10887_v49 }
 0x1d7   :  { %7665 = vmatprep.mubr.msk.bf16.mxu1 %vm18591_vm7, %v18457_v53  ;;  %v4622_v56 = vsel %vm18758_vm13, %v4595_v61, 0.0  ;;  %v4483_v15 = vsel %vm10993_vm8, %v17786_v10, 0.0  ;;  %vm18759_vm12 = vmmov %vm18758_vm13  ;;  %v11027_v40 = vpop.permute.xlu1 %2795  ;;  %v18760_v61 = vrot.slane %v10659_v3, 1  ;;  %vm18761_vm6 = vcmask 1046528   ;;  %v18762_v10 = vld [vmem:[#allocation19_spill] sm:$0xff] }
 0x1d8   :  { %v11022_v6 = vadd.f32 %v4622_v56, %v4621_v29  ;;  %v4510_v9 = vsel %vm18759_vm12, %v4483_v15, 0.0  ;;  %3007 = vrot.lane.b32.xlu0 %v11001_v58, %s7930_s24  ;;  %v17800_v29 = vrot.slane %v10836_v43, 1  ;;  %v189_v56 = vmul.u32 9, %v168_v2  ;;  %vm18765_vm13 = vmmov %vm18761_vm6 }
 0x1d9   :  { %v11030_v14 = vadd.f32 %v4510_v9, %v4509_v46  ;;  %v11037_v41 = vsel %vm18761_vm6, %v18760_v61, %v17791_v59  ;;  %v11040_v15 = vpop.permute.xlu0 %2753  ;;  %3776 = vrot.lane.b32.xlu1 %v18762_v10, %s7926_s11  ;;  %v169_v4 = vshra.s32 %v148_v60, 18  ;;  %v3876_v46 = vshll.u32 %v10952_v23, 16  ;;  %v7852_v60 = vld [vmem:[%s17523_s0 + $0x164] ss:$0 sps:$4 sm:$0x11]  }
 0x1da   :  { %v11051_v61 = vsub.s32 %v10806_v22, %v105_v32  ;;  %v18764_v2 = vrot.slane %v10522_v33, 1  ;;  %v11059_v10 = vsub.s32 %v10887_v49, %v189_v56  ;;  %v106_v3 = vmul.u32 9, %v85_v52 }
 0x1db   :  { %v11048_v9 = vpop.permute.xlu1 %2775  ;;  %v190_v22 = vmul.u32 9, %v169_v4  ;;  %v3874_v32 = vor.u32 %v3872_v50, %v10759_v0  ;;  %v11067_v57 = vrot.slane %v3876_v46, 1  ;;  %vm18770_vm12 = vcmask 31744  }
 0x1dc   :  { %3103 = vrot.lane.b32.xlu0 %v11037_v41, %s7931_s25  ;;  %18763 = vst [vmem:[#allocation19_spill] sm:$0xff] %v11051_v61  ;;  %v3130_v59 = vsel %vm18765_vm13, %v18764_v2, %v17800_v29  ;;  %18766 = vst [vmem:[#allocation103_spill] sm:$0xff] %v11059_v10  ;;  %v11071_v49 = vmul.u32 2, %v11051_v61  ;;  %v11074_v56 = vmul.u32 2, %v11059_v10  ;;  %v11077_v2 = vsub.s32 %v10847_v38, %v106_v3  ;;  %v11178_v61 = vld [vmem:[%s17525_s2] ss:$0 sm:$0xff] }
 0x1dd   :  { %v993_v48 = vpop.permute.xlu0 %992  ;;  %3798 = vrot.lane.b32.xlu1 %v18718_v16, %s7928_s15  ;;  %v1247_v16 = vsel %vm18770_vm12, %v7852_v60, %v10900_v21  ;;  %v11085_v0 = vsub.s32 %v85_v52, %v190_v22  ;;  %vm18772_vm6 = vsmask.f32 7424  ;;  %v11097_v21 = vadd.s32 80, %v9772_v13 }
 0x1de   :  { %18767 = vst [vmem:[#allocation104_spill] sm:$0xff] %v11071_v49  ;;  %18768 = vst [vmem:[#allocation105_spill] sm:$0xff] %v11074_v56  ;;  %v3879_v50 = vsel %vm18772_vm6, %v3874_v32, %v11067_v57  ;;  %v11094_v38 = vadd.s32 1, %v11071_v49  ;;  %vm18775_vm13 = vcmask 64512   ;;  %vm1648_vm12 = vcmp.ge.s32.totalorder %v11074_v56, 1 }
 0x1df   :  { %v1117_v33 = vpop.permute.xlu1 %1116  ;;  %18769 = vst [vmem:[#allocation106_spill] sm:$0xff] %v11077_v2  ;;  %18771 = vst [vmem:[#allocation107_spill] sm:$0xff] %v11085_v0  ;;  %v1270_v3 = vsel %vm18775_vm13, %v1247_v16, %v10864_v19  ;;  %vm1669_vm9 = vcmp.le.s32.totalorder %v11074_v56, 16  ;;  %v11104_v52 = vmul.u32 2, %v11077_v2  ;;  %v11110_v60 = vmul.u32 2, %v11085_v0  ;;  %v18821_v56 = vld [vmem:[#allocation12_spill] sm:$0xff] }
 0x1e0   :  { %3149 = vrot.lane.b32.xlu0 %v3130_v59, %s7932_s28  ;;  %v18773_v59 = vld [vmem:[#allocation31_spill] sm:$0xff]  ;;  %vm18778_vm6 = vcmask 97280   ;;  %vm11118_vm13 = vmand %vm1648_vm12, %vm1669_vm9  ;;  %vm17806_vm1 = vcmp.ge.s32.totalorder %v11094_v38, 1  ;;  %v65_v16 = vmul.u32 29128, %v11097_v21  ;;  %vm18781_vm15 = vcmask 130048  }
 0x1e1   :  { %v11081_v4 = vpop.permute.xlu0 %2817  ;;  %3828 = vrot.lane.b32.xlu1 %v18739_v24, %s7929_s19  ;;  %18774 = vst [vmem:[#allocation31_spill] sm:$0xff] %v11094_v38  ;;  %18776 = vst [vmem:[#allocation108_spill] sm:$0xff] %v11104_v52  ;;  %v1293_v22 = vsel %vm18778_vm6, %v1270_v3, %v10933_v31  ;;  %v11128_v31 = vadd.s32 1, %v11104_v52  ;;  %vm18783_vm9 = vcmask 162816   ;;  %vm1649_vm12 = vcmp.ge.s32.totalorder %v11110_v60, 1 }
 0x1e2   :  { %18777 = vst [vmem:[#allocation109_spill] sm:$0xff] %v11110_v60  ;;  %vm18784_vm6 = vcmask 195584   ;;  %vm11148_vm0 = vmand %vm11118_vm13, %vm17806_vm1  ;;  %vm18787_vm8 = vcmask 228352   ;;  %vm18788_vm4 = vcmp.ge.s32.totalorder %v11071_v49, 1  ;;  %vm17844_vm1 = vcmp.le.s32.totalorder %v11071_v49, 16 }
 0x1e3   :  { %v11091_v46 = vpop.permute.xlu1 %2839  ;;  %18782 = vst [vmem:[#allocation110_spill] sm:$0xff] %v11128_v31  ;;  %vm17830_vm11 = vcmp.ge.s32.totalorder %v11128_v31, 1  ;;  %v18801_v2 = vmov 0 }
 0x1e4   :  { %2759 = vrot.lane.b32.xlu0 %v18773_v59, %s7925_s17 }
 0x1e5   :  { %v11106_v24 = vpop.permute.xlu0 %2797  ;;  %3937 = vrot.lane.b32.xlu1 %v3879_v50, %s7930_s24  ;;  %v1316_v50 = vsel %vm18781_vm15, %v1293_v22, %v10997_v5  ;;  %vm1670_vm15 = vcmp.le.s32.totalorder %v11110_v60, 16  ;;  %v11141_v5 = vadd.s32 88, %v9772_v13 }
 0x1e6   :  { %v1339_v3 = vsel %vm18783_vm9, %v1316_v50, %v993_v48  ;;  %v11165_v50 = vshra.s32 %v65_v16, 18  ;;  %vm18791_vm9 = vcmask 261120  }
 0x1e7   :  { %v11116_v19 = vpop.permute.xlu1 %2819  ;;  %v1362_v22 = vsel %vm18784_vm6, %v1339_v3, %v1117_v33  ;;  %vm11160_vm6 = vmand %vm11118_vm13, %vm18788_vm4  ;;  %vm18795_vm4 = vcmp.le.s32.totalorder %v11094_v38, 16 }
 0x1e8   :  { %2781 = vrot.lane.b32.xlu0 %v8687_v39, %s7927_s12  ;;  %v11133_v39 = vld [vmem:[%s17523_s0 + $0x8c] sm:$0xff]   ;;  %vm11187_vm13 = vmand %vm11148_vm0, %vm18795_vm4  ;;  %v149_v49 = vmul.u32 29128, %v11165_v50 }
 0x1e9   :  { %3967 = vrot.lane.b32.xlu1 %v11001_v58, %s7931_s25  ;;  %v2954_v32 = vshll.u32 %v11133_v39, 16  ;;  %vm11205_vm0 = vmand %vm11160_vm6, %vm17844_vm1  ;;  %vm17836_vm6 = vcmp.le.s32.totalorder %v11128_v31, 16  ;;  %vm18860_vm1 = vsmask.f32 7424 }
 0x1ea   :  { %v1177_v29 = vpop.permute.xlu0 %1176  ;;  %v18802_v2 = vsel %vm11205_vm0, 4294967295, %v18801_v2 }
 0x1eb   :  { %v1385_v48 = vsel %vm18787_vm8, %v1362_v22, %v1177_v29  ;;  %v1223_v58 = vpop.permute.xlu1 %1222  ;;  %vm11168_vm8 = vmand %vm1649_vm12, %vm1670_vm15  ;;  %v2950_v22 = vshrl.u32 %v10836_v43, 16  ;;  %vm18799_vm12 = vcmask 293888   ;;  %vm17843_vm15 = vcmp.ge.s32.totalorder %v11104_v52, 1  ;;  %18803 = vst [vmem:[#allocation114_spill] sm:$0xff] %v18802_v2 }
 0x1ec   :  { %2803 = vrot.lane.b32.xlu0 %v8545_v63, %s7926_s11  ;;  %v2528_v3 = vpop.f32.mrf.mxu1  ;;  %v1408_v0 = vsel %vm18791_vm9, %v1385_v48, %v1223_v58  ;;  %v18796_v48 = vmov 0  ;;  %vm11218_vm9 = vmand %vm11168_vm8, %vm17830_vm11  ;;  %v11235_v51 = vrot.slane %v2954_v32, 1 }
 0x1ed   :  { %v11181_v16 = vadd.f32 %v11178_v61, %v2528_v3  ;;  %v18797_v48 = vsel %vm11187_vm13, 4294967295, %v18796_v48  ;;  %v1523_v10 = vpop.f32.mrf.mxu0  ;;  %3994 = vrot.lane.b32.xlu1 %v11037_v41, %s7932_s28  ;;  %7556 = vmatmul.mubr.msk.bf16.gmra.mxu0 %vm18799_vm12, %v1408_v0  ;;  %v66_v3 = vmul.u32 29128, %v11141_v5  ;;  %v18804_v0 = vld [vmem:[#allocation33_spill] sm:$0xff]  ;;  %vm11229_vm4 = vmand %vm11168_vm8, %vm17843_vm15  ;;  %vm17837_vm12 = vcmp.le.s32.totalorder %v11104_v52, 16 }
 0x1ee   :  { %18798 = vst [vmem:[#allocation112_spill] sm:$0xff] %v18797_v48  ;;  %v11191_v58 = vpop.permute.xlu0 %3001  ;;  %v7583_v36 = vpop.f32.mrf.mxu1  ;;  %v11199_v38 = vadd.f32 %v11178_v61, %v1523_v10  ;;  %7615 = vmatprep.mubr.msk.bf16.mxu0 %vm18591_vm7, %v18457_v53  ;;  %v2952_v27 = vor.u32 %v2950_v22, %v10936_v44  ;;  %v7895_v44 = vld [vmem:[%s17523_s0 + $0x80] sm:$0xff]   ;;  %vm18811_vm8 = vcmask 261120   ;;  %vm11266_vm11 = vmand %vm11218_vm9, %vm17836_vm6  ;;  %vm18825_vm6 = vcmask 261120  }
 0x1ef   :  { %18794 = vst [vmem:[#allocation111_spill] sm:$0xff] %v11181_v16  ;;  %v7533_v10 = vpop.f32.mrf.mxu0  ;;  %v3098_v33 = vpop.permute.xlu1 %3097  ;;  %v18809_v60 = vmax.f32 %v11181_v16, 0.0  ;;  %v11255_v22 = vshra.s32 %v66_v3, 18  ;;  %vm11282_vm9 = vmand %vm11229_vm4, %vm17837_vm12  ;;  %v170_v36 = vshra.s32 %v149_v49, 18  ;;  %vm18822_vm4 = vcmask 31744  }
 0x1f0   :  { %18800 = vst [vmem:[#allocation113_spill] sm:$0xff] %v11199_v38  ;;  %2825 = vrot.lane.b32.xlu0 %v18804_v0, %s7928_s15  ;;  %v2531_v41 = vpop.f32.mrf.mxu1  ;;  %v11240_v10 = vld [vmem:[%s17523_s0 + $0x30] sm:$0xff]   ;;  %v18812_v16 = vmax.f32 %v11199_v38, 0.0  ;;  %v3166_v38 = vsel %vm18822_vm4, %v18821_v56, %v10962_v17  ;;  %v107_v56 = vmul.u32 9, %v11165_v50  ;;  %vm18826_vm4 = vcmask 97280   ;;  %vm18827_vm12 = vmmov %vm18825_vm6 }
 0x1f1   :  { %v4596_v29 = vsel %vm11187_vm13, %v18809_v60, 0.0  ;;  %v11247_v45 = vadd.f32 %v11178_v61, %v2531_v41  ;;  %v1526_v18 = vpop.f32.mrf.mxu0  ;;  %3726 = vrot.lane.b32.xlu1 %v7895_v44, %s7925_s17  ;;  %v18813_v41 = vmov 0  ;;  %vm18855_vm15 = vcmask 261120  }
 0x1f2   :  { %v11249_v8 = vpop.permute.xlu0 %2841  ;;  %v4624_v32 = vsel %vm18811_vm8, %v4596_v29, 0.0  ;;  %v4484_v60 = vsel %vm11205_vm0, %v18812_v16, 0.0  ;;  %v18814_v41 = vsel %vm11266_vm11, 4294967295, %v18813_v41  ;;  %v7584_v48 = vpop.f32.mrf.mxu1  ;;  %v11271_v44 = vadd.f32 %v11178_v61, %v1526_v18 }
 0x1f3   :  { %18810 = vst [vmem:[#allocation33_spill] sm:$0xff] %v11247_v45  ;;  %18815 = vst [vmem:[#allocation115_spill] sm:$0xff] %v18814_v41  ;;  %v4625_v3 = vadd.f32 %v4624_v32, %v11022_v6  ;;  %v4512_v29 = vsel %vm18811_vm8, %v4484_v60, 0.0  ;;  %v18817_v16 = vmov 0  ;;  %v7534_v48 = vpop.f32.mrf.mxu0  ;;  %v11286_v18 = vpop.permute.xlu1 %3720  ;;  %vm18820_vm8 = vsmask.f32 7424 }
 0x1f4   :  { %18816 = vst [vmem:[#allocation116_spill] sm:$0xff] %v11271_v44  ;;  %2847 = vrot.lane.b32.xlu0 %v8743_v12, %s7929_s19  ;;  %v18818_v16 = vsel %vm11282_vm9, 4294967295, %v18817_v16  ;;  %v4513_v6 = vadd.f32 %v4512_v29, %v11030_v14  ;;  %v17840_v32 = vmax.f32 %v11271_v44, 0.0  ;;  %v11292_v60 = vsel %vm18820_vm8, %v2952_v27, %v11235_v51 }
 0x1f5   :  { %18819 = vst [vmem:[#allocation117_spill] sm:$0xff] %v18818_v16  ;;  %v18823_v2 = vmax.f32 %v11247_v45, 0.0  ;;  %3756 = vrot.lane.b32.xlu1 %v18773_v59, %s7927_s12  ;;  %v150_v14 = vmul.u32 29128, %v11255_v22  ;;  %vm18824_vm8 = vcmask 64512   ;;  %v18830_v16 = vrot.slane %v10952_v23, 1  ;;  %v11538_v45 = vld [vmem:[%s17523_s0 + $0x38] sm:$0xff]  }
 0x1f6   :  { %v11302_v49 = vpop.permute.xlu0 %3718  ;;  %v3188_v27 = vsel %vm18824_vm8, %v3166_v38, %v11011_v42  ;;  %v4485_v17 = vsel %vm11282_vm9, %v17840_v32, 0.0  ;;  %v191_v38 = vmul.u32 9, %v170_v36  ;;  %v18829_v32 = vrot.slane %v11240_v10, 1  ;;  %v18833_v36 = vld [vmem:[#allocation25_spill] sm:$0xff] }
 0x1f7   :  { %v4597_v48 = vsel %vm11266_vm11, %v18823_v2, 0.0  ;;  %v3210_v2 = vsel %vm18826_vm4, %v3188_v27, %v11027_v40  ;;  %v4514_v59 = vsel %vm18827_vm12, %v4485_v17, 0.0  ;;  %v3144_v42 = vpop.permute.xlu1 %3143  ;;  %vm18831_vm8 = vcmask 1046528  }
 0x1f8   :  { %v4626_v29 = vsel %vm18825_vm6, %v4597_v48, 0.0  ;;  %3009 = vrot.lane.b32.xlu0 %v11292_v60, %s7930_s24  ;;  %vm18828_vm6 = vcmask 130048   ;;  %v11324_v41 = vadd.f32 %v4514_v59, %v4513_v6  ;;  %v11331_v40 = vsel %vm18831_vm8, %v18830_v16, %v18829_v32 }
 0x1f9   :  { %v11317_v12 = vadd.f32 %v4626_v29, %v4625_v3  ;;  %v3232_v48 = vsel %vm18828_vm6, %v3210_v2, %v11081_v4  ;;  %v17852_v3 = vrot.slane %v11133_v39, 1  ;;  %vm18832_vm12 = vcmask 162816   ;;  %3778 = vrot.lane.b32.xlu1 %v18833_v36, %s7926_s11 }
 0x1fa   :  { %v3254_v27 = vsel %vm18832_vm12, %v3232_v48, %v11091_v46  ;;  %v3004_v29 = vpop.permute.xlu0 %3003  ;;  %v171_v17 = vshra.s32 %v150_v14, 18  ;;  %vm18834_vm4 = vcmask 195584   ;;  %v3880_v6 = vshrl.u32 %v10952_v23, 16  ;;  %v7896_v48 = vld [vmem:[%s17523_s0 + $0x68] sm:$0xff]  }
 0x1fb   :  { %v3276_v4 = vsel %vm18834_vm4, %v3254_v27, %v11191_v58  ;;  %v3884_v2 = vshll.u32 %v11240_v10, 16  ;;  %vm18835_vm6 = vcmask 228352   ;;  %v11345_v32 = vpop.permute.xlu1 %3750  ;;  %v11348_v46 = vsub.s32 %v11097_v21, %v107_v56 }
 0x1fc   :  { %v3298_v16 = vsel %vm18835_vm6, %v3276_v4, %v3098_v33  ;;  %3105 = vrot.lane.b32.xlu0 %v11331_v40, %s7931_s25  ;;  %v11351_v59 = vsub.s32 %v11165_v50, %v191_v38  ;;  %vm18838_vm8 = vcmask 261120   ;;  %v18839_v23 = vrot.slane %v10836_v43, 1 }
 0x1fd   :  { %18836 = vst [vmem:[#allocation12_spill] sm:$0xff] %v11348_v46  ;;  %v3320_v14 = vsel %vm18838_vm8, %v3298_v16, %v3144_v42  ;;  %vm18840_vm12 = vcmask 1046528   ;;  %v108_v33 = vmul.u32 9, %v11255_v22  ;;  %vm18841_vm4 = vcmask 31744   ;;  %3800 = vrot.lane.b32.xlu1 %v8545_v63, %s7928_s15 }
 0x1fe   :  { %18837 = vst [vmem:[#allocation25_spill] sm:$0xff] %v11351_v59  ;;  %v3132_v58 = vsel %vm18840_vm12, %v18839_v23, %v17852_v3  ;;  %v3168_v21 = vsel %vm18841_vm4, %v7896_v48, %v11040_v15  ;;  %v11365_v56 = vpop.permute.xlu0 %3748  ;;  %v192_v50 = vmul.u32 9, %v171_v17  ;;  %vm18842_vm6 = vcmask 64512  }
 0x1ff   :  { %v3190_v43 = vsel %vm18842_vm6, %v3168_v21, %v11048_v9  ;;  %v3882_v42 = vor.u32 %v3880_v6, %v11067_v57  ;;  %v11372_v38 = vrot.slane %v3884_v2, 1  ;;  %vm18843_vm8 = vcmask 97280   ;;  %v11377_v15 = vpop.permute.xlu1 %3770 }
 0x200   :  { %v3212_v27 = vsel %vm18843_vm8, %v3190_v43, %v11106_v24  ;;  %v3343_v36 = vshll.u32 %v3320_v14, 16  ;;  %3151 = vrot.lane.b32.xlu0 %v3132_v58, %s7932_s28  ;;  %v11380_v4 = vmul.u32 2, %v11351_v59  ;;  %v11383_v63 = vmul.u32 2, %v11348_v46 }
 0x201   :  { %vm18846_vm12 = vcmask 130048   ;;  %v11388_v57 = vsub.s32 %v11141_v5, %v108_v33  ;;  %vm18848_vm4 = vcmask 162816   ;;  %3830 = vrot.lane.b32.xlu1 %v18804_v0, %s7929_s19  ;;  %v11395_v6 = vsub.s32 %v11255_v22, %v192_v50  ;;  %v18853_v5 = vld [vmem:[#allocation35_spill] sm:$0xff] }
 0x202   :  { %18844 = vst [vmem:[#allocation118_spill] sm:$0xff] %v11380_v4  ;;  %18845 = vst [vmem:[#allocation119_spill] sm:$0xff] %v11383_v63  ;;  %v3234_v9 = vsel %vm18846_vm12, %v3212_v27, %v11116_v19  ;;  %v3100_v17 = vpop.permute.xlu0 %3099  ;;  %vm18850_vm6 = vcmask 195584   ;;  %vm18851_vm8 = vsmask.f32 7424  ;;  %v3345_v23 = vrot.slane %v3343_v36, 1 }
 0x203   :  { %18847 = vst [vmem:[#allocation120_spill] sm:$0xff] %v11388_v57  ;;  %v3256_v24 = vsel %vm18848_vm4, %v3234_v9, %v11249_v8  ;;  %18849 = vst [vmem:[#allocation121_spill] sm:$0xff] %v11395_v6  ;;  %v3887_v16 = vsel %vm18851_vm8, %v3882_v42, %v11372_v38  ;;  %vm18852_vm12 = vcmask 228352   ;;  %v3146_v58 = vpop.permute.xlu1 %3145  ;;  %vm1650_vm4 = vcmp.ge.s32.totalorder %v11380_v4, 1  ;;  %v18857_v27 = vld [vmem:[#allocation36_spill] sm:$0xff] }
 0x204   :  { %v3278_v2 = vsel %vm18850_vm6, %v3256_v24, %v3004_v29  ;;  %2761 = vrot.lane.b32.xlu0 %v18853_v5, %s7925_s17  ;;  %v11405_v8 = vadd.s32 1, %v11383_v63  ;;  %vm1671_vm6 = vcmp.le.s32.totalorder %v11380_v4, 16  ;;  %v11412_v22 = vmul.u32 2, %v11388_v57  ;;  %v11444_v24 = vld [vmem:[%s17523_s0 + $0x94] sm:$0xff]  }
 0x205   :  { %v3300_v19 = vsel %vm18852_vm12, %v3278_v2, %v3100_v17  ;;  %v11415_v29 = vadd.s32 96, %v9772_v13  ;;  %v3341_v33 = vshrl.u32 %v3320_v14, 16  ;;  %3939 = vrot.lane.b32.xlu1 %v3887_v16, %s7930_s24  ;;  %v11422_v50 = vmul.u32 2, %v11395_v6 }
 0x206   :  { %18854 = vst [vmem:[#allocation35_spill] sm:$0xff] %v11405_v8  ;;  %v11408_v0 = vsel %vm18855_vm15, %v3300_v19, %v3146_v58  ;;  %v11417_v48 = vpop.permute.xlu0 %3772  ;;  %vm11432_vm15 = vmand %vm1650_vm4, %vm1671_vm6  ;;  %vm17851_vm8 = vcmp.ge.s32.totalorder %v11405_v8, 1  ;;  %v11439_v9 = vadd.s32 1, %v11412_v22  ;;  %vm18863_vm11 = vcmask 293888  }
 0x207   :  { %v3347_v21 = vshll.u32 %v11408_v0, 16  ;;  %18856 = vst [vmem:[#allocation122_spill] sm:$0xff] %v11422_v50  ;;  %v3346_v43 = vor.u32 %v3345_v23, %v3341_v33  ;;  %v11428_v36 = vpop.permute.xlu1 %3794  ;;  %v67_v17 = vmul.u32 29128, %v11415_v29  ;;  %vm1651_vm4 = vcmp.ge.s32.totalorder %v11422_v50, 1  ;;  %vm11462_vm12 = vmand %vm11432_vm15, %vm17851_vm8 }
 0x208   :  { %2783 = vrot.lane.b32.xlu0 %v18857_v27, %s7927_s12  ;;  %vm1672_vm6 = vcmp.le.s32.totalorder %v11422_v50, 16  ;;  %v11456_v23 = vadd.s32 104, %v9772_v13  ;;  %vm18865_vm13 = vcmp.ge.s32.totalorder %v11383_v63, 1  ;;  %vm17893_vm8 = vcmp.le.s32.totalorder %v11383_v63, 16 }
 0x209   :  { %v11424_v42 = vrot.slane %v3347_v21, 1  ;;  %3969 = vrot.lane.b32.xlu1 %v11292_v60, %s7931_s25  ;;  %v18864_v60 = vld [vmem:[#allocation32_spill] sm:$0xff]  ;;  %vm11476_vm9 = vmand %vm11432_vm15, %vm18865_vm13  ;;  %v2958_v27 = vshrl.u32 %v11133_v39, 16  ;;  %v2962_v14 = vshll.u32 %v11444_v24, 16  ;;  %vm18871_vm13 = vcmp.le.s32.totalorder %v11405_v8, 16 }
 0x20a   :  { %v11449_v16 = vpop.permute.xlu0 %3792  ;;  %vm11499_vm15 = vmand %vm11462_vm12, %vm18871_vm13  ;;  %v18872_v57 = vmov 0  ;;  %v18876_v19 = vmov 0  ;;  %vm17888_vm13 = vcmp.le.s32.totalorder %v11439_v9, 16 }
 0x20b   :  { %v3350_v2 = vsel %vm18860_vm1, %v3346_v43, %v11424_v42  ;;  %v11470_v58 = vpop.permute.xlu1 %3822  ;;  %vm17863_vm1 = vcmp.ge.s32.totalorder %v11439_v9, 1  ;;  %v18873_v57 = vsel %vm11499_vm15, 4294967295, %v18872_v57  ;;  %vm11516_vm12 = vmand %vm11476_vm9, %vm17893_vm8  ;;  %vm17891_vm9 = vcmp.le.s32.totalorder %v11412_v22, 16 }
 0x20c   :  { %7616 = vmatmul.mubr.msk.bf16.vlgmr.msra.gmra.mxu0 %vm18863_vm11, %v3350_v2  ;;  %2805 = vrot.lane.b32.xlu0 %v18864_v60, %s7926_s11  ;;  %v2536_v21 = vpop.f32.mrf.mxu1  ;;  %vm11483_vm11 = vmand %vm1651_vm4, %vm1672_vm6  ;;  %v11490_v2 = vshra.s32 %v67_v17, 18  ;;  %18874 = vst [vmem:[#allocation32_spill] sm:$0xff] %v18873_v57  ;;  %vm17876_vm4 = vcmp.ge.s32.totalorder %v11412_v22, 1  ;;  %v68_v17 = vmul.u32 29128, %v11456_v23  ;;  %v18877_v19 = vsel %vm11516_vm12, 4294967295, %v18876_v19 }
 0x20d   :  { %7619 = vmatprep.mubr.msk.bf16.mxu0 %vm18591_vm7, %v18457_v53  ;;  %v11493_v3 = vadd.f32 %v11178_v61, %v2536_v21  ;;  %v1531_v46 = vpop.f32.mrf.mxu0  ;;  %3996 = vrot.lane.b32.xlu1 %v11331_v40, %s7932_s28  ;;  %18878 = vst [vmem:[#allocation124_spill] sm:$0xff] %v18877_v19  ;;  %v18879_v40 = vld [vmem:[#allocation38_spill] sm:$0xff]  ;;  %vm11527_vm6 = vmand %vm11483_vm11, %vm17863_vm1  ;;  %v11550_v50 = vrot.slane %v2962_v14, 1  ;;  %vm18914_vm8 = vcmask 162816  }
 0x20e   :  { %v11503_v6 = vpop.permute.xlu0 %2755  ;;  %v7587_v21 = vpop.f32.mrf.mxu1  ;;  %v11510_v59 = vadd.f32 %v11178_v61, %v1531_v46  ;;  %vm11545_vm1 = vmand %vm11483_vm11, %vm17876_vm4  ;;  %v151_v4 = vmul.u32 29128, %v11490_v2  ;;  %vm18886_vm11 = vcmask 261120   ;;  %v18893_v46 = vmov 0 }
 0x20f   :  { %18870 = vst [vmem:[#allocation36_spill] sm:$0xff] %v11493_v3  ;;  %v7537_v33 = vpop.f32.mrf.mxu0  ;;  %v11532_v21 = vpop.permute.xlu1 %2777  ;;  %v18884_v31 = vmax.f32 %v11493_v3, 0.0  ;;  %vm11575_vm4 = vmand %vm11527_vm6, %vm17888_vm13  ;;  %vm18904_vm13 = vcmask 64512  }
 0x210   :  { %18875 = vst [vmem:[#allocation123_spill] sm:$0xff] %v11510_v59  ;;  %2827 = vrot.lane.b32.xlu0 %v18879_v40, %s7928_s15  ;;  %v2539_v8 = vpop.f32.mrf.mxu1  ;;  %v2960_v33 = vor.u32 %v2958_v27, %v11235_v51  ;;  %v11564_v51 = vshra.s32 %v68_v17, 18  ;;  %v18887_v14 = vmax.f32 %v11510_v59, 0.0  ;;  %vm11591_vm6 = vmand %vm11545_vm1, %vm17891_vm9  ;;  %vm18897_vm1 = vcmask 261120  }
 0x211   :  { %v4598_v44 = vsel %vm11499_vm15, %v18884_v31, 0.0  ;;  %v11558_v52 = vadd.f32 %v11178_v61, %v2539_v8  ;;  %v1534_v43 = vpop.f32.mrf.mxu0  ;;  %3728 = vrot.lane.b32.xlu1 %v7897_v1, %s7925_s17  ;;  %v18888_v8 = vmov 0  ;;  %v18894_v46 = vsel %vm11591_vm6, 4294967295, %v18893_v46 }
 0x212   :  { %v3825_v54 = vpop.permute.xlu0 %3824  ;;  %v4628_v27 = vsel %vm18886_vm11, %v4598_v44, 0.0  ;;  %v4486_v31 = vsel %vm11516_vm12, %v18887_v14, 0.0  ;;  %v18889_v8 = vsel %vm11575_vm4, 4294967295, %v18888_v8  ;;  %v7588_v57 = vpop.f32.mrf.mxu1  ;;  %v11580_v1 = vadd.f32 %v11178_v61, %v1534_v43  ;;  %v18892_v14 = vld [vmem:[#allocation39_spill] sm:$0xff] }
 0x213   :  { %18885 = vst [vmem:[#allocation38_spill] sm:$0xff] %v11558_v52  ;;  %18890 = vst [vmem:[#allocation125_spill] sm:$0xff] %v18889_v8  ;;  %v4629_v17 = vadd.f32 %v4628_v27, %v11317_v12  ;;  %v4516_v44 = vsel %vm18886_vm11, %v4486_v31, 0.0  ;;  %v17883_v3 = vmax.f32 %v11558_v52, 0.0  ;;  %v7538_v57 = vpop.f32.mrf.mxu0  ;;  %v3934_v43 = vpop.permute.xlu1 %3933  ;;  %vm18896_vm11 = vsmask.f32 7424 }
 0x214   :  { %18891 = vst [vmem:[#allocation126_spill] sm:$0xff] %v11580_v1  ;;  %2849 = vrot.lane.b32.xlu0 %v18892_v14, %s7929_s19  ;;  %18895 = vst [vmem:[#allocation39_spill] sm:$0xff] %v18894_v46  ;;  %v4517_v12 = vadd.f32 %v4516_v44, %v11324_v41  ;;  %v17887_v27 = vmax.f32 %v11580_v1, 0.0  ;;  %v11600_v31 = vsel %vm18896_vm11, %v2960_v33, %v11550_v50  ;;  %v172_v14 = vshra.s32 %v151_v4, 18 }
 0x215   :  { %v4599_v63 = vsel %vm11575_vm4, %v17883_v3, 0.0  ;;  %3758 = vrot.lane.b32.xlu1 %v18853_v5, %s7927_s12  ;;  %v152_v57 = vmul.u32 29128, %v11564_v51  ;;  %vm18898_vm11 = vmmov %vm18897_vm1  ;;  %v109_v5 = vmul.u32 9, %v11490_v2  ;;  %v18900_v52 = vrot.slane %v11240_v10, 1 }
 0x216   :  { %v3932_v59 = vpop.permute.xlu0 %3931  ;;  %v4630_v41 = vsel %vm18897_vm1, %v4599_v63, 0.0  ;;  %v4487_v33 = vsel %vm11591_vm6, %v17887_v27, 0.0  ;;  %v18899_v63 = vrot.slane %v11538_v45, 1  ;;  %vm18901_vm1 = vcmask 1046528  }
 0x217   :  { %v11614_v44 = vadd.f32 %v4630_v41, %v4629_v17  ;;  %v4518_v4 = vsel %vm18898_vm11, %v4487_v33, 0.0  ;;  %v3962_v3 = vpop.permute.xlu1 %3961  ;;  %v193_v17 = vmul.u32 9, %v172_v14  ;;  %v7898_v41 = vld [vmem:[%s17523_s0 + $0xc] sm:$0xff]   ;;  %vm18902_vm11 = vcmask 31744  }
 0x218   :  { %3011 = vrot.lane.b32.xlu0 %v11600_v31, %s7930_s24  ;;  %v11621_v8 = vadd.f32 %v4518_v4, %v4517_v12  ;;  %v11628_v27 = vsel %vm18901_vm1, %v18900_v52, %v18899_v63  ;;  %v4013_v33 = vsel %vm18902_vm11, %v7898_v41, %v11286_v18  ;;  %v18903_v12 = vld [vmem:[#allocation30_spill] sm:$0xff]  ;;  %v173_v4 = vshra.s32 %v152_v57, 18  ;;  %vm18905_vm1 = vmmov %vm18902_vm11 }
 0x219   :  { %3780 = vrot.lane.b32.xlu1 %v18903_v12, %s7926_s11  ;;  %v4035_v46 = vsel %vm18904_vm13, %v4013_v33, %v11345_v32  ;;  %v3888_v52 = vshrl.u32 %v11240_v10, 16  ;;  %v3892_v14 = vshll.u32 %v11538_v45, 16  ;;  %v7899_v63 = vld [vmem:[%s17523_s0 + $0x4] sm:$0xfe]   ;;  %vm18906_vm11 = vcmask 97280  }
 0x21a   :  { %v11635_v19 = vpop.permute.xlu0 %2799  ;;  %v4011_v18 = vsel %vm18905_vm1, %v7899_v63, %v11302_v49  ;;  %v4057_v41 = vsel %vm18906_vm11, %v4035_v46, %v11417_v48  ;;  %v18907_v32 = vrot.slane %v11444_v24, 1  ;;  %v18908_v10 = vrot.slane %v11133_v39, 1 }
 0x21b   :  { %v11652_v57 = vpop.permute.xlu1 %2821  ;;  %vm18909_vm13 = vcmask 1046528   ;;  %v11660_v12 = vsub.s32 %v11415_v29, %v109_v5  ;;  %vm18911_vm9 = vcmask 64512   ;;  %vm18912_vm1 = vcmask 130048  }
 0x21c   :  { %3107 = vrot.lane.b32.xlu0 %v11628_v27, %s7931_s25  ;;  %v3134_v33 = vsel %vm18909_vm13, %v18908_v10, %v18907_v32  ;;  %v4033_v49 = vsel %vm18911_vm9, %v4011_v18, %v11365_v56  ;;  %v4079_v48 = vsel %vm18912_vm1, %v4057_v41, %v11428_v36  ;;  %v11667_v46 = vsub.s32 %v11490_v2, %v193_v17  ;;  %vm18915_vm9 = vmmov %vm18912_vm1 }
 0x21d   :  { %18910 = vst [vmem:[#allocation30_spill] sm:$0xff] %v11660_v12  ;;  %v110_v63 = vmul.u32 9, %v11564_v51  ;;  %v4055_v1 = vsel %vm18906_vm11, %v4033_v49, %v11377_v15  ;;  %v4101_v39 = vsel %vm18914_vm8, %v4079_v48, %v3825_v54  ;;  %3802 = vrot.lane.b32.xlu1 %v18864_v60, %s7928_s15  ;;  %v194_v29 = vmul.u32 9, %v173_v4  ;;  %vm18917_vm1 = vmmov %vm18914_vm8 }
 0x21e   :  { %18913 = vst [vmem:[#allocation127_spill] sm:$0xff] %v11667_v46  ;;  %v3964_v32 = vpop.permute.xlu0 %3963  ;;  %v4077_v56 = vsel %vm18915_vm9, %v4055_v1, %v11449_v16  ;;  %vm18916_vm13 = vcmask 195584   ;;  %v3890_v2 = vor.u32 %v3888_v52, %v11372_v38  ;;  %v11679_v5 = vrot.slane %v3892_v14, 1 }
 0x21f   :  { %v4123_v36 = vsel %vm18916_vm13, %v4101_v39, %v3934_v43  ;;  %v4099_v17 = vsel %vm18917_vm1, %v4077_v56, %v11470_v58  ;;  %vm18918_vm11 = vcmask 228352   ;;  %v3991_v54 = vpop.permute.xlu1 %3990  ;;  %v11686_v60 = vmul.u32 2, %v11660_v12  ;;  %vm18919_vm8 = vmmov %vm18916_vm13 }
 0x220   :  { %v4145_v15 = vsel %vm18918_vm11, %v4123_v36, %v3964_v32  ;;  %3153 = vrot.lane.b32.xlu0 %v3134_v33, %s7932_s28  ;;  %v4121_v4 = vsel %vm18919_vm8, %v4099_v17, %v3932_v59  ;;  %vm18920_vm9 = vcmask 261120   ;;  %v11693_v38 = vmul.u32 2, %v11667_v46  ;;  %vm18922_vm13 = vmmov %vm18918_vm11  ;;  %v11743_v32 = vld [vmem:[%s17523_s0 + $0x9c] sm:$0xff]  }
 0x221   :  { %v11690_v16 = vsel %vm18920_vm9, %v4145_v15, %v3991_v54  ;;  %v11696_v1 = vsub.s32 %v11456_v23, %v110_v63  ;;  %v4143_v58 = vsel %vm18922_vm13, %v4121_v4, %v3962_v3  ;;  %3832 = vrot.lane.b32.xlu1 %v18879_v40, %s7929_s19  ;;  %v11703_v14 = vsub.s32 %v11564_v51, %v194_v29  ;;  %vm18924_vm1 = vmmov %vm18920_vm9  ;;  %v18926_v23 = vld [vmem:[#allocation41_spill] sm:$0xff] }
 0x222   :  { %v3989_v43 = vpop.permute.xlu0 %3988  ;;  %v17903_v52 = vrot.slane %v11690_v16, 1  ;;  %vm18925_vm11 = vsmask.f32 7424  ;;  %v11713_v3 = vadd.s32 1, %v11686_v60  ;;  %vm1652_vm8 = vcmp.ge.s32.totalorder %v11693_v38, 1  ;;  %v18935_v54 = vld [vmem:[#allocation37_spill] sm:$0xff] }
 0x223   :  { %18921 = vst [vmem:[#allocation128_spill] sm:$0xff] %v11696_v1  ;;  %18923 = vst [vmem:[#allocation129_spill] sm:$0xff] %v11703_v14  ;;  %v4165_v59 = vsel %vm18924_vm1, %v4143_v58, %v3989_v43  ;;  %v3895_v18 = vsel %vm18925_vm11, %v3890_v2, %v11679_v5  ;;  %v11710_v10 = vpop.permute.xlu1 %3722  ;;  %vm1673_vm9 = vcmp.le.s32.totalorder %v11693_v38, 16  ;;  %v11718_v40 = vmul.u32 2, %v11696_v1 }
 0x224   :  { %v4197_v41 = vrot.slane %v4165_v59, 1  ;;  %2763 = vrot.lane.b32.xlu0 %v18926_v23, %s7925_s17  ;;  %18927 = vst [vmem:[#allocation41_spill] sm:$0xff] %v11713_v3  ;;  %v11721_v51 = vadd.s32 112, %v9772_v13  ;;  %vm18928_vm13 = vcmask 1046528   ;;  %v11728_v48 = vmul.u32 2, %v11703_v14  ;;  %vm11735_vm11 = vmand %vm1652_vm8, %vm1673_vm9 }
 0x225   :  { %3941 = vrot.lane.b32.xlu1 %v3895_v18, %s7930_s24  ;;  %vm18929_vm1 = vcmask 293888   ;;  %vm17896_vm4 = vcmp.ge.s32.totalorder %v11713_v3, 1  ;;  %v11753_v56 = vadd.s32 120, %v9772_v13  ;;  %v2966_v17 = vshrl.u32 %v11444_v24, 16 }
 0x226   :  { %v4199_v33 = vsel %vm18928_vm13, %v4197_v41, %v17903_v52  ;;  %v2844_v49 = vpop.permute.xlu0 %2843  ;;  %v69_v29 = vmul.u32 29128, %v11721_v51  ;;  %vm1674_vm9 = vcmp.le.s32.totalorder %v11728_v48, 16  ;;  %vm18934_vm8 = vcmask 31744  }
 0x227   :  { %7666 = vmatmul.mubr.msk.bf16.vlgmr.msra.gmra.mxu1 %vm18929_vm1, %v4199_v33  ;;  %v11733_v63 = vpop.permute.xlu1 %3752  ;;  %vm11763_vm1 = vmand %vm11735_vm11, %vm17896_vm4  ;;  %vm18936_vm4 = vcmp.ge.s32.totalorder %v11686_v60, 1  ;;  %vm17914_vm13 = vcmp.le.s32.totalorder %v11686_v60, 16  ;;  %v2970_v43 = vshll.u32 %v11743_v32, 16  ;;  %vm18940_vm6 = vcmp.ge.s32.totalorder %v11728_v48, 1 }
 0x228   :  { %2785 = vrot.lane.b32.xlu0 %v9075_v28, %s7927_s12  ;;  %7669 = vmatprep.mubr.msk.bf16.mxu1 %vm18591_vm7, %v18457_v53  ;;  %v11749_v28 = vadd.s32 1, %v11718_v40  ;;  %vm11782_vm15 = vmand %vm11735_vm11, %vm18936_vm4  ;;  %v11802_v33 = vshra.s32 %v69_v29, 18  ;;  %v70_v39 = vmul.u32 29128, %v11753_v56  ;;  %vm18943_vm11 = vcmask 97280  }
 0x229   :  { %3971 = vrot.lane.b32.xlu1 %v11600_v31, %s7931_s25  ;;  %v7900_v31 = vld [vmem:[%s17523_s0 + $0x70] sm:$0xff]   ;;  %vm11797_vm12 = vmand %vm18940_vm6, %vm1674_vm9  ;;  %vm18949_vm4 = vcmask 130048   ;;  %v18951_v2 = vmov 0  ;;  %vm18954_vm9 = vcmask 162816   ;;  %v11851_v14 = vrot.slane %v2970_v43, 1 }
 0x22a   :  { %v3006_v36 = vpop.permute.xlu0 %3005  ;;  %v3170_v15 = vsel %vm18934_vm8, %v7900_v31, %v11503_v6  ;;  %v11791_v6 = vld [vmem:[%s17523_s0 + $0x40] sm:$0xff]   ;;  %vm18939_vm8 = vcmask 64512   ;;  %v11865_v12 = vshra.s32 %v70_v39, 18  ;;  %v3351_v43 = vshrl.u32 %v11408_v0, 16 }
 0x22b   :  { %v11776_v4 = vpop.permute.xlu1 %3774  ;;  %v3192_v59 = vsel %vm18939_vm8, %v3170_v15, %v11532_v21  ;;  %vm18945_vm8 = vcmp.le.s32.totalorder %v11713_v3, 16  ;;  %v18946_v21 = vmov 0  ;;  %v7901_v3 = vld [vmem:[%s17523_s0 + $0x90] sm:$0xff]  }
 0x22c   :  { %2807 = vrot.lane.b32.xlu0 %v18935_v54, %s7926_s11  ;;  %v2544_v18 = vpop.f32.mrf.mxu1  ;;  %v3214_v31 = vsel %vm18943_vm11, %v3192_v59, %v11635_v19  ;;  %vm11814_vm6 = vmand %vm11763_vm1, %vm18945_vm8  ;;  %vm17926_vm8 = vcmp.le.s32.totalorder %v11718_v40, 16 }
 0x22d   :  { %v11808_v52 = vadd.f32 %v11178_v61, %v2544_v18  ;;  %v18947_v21 = vsel %vm11814_vm6, 4294967295, %v18946_v21  ;;  %v1539_v1 = vpop.f32.mrf.mxu0  ;;  %3998 = vrot.lane.b32.xlu1 %v11628_v27, %s7932_s28  ;;  %v3236_v19 = vsel %vm18949_vm4, %v3214_v31, %v11652_v57  ;;  %vm11831_vm1 = vmand %vm11782_vm15, %vm17914_vm13  ;;  %v2968_v27 = vor.u32 %v2966_v17, %v11550_v50  ;;  %v18955_v31 = vld [vmem:[#allocation42_spill] sm:$0xff] }
 0x22e   :  { %18948 = vst [vmem:[#allocation130_spill] sm:$0xff] %v18947_v21  ;;  %v3102_v15 = vpop.permute.xlu0 %3101  ;;  %v7591_v29 = vpop.f32.mrf.mxu1  ;;  %v11825_v59 = vadd.f32 %v11178_v61, %v1539_v1  ;;  %v18952_v2 = vsel %vm11831_vm1, 4294967295, %v18951_v2  ;;  %v3258_v18 = vsel %vm18954_vm9, %v3236_v19, %v2844_v49  ;;  %vm18956_vm4 = vcmp.ge.s32.totalorder %v11749_v28, 1  ;;  %v18974_v1 = vld [vmem:[#allocation43_spill] sm:$0xff] }
 0x22f   :  { %18944 = vst [vmem:[#allocation37_spill] sm:$0xff] %v11808_v52  ;;  %18953 = vst [vmem:[#allocation132_spill] sm:$0xff] %v18952_v2  ;;  %v7541_v58 = vpop.f32.mrf.mxu0  ;;  %v11849_v29 = vpop.permute.xlu1 %3796  ;;  %vm18959_vm15 = vcmask 195584   ;;  %vm18960_vm9 = vcmp.ge.s32.totalorder %v11718_v40, 1  ;;  %v18963_v50 = vmax.f32 %v11808_v52, 0.0 }
 0x230   :  { %18950 = vst [vmem:[#allocation131_spill] sm:$0xff] %v11825_v59  ;;  %2829 = vrot.lane.b32.xlu0 %v18955_v31, %s7928_s15  ;;  %vm11845_vm11 = vmand %vm11797_vm12, %vm18956_vm4  ;;  %v3280_v49 = vsel %vm18959_vm15, %v3258_v18, %v3006_v36  ;;  %v2547_v19 = vpop.f32.mrf.mxu1  ;;  %v153_v58 = vmul.u32 29128, %v11802_v33  ;;  %vm18964_vm15 = vcmask 228352   ;;  %v18967_v39 = vmax.f32 %v11825_v59, 0.0 }
 0x231   :  { %vm11860_vm4 = vmand %vm11797_vm12, %vm18960_vm9  ;;  %v4600_v36 = vsel %vm11814_vm6, %v18963_v50, 0.0  ;;  %v3302_v18 = vsel %vm18964_vm15, %v3280_v49, %v3102_v15  ;;  %v11874_v17 = vadd.f32 %v11178_v61, %v2547_v19  ;;  %v1542_v46 = vpop.f32.mrf.mxu0  ;;  %3730 = vrot.lane.b32.xlu1 %v7901_v3, %s7925_s17  ;;  %vm18966_vm12 = vcmask 261120  }
 0x232   :  { %v3148_v41 = vpop.permute.xlu0 %3147  ;;  %v4632_v0 = vsel %vm18966_vm12, %v4600_v36, 0.0  ;;  %v4488_v50 = vsel %vm11831_vm1, %v18967_v39, 0.0  ;;  %vm18968_vm9 = vcmp.le.s32.totalorder %v11749_v28, 16  ;;  %v18969_v15 = vmov 0  ;;  %vm18972_vm13 = vmmov %vm18966_vm12  ;;  %v7592_v19 = vpop.f32.mrf.mxu1 }
 0x233   :  { %18965 = vst [vmem:[#allocation42_spill] sm:$0xff] %v11874_v17  ;;  %vm11889_vm15 = vmand %vm11845_vm11, %vm18968_vm9  ;;  %v11894_v49 = vsel %vm18972_vm13, %v3302_v18, %v3148_v41  ;;  %v11897_v3 = vadd.f32 %v11178_v61, %v1542_v46  ;;  %v4633_v36 = vadd.f32 %v4632_v0, %v11614_v44  ;;  %v4520_v21 = vsel %vm18966_vm12, %v4488_v50, 0.0  ;;  %v7542_v46 = vpop.f32.mrf.mxu0  ;;  %v3827_v41 = vpop.permute.xlu1 %3826 }
 0x234   :  { %v18970_v15 = vsel %vm11889_vm15, 4294967295, %v18969_v15  ;;  %v17920_v39 = vmax.f32 %v11874_v17, 0.0  ;;  %v3354_v2 = vshll.u32 %v11894_v49, 16  ;;  %2851 = vrot.lane.b32.xlu0 %v18974_v1, %s7929_s19  ;;  %vm11909_vm13 = vmand %vm11860_vm4, %vm17926_vm8  ;;  %v18975_v18 = vmov 0 }
 0x235   :  { %18971 = vst [vmem:[#allocation133_spill] sm:$0xff] %v18970_v15  ;;  %18973 = vst [vmem:[#allocation134_spill] sm:$0xff] %v11897_v3  ;;  %v18976_v18 = vsel %vm11909_vm13, 4294967295, %v18975_v18  ;;  %v4521_v44 = vadd.f32 %v4520_v21, %v11621_v8  ;;  %v17921_v0 = vmax.f32 %v11897_v3, 0.0  ;;  %vm18978_vm11 = vsmask.f32 7424  ;;  %3760 = vrot.lane.b32.xlu1 %v18926_v23, %s7927_s12 }
 0x236   :  { %18977 = vst [vmem:[#allocation43_spill] sm:$0xff] %v18976_v18  ;;  %v11917_v50 = vsel %vm18978_vm11, %v2968_v27, %v11851_v14  ;;  %v174_v19 = vshra.s32 %v153_v58, 18  ;;  %v3353_v1 = vor.u32 %v3351_v43, %v11424_v42  ;;  %v4601_v57 = vsel %vm11889_vm15, %v17920_v39, 0.0  ;;  %v11926_v46 = vpop.permute.xlu0 %2757  ;;  %vm18979_vm4 = vmmov %vm18966_vm12 }
 0x237   :  { %v11924_v52 = vrot.slane %v3354_v2, 1  ;;  %v154_v8 = vmul.u32 29128, %v11865_v12  ;;  %v4634_v21 = vsel %vm18979_vm4, %v4601_v57, 0.0  ;;  %v4489_v42 = vsel %vm11909_vm13, %v17921_v0, 0.0  ;;  %v7902_v2 = vld [vmem:[%s17523_s0 + $0x14] sm:$0xff]   ;;  %vm18981_vm12 = vmmov %vm18979_vm4  ;;  %v3936_v39 = vpop.permute.xlu1 %3935 }
 0x238   :  { %v111_v27 = vmul.u32 9, %v11802_v33  ;;  %vm18980_vm9 = vcmask 31744   ;;  %v11942_v43 = vadd.f32 %v4634_v21, %v4633_v36  ;;  %v4522_v23 = vsel %vm18981_vm12, %v4489_v42, 0.0  ;;  %3013 = vrot.lane.b32.xlu0 %v11917_v50, %s7930_s24 }
 0x239   :  { %v4015_v58 = vsel %vm18980_vm9, %v7902_v2, %v11710_v10  ;;  %v3357_v57 = vsel %vm18978_vm11, %v3353_v1, %v11924_v52  ;;  %v11949_v0 = vadd.f32 %v4522_v23, %v4521_v44  ;;  %vm18982_vm4 = vcmask 293888   ;;  %v18986_v2 = vld [vmem:[#allocation34_spill] sm:$0xff] }
 0x23a   :  { %7620 = vmatmul.mubr.msk.bf16.gmra.mxu0 %vm18982_vm4, %v3357_v57  ;;  %v18983_v15 = vrot.slane %v11791_v6, 1  ;;  %v18984_v18 = vrot.slane %v11538_v45, 1  ;;  %vm18985_vm9 = vcmask 1046528   ;;  %v17933_v36 = vrot.slane %v11743_v32, 1  ;;  %v11960_v42 = vpop.permute.xlu0 %2779  ;;  %3782 = vrot.lane.b32.xlu1 %v18986_v2, %s7926_s11 }
 0x23b   :  { %v195_v21 = vmul.u32 9, %v174_v19  ;;  %v175_v1 = vshra.s32 %v154_v8, 18  ;;  %7623 = vmatprep.mubr.msk.bf16.mxu0 %vm18591_vm7, %v18457_v53  ;;  %vm18987_vm12 = vcmask 64512   ;;  %v3896_v23 = vshrl.u32 %v11538_v45, 16  ;;  %v3966_v19 = vpop.permute.xlu1 %3965 }
 0x23c   :  { %v11957_v10 = vsel %vm18985_vm9, %v18984_v18, %v18983_v15  ;;  %v4037_v44 = vsel %vm18987_vm12, %v4015_v58, %v11733_v63  ;;  %v3900_v15 = vshll.u32 %v11791_v6, 16  ;;  %vm18988_vm11 = vcmask 97280  }
 0x23d   :  { %v4059_v18 = vsel %vm18988_vm11, %v4037_v44, %v11776_v4  ;;  %3109 = vrot.lane.b32.xlu0 %v11957_v10, %s7931_s25  ;;  %v11975_v57 = vsub.s32 %v11721_v51, %v111_v27  ;;  %vm18990_vm4 = vcmask 130048   ;;  %v18991_v63 = vrot.slane %v11444_v24, 1 }
 0x23e   :  { %v4081_v8 = vsel %vm18990_vm4, %v4059_v18, %v11849_v29  ;;  %v11985_v58 = vsub.s32 %v11802_v33, %v195_v21  ;;  %v112_v4 = vmul.u32 9, %v11865_v12  ;;  %vm18993_vm12 = vcmask 162816   ;;  %v2802_v44 = vpop.permute.xlu0 %2801  ;;  %3804 = vrot.lane.b32.xlu1 %v18935_v54, %s7928_s15 }
 0x23f   :  { %18989 = vst [vmem:[#allocation34_spill] sm:$0xff] %v11975_v57  ;;  %v3136_v45 = vsel %vm18985_vm9, %v18991_v63, %v17933_v36  ;;  %v4103_v2 = vsel %vm18993_vm12, %v4081_v8, %v3827_v41  ;;  %v196_v51 = vmul.u32 9, %v175_v1  ;;  %vm18994_vm11 = vcmask 195584   ;;  %v3993_v33 = vpop.permute.xlu1 %3992 }
 0x240   :  { %18992 = vst [vmem:[#allocation135_spill] sm:$0xff] %v11985_v58  ;;  %v4125_v29 = vsel %vm18994_vm11, %v4103_v2, %v3936_v39  ;;  %v3898_v27 = vor.u32 %v3896_v23, %v11679_v5  ;;  %v11993_v18 = vrot.slane %v3900_v15, 1  ;;  %vm18995_vm4 = vcmask 228352  }
 0x241   :  { %v4147_v24 = vsel %vm18995_vm4, %v4125_v29, %v3966_v19  ;;  %3155 = vrot.lane.b32.xlu0 %v3136_v45, %s7932_s28  ;;  %v11998_v21 = vmul.u32 2, %v11975_v57  ;;  %vm18997_vm9 = vcmask 261120   ;;  %v12004_v54 = vmul.u32 2, %v11985_v58  ;;  %v19002_v19 = vld [vmem:[#allocation45_spill] sm:$0xff]  ;;  %v12056_v29 = vld [vmem:[%s17523_s0 + $0xa4] sm:$0xff]  }
 0x242   :  { %v12001_v41 = vsel %vm18997_vm9, %v4147_v24, %v3993_v33  ;;  %v12007_v39 = vsub.s32 %v11753_v56, %v112_v4  ;;  %v2824_v5 = vpop.permute.xlu0 %2823  ;;  %3834 = vrot.lane.b32.xlu1 %v18955_v31, %s7929_s19  ;;  %v12013_v23 = vsub.s32 %v11865_v12, %v196_v51  ;;  %vm19001_vm12 = vsmask.f32 7424 }
 0x243   :  { %18996 = vst [vmem:[#allocation136_spill] sm:$0xff] %v11998_v21  ;;  %18998 = vst [vmem:[#allocation137_spill] sm:$0xff] %v12004_v54  ;;  %v17929_v1 = vrot.slane %v12001_v41, 1  ;;  %v3903_v15 = vsel %vm19001_vm12, %v3898_v27, %v11993_v18  ;;  %v12019_v8 = vpop.permute.xlu1 %3724  ;;  %v19003_v56 = vrot.slane %v11690_v16, 1  ;;  %vm19004_vm11 = vcmask 1046528  }
 0x244   :  { %18999 = vst [vmem:[#allocation138_spill] sm:$0xff] %v12007_v39  ;;  %19000 = vst [vmem:[#allocation139_spill] sm:$0xff] %v12013_v23  ;;  %v12027_v45 = vadd.s32 1, %v11998_v21  ;;  %vm19006_vm4 = vcmask 293888   ;;  %vm1654_vm9 = vcmp.ge.s32.totalorder %v12004_v54, 1  ;;  %vm1675_vm12 = vcmp.le.s32.totalorder %v12004_v54, 16 }
 0x245   :  { %2765 = vrot.lane.b32.xlu0 %v19002_v19, %s7925_s17  ;;  %v4201_v63 = vsel %vm19004_vm11, %v19003_v56, %v17929_v1  ;;  %v12033_v12 = vmul.u32 2, %v12007_v39  ;;  %v12036_v31 = vadd.s32 128, %v9772_v13  ;;  %v12040_v16 = vmul.u32 2, %v12013_v23  ;;  %vm12048_vm11 = vmand %vm1654_vm9, %vm1675_vm12  ;;  %v12188_v54 = vld [vmem:[%s17523_s0 + $0x98] sm:$0xff]  }
 0x246   :  { %19005 = vst [vmem:[#allocation45_spill] sm:$0xff] %v12027_v45  ;;  %7670 = vmatmul.mubr.msk.bf16.gmra.mxu1 %vm19006_vm4, %v4201_v63  ;;  %v2846_v4 = vpop.permute.xlu0 %2845  ;;  %3943 = vrot.lane.b32.xlu1 %v3903_v15, %s7930_s24  ;;  %vm17930_vm4 = vcmp.ge.s32.totalorder %v12027_v45, 1  ;;  %v12064_v24 = vadd.s32 136, %v9772_v13  ;;  %v2974_v56 = vshrl.u32 %v11743_v32, 16  ;;  %vm19013_vm9 = vcmask 31744  }
 0x247   :  { %19007 = vst [vmem:[#allocation140_spill] sm:$0xff] %v12040_v16  ;;  %7673 = vmatprep.mubr.msk.bf16.mxu1 %vm18591_vm7, %v18457_v53  ;;  %v12046_v2 = vpop.permute.xlu1 %3754  ;;  %v12060_v27 = vadd.s32 1, %v12033_v12  ;;  %vm1676_vm12 = vcmp.le.s32.totalorder %v12040_v16, 16  ;;  %vm12074_vm8 = vmand %vm12048_vm11, %vm17930_vm4  ;;  %vm19014_vm4 = vcmp.ge.s32.totalorder %v11998_v21, 1  ;;  %v2978_v39 = vshll.u32 %v12056_v29, 16 }
 0x248   :  { %vm12093_vm6 = vmand %vm12048_vm11, %vm19014_vm4  ;;  %vm19018_vm13 = vcmp.ge.s32.totalorder %v12040_v16, 1  ;;  %v72_v58 = vmul.u32 29128, %v12064_v24  ;;  %vm19021_vm4 = vcmask 97280   ;;  %v19030_v15 = vmov 0 }
 0x249   :  { %2787 = vrot.lane.b32.xlu0 %v9264_v25, %s7927_s12  ;;  %19010 = vst [vmem:[#allocation141_spill] sm:$0xff] %v12060_v27  ;;  %v71_v25 = vmul.u32 29128, %v12036_v31  ;;  %vm12108_vm1 = vmand %vm19018_vm13, %vm1676_vm12  ;;  %vm17966_vm11 = vcmp.le.s32.totalorder %v12033_v12, 16  ;;  %vm19033_vm13 = vcmask 162816  }
 0x24a   :  { %v3008_v33 = vpop.permute.xlu0 %3007  ;;  %3973 = vrot.lane.b32.xlu1 %v11917_v50, %s7931_s25  ;;  %v7903_v50 = vld [vmem:[%s17523_s0 + $0x78] sm:$0xff]  }
 0x24b   :  { %v3172_v63 = vsel %vm19013_vm9, %v7903_v50, %v11926_v46  ;;  %v12087_v1 = vpop.permute.xlu1 %3776  ;;  %v12102_v46 = vld [vmem:[%s17523_s0 + $0x48] sm:$0xff]   ;;  %vm19017_vm9 = vcmask 64512   ;;  %v12113_v57 = vshra.s32 %v71_v25, 18 }
 0x24c   :  { %v3194_v50 = vsel %vm19017_vm9, %v3172_v63, %v11960_v42  ;;  %v2552_v23 = vpop.f32.mrf.mxu1  ;;  %vm19023_vm9 = vcmp.le.s32.totalorder %v12027_v45, 16  ;;  %v19024_v42 = vmov 0  ;;  %v12160_v45 = vrot.slane %v2978_v39, 1 }
 0x24d   :  { %2809 = vrot.lane.b32.xlu0 %v9080_v37, %s7926_s11  ;;  %v3216_v17 = vsel %vm19021_vm4, %v3194_v50, %v2802_v44  ;;  %v12118_v3 = vadd.f32 %v11178_v61, %v2552_v23  ;;  %vm12124_vm15 = vmand %vm12074_vm8, %vm19023_vm9  ;;  %v1547_v59 = vpop.f32.mrf.mxu0  ;;  %vm19027_vm4 = vcmask 130048   ;;  %vm19029_vm8 = vcmp.le.s32.totalorder %v11998_v21, 16 }
 0x24e   :  { %v19025_v42 = vsel %vm12124_vm15, 4294967295, %v19024_v42  ;;  %v3104_v63 = vpop.permute.xlu0 %3103  ;;  %4000 = vrot.lane.b32.xlu1 %v11957_v10, %s7932_s28  ;;  %v3238_v44 = vsel %vm19027_vm4, %v3216_v17, %v2824_v5  ;;  %v7595_v23 = vpop.f32.mrf.mxu1  ;;  %v12134_v25 = vadd.f32 %v11178_v61, %v1547_v59  ;;  %vm12140_vm9 = vmand %vm12093_vm6, %vm19029_vm8  ;;  %v2976_v10 = vor.u32 %v2974_v56, %v11851_v14  ;;  %v19034_v5 = vld [vmem:[#allocation46_spill] sm:$0xff]  ;;  %v19053_v59 = vld [vmem:[#allocation47_spill] sm:$0xff] }
 0x24f   :  { %19022 = vst [vmem:[#allocation142_spill] sm:$0xff] %v12118_v3  ;;  %19026 = vst [vmem:[#allocation143_spill] sm:$0xff] %v19025_v42  ;;  %v19031_v15 = vsel %vm12140_vm9, 4294967295, %v19030_v15  ;;  %v3260_v50 = vsel %vm19033_vm13, %v3238_v44, %v2846_v4  ;;  %vm19035_vm4 = vcmp.ge.s32.totalorder %v12060_v27, 1  ;;  %v7545_v36 = vpop.f32.mrf.mxu0  ;;  %v12158_v23 = vpop.permute.xlu1 %3798  ;;  %vm19038_vm6 = vcmask 195584  }
 0x250   :  { %19028 = vst [vmem:[#allocation144_spill] sm:$0xff] %v12134_v25  ;;  %19032 = vst [vmem:[#allocation145_spill] sm:$0xff] %v19031_v15  ;;  %v3282_v4 = vsel %vm19038_vm6, %v3260_v50, %v3008_v33  ;;  %v2555_v44 = vpop.f32.mrf.mxu1  ;;  %vm19039_vm13 = vcmp.ge.s32.totalorder %v12033_v12, 1  ;;  %v155_v36 = vmul.u32 29128, %v12113_v57  ;;  %v12174_v21 = vshra.s32 %v72_v58, 18 }
 0x251   :  { %2831 = vrot.lane.b32.xlu0 %v19034_v5, %s7928_s15  ;;  %vm12154_vm12 = vmand %vm12108_vm1, %vm19035_vm4  ;;  %v3358_v39 = vshrl.u32 %v11894_v49, 16  ;;  %v19042_v14 = vmax.f32 %v12118_v3, 0.0  ;;  %vm19043_vm4 = vcmask 228352   ;;  %v12183_v56 = vadd.f32 %v11178_v61, %v2555_v44  ;;  %v1550_v16 = vpop.f32.mrf.mxu0 }
 0x252   :  { %vm12169_vm8 = vmand %vm12108_vm1, %vm19039_vm13  ;;  %v3304_v50 = vsel %vm19043_vm4, %v3282_v4, %v3104_v63  ;;  %v3150_v51 = vpop.permute.xlu0 %3149  ;;  %3732 = vrot.lane.b32.xlu1 %v12188_v54, %s7925_s17  ;;  %vm19045_vm1 = vcmask 261120   ;;  %v19046_v58 = vmax.f32 %v12134_v25, 0.0  ;;  %vm19047_vm6 = vcmp.le.s32.totalorder %v12060_v27, 16  ;;  %v7596_v44 = vpop.f32.mrf.mxu1 }
 0x253   :  { %v4602_v33 = vsel %vm12124_vm15, %v19042_v14, 0.0  ;;  %19044 = vst [vmem:[#allocation46_spill] sm:$0xff] %v12183_v56  ;;  %vm12201_vm13 = vmand %vm12154_vm12, %vm19047_vm6  ;;  %v19048_v14 = vmov 0  ;;  %v12209_v42 = vadd.f32 %v11178_v61, %v1550_v16  ;;  %v7546_v61 = vpop.f32.mrf.mxu0  ;;  %v3829_v16 = vpop.permute.xlu1 %3828  ;;  %vm19057_vm6 = vsmask.f32 7424 }
 0x254   :  { %v4636_v49 = vsel %vm19045_vm1, %v4602_v33, 0.0  ;;  %v4490_v63 = vsel %vm12140_vm9, %v19046_v58, 0.0  ;;  %v19049_v14 = vsel %vm12201_vm13, 4294967295, %v19048_v14  ;;  %vm19051_vm4 = vmmov %vm19045_vm1  ;;  %v17960_v58 = vmax.f32 %v12183_v56, 0.0 }
 0x255   :  { %19050 = vst [vmem:[#allocation146_spill] sm:$0xff] %v19049_v14  ;;  %v12206_v4 = vsel %vm19051_vm4, %v3304_v50, %v3150_v51  ;;  %19052 = vst [vmem:[#allocation147_spill] sm:$0xff] %v12209_v42  ;;  %v4637_v33 = vadd.f32 %v4636_v49, %v11942_v43  ;;  %v4524_v15 = vsel %vm19045_vm1, %v4490_v63, 0.0  ;;  %2853 = vrot.lane.b32.xlu0 %v19053_v59, %s7929_s19  ;;  %v19054_v50 = vmov 0 }
 0x256   :  { %v3361_v3 = vshll.u32 %v12206_v4, 16  ;;  %vm12221_vm12 = vmand %vm12169_vm8, %vm17966_vm11  ;;  %v4525_v43 = vadd.f32 %v4524_v15, %v11949_v0  ;;  %v17961_v51 = vmax.f32 %v12209_v42, 0.0  ;;  %v12229_v49 = vsel %vm19057_vm6, %v2976_v10, %v12160_v45  ;;  %v12238_v61 = vpop.permute.xlu0 %2759  ;;  %3762 = vrot.lane.b32.xlu1 %v19002_v19, %s7927_s12 }
 0x257   :  { %v19055_v50 = vsel %vm12221_vm12, 4294967295, %v19054_v50  ;;  %v176_v63 = vshra.s32 %v155_v36, 18  ;;  %v3360_v44 = vor.u32 %v3358_v39, %v11924_v52  ;;  %v4603_v17 = vsel %vm12201_vm13, %v17960_v58, 0.0  ;;  %vm19058_vm8 = vmmov %vm19045_vm1  ;;  %v3938_v58 = vpop.permute.xlu1 %3937 }
 0x258   :  { %19056 = vst [vmem:[#allocation47_spill] sm:$0xff] %v19055_v50  ;;  %v12236_v59 = vrot.slane %v3361_v3, 1  ;;  %v156_v0 = vmul.u32 29128, %v12174_v21  ;;  %v4638_v15 = vsel %vm19058_vm8, %v4603_v17, 0.0  ;;  %v4491_v52 = vsel %vm12221_vm12, %v17961_v51, 0.0  ;;  %v7905_v3 = vld [vmem:[%s17523_s0 + $0x1c] sm:$0xff]  }
 0x259   :  { %v113_v10 = vmul.u32 9, %v12113_v57  ;;  %vm19059_vm4 = vcmask 31744   ;;  %v12254_v39 = vadd.f32 %v4638_v15, %v4637_v33  ;;  %v4526_v19 = vsel %vm19045_vm1, %v4491_v52, 0.0  ;;  %3015 = vrot.lane.b32.xlu0 %v12229_v49, %s7930_s24 }
 0x25a   :  { %v4017_v36 = vsel %vm19059_vm4, %v7905_v3, %v12019_v8  ;;  %v3364_v17 = vsel %vm19057_vm6, %v3360_v44, %v12236_v59  ;;  %v12261_v51 = vadd.f32 %v4526_v19, %v4525_v43  ;;  %vm19060_vm8 = vcmask 293888   ;;  %v12272_v52 = vpop.permute.xlu0 %2781  ;;  %v19064_v3 = vld [vmem:[#allocation40_spill] sm:$0xff] }
 0x25b   :  { %7624 = vmatmul.mubr.msk.bf16.gmra.mxu0 %vm19060_vm8, %v3364_v17  ;;  %v19061_v14 = vrot.slane %v12102_v46, 1  ;;  %v19062_v50 = vrot.slane %v11791_v6, 1  ;;  %vm19063_vm4 = vcmask 1046528   ;;  %v17972_v33 = vrot.slane %v12056_v29, 1  ;;  %3784 = vrot.lane.b32.xlu1 %v19064_v3, %s7926_s11 }
 0x25c   :  { %v197_v15 = vmul.u32 9, %v176_v63  ;;  %v177_v44 = vshra.s32 %v156_v0, 18  ;;  %7627 = vmatprep.mubr.msk.bf16.mxu0 %vm18591_vm7, %v18457_v53  ;;  %vm19065_vm1 = vcmask 64512   ;;  %v3904_v19 = vshrl.u32 %v11791_v6, 16  ;;  %v3968_v63 = vpop.permute.xlu1 %3967 }
 0x25d   :  { %v12269_v8 = vsel %vm19063_vm4, %v19062_v50, %v19061_v14  ;;  %v4039_v43 = vsel %vm19065_vm1, %v4017_v36, %v12046_v2  ;;  %v3908_v14 = vshll.u32 %v12102_v46, 16  ;;  %vm19066_vm6 = vcmask 97280  }
 0x25e   :  { %v4061_v50 = vsel %vm19066_vm6, %v4039_v43, %v12087_v1  ;;  %3111 = vrot.lane.b32.xlu0 %v12269_v8, %s7931_s25  ;;  %v12287_v17 = vsub.s32 %v12036_v31, %v113_v10  ;;  %vm19068_vm8 = vcmask 130048   ;;  %v19069_v2 = vrot.slane %v11743_v32, 1  ;;  %v12301_v43 = vpop.permute.xlu0 %2803 }
 0x25f   :  { %v4083_v0 = vsel %vm19068_vm8, %v4061_v50, %v12158_v23  ;;  %v12297_v36 = vsub.s32 %v12113_v57, %v197_v15  ;;  %v114_v1 = vmul.u32 9, %v12174_v21  ;;  %vm19071_vm1 = vcmask 162816   ;;  %3806 = vrot.lane.b32.xlu1 %v9080_v37, %s7928_s15 }
 0x260   :  { %19067 = vst [vmem:[#allocation40_spill] sm:$0xff] %v12287_v17  ;;  %v3138_v6 = vsel %vm19063_vm4, %v19069_v2, %v17972_v33  ;;  %v4105_v3 = vsel %vm19071_vm1, %v4083_v0, %v3829_v16  ;;  %v198_v31 = vmul.u32 9, %v177_v44  ;;  %vm19072_vm6 = vcmask 195584   ;;  %v3995_v57 = vpop.permute.xlu1 %3994  ;;  %v19080_v0 = vld [vmem:[#allocation49_spill] sm:$0xff] }
 0x261   :  { %19070 = vst [vmem:[#allocation148_spill] sm:$0xff] %v12297_v36  ;;  %v4127_v23 = vsel %vm19072_vm6, %v4105_v3, %v3938_v58  ;;  %v3906_v10 = vor.u32 %v3904_v19, %v11993_v18  ;;  %v12307_v32 = vrot.slane %v3908_v14, 1  ;;  %vm19073_vm8 = vcmask 228352  }
 0x262   :  { %v4149_v50 = vsel %vm19073_vm8, %v4127_v23, %v3968_v63  ;;  %3157 = vrot.lane.b32.xlu0 %v3138_v6, %s7932_s28  ;;  %v12312_v15 = vmul.u32 2, %v12287_v17  ;;  %v12315_v16 = vadd.s32 144, %v9772_v13  ;;  %vm19075_vm4 = vcmask 261120   ;;  %v2826_v44 = vpop.permute.xlu0 %2825 }
 0x263   :  { %v12318_v37 = vsel %vm19075_vm4, %v4149_v50, %v3995_v57  ;;  %v12321_v58 = vmul.u32 2, %v12297_v36  ;;  %v12324_v18 = vsub.s32 %v12064_v24, %v114_v1  ;;  %3836 = vrot.lane.b32.xlu1 %v19034_v5, %s7929_s19  ;;  %v12330_v14 = vsub.s32 %v12174_v21, %v198_v31  ;;  %v12349_v21 = vld [vmem:[%s17523_s0 + $0xac] sm:$0xff]  }
 0x264   :  { %19074 = vst [vmem:[#allocation149_spill] sm:$0xff] %v12312_v15  ;;  %v17971_v19 = vrot.slane %v12318_v37, 1  ;;  %vm19079_vm1 = vsmask.f32 7424  ;;  %v12336_v2 = vpop.permute.xlu1 %3726  ;;  %v19081_v24 = vrot.slane %v12001_v41, 1  ;;  %vm19082_vm6 = vcmask 1046528  }
 0x265   :  { %19076 = vst [vmem:[#allocation150_spill] sm:$0xff] %v12321_v58  ;;  %19077 = vst [vmem:[#allocation151_spill] sm:$0xff] %v12324_v18  ;;  %v3911_v63 = vsel %vm19079_vm1, %v3906_v10, %v12307_v32  ;;  %v12344_v1 = vadd.s32 1, %v12312_v15  ;;  %v73_v5 = vmul.u32 29128, %v12315_v16  ;;  %vm19084_vm8 = vcmask 293888  }
 0x266   :  { %19078 = vst [vmem:[#allocation152_spill] sm:$0xff] %v12330_v14  ;;  %2767 = vrot.lane.b32.xlu0 %v19080_v0, %s7925_s17  ;;  %v4203_v6 = vsel %vm19082_vm6, %v19081_v24, %v17971_v19  ;;  %vm1656_vm4 = vcmp.ge.s32.totalorder %v12321_v58, 1  ;;  %vm1677_vm1 = vcmp.le.s32.totalorder %v12321_v58, 16  ;;  %v12356_v41 = vmul.u32 2, %v12324_v18  ;;  %v2848_v3 = vpop.permute.xlu0 %2847  ;;  %v7906_v19 = vld [vmem:[%s17523_s0 + $0x80] sm:$0xff]  }
 0x267   :  { %19083 = vst [vmem:[#allocation49_spill] sm:$0xff] %v12344_v1  ;;  %7674 = vmatmul.mubr.msk.bf16.gmra.mxu1 %vm19084_vm8, %v4203_v6  ;;  %3945 = vrot.lane.b32.xlu1 %v3911_v63, %s7930_s24  ;;  %v12360_v31 = vmul.u32 2, %v12330_v14  ;;  %vm12368_vm6 = vmand %vm1656_vm4, %vm1677_vm1  ;;  %vm17975_vm8 = vcmp.ge.s32.totalorder %v12344_v1, 1  ;;  %v2982_v50 = vshrl.u32 %v12056_v29, 16  ;;  %v2986_v57 = vshll.u32 %v12349_v21, 16 }
 0x268   :  { %7677 = vmatprep.mubr.msk.bf16.mxu1 %vm18591_vm7, %v18457_v53  ;;  %v12366_v23 = vpop.permute.xlu1 %3756  ;;  %v12375_v63 = vshra.s32 %v73_v5, 18  ;;  %v12379_v24 = vadd.s32 1, %v12356_v41  ;;  %vm12392_vm13 = vmand %vm12368_vm6, %vm17975_vm8  ;;  %vm19091_vm4 = vcmask 31744   ;;  %vm19092_vm8 = vcmp.ge.s32.totalorder %v12312_v15, 1 }
 0x269   :  { %19085 = vst [vmem:[#allocation153_spill] sm:$0xff] %v12360_v31  ;;  %vm1678_vm1 = vcmp.le.s32.totalorder %v12360_v31, 16  ;;  %v3174_v33 = vsel %vm19091_vm4, %v7906_v19, %v12238_v61  ;;  %vm12416_vm15 = vmand %vm12368_vm6, %vm19092_vm8  ;;  %v2984_v17 = vor.u32 %v2982_v50, %v12160_v45  ;;  %v12421_v36 = vrot.slane %v2986_v57, 1 }
 0x26a   :  { %2789 = vrot.lane.b32.xlu0 %v9448_v20, %s7927_s12  ;;  %19088 = vst [vmem:[#allocation154_spill] sm:$0xff] %v12379_v24  ;;  %v12382_v20 = vadd.s32 152, %v9772_v13  ;;  %v3010_v6 = vpop.permute.xlu0 %3009  ;;  %v157_v56 = vmul.u32 29128, %v12375_v63  ;;  %vm19095_vm4 = vcmask 64512   ;;  %vm19096_vm11 = vcmp.ge.s32.totalorder %v12360_v31, 1 }
 0x26b   :  { %3975 = vrot.lane.b32.xlu1 %v12229_v49, %s7931_s25  ;;  %v12401_v49 = vld [vmem:[%s17523_s0 + $0x50] sm:$0xff]   ;;  %v3196_v61 = vsel %vm19095_vm4, %v3174_v33, %v12272_v52  ;;  %vm12430_vm12 = vmand %vm19096_vm11, %vm1678_vm1  ;;  %v12437_v50 = vadd.s32 160, %v9772_v13  ;;  %vm19099_vm8 = vcmask 97280   ;;  %v12444_v33 = vld [vmem:[%s17525_s2] ss:$0 sm:$0xff]  ;;  %vm19101_vm11 = vcmp.le.s32.totalorder %v12344_v1, 16 }
 0x26c   :  { %v12410_v18 = vpop.permute.xlu1 %3778  ;;  %v2560_v19 = vpop.f32.mrf.mxu1  ;;  %v74_v45 = vmul.u32 29128, %v12382_v20  ;;  %v3218_v57 = vsel %vm19099_vm8, %v3196_v61, %v12301_v43  ;;  %vm12453_vm1 = vmand %vm12392_vm13, %vm19101_vm11  ;;  %v19102_v42 = vmov 0  ;;  %vm19105_vm6 = vcmask 130048  }
 0x26d   :  { %v12447_v52 = vadd.f32 %v12444_v33, %v2560_v19  ;;  %v19103_v42 = vsel %vm12453_vm1, 4294967295, %v19102_v42  ;;  %v1555_v25 = vpop.f32.mrf.mxu0  ;;  %v3240_v43 = vsel %vm19105_vm6, %v3218_v57, %v2826_v44  ;;  %vm19107_vm13 = vcmp.le.s32.totalorder %v12312_v15, 16  ;;  %v19112_v57 = vld [vmem:[#allocation51_spill] sm:$0xff] }
 0x26e   :  { %2811 = vrot.lane.b32.xlu0 %v9269_v55, %s7926_s11  ;;  %19104 = vst [vmem:[#allocation156_spill] sm:$0xff] %v19103_v42  ;;  %v3106_v13 = vpop.permute.xlu0 %3105  ;;  %v7599_v61 = vpop.f32.mrf.mxu1  ;;  %v12463_v19 = vadd.f32 %v12444_v33, %v1555_v25  ;;  %vm12469_vm11 = vmand %vm12416_vm15, %vm19107_vm13  ;;  %v19108_v5 = vmov 0  ;;  %vm18014_vm9 = vcmp.le.s32.totalorder %v12379_v24, 16  ;;  %vm19111_vm4 = vcmask 162816  }
 0x26f   :  { %19100 = vst [vmem:[#allocation155_spill] sm:$0xff] %v12447_v52  ;;  %4002 = vrot.lane.b32.xlu1 %v12269_v8, %s7932_s28  ;;  %v19109_v5 = vsel %vm12469_vm11, 4294967295, %v19108_v5  ;;  %v3262_v1 = vsel %vm19111_vm4, %v3240_v43, %v2848_v3  ;;  %vm19113_vm6 = vcmp.ge.s32.totalorder %v12379_v24, 1  ;;  %v7549_v14 = vpop.f32.mrf.mxu0  ;;  %vm19116_vm15 = vsmask.f32 7424 }
 0x270   :  { %19106 = vst [vmem:[#allocation157_spill] sm:$0xff] %v12463_v19  ;;  %19110 = vst [vmem:[#allocation158_spill] sm:$0xff] %v19109_v5  ;;  %v12487_v61 = vpop.permute.xlu1 %3800  ;;  %v12491_v8 = vsel %vm19116_vm15, %v2984_v17, %v12421_v36  ;;  %v12493_v3 = vshra.s32 %v157_v56, 18  ;;  %vm19117_vm4 = vcmask 195584   ;;  %v2563_v15 = vpop.f32.mrf.mxu1  ;;  %vm19118_vm13 = vcmp.ge.s32.totalorder %v12356_v41, 1 }
 0x271   :  { %vm12483_vm8 = vmand %vm12430_vm12, %vm19113_vm6  ;;  %v3284_v43 = vsel %vm19117_vm4, %v3262_v1, %v3010_v6  ;;  %v12505_v14 = vshra.s32 %v74_v45, 18  ;;  %v75_v17 = vmul.u32 29128, %v12437_v50  ;;  %v3365_v56 = vshrl.u32 %v12206_v4, 16  ;;  %v1558_v27 = vpop.f32.mrf.mxu0  ;;  %v12520_v45 = vld [vmem:[%s17523_s0 + $0xa0] sm:$0xff]  }
 0x272   :  { %2833 = vrot.lane.b32.xlu0 %v19112_v57, %s7928_s15  ;;  %vm12501_vm6 = vmand %vm12430_vm12, %vm19118_vm13  ;;  %v19121_v58 = vmax.f32 %v12447_v52, 0.0  ;;  %vm19122_vm15 = vcmask 228352   ;;  %v12515_v44 = vadd.f32 %v12444_v33, %v2563_v15  ;;  %v3152_v10 = vpop.permute.xlu0 %3151  ;;  %vm19124_vm12 = vcmask 261120  }
 0x273   :  { %v3306_v6 = vsel %vm19122_vm15, %v3284_v43, %v3106_v13  ;;  %3734 = vrot.lane.b32.xlu1 %v12520_v45, %s7925_s17  ;;  %v19125_v42 = vmax.f32 %v12463_v19, 0.0  ;;  %vm12533_vm4 = vmand %vm12483_vm8, %vm18014_vm9  ;;  %v19126_v15 = vmov 0  ;;  %v7600_v43 = vpop.f32.mrf.mxu1  ;;  %v12541_v52 = vadd.f32 %v12444_v33, %v1558_v27  ;;  %v7550_v27 = vpop.f32.mrf.mxu0 }
 0x274   :  { %v4604_v1 = vsel %vm12453_vm1, %v19121_v58, 0.0  ;;  %19123 = vst [vmem:[#allocation51_spill] sm:$0xff] %v12515_v44  ;;  %v19127_v15 = vsel %vm12533_vm4, 4294967295, %v19126_v15  ;;  %vm19129_vm13 = vmmov %vm19124_vm12  ;;  %vm19132_vm8 = vcmp.le.s32.totalorder %v12356_v41, 16  ;;  %v19133_v25 = vmov 0 }
 0x275   :  { %v4640_v4 = vsel %vm19124_vm12, %v4604_v1, 0.0  ;;  %v4492_v13 = vsel %vm12469_vm11, %v19125_v42, 0.0  ;;  %19128 = vst [vmem:[#allocation159_spill] sm:$0xff] %v19127_v15  ;;  %v12538_v58 = vsel %vm19129_vm13, %v3306_v6, %v3152_v10  ;;  %19130 = vst [vmem:[#allocation160_spill] sm:$0xff] %v12541_v52  ;;  %v18007_v42 = vmax.f32 %v12515_v44, 0.0  ;;  %v3831_v6 = vpop.permute.xlu1 %3830 }
 0x276   :  { %v4641_v1 = vadd.f32 %v4640_v4, %v12254_v39  ;;  %vm19131_vm15 = vmmov %vm19124_vm12  ;;  %v3368_v19 = vshll.u32 %v12538_v58, 16  ;;  %2855 = vrot.lane.b32.xlu0 %v9521_v62, %s7929_s19  ;;  %v18008_v10 = vmax.f32 %v12541_v52, 0.0  ;;  %v158_v4 = vmul.u32 29128, %v12505_v14  ;;  %v12569_v24 = vpop.permute.xlu0 %2761  ;;  %v19224_v52 = vld [vmem:[#allocation52_spill] sm:$0xff] }
 0x277   :  { %v4528_v5 = vsel %vm19131_vm15, %v4492_v13, 0.0  ;;  %vm12553_vm12 = vmand %vm12501_vm6, %vm19132_vm8  ;;  %v12560_v13 = vshra.s32 %v75_v17, 18  ;;  %v3367_v62 = vor.u32 %v3365_v56, %v12236_v59  ;;  %v4605_v31 = vsel %vm12533_vm4, %v18007_v42, 0.0  ;;  %3764 = vrot.lane.b32.xlu1 %v19080_v0, %s7927_s12  ;;  %v7909_v0 = vld [vmem:[%s17523_s0 + $0x24] sm:$0xff]  }
 0x278   :  { %v19134_v25 = vsel %vm12553_vm12, 4294967295, %v19133_v25  ;;  %v4529_v39 = vadd.f32 %v4528_v5, %v12261_v51  ;;  %v12567_v43 = vrot.slane %v3368_v19, 1  ;;  %v19136_v51 = vrot.slane %v12401_v49, 1  ;;  %vm19140_vm8 = vmmov %vm19129_vm13 }
 0x279   :  { %19135 = vst [vmem:[#allocation161_spill] sm:$0xff] %v19134_v25  ;;  %v19137_v5 = vrot.slane %v12102_v46, 1  ;;  %vm19138_vm6 = vcmask 1046528   ;;  %v4642_v59 = vsel %vm19129_vm13, %v4605_v31, 0.0  ;;  %v4493_v19 = vsel %vm12553_vm12, %v18008_v10, 0.0  ;;  %v3940_v10 = vpop.permute.xlu1 %3939 }
 0x27a   :  { %v115_v56 = vmul.u32 9, %v12375_v63  ;;  %v199_v27 = vmul.u32 9, %v12493_v3  ;;  %vm19139_vm15 = vcmask 31744   ;;  %v4530_v31 = vsel %vm19140_vm8, %v4493_v19, 0.0  ;;  %3017 = vrot.lane.b32.xlu0 %v12491_v8, %s7930_s24 }
 0x27b   :  { %v12578_v17 = vsel %vm19138_vm6, %v19137_v5, %v19136_v51  ;;  %v4019_v42 = vsel %vm19139_vm15, %v7909_v0, %v12336_v2  ;;  %v12592_v51 = vadd.f32 %v4642_v59, %v4641_v1  ;;  %vm19141_vm6 = vsmask.f32 7424  ;;  %v12604_v1 = vpop.permute.xlu0 %2783  ;;  %v19143_v59 = vld [vmem:[#allocation44_spill] sm:$0xff] }
 0x27c   :  { %v3371_v5 = vsel %vm19141_vm6, %v3367_v62, %v12567_v43  ;;  %v12599_v15 = vadd.f32 %v4530_v31, %v4529_v39  ;;  %vm19142_vm13 = vcmask 293888   ;;  %v18027_v3 = vrot.slane %v12349_v21, 1  ;;  %3786 = vrot.lane.b32.xlu1 %v19143_v59, %s7926_s11 }
 0x27d   :  { %7628 = vmatmul.mubr.msk.bf16.gmra.mxu0 %vm19142_vm13, %v3371_v5  ;;  %v179_v25 = vshra.s32 %v158_v4, 18  ;;  %v159_v2 = vmul.u32 29128, %v12560_v13  ;;  %vm19144_vm15 = vcmask 64512   ;;  %v3912_v39 = vshrl.u32 %v12102_v46, 16  ;;  %v3970_v31 = vpop.permute.xlu1 %3969 }
 0x27e   :  { %7631 = vmatprep.mubr.msk.bf16.mxu0 %vm18591_vm7, %v18457_v53  ;;  %v4041_v62 = vsel %vm19144_vm15, %v4019_v42, %v12366_v23  ;;  %v3916_v19 = vshll.u32 %v12401_v49, 16  ;;  %v12615_v0 = vsub.s32 %v12315_v16, %v115_v56  ;;  %vm19146_vm8 = vcmask 97280   ;;  %3113 = vrot.lane.b32.xlu0 %v12578_v17, %s7931_s25 }
 0x27f   :  { %v4063_v4 = vsel %vm19146_vm8, %v4041_v62, %v12410_v18  ;;  %v12622_v5 = vsub.s32 %v12375_v63, %v199_v27  ;;  %v116_v59 = vmul.u32 9, %v12505_v14  ;;  %vm19148_vm6 = vcmask 130048   ;;  %v2806_v62 = vpop.permute.xlu0 %2805 }
 0x280   :  { %19145 = vst [vmem:[#allocation44_spill] sm:$0xff] %v12615_v0  ;;  %v4085_v46 = vsel %vm19148_vm6, %v4063_v4, %v12487_v61  ;;  %v19149_v16 = vrot.slane %v12056_v29, 1  ;;  %vm19150_vm13 = vcmask 1046528   ;;  %v200_v42 = vmul.u32 9, %v179_v25  ;;  %3808 = vrot.lane.b32.xlu1 %v9269_v55, %s7928_s15 }
 0x281   :  { %19147 = vst [vmem:[#allocation162_spill] sm:$0xff] %v12622_v5  ;;  %v180_v18 = vshra.s32 %v159_v2, 18  ;;  %vm19151_vm15 = vcmask 162816   ;;  %vm19152_vm8 = vcmask 195584   ;;  %v3914_v27 = vor.u32 %v3912_v39, %v12307_v32  ;;  %v3997_v25 = vpop.permute.xlu1 %3996 }
 0x282   :  { %v3140_v23 = vsel %vm19150_vm13, %v19149_v16, %v18027_v3  ;;  %v4107_v56 = vsel %vm19151_vm15, %v4085_v46, %v3831_v6  ;;  %v12637_v44 = vrot.slane %v3916_v19, 1  ;;  %v12640_v61 = vmul.u32 2, %v12615_v0 }
 0x283   :  { %v4129_v63 = vsel %vm19152_vm8, %v4107_v56, %v3940_v10  ;;  %vm19154_vm6 = vcmask 228352   ;;  %3159 = vrot.lane.b32.xlu0 %v3140_v23, %s7932_s28  ;;  %v12645_v6 = vmul.u32 2, %v12622_v5  ;;  %v12648_v2 = vsub.s32 %v12382_v20, %v116_v59  ;;  %v2828_v19 = vpop.permute.xlu0 %2827  ;;  %v19161_v59 = vld [vmem:[#allocation53_spill] sm:$0xff]  ;;  %v19265_v56 = vld [vmem:[#allocation60_spill] sm:$0xff] }
 0x284   :  { %19153 = vst [vmem:[#allocation163_spill] sm:$0xff] %v12640_v61  ;;  %v4151_v29 = vsel %vm19154_vm6, %v4129_v63, %v3970_v31  ;;  %vm19157_vm13 = vcmask 261120   ;;  %v12654_v32 = vsub.s32 %v12505_v14, %v200_v42  ;;  %v117_v10 = vmul.u32 9, %v12560_v13  ;;  %3838 = vrot.lane.b32.xlu1 %v19112_v57, %s7929_s19  ;;  %v12708_v63 = vld [vmem:[%s17523_s0 + $0xb4] ss:$0 sps:$4 sm:$0x33]  }
 0x285   :  { %19155 = vst [vmem:[#allocation164_spill] sm:$0xff] %v12645_v6  ;;  %19156 = vst [vmem:[#allocation165_spill] sm:$0xff] %v12648_v2  ;;  %v12651_v55 = vsel %vm19157_vm13, %v4151_v29, %v3997_v25  ;;  %v201_v39 = vmul.u32 9, %v180_v18  ;;  %vm19159_vm15 = vsmask.f32 7424  ;;  %v12663_v20 = vadd.s32 1, %v12640_v61  ;;  %v12667_v14 = vpop.permute.xlu1 %3728 }
 0x286   :  { %19158 = vst [vmem:[#allocation166_spill] sm:$0xff] %v12654_v32  ;;  %v18026_v4 = vrot.slane %v12651_v55, 1  ;;  %v3919_v31 = vsel %vm19159_vm15, %v3914_v27, %v12637_v44  ;;  %v19162_v46 = vrot.slane %v12318_v37, 1  ;;  %vm19163_vm8 = vcmask 1046528  }
 0x287   :  { %19160 = vst [vmem:[#allocation167_spill] sm:$0xff] %v12663_v20  ;;  %2769 = vrot.lane.b32.xlu0 %v19161_v59, %s7925_s17  ;;  %vm1658_vm6 = vcmp.ge.s32.totalorder %v12645_v6, 1  ;;  %vm1679_vm13 = vcmp.le.s32.totalorder %v12645_v6, 16  ;;  %v12677_v57 = vmul.u32 2, %v12648_v2  ;;  %vm19165_vm15 = vcmask 293888   ;;  %v2850_v37 = vpop.permute.xlu0 %2849 }
 0x288   :  { %v4205_v16 = vsel %vm19163_vm8, %v19162_v46, %v18026_v4  ;;  %v12681_v23 = vmul.u32 2, %v12654_v32  ;;  %v12684_v42 = vsub.s32 %v12437_v50, %v117_v10  ;;  %v12687_v18 = vsub.s32 %v12560_v13, %v201_v39  ;;  %3947 = vrot.lane.b32.xlu1 %v3919_v31, %s7930_s24  ;;  %vm12692_vm8 = vmand %vm1658_vm6, %vm1679_vm13  ;;  %v7910_v10 = vld [vmem:[%s17523_s0 + $0x88] sm:$0xff]   ;;  %v12746_v31 = vld [vmem:[%s17523_s0 + $0x54] ss:$0 sps:$4 sm:$0x77]  }
 0x289   :  { %19164 = vst [vmem:[#allocation53_spill] sm:$0xff] %v12677_v57  ;;  %7678 = vmatmul.mubr.msk.bf16.gmra.mxu1 %vm19165_vm15, %v4205_v16  ;;  %vm18019_vm15 = vcmp.ge.s32.totalorder %v12640_v61, 1  ;;  %v12699_v50 = vpop.permute.xlu1 %3758  ;;  %v12703_v13 = vadd.s32 1, %v12677_v57  ;;  %vm19175_vm13 = vcmask 31744   ;;  %vm19176_vm4 = vcmp.ge.s32.totalorder %v12663_v20, 1  ;;  %v19180_v46 = vld [vmem:[#allocation50_spill] sm:$0xff] }
 0x28a   :  { %19166 = vst [vmem:[#allocation168_spill] sm:$0xff] %v12681_v23  ;;  %19167 = vst [vmem:[#allocation169_spill] sm:$0xff] %v12684_v42  ;;  %7681 = vmatprep.mubr.msk.bf16.mxu1 %vm18591_vm7, %v18457_v53  ;;  %v12713_v27 = vmul.u32 2, %v12687_v18  ;;  %v3176_v39 = vsel %vm19175_vm13, %v7910_v10, %v12569_v24  ;;  %v3741_v59 = vshll.u32 %v12746_v31, 16  ;;  %vm19179_vm6 = vcmask 64512  }
 0x28b   :  { %19168 = vst [vmem:[#allocation170_spill] sm:$0xff] %v12687_v18  ;;  %2791 = vrot.lane.b32.xlu0 %v9625_v34, %s7927_s12  ;;  %19171 = vst [vmem:[#allocation171_spill] sm:$0xff] %v12703_v13  ;;  %v12716_v34 = vmul.u32 2, %v12684_v42  ;;  %v3012_v29 = vpop.permute.xlu0 %3011  ;;  %v3198_v24 = vsel %vm19179_vm6, %v3176_v39, %v12604_v1  ;;  %v2990_v10 = vshrl.u32 %v12349_v21, 16  ;;  %vm19185_vm6 = vcmask 97280  }
 0x28c   :  { %19172 = vst [vmem:[#allocation172_spill] sm:$0xff] %v12713_v27  ;;  %3977 = vrot.lane.b32.xlu1 %v12491_v8, %s7931_s25  ;;  %vm12724_vm9 = vmand %vm12692_vm8, %vm18019_vm15  ;;  %vm18032_vm15 = vcmp.ge.s32.totalorder %v12677_v57, 1  ;;  %v3220_v1 = vsel %vm19185_vm6, %v3198_v24, %v2806_v62  ;;  %v1563_v39 = vpop.f32.mrf.mxu0  ;;  %vm19186_vm11 = vcmp.le.s32.totalorder %v12640_v61, 16  ;;  %v19187_v4 = vmov 0 }
 0x28d   :  { %vm12738_vm1 = vmand %vm12692_vm8, %vm19176_vm4  ;;  %v12753_v16 = vpop.permute.xlu1 %3780  ;;  %vm19181_vm4 = vcmp.le.s32.totalorder %v12681_v23, 16  ;;  %vm19182_vm8 = vcmp.ge.s32.totalorder %v12681_v23, 1  ;;  %v2568_v3 = vpop.f32.mrf.mxu1  ;;  %v12777_v42 = vadd.s32 1, %v12716_v34  ;;  %v2994_v18 = vshll.u32 %v12708_v63, 16 }
 0x28e   :  { %vm12759_vm13 = vmand %vm19182_vm8, %vm19181_vm4  ;;  %vm19191_vm8 = vcmask 130048   ;;  %v12782_v62 = vadd.f32 %v12444_v33, %v1563_v39  ;;  %v12785_v24 = vadd.f32 %v12444_v33, %v2568_v3  ;;  %v19195_v25 = vmov 0 }
 0x28f   :  { %2813 = vrot.lane.b32.xlu0 %v19180_v46, %s7926_s11  ;;  %vm12771_vm0 = vmand %vm12724_vm9, %vm19186_vm11  ;;  %19190 = vst [vmem:[#allocation173_spill] sm:$0xff] %v12777_v42  ;;  %v3242_v2 = vsel %vm19191_vm8, %v3220_v1, %v2828_v19  ;;  %vm19194_vm9 = vcmp.le.s32.totalorder %v12663_v20, 16  ;;  %v3108_v32 = vpop.permute.xlu0 %3107  ;;  %vm1681_vm6 = vcmp.le.s32.totalorder %v12713_v27, 16  ;;  %vm19198_vm8 = vcmask 162816   ;;  %v7553_v1 = vpop.f32.mrf.mxu0 }
 0x290   :  { %v19188_v4 = vsel %vm12771_vm0, 4294967295, %v19187_v4  ;;  %19192 = vst [vmem:[#allocation174_spill] sm:$0xff] %v12782_v62  ;;  %19193 = vst [vmem:[#allocation175_spill] sm:$0xff] %v12785_v24  ;;  %4004 = vrot.lane.b32.xlu1 %v12578_v17, %s7932_s28  ;;  %v3264_v19 = vsel %vm19198_vm8, %v3242_v2, %v2850_v37  ;;  %v7603_v39 = vpop.f32.mrf.mxu1  ;;  %v12809_v8 = vrot.slane %v3741_v59, 1  ;;  %vm19201_vm12 = vcmask 195584   ;;  %v19202_v1 = vld [vmem:[#allocation55_spill] sm:$0xff] }
 0x291   :  { %19189 = vst [vmem:[#allocation50_spill] sm:$0xff] %v19188_v4  ;;  %vm12791_vm11 = vmand %vm12738_vm1, %vm19194_vm9  ;;  %v3286_v17 = vsel %vm19201_vm12, %v3264_v19, %v3012_v29  ;;  %v18039_v2 = vmax.f32 %v12782_v62, 0.0  ;;  %vm19203_vm8 = vcmp.ge.s32.totalorder %v12703_v13, 1  ;;  %v12824_v0 = vpop.permute.xlu1 %3802  ;;  %v12827_v29 = vor.u32 %v2990_v10, %v12421_v36  ;;  %v1566_v19 = vpop.f32.mrf.mxu0  ;;  %v12845_v36 = vld [vmem:[%s17523_s0 + $0x58] ss:$0 sps:$4 sm:$0x77]  }
 0x292   :  { %v19196_v25 = vsel %vm12791_vm11, 4294967295, %v19195_v25  ;;  %vm12803_vm4 = vmand %vm12759_vm13, %vm18032_vm15  ;;  %vm19206_vm12 = vcmask 228352   ;;  %v2571_v37 = vpop.f32.mrf.mxu1  ;;  %vm19207_vm1 = vcmp.ge.s32.totalorder %v12713_v27, 1  ;;  %v19210_v10 = vmax.f32 %v12785_v24, 0.0 }
 0x293   :  { %19197 = vst [vmem:[#allocation176_spill] sm:$0xff] %v19196_v25  ;;  %2835 = vrot.lane.b32.xlu0 %v19202_v1, %s7928_s15  ;;  %vm12820_vm15 = vmand %vm12759_vm13, %vm19203_vm8  ;;  %v3308_v59 = vsel %vm19206_vm12, %v3286_v17, %v3108_v32  ;;  %v12840_v1 = vrot.slane %v2994_v18, 1  ;;  %v4494_v32 = vsel %vm12771_vm0, %v18039_v2, 0.0  ;;  %v12856_v5 = vadd.f32 %v12444_v33, %v1566_v19  ;;  %v3154_v2 = vpop.permute.xlu0 %3153  ;;  %v12872_v25 = vld [vmem:[%s17523_s0 + $0xa8] sm:$0xff]   ;;  %v7554_v4 = vpop.f32.mrf.mxu0 }
 0x294   :  { %vm12834_vm5 = vmand %vm19207_vm1, %vm1681_vm6  ;;  %v4606_v17 = vsel %vm12791_vm11, %v19210_v10, 0.0  ;;  %vm19212_vm6 = vcmp.le.s32.totalorder %v12677_v57, 16  ;;  %v19213_v18 = vmov 0  ;;  %v12867_v62 = vadd.f32 %v12444_v33, %v2571_v37  ;;  %3736 = vrot.lane.b32.xlu1 %v12872_v25, %s7925_s17  ;;  %v7604_v24 = vpop.f32.mrf.mxu1  ;;  %v19226_v57 = vld [vmem:[#allocation56_spill] sm:$0xff] }
 0x295   :  { %19211 = vst [vmem:[#allocation55_spill] sm:$0xff] %v12856_v5  ;;  %vm12862_vm1 = vmand %vm12803_vm4, %vm19212_vm6  ;;  %vm19217_vm12 = vcmask 261120   ;;  %vm19219_vm4 = vcmp.le.s32.totalorder %v12703_v13, 16  ;;  %v19220_v37 = vmov 0  ;;  %vm19225_vm13 = vsmask.f32 7424 }
 0x296   :  { %v19214_v18 = vsel %vm12862_vm1, 4294967295, %v19213_v18  ;;  %19216 = vst [vmem:[#allocation178_spill] sm:$0xff] %v12867_v62  ;;  %v4532_v19 = vsel %vm19217_vm12, %v4494_v32, 0.0  ;;  %vm19218_vm9 = vmmov %vm19217_vm12  ;;  %v3744_v20 = vsel %vm19225_vm13, %v19224_v52, %v12809_v8  ;;  %v18057_v13 = vmax.f32 %v12856_v5, 0.0  ;;  %v3833_v52 = vpop.permute.xlu1 %3832  ;;  %v2576_v24 = vpop.f32.mrf.mxu1  ;;  %v7914_v5 = vld [vmem:[%s17523_s0 + $0x2c] sm:$0xff]  }
 0x297   :  { %19215 = vst [vmem:[#allocation177_spill] sm:$0xff] %v19214_v18  ;;  %v4644_v3 = vsel %vm19218_vm9, %v4606_v17, 0.0  ;;  %vm12882_vm6 = vmand %vm12820_vm15, %vm19219_vm4  ;;  %v4533_v32 = vadd.f32 %v4532_v19, %v12599_v15  ;;  %v18059_v39 = vmax.f32 %v12867_v62, 0.0  ;;  %2857 = vrot.lane.b32.xlu0 %v19226_v57, %s7929_s19  ;;  %vm19227_vm15 = vcmp.ge.s32.totalorder %v12777_v42, 1  ;;  %v12930_v61 = vpop.permute.xlu0 %2763 }
 0x298   :  { %v19221_v37 = vsel %vm12882_vm6, 4294967295, %v19220_v37  ;;  %vm19223_vm8 = vmmov %vm19218_vm9  ;;  %v4645_v17 = vadd.f32 %v4644_v3, %v12592_v51  ;;  %v3372_v15 = vshrl.u32 %v12538_v58, 16  ;;  %v12912_v57 = vrot.slane %v12845_v36, 1  ;;  %3766 = vrot.lane.b32.xlu1 %v3744_v20, %s7927_s12  ;;  %v12936_v27 = vld [vmem:[%s17523_s0 + $0x10c] ss:$0 sps:$4 sm:$0x77]  }
 0x299   :  { %19222 = vst [vmem:[#allocation179_spill] sm:$0xff] %v19221_v37  ;;  %v12887_v10 = vsel %vm19223_vm8, %v3308_v59, %v3154_v2  ;;  %vm12902_vm9 = vmand %vm12834_vm5, %vm19227_vm15  ;;  %v2997_v2 = vsel %vm19225_vm13, %v12827_v29, %v12840_v1  ;;  %v12917_v59 = vld [vmem:[%s17523_s0 + $0xb4] ss:$0 sps:$4 sm:$0x77]   ;;  %v4495_v58 = vsel %vm12862_vm1, %v18057_v13, 0.0  ;;  %v4607_v19 = vsel %vm12882_vm6, %v18059_v39, 0.0 }
 0x29a   :  { %v3375_v51 = vshll.u32 %v12887_v10, 16  ;;  %v12928_v3 = vadd.f32 %v12444_v33, %v2576_v24  ;;  %v3815_v18 = vshll.u32 %v12936_v27, 16  ;;  %v3374_v13 = vor.u32 %v3372_v15, %v12567_v43  ;;  %vm19230_vm12 = vmmov %vm19223_vm8  ;;  %v7607_v24 = vpop.f32.mrf.mxu1  ;;  %v3942_v4 = vpop.permute.xlu1 %3941 }
 0x29b   :  { %v4534_v62 = vsel %vm19223_vm8, %v4495_v58, 0.0  ;;  %v4646_v39 = vsel %vm19230_vm12, %v4607_v19, 0.0  ;;  %vm19231_vm4 = vcmp.le.s32.totalorder %v12777_v42, 16  ;;  %v19232_v20 = vmov 0  ;;  %3019 = vrot.lane.b32.xlu0 %v2997_v2, %s7930_s24 }
 0x29c   :  { %v12942_v37 = vrot.slane %v3375_v51, 1  ;;  %vm12948_vm15 = vmand %vm12902_vm9, %vm19231_vm4  ;;  %vm19235_vm13 = vcmask 31744   ;;  %v12957_v15 = vadd.f32 %v4534_v62, %v4533_v32  ;;  %v4647_v51 = vadd.f32 %v4646_v39, %v4645_v17  ;;  %v2579_v19 = vpop.f32.mrf.mxu1  ;;  %v19240_v62 = vld [vmem:[#allocation48_spill] sm:$0xff] }
 0x29d   :  { %v19233_v20 = vsel %vm12948_vm15, 4294967295, %v19232_v20  ;;  %v4021_v43 = vsel %vm19235_vm13, %v7914_v5, %v12667_v14  ;;  %v18094_v58 = vmax.f32 %v12928_v3, 0.0  ;;  %vm19236_vm9 = vsmask.f32 7424  ;;  %v2786_v14 = vpop.permute.xlu0 %2785  ;;  %3788 = vrot.lane.b32.xlu1 %v19240_v62, %s7926_s11 }
 0x29e   :  { %19234 = vst [vmem:[#allocation52_spill] sm:$0xff] %v19233_v20  ;;  %v3378_v42 = vsel %vm19236_vm9, %v3374_v13, %v12942_v37  ;;  %v19237_v24 = vrot.slane %v12401_v49, 1  ;;  %vm19238_vm8 = vcmask 1046528   ;;  %v3141_v6 = vrot.slane %v12917_v59, 1  ;;  %v7608_v39 = vpop.f32.mrf.mxu1 }
 0x29f   :  { %v4608_v5 = vsel %vm12948_vm15, %v18094_v58, 0.0  ;;  %vm19239_vm12 = vcmask 293888   ;;  %v12975_v32 = vrot.slane %v3815_v18, 1  ;;  %vm19241_vm4 = vcmask 64512   ;;  %v3972_v18 = vpop.permute.xlu1 %3971 }
 0x2a0   :  { %v3096_v23 = vsel %vm19238_vm8, %v19237_v24, %v12912_v57  ;;  %7632 = vmatmul.mubr.msk.bf16.gmra.mxu0 %vm19239_vm12, %v3378_v42  ;;  %v4043_v13 = vsel %vm19241_vm4, %v4021_v43, %v12699_v50  ;;  %vm19242_vm13 = vcmask 254976   ;;  %v3920_v2 = vshrl.u32 %v12401_v49, 16 }
 0x2a1   :  { %v4648_v17 = vsel %vm19242_vm13, %v4608_v5, 0.0  ;;  %v3924_v19 = vshll.u32 %v12845_v36, 16  ;;  %7635 = vmatprep.mubr.msk.bf16.mxu0 %vm18591_vm7, %v18457_v53  ;;  %vm19243_vm9 = vcmask 97280   ;;  %3115 = vrot.lane.b32.xlu0 %v3096_v23, %s7931_s25  ;;  %vm19244_vm8 = vcmask 130048   ;;  %v2808_v62 = vpop.permute.xlu0 %2807 }
 0x2a2   :  { %v4065_v42 = vsel %vm19243_vm9, %v4043_v13, %v12753_v16  ;;  %v4649_v24 = vadd.f32 %v4648_v17, %v4647_v51  ;;  %v19245_v43 = vrot.slane %v12349_v21, 1  ;;  %vm19246_vm12 = vcmask 1046528   ;;  %3810 = vrot.lane.b32.xlu1 %v19180_v46, %s7928_s15  ;;  %v19248_v16 = vld [vmem:[#allocation54_spill] sm:$0xff] }
 0x2a3   :  { %v4087_v50 = vsel %vm19244_vm8, %v4065_v42, %v12824_v0  ;;  %vm19247_vm4 = vcmask 162816   ;;  %vm19249_vm13 = vsmask.f32 7424  ;;  %vm19250_vm9 = vcmask 195584  }
 0x2a4   :  { %v3142_v49 = vsel %vm19246_vm12, %v19245_v43, %v3141_v6  ;;  %v4109_v5 = vsel %vm19247_vm4, %v4087_v50, %v3833_v52  ;;  %v3818_v51 = vsel %vm19249_vm13, %v19248_v16, %v12975_v32  ;;  %v3922_v0 = vor.u32 %v3920_v2, %v12637_v44  ;;  %v3999_v52 = vpop.permute.xlu1 %3998  ;;  %vm19253_vm4 = vmmov %vm19249_vm13  ;;  %v19254_v2 = vld [vmem:[#allocation57_spill] sm:$0xff]  ;;  %v19259_v16 = vld [vmem:[#allocation58_spill] sm:$0xff] }
 0x2a5   :  { %v4131_v13 = vsel %vm19250_vm9, %v4109_v5, %v3942_v4  ;;  %v13002_v17 = vrot.slane %v3924_v19, 1  ;;  %v3954_v21 = vshll.u32 %v12917_v59, 16  ;;  %vm19251_vm8 = vcmask 228352   ;;  %3161 = vrot.lane.b32.xlu0 %v3142_v49, %s7932_s28  ;;  %v2830_v46 = vpop.permute.xlu0 %2829 }
 0x2a6   :  { %v4153_v39 = vsel %vm19251_vm8, %v4131_v13, %v3972_v18  ;;  %vm19252_vm12 = vcmask 261120   ;;  %3840 = vrot.lane.b32.xlu1 %v3818_v51, %s7929_s19  ;;  %v19255_v18 = vrot.slane %v12651_v55, 1  ;;  %vm19256_vm13 = vcmask 1046528   ;;  %vm19258_vm8 = vmmov %vm19253_vm4  ;;  %v7915_v13 = vld [vmem:[%s17523_s0 + $0x90] sm:$0xff]  }
 0x2a7   :  { %v13008_v42 = vsel %vm19252_vm12, %v4153_v39, %v3999_v52  ;;  %v3927_v44 = vsel %vm19253_vm4, %v3922_v0, %v13002_v17  ;;  %v13014_v4 = vrot.slane %v3954_v21, 1  ;;  %vm19257_vm9 = vcmask 293888  }
 0x2a8   :  { %v4206_v50 = vrot.slane %v13008_v42, 1  ;;  %v3731_v19 = vpop.permute.xlu1 %3730  ;;  %vm18070_vm12 = vcmp.ge.s32.totalorder %v12716_v34, 1  ;;  %vm19260_vm4 = vcmask 31744   ;;  %v4650_v39 = vrot.slane %v4649_v24, 4 }
 0x2a9   :  { %2771 = vrot.lane.b32.xlu0 %v19254_v2, %s7925_s17  ;;  %v2852_v49 = vpop.permute.xlu0 %2851  ;;  %v3957_v5 = vsel %vm19258_vm8, %v12827_v29, %v13014_v4  ;;  %v3178_v0 = vsel %vm19260_vm4, %v7915_v13, %v12930_v61  ;;  %v13044_v29 = vld [vmem:[%s17523_s0 + $0x168] ss:$0 sps:$4 sm:$0x33]   ;;  %vm18069_vm8 = vcmp.le.s32.totalorder %v12716_v34, 16  ;;  %vm19262_vm4 = vcmask 97280  }
 0x2aa   :  { %v4207_v43 = vsel %vm19256_vm13, %v19255_v18, %v4206_v50  ;;  %3949 = vrot.lane.b32.xlu1 %v3927_v44, %s7930_s24  ;;  %vm19261_vm13 = vcmask 64512   ;;  %v3745_v18 = vshrl.u32 %v12746_v31, 16  ;;  %vm19263_vm15 = vcmask 130048  }
 0x2ab   :  { %7682 = vmatmul.mubr.msk.bf16.gmra.mxu1 %vm19257_vm9, %v4207_v43  ;;  %v3200_v52 = vsel %vm19261_vm13, %v3178_v0, %v2786_v14  ;;  %vm1744_vm9 = vmand %vm12834_vm5, %vm18070_vm12  ;;  %vm19264_vm13 = vcmask 162816   ;;  %v2998_v31 = vshrl.u32 %v12708_v63, 16  ;;  %v4651_v13 = vadd.f32 %v4650_v39, %v4649_v24 }
 0x2ac   :  { %7685 = vmatprep.mubr.msk.bf16.mxu1 %vm18591_vm7, %v18457_v53  ;;  %v13032_v51 = vpop.permute.xlu1 %3760  ;;  %v3222_v61 = vsel %vm19262_vm4, %v3200_v52, %v2808_v62  ;;  %vm13066_vm5 = vmand %vm1744_vm9, %vm18069_vm8  ;;  %v19266_v62 = vmov 0  ;;  %vm19270_vm4 = vcmask 228352   ;;  %vm19271_vm9 = vcmask 261120  }
 0x2ad   :  { %2793 = vrot.lane.b32.xlu0 %v19259_v16, %s7927_s12  ;;  %v3014_v55 = vpop.permute.xlu0 %3013  ;;  %v1571_v2 = vpop.f32.mrf.mxu0  ;;  %v3244_v43 = vsel %vm19263_vm15, %v3222_v61, %v2830_v46  ;;  %v19267_v62 = vsel %vm13066_vm5, 4294967295, %v19266_v62  ;;  %vm19269_vm15 = vcmask 195584   ;;  %vm19292_vm6 = vcmask 31744  }
 0x2ae   :  { %3979 = vrot.lane.b32.xlu1 %v3957_v5, %s7931_s25  ;;  %v13059_v5 = vadd.f32 %v12444_v33, %v1571_v2  ;;  %v3266_v14 = vsel %vm19264_vm13, %v3244_v43, %v2852_v49  ;;  %19268 = vst [vmem:[#allocation56_spill] sm:$0xff] %v19267_v62  ;;  %v13077_v2 = vld [vmem:[%s17523_s0 + $0xb0] ss:$0 sps:$4 sm:$0x33]   ;;  %v3747_v43 = vor.u32 %v3745_v18, %v12809_v8  ;;  %vm19272_vm13 = vcmask 254976  }
 0x2af   :  { %v7557_v16 = vpop.f32.mrf.mxu0  ;;  %v3288_v46 = vsel %vm19269_vm15, %v3266_v14, %v3014_v55  ;;  %v3379_v55 = vshrl.u32 %v12887_v10, 16  ;;  %v19273_v14 = vld [vmem:[#allocation61_spill] sm:$0xff]  ;;  %v3000_v8 = vor.u32 %v2998_v31, %v12840_v1  ;;  %v4652_v18 = vrot.slane %v4651_v13, 2 }
 0x2b0   :  { %v3783_v21 = vpop.permute.xlu1 %3782  ;;  %v18106_v0 = vmax.f32 %v13059_v5, 0.0  ;;  %vm19274_vm15 = vcmask 31744  }
 0x2b1   :  { %2815 = vrot.lane.b32.xlu0 %v13044_v29, %s7926_s11  ;;  %v3110_v44 = vpop.permute.xlu0 %3109  ;;  %v1574_v61 = vpop.f32.mrf.mxu0 }
 0x2b2   :  { %4006 = vrot.lane.b32.xlu1 %v3096_v23, %s7932_s28  ;;  %v3310_v49 = vsel %vm19270_vm4, %v3288_v46, %v3110_v44  ;;  %v4496_v63 = vsel %vm13066_vm5, %v18106_v0, 0.0  ;;  %v3381_v61 = vor.u32 %v3379_v55, %v12942_v37  ;;  %vm19275_vm4 = vsmask.f32 7424 }
 0x2b3   :  { %v4537_v39 = vsel %vm19272_vm13, %v4496_v63, 0.0  ;;  %v7918_v63 = vld [vmem:[%s17523_s0 + $0x34] sm:$0xff]   ;;  %v4653_v37 = vadd.f32 %v4652_v18, %v4651_v13  ;;  %vm19277_vm13 = vcmask 64512   ;;  %vm19299_vm5 = vcmask 130048  }
 0x2b4   :  { %v3805_v23 = vpop.permute.xlu1 %3804  ;;  %v4538_v46 = vadd.f32 %v4537_v39, %v12957_v15  ;;  %v3928_v39 = vshrl.u32 %v12845_v36, 16 }
 0x2b5   :  { %2837 = vrot.lane.b32.xlu0 %v19265_v56, %s7928_s15  ;;  %v3156_v52 = vpop.permute.xlu0 %3155  ;;  %v7558_v56 = vpop.f32.mrf.mxu0  ;;  %v4654_v18 = vrot.slane %v4653_v37, 1 }
 0x2b6   :  { %3738 = vrot.lane.b32.xlu1 %v13077_v2, %s7925_s17  ;;  %v13087_v24 = vsel %vm19271_vm9, %v3310_v49, %v3156_v52  ;;  %v4539_v10 = vrot.slane %v4538_v46, 4  ;;  %vm19276_vm9 = vcmask 293888  }
 0x2b7   :  { %v3382_v44 = vshll.u32 %v13087_v24, 16 }
 0x2b8   :  { %v3835_v16 = vpop.permute.xlu1 %3834  ;;  %v4540_v31 = vadd.f32 %v4539_v10, %v4538_v46 }
 0x2b9   :  { %2859 = vrot.lane.b32.xlu0 %v19273_v14, %s7929_s19  ;;  %v13097_v49 = vrot.slane %v3382_v44, 1  ;;  %v13099_v52 = vpop.permute.xlu0 %2765  ;;  %v4023_v14 = vsel %vm19274_vm15, %v7918_v63, %v3731_v19  ;;  %vm19278_vm15 = vcmask 97280  }
 0x2ba   :  { %3768 = vrot.lane.b32.xlu1 %v3747_v43, %s7927_s12  ;;  %v7919_v43 = vld [vmem:[%s17523_s0 + $0x10c] ss:$0 sps:$4 sm:$0x33]   ;;  %v4045_v19 = vsel %vm19277_vm13, %v4023_v14, %v13032_v51  ;;  %v4541_v44 = vrot.slane %v4540_v31, 2  ;;  %v3930_v51 = vor.u32 %v3928_v39, %v13002_v17  ;;  %vm19281_vm13 = vcmask 195584  }
 0x2bb   :  { %v3385_v1 = vsel %vm19275_vm4, %v3381_v61, %v13097_v49  ;;  %v4067_v13 = vsel %vm19278_vm15, %v4045_v19, %v3783_v21  ;;  %vm19279_vm4 = vcmask 130048   ;;  %vm19282_vm15 = vcmask 228352  }
 0x2bc   :  { %v3944_v15 = vpop.permute.xlu1 %3943  ;;  %7636 = vmatmul.mubr.msk.bf16.gmra.mxu0 %vm19276_vm9, %v3385_v1  ;;  %v4542_v46 = vadd.f32 %v4541_v44, %v4540_v31  ;;  %v4089_v61 = vsel %vm19279_vm4, %v4067_v13, %v3805_v23  ;;  %vm19280_vm9 = vcmask 162816   ;;  %v4655_v1 = vadd.f32 %v4654_v18, %v4653_v37  ;;  %v19286_v37 = vld [vmem:[#allocation8_spill] sm:$0xff] }
 0x2bd   :  { %3021 = vrot.lane.b32.xlu0 %v3000_v8, %s7930_s24  ;;  %v2788_v55 = vpop.permute.xlu0 %2787  ;;  %7639 = vmatprep.mubr.msk.bf16.mxu0 %vm18591_vm7, %v18457_v53  ;;  %v3819_v8 = vshrl.u32 %v12936_v27, 16  ;;  %v4111_v36 = vsel %vm19280_vm9, %v4089_v61, %v3835_v16  ;;  %v3958_v16 = vshrl.u32 %v12917_v59, 16  ;;  %vm19283_vm4 = vcmask 261120  }
 0x2be   :  { %3790 = vrot.lane.b32.xlu1 %v7919_v43, %s7926_s11  ;;  %v4543_v63 = vrot.slane %v4542_v46, 1  ;;  %v4133_v21 = vsel %vm19281_vm13, %v4111_v36, %v3944_v15  ;;  %v19284_v15 = vld [vmem:[#allocation3_spill] sm:$0xff]  ;;  %vm19285_vm9 = vcmask 1046528   ;;  %v3592_v44 = vadd.s32 1, %v19286_v37  ;;  %s7936_s11 = smov 96  }
 0x2bf   :  { %v3821_v23 = vor.u32 %v3819_v8, %v12975_v32  ;;  %v3591_v39 = vadd.s32 1, %v19284_v15  ;;  %v3960_v32 = vor.u32 %v3958_v16, %v13014_v4  ;;  %vm19287_vm13 = vcmask 293888  }
 0x2c0   :  { %v3974_v56 = vpop.permute.xlu1 %3973  ;;  %v4544_v31 = vadd.f32 %v4543_v63, %v4542_v46  ;;  %vm3613_vm8 = vcmp.ge.s32.totalorder %v3592_v44, 1  ;;  %v19293_v46 = vld [vmem:[#allocation64_spill] sm:$0xff]  ;;  %v19337_v8 = vmov 0 }
 0x2c1   :  { %3117 = vrot.lane.b32.xlu0 %v12912_v57, %s7931_s25  ;;  %v2810_v10 = vpop.permute.xlu0 %2809  ;;  %v4155_v14 = vsel %vm19282_vm15, %v4133_v21, %v3974_v56  ;;  %vm3612_vm15 = vcmp.ge.s32.totalorder %v3591_v39, 1  ;;  %vm19294_vm11 = vcmp.ge.s32.totalorder %v19293_v46, 1  ;;  %vm19300_vm1 = vcmp.le.s32.totalorder %v19293_v46, 16 }
 0x2c2   :  { %3812 = vrot.lane.b32.xlu1 %v13044_v29, %s7928_s15  ;;  %v13141_v19 = vadd.f32 %v4655_v1, %v4544_v31  ;;  %v19307_v31 = vmov 0 }
 0x2c4   :  { %v4001_v27 = vpop.permute.xlu1 %4000 }
 0x2c5   :  { %3163 = vrot.lane.b32.xlu0 %v3141_v6, %s7932_s28  ;;  %v13136_v29 = vsel %vm19283_vm4, %v4155_v14, %v4001_v27  ;;  %v2832_v17 = vpop.permute.xlu0 %2831  ;;  %vm3633_vm4 = vcmp.le.s32.totalorder %v3591_v39, 16  ;;  %v19297_v27 = vld [vmem:[#allocation68_spill] sm:$0xff] }
 0x2c6   :  { %v4208_v43 = vrot.slane %v13136_v29, 1  ;;  %3951 = vrot.lane.b32.xlu1 %v3930_v51, %s7930_s24  ;;  %vm13157_vm12 = vmand %vm3612_vm15, %vm3633_vm4  ;;  %vm19295_vm4 = vcmask 64512  }
 0x2c7   :  { %vm3675_vm15 = vmand %vm13157_vm12, %vm19294_vm11  ;;  %vm19304_vm11 = vcmask 162816  }
 0x2c8   :  { %v3733_v6 = vpop.permute.xlu1 %3732  ;;  %v4209_v59 = vsel %vm19285_vm9, %v4206_v50, %v4208_v43  ;;  %vm3634_vm9 = vcmp.le.s32.totalorder %v3592_v44, 16  ;;  %vm13185_vm0 = vmand %vm3675_vm15, %vm19300_vm1  ;;  %vm19310_vm1 = vcmask 228352   ;;  %v3386_v44 = vshrl.u32 %v13087_v24, 16  ;;  %v7920_v24 = vld [vmem:[%s17523_s0 + $0x3c] sm:$0xff]  }
 0x2c9   :  { %3842 = vrot.lane.b32.xlu0 %v3821_v23, %s7929_s19  ;;  %7686 = vmatmul.mubr.msk.bf16.gmra.mxu1 %vm19287_vm13, %v4209_v59  ;;  %v2854_v13 = vpop.permute.xlu0 %2853  ;;  %vm13161_vm13 = vmand %vm3613_vm8, %vm3634_vm9  ;;  %vm19296_vm8 = vcmask 97280   ;;  %vm19298_vm9 = vcmp.ge.s32.totalorder %v19297_v27, 1 }
 0x2ca   :  { %4008 = vrot.lane.b32.xlu1 %v12912_v57, %s7932_s28  ;;  %7689 = vmatprep.mubr.msk.bf16.mxu1 %vm18591_vm7, %v18457_v53  ;;  %v3180_v57 = vsel %vm19292_vm6, %v12188_v54, %v13099_v52  ;;  %vm3676_vm6 = vmand %vm13161_vm13, %vm19298_vm9  ;;  %v19301_v52 = vmov 0 }
 0x2cb   :  { %v3202_v36 = vsel %vm19295_vm4, %v3180_v57, %v2788_v55  ;;  %v19302_v52 = vsel %vm13185_vm0, 4294967295, %v19301_v52  ;;  %vm19305_vm4 = vcmask 195584  }
 0x2cc   :  { %v3763_v42 = vpop.permute.xlu1 %3762  ;;  %v3484_v56 = vpop.f32.mrf.mxu0  ;;  %v3224_v63 = vsel %vm19296_vm8, %v3202_v36, %v2810_v10  ;;  %19303 = vst [vmem:[#allocation48_spill] sm:$0xff] %v19302_v52  ;;  %vm19306_vm8 = vcmp.le.s32.totalorder %v19297_v27, 16  ;;  %v3388_v36 = vor.u32 %v3386_v44, %v13097_v49 }
 0x2cd   :  { %3981 = vrot.lane.b32.xlu0 %v3960_v32, %s7931_s25  ;;  %v3016_v4 = vpop.permute.xlu0 %3015  ;;  %v13169_v18 = vadd.f32 %v12444_v33, %v3484_v56  ;;  %v3246_v54 = vsel %vm19299_vm5, %v3224_v63, %v2832_v17  ;;  %vm13196_vm9 = vmand %vm3676_vm6, %vm19306_vm8  ;;  %vm19311_vm5 = vcmask 261120   ;;  %vm19316_vm8 = vcmask 293888  }
 0x2ce   :  { %v7617_v51 = vpop.f32.mrf.mxu0  ;;  %v3268_v23 = vsel %vm19304_vm11, %v3246_v54, %v2854_v13  ;;  %v19308_v31 = vsel %vm13196_vm9, 4294967295, %v19307_v31  ;;  %vm19312_vm15 = vmmov %vm19311_vm5  ;;  %vm19314_vm11 = vcmask 31744  }
 0x2cf   :  { %v18093_v21 = vmax.f32 %v13169_v18, 0.0  ;;  %v3290_v1 = vsel %vm19305_vm4, %v3268_v23, %v3016_v4  ;;  %19309 = vst [vmem:[#allocation54_spill] sm:$0xff] %v19308_v31  ;;  %vm19313_vm6 = vmmov %vm19311_vm5  ;;  %v4025_v27 = vsel %vm19314_vm11, %v7920_v24, %v3733_v6  ;;  %vm19315_vm4 = vsmask.f32 7424  ;;  %v19326_v24 = vld [vmem:[#allocation67_spill] sm:$0xff]  ;;  %v19716_v31 = vld [vmem:[#allocation173_spill] sm:$0xff] }
 0x2d0   :  { %v3785_v61 = vpop.permute.xlu1 %3784  ;;  %v3487_v55 = vpop.f32.mrf.mxu0  ;;  %vm19321_vm11 = vcmask 195584  }
 0x2d1   :  { %v3112_v14 = vpop.permute.xlu0 %3111  ;;  %v13191_v10 = vadd.f32 %v12444_v33, %v3487_v55  ;;  %v4699_v15 = vsel %vm13185_vm0, %v18093_v21, 0.0 }
 0x2d2   :  { %v7618_v17 = vpop.f32.mrf.mxu0  ;;  %v3312_v39 = vsel %vm19310_vm1, %v3290_v1, %v3112_v14  ;;  %v4720_v57 = vsel %vm19312_vm15, %v4699_v15, 0.0  ;;  %vm19317_vm1 = vcmask 64512   ;;  %vm19319_vm15 = vcmask 130048  }
 0x2d3   :  { %v18092_v59 = vmax.f32 %v13191_v10, 0.0  ;;  %v4047_v49 = vsel %vm19317_vm1, %v4025_v27, %v3763_v42  ;;  %vm19324_vm1 = vcmask 1046528  }
 0x2d4   :  { %v3807_v16 = vpop.permute.xlu1 %3806 }
 0x2d5   :  { %v3158_v32 = vpop.permute.xlu0 %3157  ;;  %v4700_v13 = vsel %vm13196_vm9, %v18092_v59, 0.0 }
 0x2d6   :  { %v13207_v37 = vsel %vm19311_vm5, %v3312_v39, %v3158_v32  ;;  %v4721_v46 = vsel %vm19313_vm6, %v4700_v13, 0.0  ;;  %vm19318_vm5 = vcmask 97280   ;;  %vm19320_vm6 = vcmask 162816  }
 0x2d7   :  { %v3389_v4 = vshll.u32 %v13207_v37, 16  ;;  %v13218_v51 = vadd.f32 %v4721_v46, %v4720_v57  ;;  %v4069_v1 = vsel %vm19318_vm5, %v4047_v49, %v3785_v61  ;;  %vm19325_vm5 = vcmask 293888  }
 0x2d8   :  { %v3837_v56 = vpop.permute.xlu1 %3836  ;;  %v4091_v15 = vsel %vm19319_vm15, %v4069_v1, %v3807_v16  ;;  %vm19327_vm15 = vcmp.ge.s32.totalorder %v19326_v24, 1  ;;  %v19331_v49 = vmov 0 }
 0x2d9   :  { %v13220_v63 = vrot.slane %v3389_v4, 1  ;;  %v2768_v14 = vpop.permute.xlu0 %2767  ;;  %v4113_v39 = vsel %vm19320_vm6, %v4091_v15, %v3837_v56  ;;  %vm4392_vm6 = vmand %vm13157_vm12, %vm19327_vm15  ;;  %vm19335_vm12 = vcmask 64512  }
 0x2db   :  { %v3392_v54 = vsel %vm19315_vm4, %v3388_v36, %v13220_v63  ;;  %vm19322_vm4 = vcmask 228352  }
 0x2dc   :  { %v3946_v55 = vpop.permute.xlu1 %3945  ;;  %7640 = vmatmul.mubr.msk.bf16.gmra.mxu0 %vm19316_vm8, %v3392_v54  ;;  %vm19323_vm8 = vcmask 261120  }
 0x2dd   :  { %v2790_v23 = vpop.permute.xlu0 %2789  ;;  %7643 = vmatprep.mubr.msk.bf16.mxu0 %vm18591_vm7, %v18457_v53  ;;  %v4135_v32 = vsel %vm19321_vm11, %v4113_v39, %v3946_v55  ;;  %v19328_v55 = vld [vmem:[#allocation14_spill] sm:$0xff] }
 0x2de   :  { %vm19329_vm11 = vcmp.ge.s32.totalorder %v19328_v55, 1  ;;  %vm19336_vm15 = vcmp.le.s32.totalorder %v19328_v55, 16 }
 0x2e0   :  { %v3976_v17 = vpop.permute.xlu1 %3975 }
 0x2e1   :  { %v2812_v6 = vpop.permute.xlu0 %2811  ;;  %v4157_v44 = vsel %vm19322_vm4, %v4135_v32, %v3976_v17  ;;  %vm4393_vm4 = vmand %vm13161_vm13, %vm19329_vm11  ;;  %vm19340_vm13 = vcmask 97280   ;;  %vm19342_vm11 = vcmask 162816  }
 0x2e2   :  { %vm13275_vm9 = vmand %vm4393_vm4, %vm19336_vm15  ;;  %vm19343_vm4 = vcmask 261120   ;;  %vm19346_vm15 = vcmask 228352  }
 0x2e3   :  { %v19338_v8 = vsel %vm13275_vm9, 4294967295, %v19337_v8 }
 0x2e4   :  { %v4003_v13 = vpop.permute.xlu1 %4002  ;;  %19339 = vst [vmem:[#allocation58_spill] sm:$0xff] %v19338_v8  ;;  %v19556_v8 = vld [vmem:[#allocation35_spill] sm:$0xff] }
 0x2e5   :  { %v13238_v4 = vsel %vm19323_vm8, %v4157_v44, %v4003_v13  ;;  %v2834_v57 = vpop.permute.xlu0 %2833  ;;  %vm19330_vm8 = vcmp.le.s32.totalorder %v19326_v24, 16  ;;  %v3593_v44 = vadd.s32 1, %v10176_v47 }
 0x2e6   :  { %v4210_v46 = vrot.slane %v13238_v4, 1  ;;  %v19381_v4 = vmov 0 }
 0x2e7   :  { %v4285_v56 = vpop.f32.mrf.mxu1 }
 0x2e8   :  { %v3735_v42 = vpop.permute.xlu1 %3734  ;;  %v4211_v61 = vsel %vm19324_vm1, %v4208_v43, %v4210_v46  ;;  %v13250_v36 = vadd.f32 %v12444_v33, %v4285_v56  ;;  %vm13263_vm1 = vmand %vm4392_vm6, %vm19330_vm8  ;;  %vm19341_vm6 = vcmask 130048   ;;  %vm19344_vm8 = vcmask 195584  }
 0x2e9   :  { %7690 = vmatmul.mubr.msk.bf16.gmra.mxu1 %vm19325_vm5, %v4211_v61  ;;  %v2856_v16 = vpop.permute.xlu0 %2855  ;;  %v7667_v54 = vpop.f32.mrf.mxu1  ;;  %v19332_v49 = vsel %vm13263_vm1, 4294967295, %v19331_v49  ;;  %vm19334_vm5 = vcmask 31744  }
 0x2ea   :  { %7693 = vmatprep.mubr.msk.bf16.mxu1 %vm18591_vm7, %v18457_v53  ;;  %v18088_v29 = vmax.f32 %v13250_v36, 0.0  ;;  %19333 = vst [vmem:[#allocation57_spill] sm:$0xff] %v19332_v49  ;;  %v3182_v50 = vsel %vm19334_vm5, %v12520_v45, %v2768_v14  ;;  %vm19345_vm5 = vmmov %vm19343_vm4  ;;  %v19587_v49 = vld [vmem:[#allocation41_spill] sm:$0xff] }
 0x2eb   :  { %v4288_v1 = vpop.f32.mrf.mxu1  ;;  %v3204_v39 = vsel %vm19335_vm12, %v3182_v50, %v2790_v23  ;;  %vm3614_vm12 = vcmp.ge.s32.totalorder %v3593_v44, 1 }
 0x2ec   :  { %v3765_v27 = vpop.permute.xlu1 %3764  ;;  %v13270_v17 = vadd.f32 %v12444_v33, %v4288_v1  ;;  %v3226_v13 = vsel %vm19340_vm13, %v3204_v39, %v2812_v6  ;;  %v4810_v45 = vsel %vm13263_vm1, %v18088_v29, 0.0  ;;  %vm3635_vm13 = vcmp.le.s32.totalorder %v3593_v44, 16 }
 0x2ed   :  { %v3018_v43 = vpop.permute.xlu0 %3017  ;;  %v7668_v32 = vpop.f32.mrf.mxu1  ;;  %v3248_v23 = vsel %vm19341_vm6, %v3226_v13, %v2834_v57  ;;  %v4831_v6 = vsel %vm19343_vm4, %v4810_v45, 0.0  ;;  %vm19347_vm6 = vmmov %vm19343_vm4  ;;  %vm19364_vm1 = vcmask 130048   ;;  %v19389_v29 = vmov 0 }
 0x2ee   :  { %v18087_v14 = vmax.f32 %v13270_v17, 0.0  ;;  %v3270_v56 = vsel %vm19342_vm11, %v3248_v23, %v2856_v16  ;;  %v3594_v16 = vadd.s32 1, %v10221_v26  ;;  %v3393_v32 = vshrl.u32 %v13207_v37, 16  ;;  %vm13304_vm11 = vmand %vm3614_vm12, %vm3635_vm13  ;;  %v7921_v26 = vld [vmem:[%s17523_s0 + $0x44] sm:$0xff]  }
 0x2ef   :  { %v3292_v54 = vsel %vm19344_vm8, %v3270_v56, %v3018_v43  ;;  %vm19352_vm13 = vsmask.f32 7424 }
 0x2f0   :  { %v3787_v15 = vpop.permute.xlu1 %3786  ;;  %v4811_v24 = vsel %vm13275_vm9, %v18087_v14, 0.0  ;;  %v3395_v23 = vor.u32 %v3393_v32, %v13220_v63  ;;  %vm3615_vm4 = vcmp.ge.s32.totalorder %v3594_v16, 1  ;;  %vm3636_vm8 = vcmp.le.s32.totalorder %v3594_v16, 16 }
 0x2f1   :  { %v3114_v61 = vpop.permute.xlu0 %3113  ;;  %v4832_v55 = vsel %vm19345_vm5, %v4811_v24, 0.0  ;;  %vm19350_vm5 = vcmask 31744   ;;  %vm13324_vm9 = vmand %vm3615_vm4, %vm3636_vm8  ;;  %vm19361_vm4 = vcmask 97280  }
 0x2f2   :  { %v13295_v1 = vadd.f32 %v4832_v55, %v4831_v6  ;;  %v3314_v50 = vsel %vm19346_vm15, %v3292_v54, %v3114_v61  ;;  %v4027_v37 = vsel %vm19350_vm5, %v7921_v26, %v3735_v42  ;;  %vm19351_vm15 = vcmp.ge.s32.totalorder %v10168_v7, 1 }
 0x2f3   :  { %vm3677_vm12 = vmand %vm13304_vm11, %vm19351_vm15  ;;  %vm19356_vm5 = vcmask 64512   ;;  %vm19357_vm15 = vcmp.le.s32.totalorder %v10168_v7, 16 }
 0x2f4   :  { %v3809_v47 = vpop.permute.xlu1 %3808  ;;  %v4049_v55 = vsel %vm19356_vm5, %v4027_v37, %v3765_v27  ;;  %vm19365_vm5 = vcmask 162816  }
 0x2f5   :  { %v3160_v57 = vpop.permute.xlu0 %3159  ;;  %v4071_v16 = vsel %vm19361_vm4, %v4049_v55, %v3787_v15 }
 0x2f6   :  { %v13300_v39 = vsel %vm19347_vm6, %v3314_v50, %v3160_v57  ;;  %vm19353_vm6 = vcmask 293888   ;;  %v19358_v50 = vmov 0  ;;  %v4093_v26 = vsel %vm19364_vm1, %v4071_v16, %v3809_v47 }
 0x2f7   :  { %v3396_v13 = vshll.u32 %v13300_v39, 16  ;;  %v19369_v47 = vmov 0  ;;  %vm19372_vm1 = vcmask 228352  }
 0x2f8   :  { %v3839_v45 = vpop.permute.xlu1 %3838 }
 0x2f9   :  { %v13309_v56 = vrot.slane %v3396_v13, 1  ;;  %v13311_v61 = vpop.permute.xlu0 %2769  ;;  %v19362_v13 = vld [vmem:[#allocation2_spill] sm:$0xff]  ;;  %v4115_v7 = vsel %vm19365_vm5, %v4093_v26, %v3839_v45 }
 0x2fa   :  { %v3492_v24 = vpop.f32.mrf.mxu0  ;;  %vm19363_vm8 = vcmp.ge.s32.totalorder %v19362_v13, 1  ;;  %vm19368_vm4 = vcmp.le.s32.totalorder %v19362_v13, 16 }
 0x2fb   :  { %v3399_v63 = vsel %vm19352_vm13, %v3395_v23, %v13309_v56  ;;  %v13329_v54 = vadd.f32 %v12444_v33, %v3492_v24  ;;  %vm13336_vm13 = vmand %vm3677_vm12, %vm19357_vm15  ;;  %vm19366_vm12 = vcmask 261120   ;;  %vm19367_vm15 = vcmask 195584  }
 0x2fc   :  { %v3948_v44 = vpop.permute.xlu1 %3947  ;;  %7644 = vmatmul.mubr.msk.bf16.gmra.mxu0 %vm19353_vm6, %v3399_v63  ;;  %v19359_v50 = vsel %vm13336_vm13, 4294967295, %v19358_v50  ;;  %v7621_v57 = vpop.f32.mrf.mxu0  ;;  %vm3678_vm6 = vmand %vm13324_vm9, %vm19363_vm8 }
 0x2fd   :  { %v2792_v42 = vpop.permute.xlu0 %2791  ;;  %7647 = vmatprep.mubr.msk.bf16.mxu0 %vm18591_vm7, %v18457_v53  ;;  %19360 = vst [vmem:[#allocation60_spill] sm:$0xff] %v19359_v50  ;;  %v18090_v32 = vmax.f32 %v13329_v54, 0.0  ;;  %v4137_v55 = vsel %vm19367_vm15, %v4115_v7, %v3948_v44  ;;  %vm13359_vm8 = vmand %vm3678_vm6, %vm19368_vm4  ;;  %vm19377_vm4 = vcmask 1046528   ;;  %v19707_v50 = vld [vmem:[#allocation171_spill] sm:$0xff] }
 0x2fe   :  { %v3495_v27 = vpop.f32.mrf.mxu0  ;;  %v19370_v47 = vsel %vm13359_vm8, 4294967295, %v19369_v47  ;;  %vm19373_vm5 = vmmov %vm19366_vm12 }
 0x2ff   :  { %v4701_v37 = vsel %vm13336_vm13, %v18090_v32, 0.0  ;;  %v13353_v15 = vadd.f32 %v12444_v33, %v3495_v27  ;;  %19371 = vst [vmem:[#allocation61_spill] sm:$0xff] %v19370_v47  ;;  %vm19374_vm6 = vmmov %vm19373_vm5  ;;  %vm19416_vm13 = vcmask 130048  }
 0x300   :  { %v3978_v23 = vpop.permute.xlu1 %3977  ;;  %v4723_v24 = vsel %vm19366_vm12, %v4701_v37, 0.0  ;;  %v7622_v45 = vpop.f32.mrf.mxu0 }
 0x301   :  { %v2814_v63 = vpop.permute.xlu0 %2813  ;;  %v4724_v57 = vadd.f32 %v4723_v24, %v13218_v51  ;;  %v18089_v16 = vmax.f32 %v13353_v15, 0.0  ;;  %v4159_v26 = vsel %vm19372_vm1, %v4137_v55, %v3978_v23  ;;  %v19375_v24 = vld [vmem:[#allocation74_spill] sm:$0xff]  ;;  %vm19378_vm1 = vcmask 293888  }
 0x302   :  { %vm19376_vm12 = vcmp.ge.s32.totalorder %v19375_v24, 1 }
 0x303   :  { %v4702_v44 = vsel %vm13359_vm8, %v18089_v16, 0.0  ;;  %vm4394_vm15 = vmand %vm13304_vm11, %vm19376_vm12  ;;  %vm19380_vm11 = vcmp.le.s32.totalorder %v19375_v24, 16 }
 0x304   :  { %v4005_v33 = vpop.permute.xlu1 %4004  ;;  %v4725_v37 = vsel %vm19374_vm6, %v4702_v44, 0.0 }
 0x305   :  { %v13367_v27 = vsel %vm19373_vm5, %v4159_v26, %v4005_v33  ;;  %v2836_v13 = vpop.permute.xlu0 %2835  ;;  %v13375_v45 = vadd.f32 %v4725_v37, %v4724_v57  ;;  %v13390_v57 = vld [vmem:[%s17525_s2] ss:$0 sm:$0xff]  ;;  %vm13399_vm5 = vmand %vm4394_vm15, %vm19380_vm11  ;;  %v19384_v37 = vld [vmem:[#allocation75_spill] sm:$0xff]  ;;  %vm19387_vm15 = vcmask 261120   ;;  %vm19393_vm11 = vcmask 64512  }
 0x306   :  { %v4212_v7 = vrot.slane %v13367_v27, 1  ;;  %v4293_v55 = vpop.f32.mrf.mxu1  ;;  %v19382_v4 = vsel %vm13399_vm5, 4294967295, %v19381_v4  ;;  %vm19385_vm6 = vcmp.ge.s32.totalorder %v19384_v37, 1 }
 0x307   :  { %v13393_v33 = vadd.f32 %v13390_v57, %v4293_v55  ;;  %19383 = vst [vmem:[#allocation8_spill] sm:$0xff] %v19382_v4  ;;  %vm4395_vm12 = vmand %vm13324_vm9, %vm19385_vm6  ;;  %vm19392_vm9 = vcmask 31744   ;;  %vm19394_vm6 = vcmask 97280  }
 0x308   :  { %v3737_v51 = vpop.permute.xlu1 %3736  ;;  %v4213_v23 = vsel %vm19377_vm4, %v4210_v46, %v4212_v7  ;;  %v7671_v46 = vpop.f32.mrf.mxu1  ;;  %vm19388_vm4 = vcmp.le.s32.totalorder %v19384_v37, 16  ;;  %v3184_v16 = vsel %vm19392_vm9, %v12872_v25, %v13311_v61  ;;  %vm19397_vm9 = vcmask 195584  }
 0x309   :  { %7694 = vmatmul.mubr.msk.bf16.gmra.mxu1 %vm19378_vm1, %v4213_v23  ;;  %v2858_v26 = vpop.permute.xlu0 %2857  ;;  %19379 = vst [vmem:[#allocation3_spill] sm:$0xff] %v13393_v33  ;;  %v18091_v43 = vmax.f32 %v13393_v33, 0.0  ;;  %vm13418_vm1 = vmand %vm4395_vm12, %vm19388_vm4  ;;  %vm19395_vm12 = vcmask 130048   ;;  %vm19396_vm4 = vcmask 162816   ;;  %v19786_v33 = vld [vmem:[#allocation111_spill] sm:$0xff] }
 0x30a   :  { %7697 = vmatprep.mubr.msk.bf16.mxu1 %vm18591_vm7, %v18457_v53  ;;  %v4296_v23 = vpop.f32.mrf.mxu1  ;;  %v19390_v29 = vsel %vm13418_vm1, 4294967295, %v19389_v29 }
 0x30b   :  { %v4812_v55 = vsel %vm13399_vm5, %v18091_v43, 0.0  ;;  %v13413_v14 = vadd.f32 %v13390_v57, %v4296_v23  ;;  %19391 = vst [vmem:[#allocation68_spill] sm:$0xff] %v19390_v29  ;;  %v3206_v23 = vsel %vm19393_vm11, %v3184_v16, %v2792_v42  ;;  %vm19398_vm11 = vcmask 228352   ;;  %v19447_v29 = vld [vmem:[#allocation93_spill] sm:$0xff] }
 0x30c   :  { %v3767_v44 = vpop.permute.xlu1 %3766  ;;  %v4834_v46 = vsel %vm19387_vm15, %v4812_v55, 0.0  ;;  %v7672_v6 = vpop.f32.mrf.mxu1  ;;  %v3228_v55 = vsel %vm19394_vm6, %v3206_v23, %v2814_v63  ;;  %v3596_v23 = vadd.s32 1, %v10504_v11  ;;  %v7923_v11 = vld [vmem:[%s17523_s0 + $0x4c] sm:$0xff]  }
 0x30d   :  { %v3020_v24 = vpop.permute.xlu0 %3019  ;;  %19386 = vst [vmem:[#allocation64_spill] sm:$0xff] %v13413_v14  ;;  %v4835_v32 = vadd.f32 %v4834_v46, %v13295_v1  ;;  %v18103_v43 = vmax.f32 %v13413_v14, 0.0  ;;  %v3595_v6 = vadd.s32 1, %v10473_v35  ;;  %v3250_v58 = vsel %vm19395_vm12, %v3228_v55, %v2836_v13  ;;  %v19783_v14 = vld [vmem:[#allocation28_spill] sm:$0xff] }
 0x30e   :  { %v3272_v1 = vsel %vm19396_vm4, %v3250_v58, %v2858_v26  ;;  %v3400_v13 = vshrl.u32 %v13300_v39, 16  ;;  %vm3638_vm4 = vcmp.le.s32.totalorder %v3596_v23, 16 }
 0x30f   :  { %v4813_v37 = vsel %vm13418_vm1, %v18103_v43, 0.0  ;;  %v3294_v42 = vsel %vm19397_vm9, %v3272_v1, %v3020_v24  ;;  %vm3616_vm6 = vcmp.ge.s32.totalorder %v3595_v6, 1  ;;  %vm3637_vm5 = vcmp.le.s32.totalorder %v3595_v6, 16  ;;  %vm19399_vm1 = vmmov %vm19387_vm15 }
 0x310   :  { %v3789_v59 = vpop.permute.xlu1 %3788  ;;  %v4836_v25 = vsel %vm19387_vm15, %v4813_v37, 0.0  ;;  %vm13447_vm12 = vmand %vm3616_vm6, %vm3637_vm5  ;;  %v3402_v26 = vor.u32 %v3400_v13, %v13309_v56  ;;  %vm3617_vm15 = vcmp.ge.s32.totalorder %v3596_v23, 1  ;;  %vm19403_vm9 = vcmp.ge.s32.totalorder %v10462_v30, 1 }
 0x311   :  { %v13437_v61 = vadd.f32 %v4836_v25, %v4835_v32  ;;  %vm3679_vm5 = vmand %vm13447_vm12, %vm19403_vm9  ;;  %vm19405_vm6 = vcmask 293888   ;;  %vm19409_vm9 = vcmp.le.s32.totalorder %v10462_v30, 16  ;;  %v19433_v32 = vmov 0 }
 0x312   :  { %vm13465_vm8 = vmand %vm3617_vm15, %vm3638_vm4  ;;  %vm19413_vm15 = vcmask 97280  }
 0x313   :  { %v3116_v21 = vpop.permute.xlu0 %3115 }
 0x314   :  { %v3811_v46 = vpop.permute.xlu1 %3810  ;;  %v3316_v63 = vsel %vm19398_vm11, %v3294_v42, %v3116_v21  ;;  %vm19404_vm11 = vsmask.f32 7424 }
 0x317   :  { %v3162_v16 = vpop.permute.xlu0 %3161 }
 0x318   :  { %v13443_v35 = vsel %vm19399_vm1, %v3316_v63, %v3162_v16  ;;  %v3841_v58 = vpop.permute.xlu1 %3840  ;;  %vm19402_vm1 = vcmask 31744   ;;  %v19410_v63 = vmov 0 }
 0x319   :  { %v3403_v55 = vshll.u32 %v13443_v35, 16  ;;  %v4029_v39 = vsel %vm19402_vm1, %v7923_v11, %v3737_v51  ;;  %vm19408_vm1 = vcmask 64512  }
 0x31a   :  { %v4051_v42 = vsel %vm19408_vm1, %v4029_v39, %v3767_v44  ;;  %vm19417_vm1 = vcmask 162816  }
 0x31b   :  { %v13452_v21 = vrot.slane %v3403_v55, 1  ;;  %v2772_v24 = vpop.permute.xlu0 %2771  ;;  %v3500_v6 = vpop.f32.mrf.mxu0  ;;  %v4073_v23 = vsel %vm19413_vm15, %v4051_v42, %v3789_v59  ;;  %v19414_v55 = vld [vmem:[#allocation84_spill] sm:$0xff] }
 0x31c   :  { %v3950_v56 = vpop.permute.xlu1 %3949  ;;  %v13470_v1 = vadd.f32 %v13390_v57, %v3500_v6  ;;  %vm19415_vm4 = vcmp.ge.s32.totalorder %v19414_v55, 1  ;;  %v4095_v11 = vsel %vm19416_vm13, %v4073_v23, %v3811_v46  ;;  %vm19420_vm15 = vcmp.le.s32.totalorder %v19414_v55, 16 }
 0x31d   :  { %v3406_v37 = vsel %vm19404_vm11, %v3402_v26, %v13452_v21  ;;  %vm13477_vm11 = vmand %vm3679_vm5, %vm19409_vm9  ;;  %v7625_v16 = vpop.f32.mrf.mxu0  ;;  %v4117_v30 = vsel %vm19417_vm1, %v4095_v11, %v3841_v58  ;;  %vm19418_vm5 = vcmask 261120   ;;  %vm19419_vm9 = vcmask 195584  }
 0x31e   :  { %7648 = vmatmul.mubr.msk.bf16.gmra.mxu0 %vm19405_vm6, %v3406_v37  ;;  %v19411_v63 = vsel %vm13477_vm11, 4294967295, %v19410_v63  ;;  %v18105_v13 = vmax.f32 %v13470_v1, 0.0  ;;  %vm3680_vm6 = vmand %vm13465_vm8, %vm19415_vm4  ;;  %v4139_v42 = vsel %vm19419_vm9, %v4117_v30, %v3950_v56  ;;  %v19421_v46 = vmov 0 }
 0x31f   :  { %v2794_v51 = vpop.permute.xlu0 %2793  ;;  %7651 = vmatprep.mubr.msk.bf16.mxu0 %vm18591_vm7, %v18457_v53  ;;  %19412 = vst [vmem:[#allocation67_spill] sm:$0xff] %v19411_v63  ;;  %v3503_v44 = vpop.f32.mrf.mxu0  ;;  %vm13500_vm4 = vmand %vm3680_vm6, %vm19420_vm15  ;;  %vm19424_vm13 = vcmask 228352   ;;  %vm19429_vm15 = vcmask 1046528  }
 0x320   :  { %v3980_v26 = vpop.permute.xlu1 %3979  ;;  %v4703_v39 = vsel %vm13477_vm11, %v18105_v13, 0.0  ;;  %v13494_v59 = vadd.f32 %v13390_v57, %v3503_v44  ;;  %v19422_v46 = vsel %vm13500_vm4, 4294967295, %v19421_v46  ;;  %vm19425_vm1 = vmmov %vm19418_vm5 }
 0x321   :  { %v4727_v6 = vsel %vm19418_vm5, %v4703_v39, 0.0  ;;  %19423 = vst [vmem:[#allocation14_spill] sm:$0xff] %v19422_v46  ;;  %v7626_v58 = vpop.f32.mrf.mxu0  ;;  %v4161_v11 = vsel %vm19424_vm13, %v4139_v42, %v3980_v26  ;;  %vm19426_vm6 = vmmov %vm19425_vm1  ;;  %vm19430_vm13 = vcmask 293888  }
 0x322   :  { %v4728_v16 = vadd.f32 %v4727_v6, %v13375_v45  ;;  %v18104_v23 = vmax.f32 %v13494_v59, 0.0  ;;  %v19427_v6 = vld [vmem:[#allocation83_spill] sm:$0xff] }
 0x323   :  { %v2816_v37 = vpop.permute.xlu0 %2815  ;;  %vm19428_vm5 = vcmp.ge.s32.totalorder %v19427_v6, 1 }
 0x324   :  { %v4007_v44 = vpop.permute.xlu1 %4006  ;;  %v4704_v56 = vsel %vm13500_vm4, %v18104_v23, 0.0  ;;  %vm4396_vm9 = vmand %vm13447_vm12, %vm19428_vm5  ;;  %v19441_v23 = vmov 0  ;;  %vm19459_vm4 = vcmask 162816  }
 0x325   :  { %v13508_v43 = vsel %vm19425_vm1, %v4161_v11, %v4007_v44  ;;  %v4729_v39 = vsel %vm19426_vm6, %v4704_v56, 0.0  ;;  %vm19432_vm1 = vcmp.le.s32.totalorder %v19427_v6, 16  ;;  %v19436_v56 = vld [vmem:[#allocation16_spill] sm:$0xff] }
 0x326   :  { %v18108_v30 = vrot.slane %v13508_v43, 1  ;;  %v13516_v58 = vadd.f32 %v4729_v39, %v4728_v16  ;;  %vm13535_vm6 = vmand %vm4396_vm9, %vm19432_vm1  ;;  %vm19437_vm12 = vcmp.ge.s32.totalorder %v19436_v56, 1  ;;  %vm19439_vm9 = vcmask 261120  }
 0x327   :  { %v2838_v55 = vpop.permute.xlu0 %2837  ;;  %v4301_v42 = vpop.f32.mrf.mxu1  ;;  %v19434_v32 = vsel %vm13535_vm6, 4294967295, %v19433_v32  ;;  %vm4397_vm5 = vmand %vm13465_vm8, %vm19437_vm12  ;;  %vm19444_vm8 = vcmask 31744   ;;  %vm19445_vm1 = vcmask 64512   ;;  %vm19446_vm12 = vcmask 97280  }
 0x328   :  { %v3739_v45 = vpop.permute.xlu1 %3738  ;;  %v4215_v26 = vsel %vm19429_vm15, %v4212_v7, %v18108_v30  ;;  %v13529_v44 = vadd.f32 %v13390_v57, %v4301_v42  ;;  %19435 = vst [vmem:[#allocation74_spill] sm:$0xff] %v19434_v32  ;;  %vm19440_vm15 = vcmp.le.s32.totalorder %v19436_v56, 16  ;;  %v3186_v13 = vsel %vm19444_vm8, %v13077_v2, %v2772_v24 }
 0x329   :  { %7698 = vmatmul.mubr.msk.bf16.gmra.mxu1 %vm19430_vm13, %v4215_v26  ;;  %v7675_v16 = vpop.f32.mrf.mxu1  ;;  %vm13554_vm13 = vmand %vm4397_vm5, %vm19440_vm15  ;;  %vm19448_vm5 = vcmask 130048   ;;  %vm19449_vm15 = vcmask 162816  }
 0x32a   :  { %19431 = vst [vmem:[#allocation2_spill] sm:$0xff] %v13529_v44  ;;  %7701 = vmatprep.mubr.msk.bf16.mxu1 %vm18591_vm7, %v18457_v53  ;;  %v18107_v27 = vmax.f32 %v13529_v44, 0.0  ;;  %v19442_v23 = vsel %vm13554_vm13, 4294967295, %v19441_v23  ;;  %v19780_v44 = vld [vmem:[#allocation22_spill] sm:$0xff] }
 0x32b   :  { %v2860_v11 = vpop.permute.xlu0 %2859  ;;  %v4304_v39 = vpop.f32.mrf.mxu1  ;;  %19443 = vst [vmem:[#allocation84_spill] sm:$0xff] %v19442_v23 }
 0x32c   :  { %v3769_v7 = vpop.permute.xlu1 %3768  ;;  %v4814_v26 = vsel %vm13535_vm6, %v18107_v27, 0.0  ;;  %v13549_v42 = vadd.f32 %v13390_v57, %v4304_v39  ;;  %v3208_v39 = vsel %vm19445_vm1, %v3186_v13, %v2794_v51  ;;  %v7924_v51 = vld [vmem:[%s17523_s0 + $0x54] ss:$0 sps:$4 sm:$0x33]   ;;  %vm19450_vm1 = vcmask 195584  }
 0x32d   :  { %v4838_v16 = vsel %vm19439_vm9, %v4814_v26, 0.0  ;;  %v7676_v25 = vpop.f32.mrf.mxu1  ;;  %v3230_v32 = vsel %vm19446_vm12, %v3208_v39, %v2816_v37  ;;  %v4031_v13 = vsel %vm19444_vm8, %v7924_v51, %v3739_v45  ;;  %v19451_v39 = vld [vmem:[#allocation97_spill] sm:$0xff]  ;;  %vm19452_vm12 = vcmask 228352   ;;  %v19460_v51 = vld [vmem:[#allocation92_spill] sm:$0xff] }
 0x32e   :  { %19438 = vst [vmem:[#allocation75_spill] sm:$0xff] %v13549_v42  ;;  %v4839_v0 = vadd.f32 %v4838_v16, %v13437_v61  ;;  %v18115_v27 = vmax.f32 %v13549_v42, 0.0  ;;  %v3597_v25 = vadd.s32 1, %v19447_v29  ;;  %v3252_v4 = vsel %vm19448_vm5, %v3230_v32, %v2838_v55  ;;  %v19777_v42 = vld [vmem:[#allocation88_spill] sm:$0xff] }
 0x32f   :  { %v3022_v6 = vpop.permute.xlu0 %3021  ;;  %v3274_v61 = vsel %vm19449_vm15, %v3252_v4, %v2860_v11  ;;  %vm19454_vm15 = vcmask 64512   ;;  %vm19455_vm6 = vcmask 97280  }
 0x330   :  { %v3791_v30 = vpop.permute.xlu1 %3790  ;;  %v4815_v56 = vsel %vm13554_vm13, %v18115_v27, 0.0  ;;  %v3296_v37 = vsel %vm19450_vm1, %v3274_v61, %v3022_v6  ;;  %v3598_v27 = vadd.s32 1, %v19451_v39  ;;  %vm3618_vm5 = vcmp.ge.s32.totalorder %v3597_v25, 1 }
 0x331   :  { %v4840_v2 = vsel %vm19439_vm9, %v4815_v56, 0.0  ;;  %vm3639_vm9 = vcmp.le.s32.totalorder %v3597_v25, 16  ;;  %vm19453_vm13 = vcmask 261120   ;;  %v4053_v11 = vsel %vm19454_vm15, %v4031_v13, %v3769_v7 }
 0x332   :  { %v13572_v24 = vadd.f32 %v4840_v2, %v4839_v0  ;;  %v3407_v0 = vshrl.u32 %v13443_v35, 16  ;;  %v4075_v2 = vsel %vm19455_vm6, %v4053_v11, %v3791_v30  ;;  %vm13585_vm8 = vmand %vm3618_vm5, %vm3639_vm9  ;;  %vm3619_vm1 = vcmp.ge.s32.totalorder %v3598_v27, 1 }
 0x333   :  { %v3118_v26 = vpop.permute.xlu0 %3117  ;;  %vm19461_vm15 = vcmp.ge.s32.totalorder %v19460_v51, 1  ;;  %vm19462_vm6 = vsmask.f32 7424  ;;  %vm19463_vm5 = vcmask 293888   ;;  %v19468_v39 = vmov 0 }
 0x334   :  { %v3813_v16 = vpop.permute.xlu1 %3812  ;;  %v3318_v29 = vsel %vm19452_vm12, %v3296_v37, %v3118_v26  ;;  %v3409_v6 = vor.u32 %v3407_v0, %v13452_v21  ;;  %vm19458_vm12 = vcmask 130048   ;;  %vm3681_vm11 = vmand %vm13585_vm8, %vm19461_vm15 }
 0x335   :  { %v4097_v25 = vsel %vm19458_vm12, %v4075_v2, %v3813_v16  ;;  %vm19466_vm12 = vcmask 195584  }
 0x337   :  { %v3164_v55 = vpop.permute.xlu0 %3163 }
 0x338   :  { %v3340_v4 = vsel %vm19453_vm13, %v3318_v29, %v3164_v55  ;;  %v3952_v56 = vpop.permute.xlu1 %3951  ;;  %vm3640_vm13 = vcmp.le.s32.totalorder %v3598_v27, 16 }
 0x339   :  { %v3410_v32 = vshll.u32 %v3340_v4, 16  ;;  %vm13598_vm9 = vmand %vm3619_vm1, %vm3640_vm13  ;;  %vm19472_vm1 = vcmask 261120  }
 0x33b   :  { %v3412_v26 = vrot.slane %v3410_v32, 1  ;;  %v3843_v61 = vpop.permute.xlu0 %3842  ;;  %v19473_v32 = vld [vmem:[#allocation26_spill] sm:$0xff] }
 0x33c   :  { %v4119_v35 = vsel %vm19459_vm4, %v4097_v25, %v3843_v61  ;;  %v4009_v13 = vpop.permute.xlu1 %4008  ;;  %vm19467_vm4 = vcmp.le.s32.totalorder %v19460_v51, 16  ;;  %vm19474_vm13 = vcmp.ge.s32.totalorder %v19473_v32, 1 }
 0x33d   :  { %v3413_v30 = vsel %vm19462_vm6, %v3409_v6, %v3412_v26  ;;  %v3508_v7 = vpop.f32.mrf.mxu0  ;;  %v4141_v16 = vsel %vm19466_vm12, %v4119_v35, %v3952_v56  ;;  %vm13610_vm15 = vmand %vm3681_vm11, %vm19467_vm4  ;;  %vm19471_vm6 = vcmask 228352   ;;  %v3414_v56 = vshrl.u32 %v3340_v4, 16 }
 0x33e   :  { %7652 = vmatmul.mubr.msk.bf16.gmra.mxu0 %vm19463_vm5, %v3413_v30  ;;  %v13604_v27 = vadd.f32 %v13390_v57, %v3508_v7  ;;  %v19469_v39 = vsel %vm13610_vm15, 4294967295, %v19468_v39  ;;  %vm3682_vm5 = vmand %vm13598_vm9, %vm19474_vm13  ;;  %vm19476_vm12 = vcmp.le.s32.totalorder %v19473_v32, 16  ;;  %v19477_v30 = vmov 0 }
 0x33f   :  { %v3982_v37 = vpop.permute.xlu0 %3981  ;;  %7655 = vmatprep.mubr.msk.bf16.mxu0 %vm18591_vm7, %v18457_v53  ;;  %19470 = vst [vmem:[#allocation83_spill] sm:$0xff] %v19469_v39  ;;  %v7629_v55 = vpop.f32.mrf.mxu0  ;;  %v3416_v35 = vor.u32 %v3414_v56, %v3412_v26  ;;  %vm19475_vm11 = vmmov %vm19472_vm1  ;;  %v19480_v7 = vrot.slane %v13508_v43, 1  ;;  %v19489_v32 = vmov 0 }
 0x340   :  { %v4163_v29 = vsel %vm19471_vm6, %v4141_v16, %v3982_v37  ;;  %v18133_v0 = vmax.f32 %v13604_v27, 0.0  ;;  %vm13631_vm4 = vmand %vm3682_vm5, %vm19476_vm12  ;;  %vm19481_vm6 = vcmask 1046528   ;;  %v19485_v55 = vld [vmem:[#allocation96_spill] sm:$0xff] }
 0x341   :  { %v4185_v11 = vsel %vm19472_vm1, %v4163_v29, %v4009_v13  ;;  %v3511_v6 = vpop.f32.mrf.mxu0  ;;  %v19478_v30 = vsel %vm13631_vm4, 4294967295, %v19477_v30  ;;  %vm19482_vm1 = vcmask 293888   ;;  %vm19484_vm5 = vmmov %vm19475_vm11 }
 0x342   :  { %v4216_v2 = vrot.slane %v4185_v11, 1  ;;  %v4705_v25 = vsel %vm13610_vm15, %v18133_v0, 0.0  ;;  %v13626_v61 = vadd.f32 %v13390_v57, %v3511_v6  ;;  %19479 = vst [vmem:[#allocation16_spill] sm:$0xff] %v19478_v30  ;;  %vm19483_vm13 = vmmov %vm19482_vm1  ;;  %v19673_v30 = vld [vmem:[#allocation168_spill] sm:$0xff] }
 0x343   :  { %v4731_v51 = vsel %vm19475_vm11, %v4705_v25, 0.0  ;;  %v7630_v4 = vpop.f32.mrf.mxu0  ;;  %vm19486_vm11 = vcmp.ge.s32.totalorder %v19485_v55, 1  ;;  %v19492_v25 = vld [vmem:[#allocation27_spill] sm:$0xff] }
 0x344   :  { %v4217_v13 = vsel %vm19481_vm6, %v19480_v7, %v4216_v2  ;;  %v4732_v16 = vadd.f32 %v4731_v51, %v13516_v58  ;;  %v18132_v37 = vmax.f32 %v13626_v61, 0.0  ;;  %vm4398_vm12 = vmand %vm13585_vm8, %vm19486_vm11  ;;  %vm19488_vm6 = vcmp.le.s32.totalorder %v19485_v55, 16 }
 0x345   :  { %7702 = vmatmul.mubr.msk.bf16.gmra.mxu1 %vm19482_vm1, %v4217_v13  ;;  %vm13658_vm1 = vmand %vm4398_vm12, %vm19488_vm6  ;;  %vm19495_vm11 = vcmask 261120   ;;  %vm19496_vm12 = vcmp.le.s32.totalorder %v19492_v25, 16 }
 0x346   :  { %7656 = vmatmul.mubr.msk.bf16.gmra.mxu0 %vm19483_vm13, %v3416_v35  ;;  %7705 = vmatprep.mubr.msk.bf16.mxu1 %vm18591_vm7, %v18457_v53  ;;  %v4706_v26 = vsel %vm13631_vm4, %v18132_v37, 0.0  ;;  %v19490_v32 = vsel %vm13658_vm1, 4294967295, %v19489_v32  ;;  %v19521_v37 = vld [vmem:[#allocation31_spill] sm:$0xff] }
 0x347   :  { %v4733_v43 = vsel %vm19484_vm5, %v4706_v26, 0.0  ;;  %19491 = vst [vmem:[#allocation97_spill] sm:$0xff] %v19490_v32  ;;  %vm19493_vm5 = vcmp.ge.s32.totalorder %v19492_v25, 1 }
 0x348   :  { %v4734_v29 = vadd.f32 %v4733_v43, %v4732_v16  ;;  %vm4399_vm8 = vmand %vm13598_vm9, %vm19493_vm5  ;;  %v19501_v43 = vld [vmem:[#allocation105_spill] sm:$0xff] }
 0x349   :  { %v4309_v58 = vpop.f32.mrf.mxu1  ;;  %vm13680_vm6 = vmand %vm4399_vm8, %vm19496_vm12  ;;  %v3599_v55 = vadd.s32 1, %v19501_v43  ;;  %v19513_v43 = vld [vmem:[#allocation108_spill] sm:$0xff] }
 0x34a   :  { %v13654_v11 = vadd.f32 %v13390_v57, %v4309_v58  ;;  %vm19500_vm9 = vmmov %vm19495_vm11 }
 0x34b   :  { %v7679_v56 = vpop.f32.mrf.mxu1  ;;  %vm3641_vm5 = vcmp.le.s32.totalorder %v3599_v55, 16 }
 0x34c   :  { %19487 = vst [vmem:[#allocation93_spill] sm:$0xff] %v13654_v11  ;;  %v18130_v6 = vmax.f32 %v13654_v11, 0.0  ;;  %v19502_v56 = vld [vmem:[#allocation109_spill] sm:$0xff]  ;;  %v19774_v11 = vld [vmem:[#allocation23_spill] sm:$0xff] }
 0x34d   :  { %7706 = vmatmul.mubr.msk.bf16.gmra.mxu1 %vm19483_vm13, %v4216_v2  ;;  %v4312_v45 = vpop.f32.mrf.mxu1  ;;  %v19497_v2 = vmov 0  ;;  %vm3620_vm13 = vcmp.ge.s32.totalorder %v3599_v55, 1  ;;  %v3600_v25 = vadd.s32 1, %v19502_v56 }
 0x34e   :  { %7713 = vmatprep.mubr.msk.bf16.mxu1 %vm18591_vm7, %v18457_v53  ;;  %v4816_v35 = vsel %vm13658_vm1, %v18130_v6, 0.0  ;;  %v13675_v51 = vadd.f32 %v13390_v57, %v4312_v45  ;;  %v19498_v2 = vsel %vm13680_vm6, 4294967295, %v19497_v2  ;;  %vm13693_vm8 = vmand %vm3620_vm13, %vm3641_vm5  ;;  %vm19514_vm1 = vcmp.ge.s32.totalorder %v19513_v43, 1  ;;  %v19536_v53 = vld [vmem:[#allocation118_spill] sm:$0xff] }
 0x34f   :  { %v4842_v4 = vsel %vm19495_vm11, %v4816_v35, 0.0  ;;  %19499 = vst [vmem:[#allocation26_spill] sm:$0xff] %v19498_v2  ;;  %v7680_v21 = vpop.f32.mrf.mxu1  ;;  %vm3621_vm11 = vcmp.ge.s32.totalorder %v3600_v25, 1  ;;  %vm3642_vm12 = vcmp.le.s32.totalorder %v3600_v25, 16 }
 0x350   :  { %19494 = vst [vmem:[#allocation92_spill] sm:$0xff] %v13675_v51  ;;  %v4843_v7 = vadd.f32 %v4842_v4, %v13572_v24  ;;  %v18129_v13 = vmax.f32 %v13675_v51, 0.0  ;;  %v19505_v24 = vld [vmem:[#allocation104_spill] sm:$0xff]  ;;  %v19772_v51 = vld [vmem:[#allocation79_spill] sm:$0xff] }
 0x351   :  { %vm19506_vm7 = vcmp.ge.s32.totalorder %v19505_v24, 1  ;;  %vm19509_vm13 = vcmp.le.s32.totalorder %v19505_v24, 16 }
 0x352   :  { %v4817_v16 = vsel %vm13680_vm6, %v18129_v13, 0.0  ;;  %vm3683_vm6 = vmand %vm13693_vm8, %vm19506_vm7 }
 0x353   :  { %v4844_v26 = vsel %vm19500_vm9, %v4817_v16, 0.0  ;;  %vm13701_vm9 = vmand %vm3621_vm11, %vm3642_vm12  ;;  %vm19516_vm11 = vcmp.le.s32.totalorder %v19513_v43, 16 }
 0x354   :  { %v4845_v58 = vadd.f32 %v4844_v26, %v4843_v7  ;;  %vm13710_vm5 = vmand %vm3683_vm6, %vm19509_vm13  ;;  %v19510_v7 = vmov 0  ;;  %vm19515_vm6 = vcmask 261120   ;;  %vm19522_vm13 = vcmp.ge.s32.totalorder %v19521_v37, 1 }
 0x355   :  { %v19511_v7 = vsel %vm13710_vm5, 4294967295, %v19510_v7  ;;  %vm3684_vm7 = vmand %vm13701_vm9, %vm19514_vm1 }
 0x356   :  { %19512 = vst [vmem:[#allocation96_spill] sm:$0xff] %v19511_v7  ;;  %vm13729_vm12 = vmand %vm3684_vm7, %vm19516_vm11  ;;  %vm19524_vm7 = vcmp.le.s32.totalorder %v19521_v37, 16  ;;  %v19656_v7 = vld [vmem:[#allocation49_spill] sm:$0xff] }
 0x357   :  { %vm19520_vm1 = vmmov %vm19515_vm6 }
 0x360   :  { %v3516_v35 = vpop.f32.mrf.mxu0 }
 0x361   :  { %v13706_v21 = vadd.f32 %v13390_v57, %v3516_v35  ;;  %v19517_v35 = vmov 0 }
 0x362   :  { %v7633_v16 = vpop.f32.mrf.mxu0  ;;  %v19518_v35 = vsel %vm13729_vm12, 4294967295, %v19517_v35 }
 0x363   :  { %v18131_v26 = vmax.f32 %v13706_v21, 0.0  ;;  %19519 = vst [vmem:[#allocation27_spill] sm:$0xff] %v19518_v35 }
 0x364   :  { %v3519_v55 = vpop.f32.mrf.mxu0 }
 0x365   :  { %v4707_v56 = vsel %vm13710_vm5, %v18131_v26, 0.0  ;;  %v13724_v25 = vadd.f32 %v13390_v57, %v3519_v55 }
 0x366   :  { %v4735_v24 = vsel %vm19515_vm6, %v4707_v56, 0.0  ;;  %v7634_v16 = vpop.f32.mrf.mxu0  ;;  %vm4400_vm6 = vmand %vm13693_vm8, %vm19522_vm13  ;;  %vm19531_vm8 = vcmask 261120  }
 0x367   :  { %v4736_v13 = vadd.f32 %v4735_v24, %v4734_v29  ;;  %v18136_v6 = vmax.f32 %v13724_v25, 0.0  ;;  %vm13748_vm11 = vmand %vm4400_vm6, %vm19524_vm7  ;;  %v19525_v29 = vmov 0 }
 0x368   :  { %v19526_v29 = vsel %vm13748_vm11, 4294967295, %v19525_v29 }
 0x369   :  { %v4708_v26 = vsel %vm13729_vm12, %v18136_v6, 0.0  ;;  %19527 = vst [vmem:[#allocation109_spill] sm:$0xff] %v19526_v29 }
 0x36a   :  { %v4737_v55 = vsel %vm19520_vm1, %v4708_v26, 0.0  ;;  %v19528_v26 = vld [vmem:[#allocation110_spill] sm:$0xff] }
 0x36b   :  { %v4738_v43 = vadd.f32 %v4737_v55, %v4736_v13  ;;  %v4317_v56 = vpop.f32.mrf.mxu1  ;;  %vm19529_vm1 = vcmp.ge.s32.totalorder %v19528_v26, 1  ;;  %vm19532_vm13 = vcmp.le.s32.totalorder %v19528_v26, 16  ;;  %v19538_v26 = vld [vmem:[#allocation122_spill] sm:$0xff] }
 0x36c   :  { %v13744_v0 = vadd.f32 %v13390_v57, %v4317_v56  ;;  %vm4401_vm12 = vmand %vm13701_vm9, %vm19529_vm1  ;;  %v19533_v56 = vmov 0  ;;  %v3602_v2 = vadd.s32 1, %v19538_v26 }
 0x36d   :  { %v7683_v24 = vpop.f32.mrf.mxu1  ;;  %vm13767_vm6 = vmand %vm4401_vm12, %vm19532_vm13 }
 0x36e   :  { %19523 = vst [vmem:[#allocation105_spill] sm:$0xff] %v13744_v0  ;;  %v18137_v16 = vmax.f32 %v13744_v0, 0.0  ;;  %v19534_v56 = vsel %vm13767_vm6, 4294967295, %v19533_v56  ;;  %vm19537_vm9 = vmmov %vm19531_vm8  ;;  %vm3644_vm13 = vcmp.le.s32.totalorder %v3602_v2, 16  ;;  %v19770_v0 = vld [vmem:[#allocation76_spill] sm:$0xff] }
 0x36f   :  { %v4320_v45 = vpop.f32.mrf.mxu1  ;;  %19535 = vst [vmem:[#allocation108_spill] sm:$0xff] %v19534_v56 }
 0x370   :  { %v4818_v13 = vsel %vm13748_vm11, %v18137_v16, 0.0  ;;  %v13762_v37 = vadd.f32 %v13390_v57, %v4320_v45  ;;  %v3601_v45 = vadd.s32 1, %v19536_v53 }
 0x371   :  { %v4846_v55 = vsel %vm19531_vm8, %v4818_v13, 0.0  ;;  %v7684_v24 = vpop.f32.mrf.mxu1  ;;  %vm3623_vm8 = vcmp.ge.s32.totalorder %v3602_v2, 1 }
 0x372   :  { %19530 = vst [vmem:[#allocation104_spill] sm:$0xff] %v13762_v37  ;;  %v4847_v4 = vadd.f32 %v4846_v55, %v4845_v58  ;;  %v18151_v6 = vmax.f32 %v13762_v37, 0.0  ;;  %vm3622_vm7 = vcmp.ge.s32.totalorder %v3601_v45, 1  ;;  %vm3643_vm1 = vcmp.le.s32.totalorder %v3601_v45, 16  ;;  %v19541_v58 = vld [vmem:[#allocation119_spill] sm:$0xff]  ;;  %vm13787_vm5 = vmand %vm3623_vm8, %vm3644_vm13  ;;  %v19768_v37 = vld [vmem:[#allocation70_spill] sm:$0xff] }
 0x373   :  { %vm13779_vm12 = vmand %vm3622_vm7, %vm3643_vm1  ;;  %vm19542_vm11 = vcmp.ge.s32.totalorder %v19541_v58, 1  ;;  %vm19549_vm1 = vcmp.ge.s32.totalorder %v11412_v22, 1  ;;  %vm19551_vm8 = vcmp.le.s32.totalorder %v11412_v22, 16 }
 0x374   :  { %v4819_v16 = vsel %vm13767_vm6, %v18151_v6, 0.0  ;;  %vm3685_vm6 = vmand %vm13779_vm12, %vm19542_vm11 }
 0x375   :  { %v4848_v29 = vsel %vm19537_vm9, %v4819_v16, 0.0  ;;  %vm19545_vm9 = vcmp.le.s32.totalorder %v19541_v58, 16  ;;  %v19546_v16 = vmov 0  ;;  %vm3686_vm11 = vmand %vm13787_vm5, %vm19549_vm1  ;;  %vm19557_vm1 = vcmp.ge.s32.totalorder %v19556_v8, 1 }
 0x376   :  { %v4849_v13 = vadd.f32 %v4848_v29, %v4847_v4  ;;  %vm13796_vm7 = vmand %vm3685_vm6, %vm19545_vm9  ;;  %vm19550_vm6 = vcmask 261120  }
 0x377   :  { %v19547_v16 = vsel %vm13796_vm7, 4294967295, %v19546_v16  ;;  %vm13815_vm13 = vmand %vm3686_vm11, %vm19551_vm8 }
 0x378   :  { %19548 = vst [vmem:[#allocation31_spill] sm:$0xff] %v19547_v16  ;;  %vm19555_vm9 = vmmov %vm19550_vm6 }
 0x379   :  { %vm4402_vm11 = vmand %vm13779_vm12, %vm19557_vm1  ;;  %vm19565_vm12 = vcmask 261120   ;;  %vm19566_vm1 = vcmp.le.s32.totalorder %v11439_v9, 16 }
 0x37c   :  { %v3524_v55 = vpop.f32.mrf.mxu0 }
 0x37d   :  { %v13792_v29 = vadd.f32 %v13390_v57, %v3524_v55  ;;  %v19552_v55 = vmov 0 }
 0x37e   :  { %v7637_v2 = vpop.f32.mrf.mxu0  ;;  %v19553_v55 = vsel %vm13815_vm13, 4294967295, %v19552_v55 }
 0x37f   :  { %v18154_v24 = vmax.f32 %v13792_v29, 0.0  ;;  %19554 = vst [vmem:[#allocation110_spill] sm:$0xff] %v19553_v55  ;;  %v19621_v55 = vld [vmem:[#allocation45_spill] sm:$0xff] }
 0x380   :  { %v3527_v4 = vpop.f32.mrf.mxu0 }
 0x381   :  { %v4709_v45 = vsel %vm13796_vm7, %v18154_v24, 0.0  ;;  %v13810_v26 = vadd.f32 %v13390_v57, %v3527_v4 }
 0x382   :  { %v4739_v58 = vsel %vm19550_vm6, %v4709_v45, 0.0  ;;  %v7638_v2 = vpop.f32.mrf.mxu0  ;;  %vm19559_vm6 = vcmp.le.s32.totalorder %v19556_v8, 16 }
 0x383   :  { %v4740_v6 = vadd.f32 %v4739_v58, %v4738_v43  ;;  %v18162_v56 = vmax.f32 %v13810_v26, 0.0  ;;  %vm13834_vm8 = vmand %vm4402_vm11, %vm19559_vm6  ;;  %v19560_v43 = vmov 0 }
 0x384   :  { %v19561_v43 = vsel %vm13834_vm8, 4294967295, %v19560_v43 }
 0x385   :  { %v4710_v24 = vsel %vm13815_vm13, %v18162_v56, 0.0  ;;  %19562 = vst [vmem:[#allocation122_spill] sm:$0xff] %v19561_v43 }
 0x386   :  { %v4741_v4 = vsel %vm19555_vm9, %v4710_v24, 0.0  ;;  %vm19563_vm9 = vcmp.ge.s32.totalorder %v11439_v9, 1  ;;  %v3604_v9 = vadd.s32 1, %v11728_v48  ;;  %v19577_v48 = vmov 0 }
 0x387   :  { %v4742_v23 = vadd.f32 %v4741_v4, %v4740_v6  ;;  %vm4403_vm13 = vmand %vm13787_vm5, %vm19563_vm9  ;;  %v19567_v4 = vmov 0 }
 0x388   :  { %vm13853_vm11 = vmand %vm4403_vm13, %vm19566_vm1  ;;  %vm3646_vm1 = vcmp.le.s32.totalorder %v3604_v9, 16 }
 0x389   :  { %v4325_v22 = vpop.f32.mrf.mxu1  ;;  %v19568_v4 = vsel %vm13853_vm11, 4294967295, %v19567_v4  ;;  %vm19570_vm5 = vmmov %vm19565_vm12 }
 0x38a   :  { %v13830_v45 = vadd.f32 %v13390_v57, %v4325_v22  ;;  %19569 = vst [vmem:[#allocation35_spill] sm:$0xff] %v19568_v4 }
 0x38b   :  { %v7687_v58 = vpop.f32.mrf.mxu1 }
 0x38c   :  { %19558 = vst [vmem:[#allocation118_spill] sm:$0xff] %v13830_v45  ;;  %v18161_v2 = vmax.f32 %v13830_v45, 0.0  ;;  %v19766_v45 = vld [vmem:[#allocation9_spill] sm:$0xff] }
 0x38d   :  { %v4328_v32 = vpop.f32.mrf.mxu1 }
 0x38e   :  { %v4820_v6 = vsel %vm13834_vm8, %v18161_v2, 0.0  ;;  %v13848_v8 = vadd.f32 %v13390_v57, %v4328_v32  ;;  %v3603_v32 = vadd.s32 1, %v11693_v38  ;;  %vm19573_vm8 = vcmp.ge.s32.totalorder %v11686_v60, 1 }
 0x38f   :  { %v4850_v24 = vsel %vm19565_vm12, %v4820_v6, 0.0  ;;  %v7688_v22 = vpop.f32.mrf.mxu1  ;;  %vm3625_vm12 = vcmp.ge.s32.totalorder %v3604_v9, 1  ;;  %v19583_v9 = vmov 0 }
 0x390   :  { %19564 = vst [vmem:[#allocation119_spill] sm:$0xff] %v13848_v8  ;;  %v4851_v53 = vadd.f32 %v4850_v24, %v4849_v13  ;;  %v18171_v58 = vmax.f32 %v13848_v8, 0.0  ;;  %vm3624_vm6 = vcmp.ge.s32.totalorder %v3603_v32, 1  ;;  %vm3645_vm9 = vcmp.le.s32.totalorder %v3603_v32, 16  ;;  %vm13873_vm7 = vmand %vm3625_vm12, %vm3646_vm1  ;;  %v19763_v8 = vld [vmem:[#allocation55_spill] sm:$0xff] }
 0x391   :  { %vm13865_vm13 = vmand %vm3624_vm6, %vm3645_vm9  ;;  %vm19580_vm9 = vcmp.ge.s32.totalorder %v11718_v40, 1  ;;  %vm19582_vm12 = vcmp.le.s32.totalorder %v11718_v40, 16 }
 0x392   :  { %v4821_v2 = vsel %vm13853_vm11, %v18171_v58, 0.0  ;;  %vm3687_vm11 = vmand %vm13865_vm13, %vm19573_vm8 }
 0x393   :  { %v4852_v56 = vsel %vm19570_vm5, %v4821_v2, 0.0  ;;  %vm19576_vm5 = vcmp.le.s32.totalorder %v11686_v60, 16  ;;  %vm3688_vm8 = vmand %vm13873_vm7, %vm19580_vm9  ;;  %vm19588_vm9 = vcmp.ge.s32.totalorder %v19587_v49, 1 }
 0x394   :  { %v4853_v6 = vadd.f32 %v4852_v56, %v4851_v53  ;;  %vm13882_vm6 = vmand %vm3687_vm11, %vm19576_vm5  ;;  %vm19581_vm11 = vcmask 261120  }
 0x395   :  { %v19578_v48 = vsel %vm13882_vm6, 4294967295, %v19577_v48  ;;  %vm13901_vm1 = vmand %vm3688_vm8, %vm19582_vm12 }
 0x396   :  { %19579 = vst [vmem:[#allocation180_spill] sm:$0xff] %v19578_v48  ;;  %v19584_v9 = vsel %vm13901_vm1, 4294967295, %v19583_v9  ;;  %vm19586_vm5 = vmmov %vm19581_vm11 }
 0x397   :  { %19585 = vst [vmem:[#allocation181_spill] sm:$0xff] %v19584_v9  ;;  %vm4404_vm8 = vmand %vm13865_vm13, %vm19588_vm9  ;;  %vm19596_vm13 = vcmask 261120   ;;  %vm19597_vm9 = vcmp.le.s32.totalorder %v11749_v28, 16 }
 0x39c   :  { %v3532_v13 = vpop.f32.mrf.mxu0 }
 0x39d   :  { %v13878_v56 = vadd.f32 %v13390_v57, %v3532_v13 }
 0x39e   :  { %v7641_v2 = vpop.f32.mrf.mxu0 }
 0x39f   :  { %v18172_v24 = vmax.f32 %v13878_v56, 0.0 }
 0x3a0   :  { %v3535_v22 = vpop.f32.mrf.mxu0 }
 0x3a1   :  { %v4711_v53 = vsel %vm13882_vm6, %v18172_v24, 0.0  ;;  %v13896_v60 = vadd.f32 %v13390_v57, %v3535_v22 }
 0x3a2   :  { %v4743_v32 = vsel %vm19581_vm11, %v4711_v53, 0.0  ;;  %v7642_v13 = vpop.f32.mrf.mxu0  ;;  %vm19590_vm11 = vcmp.le.s32.totalorder %v19587_v49, 16 }
 0x3a3   :  { %v4744_v2 = vadd.f32 %v4743_v32, %v4742_v23  ;;  %v18180_v58 = vmax.f32 %v13896_v60, 0.0  ;;  %vm13920_vm12 = vmand %vm4404_vm8, %vm19590_vm11  ;;  %v19591_v23 = vmov 0 }
 0x3a4   :  { %v19592_v23 = vsel %vm13920_vm12, 4294967295, %v19591_v23 }
 0x3a5   :  { %v4712_v24 = vsel %vm13901_vm1, %v18180_v58, 0.0  ;;  %19593 = vst [vmem:[#allocation182_spill] sm:$0xff] %v19592_v23  ;;  %v19601_v58 = vld [vmem:[#allocation137_spill] sm:$0xff] }
 0x3a6   :  { %v4745_v22 = vsel %vm19586_vm5, %v4712_v24, 0.0  ;;  %vm19594_vm5 = vcmp.ge.s32.totalorder %v11749_v28, 1  ;;  %v19603_v28 = vld [vmem:[#allocation140_spill] sm:$0xff] }
 0x3a7   :  { %v4746_v4 = vadd.f32 %v4745_v22, %v4744_v2  ;;  %vm4405_vm1 = vmand %vm13873_vm7, %vm19594_vm5  ;;  %v19598_v22 = vmov 0  ;;  %v3606_v9 = vadd.s32 1, %v19603_v28 }
 0x3a8   :  { %vm13939_vm8 = vmand %vm4405_vm1, %vm19597_vm9 }
 0x3a9   :  { %v4333_v40 = vpop.f32.mrf.mxu1  ;;  %v19599_v22 = vsel %vm13939_vm8, 4294967295, %v19598_v22  ;;  %vm19602_vm7 = vmmov %vm19596_vm13  ;;  %vm3648_vm9 = vcmp.le.s32.totalorder %v3606_v9, 16 }
 0x3aa   :  { %v13916_v53 = vadd.f32 %v13390_v57, %v4333_v40  ;;  %19600 = vst [vmem:[#allocation184_spill] sm:$0xff] %v19599_v22 }
 0x3ab   :  { %v7691_v32 = vpop.f32.mrf.mxu1 }
 0x3ac   :  { %19589 = vst [vmem:[#allocation41_spill] sm:$0xff] %v13916_v53  ;;  %v18179_v13 = vmax.f32 %v13916_v53, 0.0  ;;  %v19761_v53 = vld [vmem:[#allocation174_spill] sm:$0xff] }
 0x3ad   :  { %v4336_v43 = vpop.f32.mrf.mxu1 }
 0x3ae   :  { %v4822_v24 = vsel %vm13920_vm12, %v18179_v13, 0.0  ;;  %v13934_v49 = vadd.f32 %v13390_v57, %v4336_v43  ;;  %v3605_v43 = vadd.s32 1, %v19601_v58 }
 0x3af   :  { %v4854_v2 = vsel %vm19596_vm13, %v4822_v24, 0.0  ;;  %v7692_v40 = vpop.f32.mrf.mxu1  ;;  %vm3627_vm13 = vcmp.ge.s32.totalorder %v3606_v9, 1 }
 0x3b0   :  { %19595 = vst [vmem:[#allocation183_spill] sm:$0xff] %v13934_v49  ;;  %v4855_v38 = vadd.f32 %v4854_v2, %v4853_v6  ;;  %v18193_v32 = vmax.f32 %v13934_v49, 0.0  ;;  %vm3626_vm11 = vcmp.ge.s32.totalorder %v3605_v43, 1  ;;  %vm3647_vm5 = vcmp.le.s32.totalorder %v3605_v43, 16  ;;  %v19606_v6 = vld [vmem:[#allocation136_spill] sm:$0xff]  ;;  %vm13959_vm6 = vmand %vm3627_vm13, %vm3648_vm9 }
 0x3b1   :  { %vm13951_vm1 = vmand %vm3626_vm11, %vm3647_vm5  ;;  %vm19607_vm12 = vcmp.ge.s32.totalorder %v19606_v6, 1  ;;  %vm19614_vm5 = vcmp.ge.s32.totalorder %v12033_v12, 1  ;;  %vm19616_vm13 = vcmp.le.s32.totalorder %v12033_v12, 16  ;;  %v19759_v49 = vld [vmem:[#allocation160_spill] sm:$0xff] }
 0x3b2   :  { %v4823_v13 = vsel %vm13939_vm8, %v18193_v32, 0.0  ;;  %vm3689_vm8 = vmand %vm13951_vm1, %vm19607_vm12 }
 0x3b3   :  { %v4856_v23 = vsel %vm19602_vm7, %v4823_v13, 0.0  ;;  %vm19610_vm7 = vcmp.le.s32.totalorder %v19606_v6, 16  ;;  %v19611_v13 = vmov 0  ;;  %vm3690_vm12 = vmand %vm13959_vm6, %vm19614_vm5  ;;  %vm19622_vm5 = vcmp.ge.s32.totalorder %v19621_v55, 1 }
 0x3b4   :  { %v4857_v24 = vadd.f32 %v4856_v23, %v4855_v38  ;;  %vm13968_vm11 = vmand %vm3689_vm8, %vm19610_vm7  ;;  %vm19615_vm8 = vcmask 261120  }
 0x3b5   :  { %v19612_v13 = vsel %vm13968_vm11, 4294967295, %v19611_v13  ;;  %vm13987_vm9 = vmand %vm3690_vm12, %vm19616_vm13 }
 0x3b6   :  { %19613 = vst [vmem:[#allocation137_spill] sm:$0xff] %v19612_v13  ;;  %vm19620_vm7 = vmmov %vm19615_vm8 }
 0x3b7   :  { %vm4406_vm12 = vmand %vm13951_vm1, %vm19622_vm5  ;;  %vm19631_vm1 = vcmask 261120  }
 0x3bc   :  { %v3540_v2 = vpop.f32.mrf.mxu0 }
 0x3bd   :  { %v13964_v23 = vadd.f32 %v13390_v57, %v3540_v2  ;;  %v19617_v2 = vmov 0 }
 0x3be   :  { %v7645_v9 = vpop.f32.mrf.mxu0  ;;  %v19618_v2 = vsel %vm13987_vm9, 4294967295, %v19617_v2 }
 0x3bf   :  { %v18196_v40 = vmax.f32 %v13964_v23, 0.0  ;;  %19619 = vst [vmem:[#allocation140_spill] sm:$0xff] %v19618_v2 }
 0x3c0   :  { %v3543_v38 = vpop.f32.mrf.mxu0 }
 0x3c1   :  { %v4713_v43 = vsel %vm13968_vm11, %v18196_v40, 0.0  ;;  %v13982_v28 = vadd.f32 %v13390_v57, %v3543_v38 }
 0x3c2   :  { %v4747_v6 = vsel %vm19615_vm8, %v4713_v43, 0.0  ;;  %v7646_v9 = vpop.f32.mrf.mxu0  ;;  %vm19624_vm8 = vcmp.le.s32.totalorder %v19621_v55, 16 }
 0x3c3   :  { %v4748_v32 = vadd.f32 %v4747_v6, %v4746_v4  ;;  %v18203_v22 = vmax.f32 %v13982_v28, 0.0  ;;  %vm14006_vm13 = vmand %vm4406_vm12, %vm19624_vm8  ;;  %v19625_v4 = vmov 0 }
 0x3c4   :  { %v19626_v4 = vsel %vm14006_vm13, 4294967295, %v19625_v4 }
 0x3c5   :  { %v4714_v40 = vsel %vm13987_vm9, %v18203_v22, 0.0  ;;  %19627 = vst [vmem:[#allocation45_spill] sm:$0xff] %v19626_v4  ;;  %v19636_v4 = vld [vmem:[#allocation150_spill] sm:$0xff] }
 0x3c6   :  { %v4749_v38 = vsel %vm19620_vm7, %v4714_v40, 0.0  ;;  %v19628_v40 = vld [vmem:[#allocation141_spill] sm:$0xff] }
 0x3c7   :  { %v4750_v13 = vadd.f32 %v4749_v38, %v4748_v32  ;;  %vm19629_vm7 = vcmp.ge.s32.totalorder %v19628_v40, 1  ;;  %vm19632_vm5 = vcmp.le.s32.totalorder %v19628_v40, 16  ;;  %v19638_v40 = vld [vmem:[#allocation153_spill] sm:$0xff] }
 0x3c8   :  { %vm4407_vm9 = vmand %vm13959_vm6, %vm19629_vm7  ;;  %v3608_v16 = vadd.s32 1, %v19638_v40 }
 0x3c9   :  { %v4341_v12 = vpop.f32.mrf.mxu1  ;;  %vm14025_vm12 = vmand %vm4407_vm9, %vm19632_vm5 }
 0x3ca   :  { %v14002_v43 = vadd.f32 %v13390_v57, %v4341_v12  ;;  %v19633_v12 = vmov 0  ;;  %vm19637_vm6 = vmmov %vm19631_vm1  ;;  %vm3650_vm5 = vcmp.le.s32.totalorder %v3608_v16, 16 }
 0x3cb   :  { %v7695_v6 = vpop.f32.mrf.mxu1  ;;  %v19634_v12 = vsel %vm14025_vm12, 4294967295, %v19633_v12 }
 0x3cc   :  { %19623 = vst [vmem:[#allocation136_spill] sm:$0xff] %v14002_v43  ;;  %v18204_v9 = vmax.f32 %v14002_v43, 0.0  ;;  %19635 = vst [vmem:[#allocation185_spill] sm:$0xff] %v19634_v12  ;;  %v19757_v43 = vld [vmem:[#allocation157_spill] sm:$0xff] }
 0x3cd   :  { %v4344_v48 = vpop.f32.mrf.mxu1 }
 0x3ce   :  { %v4824_v32 = vsel %vm14006_vm13, %v18204_v9, 0.0  ;;  %v14020_v55 = vadd.f32 %v13390_v57, %v4344_v48  ;;  %v3607_v48 = vadd.s32 1, %v19636_v4 }
 0x3cf   :  { %v4858_v38 = vsel %vm19631_vm1, %v4824_v32, 0.0  ;;  %v7696_v6 = vpop.f32.mrf.mxu1  ;;  %vm3629_vm1 = vcmp.ge.s32.totalorder %v3608_v16, 1 }
 0x3d0   :  { %19630 = vst [vmem:[#allocation141_spill] sm:$0xff] %v14020_v55  ;;  %v4859_v58 = vadd.f32 %v4858_v38, %v4857_v24  ;;  %v18219_v22 = vmax.f32 %v14020_v55, 0.0  ;;  %vm3628_vm8 = vcmp.ge.s32.totalorder %v3607_v48, 1  ;;  %vm3649_vm7 = vcmp.le.s32.totalorder %v3607_v48, 16  ;;  %v19641_v24 = vld [vmem:[#allocation149_spill] sm:$0xff]  ;;  %vm14045_vm11 = vmand %vm3629_vm1, %vm3650_vm5  ;;  %v19755_v55 = vld [vmem:[#allocation147_spill] sm:$0xff] }
 0x3d1   :  { %vm14037_vm9 = vmand %vm3628_vm8, %vm3649_vm7  ;;  %vm19642_vm13 = vcmp.ge.s32.totalorder %v19641_v24, 1  ;;  %vm19649_vm7 = vcmp.ge.s32.totalorder %v12356_v41, 1  ;;  %vm19651_vm1 = vcmp.le.s32.totalorder %v12356_v41, 16 }
 0x3d2   :  { %v4825_v9 = vsel %vm14025_vm12, %v18219_v22, 0.0  ;;  %vm3691_vm12 = vmand %vm14037_vm9, %vm19642_vm13 }
 0x3d3   :  { %v4860_v2 = vsel %vm19637_vm6, %v4825_v9, 0.0  ;;  %vm19645_vm6 = vcmp.le.s32.totalorder %v19641_v24, 16  ;;  %v19646_v9 = vmov 0  ;;  %vm3692_vm13 = vmand %vm14045_vm11, %vm19649_vm7  ;;  %vm19657_vm7 = vcmp.ge.s32.totalorder %v19656_v7, 1 }
 0x3d4   :  { %v4861_v32 = vadd.f32 %v4860_v2, %v4859_v58  ;;  %vm14054_vm8 = vmand %vm3691_vm12, %vm19645_vm6  ;;  %vm19650_vm12 = vcmask 261120  }
 0x3d5   :  { %v19647_v9 = vsel %vm14054_vm8, 4294967295, %v19646_v9  ;;  %vm14073_vm5 = vmand %vm3692_vm13, %vm19651_vm1 }
 0x3d6   :  { %19648 = vst [vmem:[#allocation150_spill] sm:$0xff] %v19647_v9  ;;  %vm19655_vm6 = vmmov %vm19650_vm12 }
 0x3d7   :  { %vm4408_vm13 = vmand %vm14037_vm9, %vm19657_vm7  ;;  %vm19666_vm9 = vcmask 261120  }
 0x3de   :  { %v3548_v38 = vpop.f32.mrf.mxu0 }
 0x3df   :  { %v14050_v2 = vadd.f32 %v13390_v57, %v3548_v38  ;;  %v19652_v38 = vmov 0 }
 0x3e0   :  { %v7649_v16 = vpop.f32.mrf.mxu0  ;;  %v19653_v38 = vsel %vm14073_vm5, 4294967295, %v19652_v38 }
 0x3e1   :  { %v18222_v6 = vmax.f32 %v14050_v2, 0.0  ;;  %19654 = vst [vmem:[#allocation153_spill] sm:$0xff] %v19653_v38 }
 0x3e2   :  { %v3551_v58 = vpop.f32.mrf.mxu0 }
 0x3e3   :  { %v4715_v48 = vsel %vm14054_vm8, %v18222_v6, 0.0  ;;  %v14068_v40 = vadd.f32 %v13390_v57, %v3551_v58 }
 0x3e4   :  { %v4751_v24 = vsel %vm19650_vm12, %v4715_v48, 0.0  ;;  %v7650_v16 = vpop.f32.mrf.mxu0  ;;  %vm19659_vm12 = vcmp.le.s32.totalorder %v19656_v7, 16 }
 0x3e5   :  { %v4752_v22 = vadd.f32 %v4751_v24, %v4750_v13  ;;  %v18229_v12 = vmax.f32 %v14068_v40, 0.0  ;;  %vm14092_vm1 = vmand %vm4408_vm13, %vm19659_vm12  ;;  %v19660_v13 = vmov 0 }
 0x3e6   :  { %v19661_v13 = vsel %vm14092_vm1, 4294967295, %v19660_v13 }
 0x3e7   :  { %v4716_v6 = vsel %vm14073_vm5, %v18229_v12, 0.0  ;;  %19662 = vst [vmem:[#allocation49_spill] sm:$0xff] %v19661_v13  ;;  %v19671_v13 = vld [vmem:[#allocation164_spill] sm:$0xff] }
 0x3e8   :  { %v4753_v58 = vsel %vm19655_vm6, %v4716_v6, 0.0  ;;  %v19663_v6 = vld [vmem:[#allocation154_spill] sm:$0xff] }
 0x3e9   :  { %v4754_v9 = vadd.f32 %v4753_v58, %v4752_v22  ;;  %v4349_v41 = vpop.f32.mrf.mxu1  ;;  %vm19664_vm6 = vcmp.ge.s32.totalorder %v19663_v6, 1  ;;  %vm19667_vm7 = vcmp.le.s32.totalorder %v19663_v6, 16  ;;  %v3610_v6 = vadd.s32 1, %v19673_v30 }
 0x3ea   :  { %v14088_v48 = vadd.f32 %v13390_v57, %v4349_v41  ;;  %vm4409_vm5 = vmand %vm14045_vm11, %vm19664_vm6  ;;  %v19668_v41 = vmov 0 }
 0x3eb   :  { %v7699_v24 = vpop.f32.mrf.mxu1  ;;  %vm14111_vm13 = vmand %vm4409_vm5, %vm19667_vm7  ;;  %vm3631_vm6 = vcmp.ge.s32.totalorder %v3610_v6, 1 }
 0x3ec   :  { %19658 = vst [vmem:[#allocation149_spill] sm:$0xff] %v14088_v48  ;;  %v18230_v16 = vmax.f32 %v14088_v48, 0.0  ;;  %v19669_v41 = vsel %vm14111_vm13, 4294967295, %v19668_v41  ;;  %vm19672_vm11 = vmmov %vm19666_vm9  ;;  %v19753_v48 = vld [vmem:[#allocation144_spill] sm:$0xff] }
 0x3ed   :  { %v4352_v35 = vpop.f32.mrf.mxu1  ;;  %19670 = vst [vmem:[#allocation186_spill] sm:$0xff] %v19669_v41 }
 0x3ee   :  { %v4826_v22 = vsel %vm14092_vm1, %v18230_v16, 0.0  ;;  %v14106_v7 = vadd.f32 %v13390_v57, %v4352_v35  ;;  %v3609_v35 = vadd.s32 1, %v19671_v13  ;;  %v19679_v13 = vld [vmem:[#allocation163_spill] sm:$0xff] }
 0x3ef   :  { %v4862_v58 = vsel %vm19666_vm9, %v4826_v22, 0.0  ;;  %v7700_v24 = vpop.f32.mrf.mxu1  ;;  %vm3652_vm9 = vcmp.le.s32.totalorder %v3610_v6, 16 }
 0x3f0   :  { %19665 = vst [vmem:[#allocation154_spill] sm:$0xff] %v14106_v7  ;;  %v4863_v4 = vadd.f32 %v4862_v58, %v4861_v32  ;;  %v18251_v12 = vmax.f32 %v14106_v7, 0.0  ;;  %vm3630_vm5 = vcmp.ge.s32.totalorder %v3609_v35, 1  ;;  %vm3651_vm12 = vcmp.le.s32.totalorder %v3609_v35, 16  ;;  %v19676_v58 = vld [vmem:[#allocation172_spill] sm:$0xff]  ;;  %vm14128_vm1 = vmand %vm3631_vm6, %vm3652_vm9  ;;  %v19751_v7 = vld [vmem:[#allocation134_spill] sm:$0xff] }
 0x3f1   :  { %vm14123_vm7 = vmand %vm3630_vm5, %vm3651_vm12  ;;  %v3611_v24 = vadd.s32 1, %v19676_v58  ;;  %vm19683_vm6 = vcmp.le.s32.totalorder %v19679_v13, 16  ;;  %v19699_v32 = vmov 0 }
 0x3f2   :  { %v4827_v16 = vsel %vm14111_vm13, %v18251_v12, 0.0  ;;  %vm19680_vm13 = vcmp.ge.s32.totalorder %v19679_v13, 1  ;;  %v19693_v12 = vld [vmem:[#allocation167_spill] sm:$0xff] }
 0x3f3   :  { %v4864_v38 = vsel %vm19672_vm11, %v4827_v16, 0.0  ;;  %vm3693_vm11 = vmand %vm14123_vm7, %vm19680_vm13  ;;  %vm3632_vm8 = vcmp.ge.s32.totalorder %v3611_v24, 1  ;;  %vm3653_vm4 = vcmp.le.s32.totalorder %v3611_v24, 16  ;;  %v19681_v16 = vld [vmem:[#allocation53_spill] sm:$0xff] }
 0x3f4   :  { %v4865_v22 = vadd.f32 %v4864_v38, %v4863_v4  ;;  %vm19682_vm5 = vcmp.ge.s32.totalorder %v19681_v16, 1  ;;  %vm14145_vm9 = vmand %vm3693_vm11, %vm19683_vm6  ;;  %v19684_v4 = vmov 0  ;;  %vm19689_vm15 = vcmp.le.s32.totalorder %v19681_v16, 16 }
 0x3f5   :  { %vm3694_vm12 = vmand %vm14128_vm1, %vm19682_vm5  ;;  %v19685_v4 = vsel %vm14145_vm9, 4294967295, %v19684_v4  ;;  %vm19695_vm11 = vcmask 261120  }
 0x3f6   :  { %19686 = vst [vmem:[#allocation164_spill] sm:$0xff] %v19685_v4  ;;  %vm14150_vm13 = vmand %vm3632_vm8, %vm3653_vm4  ;;  %vm19694_vm4 = vcmp.ge.s32.totalorder %v19693_v12, 1 }
 0x3f7   :  { %vm14156_vm0 = vmand %vm3694_vm12, %vm19689_vm15  ;;  %vm19696_vm15 = vcmp.ge.s32.totalorder %v12716_v34, 1  ;;  %vm19698_vm12 = vcmp.le.s32.totalorder %v19693_v12, 16 }
 0x3f8   :  { %vm4410_vm8 = vmand %vm14123_vm7, %vm19694_vm4  ;;  %vm19702_vm7 = vcmp.le.s32.totalorder %v12716_v34, 16 }
 0x3f9   :  { %vm3695_vm5 = vmand %vm14150_vm13, %vm19696_vm15 }
 0x3fa   :  { %vm14182_vm6 = vmand %vm4410_vm8, %vm19698_vm12 }
 0x3fb   :  { %v19700_v32 = vsel %vm14182_vm6, 4294967295, %v19699_v32  ;;  %vm14195_vm4 = vmand %vm3695_vm5, %vm19702_vm7  ;;  %vm19715_vm7 = vcmask 254976  }
 0x3fc   :  { %19701 = vst [vmem:[#allocation163_spill] sm:$0xff] %v19700_v32  ;;  %vm19706_vm8 = vmmov %vm19695_vm11 }
 0x3fd   :  { %vm19710_vm5 = vmmov %vm19706_vm8 }
 0x3fe   :  { %v3556_v30 = vpop.f32.mrf.mxu0 }
 0x3ff   :  { %v14137_v38 = vadd.f32 %v13390_v57, %v3556_v30  ;;  %v19690_v30 = vmov 0 }
 0x400   :  { %v7653_v35 = vpop.f32.mrf.mxu0  ;;  %v19691_v30 = vsel %vm14156_vm0, 4294967295, %v19690_v30 }
 0x401   :  { %v18258_v6 = vmax.f32 %v14137_v38, 0.0  ;;  %19692 = vst [vmem:[#allocation168_spill] sm:$0xff] %v19691_v30 }
 0x402   :  { %v3559_v24 = vpop.f32.mrf.mxu0 }
 0x403   :  { %v4717_v13 = vsel %vm14145_vm9, %v18258_v6, 0.0  ;;  %v14165_v35 = vadd.f32 %v13390_v57, %v3559_v24 }
 0x404   :  { %v4755_v39 = vsel %vm19695_vm11, %v4717_v13, 0.0  ;;  %v7654_v16 = vpop.f32.mrf.mxu0  ;;  %vm19708_vm11 = vcmp.ge.s32.totalorder %v19707_v50, 1 }
 0x405   :  { %v4756_v46 = vadd.f32 %v4755_v39, %v4754_v9  ;;  %v18265_v4 = vmax.f32 %v14165_v35, 0.0  ;;  %v4357_v6 = vpop.f32.mrf.mxu1  ;;  %v19703_v9 = vmov 0  ;;  %vm4411_vm15 = vmand %vm14128_vm1, %vm19708_vm11  ;;  %vm19711_vm1 = vcmp.le.s32.totalorder %v19707_v50, 16 }
 0x406   :  { %v14178_v24 = vadd.f32 %v13390_v57, %v4357_v6  ;;  %v3564_v13 = vpop.f32.mrf.mxu0  ;;  %v19704_v9 = vsel %vm14195_vm4, 4294967295, %v19703_v9  ;;  %vm14220_vm12 = vmand %vm4411_vm15, %vm19711_vm1 }
 0x407   :  { %v4718_v16 = vsel %vm14156_vm0, %v18265_v4, 0.0  ;;  %v14191_v39 = vadd.f32 %v13390_v57, %v3564_v13  ;;  %19705 = vst [vmem:[#allocation53_spill] sm:$0xff] %v19704_v9  ;;  %v7703_v12 = vpop.f32.mrf.mxu1  ;;  %vm19719_vm15 = vmmov %vm19710_vm5 }
 0x408   :  { %19697 = vst [vmem:[#allocation172_spill] sm:$0xff] %v14178_v24  ;;  %v4757_v6 = vsel %vm19706_vm8, %v4718_v16, 0.0  ;;  %v18270_v63 = vmax.f32 %v14178_v24, 0.0  ;;  %v7657_v47 = vpop.f32.mrf.mxu0  ;;  %vm19717_vm8 = vcmp.ge.s32.totalorder %v19716_v31, 1 }
 0x409   :  { %v4758_v4 = vadd.f32 %v4757_v6, %v4756_v46  ;;  %v18273_v13 = vmax.f32 %v14191_v39, 0.0  ;;  %v4360_v30 = vpop.f32.mrf.mxu1  ;;  %v19712_v46 = vmov 0  ;;  %vm4412_vm11 = vmand %vm14150_vm13, %vm19717_vm8 }
 0x40a   :  { %v4828_v34 = vsel %vm14182_vm6, %v18270_v63, 0.0  ;;  %v14211_v12 = vadd.f32 %v13390_v57, %v4360_v30  ;;  %v3567_v16 = vpop.f32.mrf.mxu0  ;;  %v19713_v46 = vsel %vm14220_vm12, 4294967295, %v19712_v46  ;;  %vm19724_vm13 = vmmov %vm19715_vm7 }
 0x40b   :  { %v4866_v47 = vsel %vm19710_vm5, %v4828_v34, 0.0  ;;  %v4719_v41 = vsel %vm14195_vm4, %v18273_v13, 0.0  ;;  %19714 = vst [vmem:[#allocation171_spill] sm:$0xff] %v19713_v46  ;;  %v7704_v6 = vpop.f32.mrf.mxu1  ;;  %vm19720_vm5 = vcmp.le.s32.totalorder %v19716_v31, 16 }
 0x40c   :  { %19709 = vst [vmem:[#allocation167_spill] sm:$0xff] %v14211_v12  ;;  %v4867_v32 = vadd.f32 %v4866_v47, %v4865_v22  ;;  %v4759_v63 = vsel %vm19715_vm7, %v4719_v41, 0.0  ;;  %v18276_v30 = vmax.f32 %v14211_v12, 0.0  ;;  %v7658_v16 = vpop.f32.mrf.mxu0  ;;  %vm14240_vm1 = vmand %vm4412_vm11, %vm19720_vm5  ;;  %v19721_v41 = vmov 0 }
 0x40d   :  { %v4760_v34 = vadd.f32 %v4759_v63, %v4758_v4  ;;  %v4365_v13 = vpop.f32.mrf.mxu1  ;;  %v19722_v41 = vsel %vm14240_vm1, 4294967295, %v19721_v41 }
 0x40e   :  { %v4829_v50 = vsel %vm14220_vm12, %v18276_v30, 0.0  ;;  %v14235_v6 = vadd.f32 %v13390_v57, %v4365_v13  ;;  %19723 = vst [vmem:[#allocation187_spill] sm:$0xff] %v19722_v41 }
 0x40f   :  { %v4761_v22 = vrot.slane %v4760_v34, 4  ;;  %v4868_v47 = vsel %vm19719_vm15, %v4829_v50, 0.0  ;;  %v7707_v58 = vpop.f32.mrf.mxu1 }
 0x410   :  { %19718 = vst [vmem:[#allocation173_spill] sm:$0xff] %v14235_v6  ;;  %v4869_v63 = vadd.f32 %v4868_v47, %v4867_v32  ;;  %v18286_v4 = vmax.f32 %v14235_v6, 0.0 }
 0x411   :  { %v4762_v16 = vadd.f32 %v4761_v22, %v4760_v34  ;;  %v4368_v9 = vpop.f32.mrf.mxu1 }
 0x412   :  { %v4830_v57 = vsel %vm14240_vm1, %v18286_v4, 0.0  ;;  %v19725_v4 = vld [vmem:[#allocation69_spill] sm:$0xff] }
 0x413   :  { %v4763_v13 = vrot.slane %v4762_v16, 2  ;;  %v4870_v50 = vsel %vm19724_vm13, %v4830_v57, 0.0  ;;  %v7708_v30 = vpop.f32.mrf.mxu1  ;;  %v19726_v41 = vmax.f32 %v19725_v4, 0.0 }
 0x414   :  { %v4871_v31 = vadd.f32 %v4870_v50, %v4869_v63  ;;  %v19727_v30 = vld [vmem:[#allocation71_spill] sm:$0xff]  ;;  %v19733_v50 = vld [vmem:[#allocation86_spill] sm:$0xff] }
 0x415   :  { %v4764_v46 = vadd.f32 %v4763_v13, %v4762_v16  ;;  %v19728_v63 = vmax.f32 %v19727_v30, 0.0 }
 0x416   :  { %v4872_v52 = vrot.slane %v4871_v31, 4 }
 0x417   :  { %v4765_v20 = vrot.slane %v4764_v46, 1 }
 0x418   :  { %v4873_v12 = vadd.f32 %v4872_v52, %v4871_v31  ;;  %v19729_v52 = vld [vmem:[#allocation4_spill] sm:$0xff] }
 0x419   :  { %v4766_v58 = vadd.f32 %v4765_v20, %v4764_v46  ;;  %v19730_v20 = vmax.f32 %v19729_v52, 0.0 }
 0x41a   :  { %v4874_v32 = vrot.slane %v4873_v12, 2 }
 0x41b   :  { %v4767_v47 = vadd.f32 %v4766_v58, %v13141_v19  ;;  %v19731_v19 = vld [vmem:[#allocation81_spill] sm:$0xff]  ;;  %v19735_v58 = vld [vmem:[#allocation90_spill] sm:$0xff] }
 0x41c   :  { %v4875_v34 = vadd.f32 %v4874_v32, %v4873_v12  ;;  %v19732_v12 = vmax.f32 %v19731_v19, 0.0  ;;  %v19736_v4 = vmax.f32 %v19735_v58, 0.0  ;;  %v19737_v32 = vld [vmem:[#allocation99_spill] sm:$0xff]  ;;  %v19743_v19 = vld [vmem:[#allocation116_spill] sm:$0xff] }
 0x41e   :  { %v4876_v9 = vrot.slane %v4875_v34, 1 }
 0x420   :  { %v4877_v22 = vadd.f32 %v4876_v9, %v4875_v34  ;;  %v19739_v9 = vld [vmem:[#allocation102_spill] sm:$0xff] }
 0x422   :  { %v4878_v6 = vadd.f32 %v4877_v22, %v4767_v47  ;;  %v19738_v47 = vmax.f32 %v19737_v32, 0.0  ;;  %v19740_v22 = vmax.f32 %v19739_v9, 0.0  ;;  %v19747_v32 = vld [vmem:[#allocation126_spill] sm:$0xff] }
 0x424   :  { %v14251_v24 = vmul.f32 0.001953125, %v4878_v6  ;;  %v19734_v6 = vmax.f32 %v19733_v50, 0.0 }
 0x426   :  { %v4880_v57 = vsub.f32 %v19726_v41, %v14251_v24  ;;  %v4881_v16 = vsub.f32 %v19728_v63, %v14251_v24  ;;  %v4882_v46 = vsub.f32 %v19730_v20, %v14251_v24  ;;  %v4883_v13 = vsub.f32 %v19732_v12, %v14251_v24  ;;  %v19741_v63 = vld [vmem:[#allocation113_spill] sm:$0xff] }
 0x427   :  { %v4884_v31 = vsub.f32 %v19734_v6, %v14251_v24  ;;  %v4885_v41 = vsub.f32 %v19736_v4, %v14251_v24  ;;  %v4886_v34 = vsub.f32 %v19738_v47, %v14251_v24  ;;  %v14277_v30 = vsub.f32 %v19740_v22, %v14251_v24  ;;  %v19745_v6 = vld [vmem:[#allocation123_spill] sm:$0xff] }
 0x428   :  { %v19742_v52 = vmax.f32 %v19741_v63, 0.0  ;;  %v19744_v12 = vmax.f32 %v19743_v19, 0.0  ;;  %v19746_v58 = vmax.f32 %v19745_v6, 0.0  ;;  %v19748_v47 = vmax.f32 %v19747_v32, 0.0  ;;  %v19749_v22 = vld [vmem:[#allocation131_spill] sm:$0xff] }
 0x429   :  { %v19750_v63 = vmax.f32 %v19749_v22, 0.0  ;;  %v19752_v19 = vmax.f32 %v19751_v7, 0.0  ;;  %v19754_v6 = vmax.f32 %v19753_v48, 0.0  ;;  %v19756_v32 = vmax.f32 %v19755_v55, 0.0 }
 0x42a   :  { %v14282_v20 = vsub.f32 %v19742_v52, %v14251_v24  ;;  %v14287_v50 = vsub.f32 %v19744_v12, %v14251_v24  ;;  %v14292_v4 = vsub.f32 %v19746_v58, %v14251_v24  ;;  %v14297_v9 = vsub.f32 %v19748_v47, %v14251_v24 }
 0x42b   :  { %v14302_v52 = vsub.f32 %v19750_v63, %v14251_v24  ;;  %v14307_v12 = vsub.f32 %v19752_v19, %v14251_v24  ;;  %v14312_v58 = vsub.f32 %v19754_v6, %v14251_v24  ;;  %v14317_v47 = vsub.f32 %v19756_v32, %v14251_v24 }
 0x42c   :  { %v19758_v22 = vmax.f32 %v19757_v43, 0.0  ;;  %v19760_v7 = vmax.f32 %v19759_v49, 0.0  ;;  %v19762_v48 = vmax.f32 %v19761_v53, 0.0  ;;  %v19764_v55 = vmax.f32 %v19763_v8, 0.0 }
 0x42d   :  { %v19765_v43 = vmax.f32 %v13059_v5, 0.0  ;;  %v19767_v49 = vmax.f32 %v19766_v45, 0.0  ;;  %v19769_v53 = vmax.f32 %v19768_v37, 0.0  ;;  %v19771_v8 = vmax.f32 %v19770_v0, 0.0 }
 0x42e   :  { %v14322_v63 = vsub.f32 %v19758_v22, %v14251_v24  ;;  %v14327_v19 = vsub.f32 %v19760_v7, %v14251_v24  ;;  %v14332_v6 = vsub.f32 %v19762_v48, %v14251_v24  ;;  %v14337_v32 = vsub.f32 %v19764_v55, %v14251_v24 }
 0x42f   :  { %v14342_v22 = vsub.f32 %v19765_v43, %v14251_v24  ;;  %v14347_v7 = vsub.f32 %v19767_v49, %v14251_v24  ;;  %v14352_v48 = vsub.f32 %v19769_v53, %v14251_v24  ;;  %v14357_v55 = vsub.f32 %v19771_v8, %v14251_v24 }
 0x430   :  { %v19773_v5 = vmax.f32 %v19772_v51, 0.0  ;;  %v19775_v45 = vmax.f32 %v19774_v11, 0.0  ;;  %v19778_v37 = vmax.f32 %v19777_v42, 0.0  ;;  %v19781_v0 = vmax.f32 %v19780_v44, 0.0 }
 0x431   :  { %v19784_v51 = vmax.f32 %v19783_v14, 0.0  ;;  %v19787_v11 = vmax.f32 %v19786_v33, 0.0 }
 0x432   :  { %v14362_v43 = vsub.f32 %v19773_v5, %v14251_v24  ;;  %v14367_v49 = vsub.f32 %v19775_v45, %v14251_v24  ;;  %v14372_v53 = vsub.f32 %v19778_v37, %v14251_v24  ;;  %v14377_v8 = vsub.f32 %v19781_v0, %v14251_v24 }
 0x433   :  { %v14382_v5 = vsub.f32 %v19784_v51, %v14251_v24  ;;  %v14387_v45 = vsub.f32 %v19787_v11, %v14251_v24 }
 0x434   :  { %19776 = vst [vmem:[#allocation69_spill] sm:$0xff] %v14367_v49  ;;  %19779 = vst [vmem:[#allocation71_spill] sm:$0xff] %v14372_v53  ;;  %v19789_v49 = vld [vmem:[#allocation33_spill] sm:$0xff]  ;;  %v19792_v53 = vld [vmem:[#allocation36_spill] sm:$0xff] }
 0x435   :  { %19782 = vst [vmem:[#allocation4_spill] sm:$0xff] %v14377_v8  ;;  %19785 = vst [vmem:[#allocation81_spill] sm:$0xff] %v14382_v5  ;;  %v19790_v42 = vmax.f32 %v19789_v49, 0.0  ;;  %v19793_v44 = vmax.f32 %v19792_v53, 0.0  ;;  %v19795_v8 = vld [vmem:[#allocation38_spill] sm:$0xff]  ;;  %v19798_v5 = vld [vmem:[#allocation37_spill] sm:$0xff] }
 0x436   :  { %19788 = vst [vmem:[#allocation86_spill] sm:$0xff] %v14387_v45  ;;  %v19796_v14 = vmax.f32 %v19795_v8, 0.0  ;;  %v19799_v33 = vmax.f32 %v19798_v5, 0.0  ;;  %v19801_v45 = vld [vmem:[#allocation42_spill] sm:$0xff] }
 0x437   :  { %v14392_v37 = vsub.f32 %v19790_v42, %v14251_v24  ;;  %v14397_v0 = vsub.f32 %v19793_v44, %v14251_v24  ;;  %v19802_v49 = vmax.f32 %v19801_v45, 0.0 }
 0x438   :  { %v14402_v51 = vsub.f32 %v19796_v14, %v14251_v24  ;;  %v14407_v11 = vsub.f32 %v19799_v33, %v14251_v24 }
 0x439   :  { %19791 = vst [vmem:[#allocation90_spill] sm:$0xff] %v14392_v37  ;;  %19794 = vst [vmem:[#allocation99_spill] sm:$0xff] %v14397_v0  ;;  %v14412_v42 = vsub.f32 %v19802_v49, %v14251_v24  ;;  %v19804_v37 = vld [vmem:[#allocation142_spill] sm:$0xff] }
 0x43a   :  { %19797 = vst [vmem:[#allocation102_spill] sm:$0xff] %v14402_v51  ;;  %19800 = vst [vmem:[#allocation113_spill] sm:$0xff] %v14407_v11  ;;  %v19805_v53 = vmax.f32 %v19804_v37, 0.0  ;;  %v19807_v0 = vld [vmem:[#allocation46_spill] sm:$0xff]  ;;  %v19809_v51 = vld [vmem:[#allocation155_spill] sm:$0xff] }
 0x43b   :  { %19803 = vst [vmem:[#allocation116_spill] sm:$0xff] %v14412_v42  ;;  %v19808_v8 = vmax.f32 %v19807_v0, 0.0  ;;  %v19810_v5 = vmax.f32 %v19809_v51, 0.0  ;;  %v19812_v11 = vld [vmem:[#allocation51_spill] sm:$0xff]  ;;  %v19819_v51 = vmax.f32 %v12928_v3, 0.0  ;;  %v19828_v3 = vmax.f32 %v13169_v18, 0.0 }
 0x43c   :  { %v14417_v44 = vsub.f32 %v19805_v53, %v14251_v24  ;;  %v19813_v45 = vmax.f32 %v19812_v11, 0.0  ;;  %v19815_v42 = vld [vmem:[#allocation175_spill] sm:$0xff]  ;;  %v14451_v11 = vsel %vm10059_vm3, %v4880_v57, 0.0  ;;  %v19829_v57 = vmax.f32 %v13191_v10, 0.0 }
 0x43d   :  { %v14422_v14 = vsub.f32 %v19808_v8, %v14251_v24  ;;  %v14427_v33 = vsub.f32 %v19810_v5, %v14251_v24  ;;  %v19816_v37 = vmax.f32 %v19815_v42, 0.0  ;;  %v14447_v5 = vsub.f32 %v19819_v51, %v14251_v24  ;;  %19821 = vst [vmem:[#allocation134_spill] sm:$0xff] %v14451_v11 }
 0x43e   :  { %19806 = vst [vmem:[#allocation123_spill] sm:$0xff] %v14417_v44  ;;  %v14432_v49 = vsub.f32 %v19813_v45, %v14251_v24  ;;  %v19817_v44 = vld [vmem:[#allocation178_spill] sm:$0xff]  ;;  %v14468_v51 = vsub.f32 %v19828_v3, %v14251_v24  ;;  %v19832_v18 = vmax.f32 %v13470_v1, 0.0  ;;  %v19833_v10 = vmax.f32 %v13494_v59, 0.0 }
 0x43f   :  { %19811 = vst [vmem:[#allocation126_spill] sm:$0xff] %v14427_v33  ;;  %v14437_v53 = vsub.f32 %v19816_v37, %v14251_v24  ;;  %v19818_v0 = vmax.f32 %v19817_v44, 0.0  ;;  %v14459_v37 = vsel %vm10336_vm2, %v4882_v46, 0.0  ;;  %v14473_v33 = vsub.f32 %v19829_v57, %v14251_v24  ;;  %v19848_v44 = vld [vmem:[#allocation87_spill] sm:$0xff] }
 0x440   :  { %19814 = vst [vmem:[#allocation131_spill] sm:$0xff] %v14432_v49  ;;  %v14455_v49 = vsel %vm10100_vm14, %v4881_v16, 0.0  ;;  %19825 = vst [vmem:[#allocation147_spill] sm:$0xff] %v14459_v37  ;;  %v19830_v16 = vmax.f32 %v13329_v54, 0.0  ;;  %v19831_v46 = vmax.f32 %v13353_v15, 0.0  ;;  %v14488_v3 = vsub.f32 %v19832_v18, %v14251_v24 }
 0x441   :  { %v14442_v8 = vsub.f32 %v19818_v0, %v14251_v24  ;;  %19823 = vst [vmem:[#allocation144_spill] sm:$0xff] %v14455_v49  ;;  %v14463_v0 = vsel %vm10412_vm10, %v4883_v13, 0.0  ;;  %v14493_v57 = vsub.f32 %v19833_v10, %v14251_v24  ;;  %v19834_v54 = vmax.f32 %v13604_v27, 0.0 }
 0x442   :  { %19827 = vst [vmem:[#allocation157_spill] sm:$0xff] %v14463_v0  ;;  %v14478_v42 = vsub.f32 %v19830_v16, %v14251_v24  ;;  %v14483_v13 = vsub.f32 %v19831_v46, %v14251_v24  ;;  %v19835_v15 = vmax.f32 %v13626_v61, 0.0  ;;  %v19836_v1 = vmax.f32 %v13706_v21, 0.0 }
 0x443   :  { %v14498_v16 = vsub.f32 %v19834_v54, %v14251_v24  ;;  %v19837_v59 = vmax.f32 %v13724_v25, 0.0  ;;  %v19838_v27 = vmax.f32 %v13792_v29, 0.0  ;;  %v19839_v61 = vmax.f32 %v13810_v26, 0.0 }
 0x444   :  { %v14503_v46 = vsub.f32 %v19835_v15, %v14251_v24  ;;  %v14508_v18 = vsub.f32 %v19836_v1, %v14251_v24  ;;  %v19840_v21 = vmax.f32 %v13878_v56, 0.0  ;;  %v19841_v25 = vmax.f32 %v13896_v60, 0.0 }
 0x445   :  { %v14513_v10 = vsub.f32 %v19837_v59, %v14251_v24  ;;  %v14518_v54 = vsub.f32 %v19838_v27, %v14251_v24  ;;  %v14523_v15 = vsub.f32 %v19839_v61, %v14251_v24  ;;  %v19842_v29 = vmax.f32 %v13964_v23, 0.0 }
 0x446   :  { %v14528_v1 = vsub.f32 %v19840_v21, %v14251_v24  ;;  %v14533_v59 = vsub.f32 %v19841_v25, %v14251_v24  ;;  %v19843_v26 = vmax.f32 %v13982_v28, 0.0  ;;  %v19844_v56 = vmax.f32 %v14050_v2, 0.0 }
 0x447   :  { %v14538_v27 = vsub.f32 %v19842_v29, %v14251_v24  ;;  %v19845_v60 = vmax.f32 %v14068_v40, 0.0  ;;  %v19846_v23 = vmax.f32 %v14137_v38, 0.0  ;;  %v19847_v28 = vmax.f32 %v14165_v35, 0.0  ;;  %v19854_v40 = vld [vmem:[#allocation100_spill] sm:$0xff]  ;;  %v19858_v35 = vld [vmem:[#allocation29_spill] sm:$0xff] }
 0x448   :  { %v14543_v61 = vsub.f32 %v19843_v26, %v14251_v24  ;;  %v14548_v21 = vsub.f32 %v19844_v56, %v14251_v24  ;;  %vm19849_vm7 = vnez %v19848_v44  ;;  %v19851_v56 = vld [vmem:[#allocation24_spill] sm:$0xff]  ;;  %vm19855_vm11 = vnez %v19854_v40 }
 0x449   :  { %v14553_v25 = vsub.f32 %v19845_v60, %v14251_v24  ;;  %v14558_v29 = vsub.f32 %v19846_v23, %v14251_v24  ;;  %v14563_v26 = vsub.f32 %v19847_v28, %v14251_v24  ;;  %v14567_v2 = vsel %vm19849_vm7, %v4884_v31, 0.0  ;;  %v19861_v31 = vld [vmem:[#allocation114_spill] sm:$0xff]  ;;  %v19867_v40 = vld [vmem:[#allocation124_spill] sm:$0xff] }
 0x44a   :  { %19850 = vst [vmem:[#allocation160_spill] sm:$0xff] %v14567_v2  ;;  %vm19852_vm8 = vnez %v19851_v56  ;;  %v14575_v60 = vsel %vm19855_vm11, %v4886_v34, 0.0  ;;  %v19857_v38 = vmax.f32 %v14191_v39, 0.0  ;;  %vm19859_vm15 = vnez %v19858_v35  ;;  %v19873_v35 = vld [vmem:[#allocation132_spill] sm:$0xff] }
 0x44b   :  { %v14571_v45 = vsel %vm19852_vm8, %v4885_v41, 0.0  ;;  %19856 = vst [vmem:[#allocation55_spill] sm:$0xff] %v14575_v60  ;;  %v14585_v28 = vsel %vm19859_vm15, %v14277_v30, 0.0  ;;  %vm19862_vm5 = vnez %v19861_v31  ;;  %v19864_v41 = vld [vmem:[#allocation117_spill] sm:$0xff]  ;;  %vm19868_vm11 = vnez %v19867_v40  ;;  %v19876_v31 = vld [vmem:[#allocation43_spill] sm:$0xff] }
 0x44c   :  { %19853 = vst [vmem:[#allocation174_spill] sm:$0xff] %v14571_v45  ;;  %v14580_v23 = vsub.f32 %v19857_v38, %v14251_v24  ;;  %19860 = vst [vmem:[#allocation9_spill] sm:$0xff] %v14585_v28  ;;  %v14590_v56 = vsel %vm19862_vm5, %v14282_v20, 0.0  ;;  %vm19865_vm13 = vnez %v19864_v41  ;;  %v14600_v39 = vsel %vm19868_vm11, %v14292_v4, 0.0  ;;  %v19870_v38 = vld [vmem:[#allocation39_spill] sm:$0xff]  ;;  %v19879_v41 = vld [vmem:[#allocation145_spill] sm:$0xff] }
 0x44d   :  { %19863 = vst [vmem:[#allocation70_spill] sm:$0xff] %v14590_v56  ;;  %v14595_v34 = vsel %vm19865_vm13, %v14287_v50, 0.0  ;;  %19869 = vst [vmem:[#allocation79_spill] sm:$0xff] %v14600_v39  ;;  %vm19871_vm8 = vnez %v19870_v38  ;;  %vm19874_vm15 = vnez %v19873_v35  ;;  %vm19877_vm5 = vnez %v19876_v31  ;;  %v19882_v40 = vld [vmem:[#allocation47_spill] sm:$0xff]  ;;  %v19885_v38 = vld [vmem:[#allocation158_spill] sm:$0xff] }
 0x44e   :  { %19866 = vst [vmem:[#allocation76_spill] sm:$0xff] %v14595_v34  ;;  %v14605_v30 = vsel %vm19871_vm8, %v14297_v9, 0.0  ;;  %v14610_v20 = vsel %vm19874_vm15, %v14302_v52, 0.0  ;;  %v14615_v50 = vsel %vm19877_vm5, %v14307_v12, 0.0  ;;  %vm19880_vm13 = vnez %v19879_v41  ;;  %v19888_v35 = vld [vmem:[#allocation161_spill] sm:$0xff]  ;;  %v19891_v31 = vld [vmem:[#allocation50_spill] sm:$0xff] }
 0x44f   :  { %19872 = vst [vmem:[#allocation23_spill] sm:$0xff] %v14605_v30  ;;  %19875 = vst [vmem:[#allocation88_spill] sm:$0xff] %v14610_v20  ;;  %v14620_v4 = vsel %vm19880_vm13, %v14312_v58, 0.0  ;;  %vm19883_vm11 = vnez %v19882_v40  ;;  %vm19886_vm8 = vnez %v19885_v38  ;;  %vm19889_vm15 = vnez %v19888_v35  ;;  %v19894_v41 = vld [vmem:[#allocation177_spill] sm:$0xff]  ;;  %v19899_v38 = vld [vmem:[#allocation11_spill] sm:$0xff] }
 0x450   :  { %19878 = vst [vmem:[#allocation22_spill] sm:$0xff] %v14615_v50  ;;  %19881 = vst [vmem:[#allocation28_spill] sm:$0xff] %v14620_v4  ;;  %v14625_v9 = vsel %vm19883_vm11, %v14317_v47, 0.0  ;;  %v14630_v52 = vsel %vm19886_vm8, %v14322_v63, 0.0  ;;  %v14635_v12 = vsel %vm19889_vm15, %v14327_v19, 0.0  ;;  %vm19892_vm5 = vnez %v19891_v31  ;;  %v19902_v35 = vld [vmem:[#allocation15_spill] sm:$0xff] }
 0x451   :  { %19884 = vst [vmem:[#allocation111_spill] sm:$0xff] %v14625_v9  ;;  %19887 = vst [vmem:[#allocation33_spill] sm:$0xff] %v14630_v52  ;;  %v14640_v58 = vsel %vm19892_vm5, %v14332_v6, 0.0  ;;  %vm19895_vm13 = vnez %v19894_v41  ;;  %vm19897_vm11 = vnez %v19267_v62  ;;  %vm19900_vm8 = vnez %v19899_v38  ;;  %v19905_v40 = vld [vmem:[#allocation77_spill] sm:$0xff]  ;;  %v19908_v41 = vld [vmem:[#allocation80_spill] sm:$0xff] }
 0x452   :  { %19890 = vst [vmem:[#allocation36_spill] sm:$0xff] %v14635_v12  ;;  %19893 = vst [vmem:[#allocation38_spill] sm:$0xff] %v14640_v58  ;;  %v14645_v47 = vsel %vm19895_vm13, %v14337_v32, 0.0  ;;  %v14650_v63 = vsel %vm19897_vm11, %v14342_v22, 0.0  ;;  %v14655_v19 = vsel %vm19900_vm8, %v14347_v7, 0.0  ;;  %vm19903_vm15 = vnez %v19902_v35  ;;  %v19925_v58 = vld [vmem:[#allocation105_spill] sm:$0xff] }
 0x453   :  { %19896 = vst [vmem:[#allocation37_spill] sm:$0xff] %v14645_v47  ;;  %19898 = vst [vmem:[#allocation42_spill] sm:$0xff] %v14650_v63  ;;  %v14660_v6 = vsel %vm19903_vm15, %v14352_v48, 0.0  ;;  %vm19906_vm5 = vnez %v19905_v40  ;;  %vm19909_vm13 = vnez %v19908_v41  ;;  %v19911_v62 = vmax.f32 %v13250_v36, 0.0  ;;  %v19913_v48 = vld [vmem:[#allocation3_spill] sm:$0xff]  ;;  %v19921_v47 = vld [vmem:[#allocation93_spill] sm:$0xff] }
 0x454   :  { %19901 = vst [vmem:[#allocation142_spill] sm:$0xff] %v14655_v19  ;;  %19904 = vst [vmem:[#allocation46_spill] sm:$0xff] %v14660_v6  ;;  %v14665_v32 = vsel %vm19906_vm5, %v14357_v55, 0.0  ;;  %v14670_v22 = vsel %vm19909_vm13, %v14362_v43, 0.0  ;;  %v19912_v38 = vmax.f32 %v13270_v17, 0.0  ;;  %v19914_v31 = vmax.f32 %v19913_v48, 0.0 }
 0x455   :  { %19907 = vst [vmem:[#allocation155_spill] sm:$0xff] %v14665_v32  ;;  %19910 = vst [vmem:[#allocation51_spill] sm:$0xff] %v14670_v22  ;;  %v5006_v7 = vsub.f32 %v19911_v62, %v14251_v24  ;;  %v19915_v55 = vld [vmem:[#allocation64_spill] sm:$0xff]  ;;  %v19917_v43 = vld [vmem:[#allocation2_spill] sm:$0xff]  ;;  %v19922_v48 = vmax.f32 %v19921_v47, 0.0 }
 0x456   :  { %v14678_v35 = vsub.f32 %v19912_v38, %v14251_v24  ;;  %v14683_v40 = vsub.f32 %v19914_v31, %v14251_v24  ;;  %v19916_v44 = vmax.f32 %v19915_v55, 0.0  ;;  %v19918_v63 = vmax.f32 %v19917_v43, 0.0  ;;  %v19919_v62 = vld [vmem:[#allocation75_spill] sm:$0xff]  ;;  %v19923_v22 = vld [vmem:[#allocation92_spill] sm:$0xff]  ;;  %v19929_v52 = vld [vmem:[#allocation118_spill] sm:$0xff] }
 0x457   :  { %v19920_v17 = vmax.f32 %v19919_v62, 0.0  ;;  %v14703_v31 = vsub.f32 %v19922_v48, %v14251_v24  ;;  %v19924_v55 = vmax.f32 %v19923_v22, 0.0  ;;  %v19926_v43 = vmax.f32 %v19925_v58, 0.0  ;;  %v19927_v12 = vld [vmem:[#allocation104_spill] sm:$0xff]  ;;  %v19931_v32 = vld [vmem:[#allocation119_spill] sm:$0xff]  ;;  %v19933_v9 = vld [vmem:[#allocation41_spill] sm:$0xff] }
 0x458   :  { %v14688_v41 = vsub.f32 %v19916_v44, %v14251_v24  ;;  %v14693_v36 = vsub.f32 %v19918_v63, %v14251_v24  ;;  %v19928_v62 = vmax.f32 %v19927_v12, 0.0  ;;  %v19930_v47 = vmax.f32 %v19929_v52, 0.0  ;;  %v19935_v4 = vld [vmem:[#allocation183_spill] sm:$0xff]  ;;  %v19937_v50 = vld [vmem:[#allocation136_spill] sm:$0xff]  ;;  %v19939_v20 = vld [vmem:[#allocation141_spill] sm:$0xff] }
 0x459   :  { %v14698_v38 = vsub.f32 %v19920_v17, %v14251_v24  ;;  %v14708_v44 = vsub.f32 %v19924_v55, %v14251_v24  ;;  %v14713_v63 = vsub.f32 %v19926_v43, %v14251_v24  ;;  %v19932_v22 = vmax.f32 %v19931_v32, 0.0  ;;  %v19941_v30 = vld [vmem:[#allocation149_spill] sm:$0xff]  ;;  %v19944_v6 = vld [vmem:[#allocation154_spill] sm:$0xff]  ;;  %v19954_v34 = vld [vmem:[#allocation167_spill] sm:$0xff] }
 0x45a   :  { %v14718_v17 = vsub.f32 %v19928_v62, %v14251_v24  ;;  %v14723_v48 = vsub.f32 %v19930_v47, %v14251_v24  ;;  %v19934_v58 = vmax.f32 %v19933_v9, 0.0  ;;  %v19936_v12 = vmax.f32 %v19935_v4, 0.0  ;;  %v19947_v19 = vld [vmem:[#allocation69_spill] sm:$0xff] }
 0x45b   :  { %v14728_v55 = vsub.f32 %v19932_v22, %v14251_v24  ;;  %v19938_v52 = vmax.f32 %v19937_v50, 0.0  ;;  %v19940_v32 = vmax.f32 %v19939_v20, 0.0  ;;  %v19942_v9 = vmax.f32 %v19941_v30, 0.0  ;;  %v19948_v39 = vld [vmem:[#allocation85_spill] sm:$0xff] }
 0x45c   :  { %v14733_v43 = vsub.f32 %v19934_v58, %v14251_v24  ;;  %v14738_v62 = vsub.f32 %v19936_v12, %v14251_v24  ;;  %v19945_v4 = vmax.f32 %v19944_v6, 0.0  ;;  %vm19949_vm11 = vnez %v19948_v39  ;;  %v19961_v56 = vld [vmem:[#allocation89_spill] sm:$0xff]  ;;  %v19963_v39 = vld [vmem:[#allocation4_spill] sm:$0xff] }
 0x45d   :  { %v14743_v47 = vsub.f32 %v19938_v52, %v14251_v24  ;;  %v14748_v22 = vsub.f32 %v19940_v32, %v14251_v24  ;;  %v14753_v58 = vsub.f32 %v19942_v9, %v14251_v24  ;;  %v14763_v50 = vsel %vm19949_vm11, %v19947_v19, 0.0  ;;  %v19951_v52 = vld [vmem:[#allocation172_spill] sm:$0xff] }
 0x45e   :  { %v14758_v12 = vsub.f32 %v19945_v4, %v14251_v24  ;;  %19950 = vst [vmem:[#allocation3_spill] sm:$0xff] %v14763_v50  ;;  %v19952_v20 = vmax.f32 %v19951_v52, 0.0  ;;  %v19955_v30 = vmax.f32 %v19954_v34, 0.0  ;;  %vm19962_vm13 = vnez %v19961_v56  ;;  %v19964_v50 = vld [vmem:[#allocation98_spill] sm:$0xff]  ;;  %v19979_v56 = vld [vmem:[#allocation99_spill] sm:$0xff] }
 0x45f   :  { %19943 = vst [vmem:[#allocation175_spill] sm:$0xff] %v14753_v58  ;;  %v19957_v58 = vld [vmem:[#allocation173_spill] sm:$0xff]  ;;  %vm19965_vm11 = vnez %v19964_v50  ;;  %v19983_v50 = vld [vmem:[#allocation102_spill] sm:$0xff] }
 0x460   :  { %19946 = vst [vmem:[#allocation178_spill] sm:$0xff] %v14758_v12  ;;  %v14768_v32 = vsub.f32 %v19952_v20, %v14251_v24  ;;  %v14773_v9 = vsub.f32 %v19955_v30, %v14251_v24  ;;  %v19958_v6 = vmax.f32 %v19957_v58, 0.0  ;;  %v19960_v12 = vld [vmem:[#allocation71_spill] sm:$0xff]  ;;  %v14788_v52 = vsel %vm19965_vm11, %v19963_v39, 0.0  ;;  %v19967_v20 = vld [vmem:[#allocation81_spill] sm:$0xff]  ;;  %v19971_v30 = vld [vmem:[#allocation86_spill] sm:$0xff] }
 0x461   :  { %v14783_v19 = vsel %vm19962_vm13, %v19960_v12, 0.0  ;;  %19966 = vst [vmem:[#allocation93_spill] sm:$0xff] %v14788_v52  ;;  %v19975_v58 = vld [vmem:[#allocation90_spill] sm:$0xff]  ;;  %v19984_v52 = vld [vmem:[#allocation125_spill] sm:$0xff] }
 0x462   :  { %19953 = vst [vmem:[#allocation64_spill] sm:$0xff] %v14768_v32  ;;  %19956 = vst [vmem:[#allocation2_spill] sm:$0xff] %v14773_v9  ;;  %v14778_v4 = vsub.f32 %v19958_v6, %v14251_v24  ;;  %v19968_v32 = vld [vmem:[#allocation101_spill] sm:$0xff]  ;;  %v19972_v9 = vld [vmem:[#allocation112_spill] sm:$0xff]  ;;  %vm19985_vm11 = vnez %v19984_v52 }
 0x463   :  { %vm19969_vm5 = vnez %v19968_v32  ;;  %vm19973_vm15 = vnez %v19972_v9  ;;  %v19976_v6 = vld [vmem:[#allocation115_spill] sm:$0xff]  ;;  %v19987_v32 = vld [vmem:[#allocation113_spill] sm:$0xff]  ;;  %v19991_v9 = vld [vmem:[#allocation116_spill] sm:$0xff] }
 0x464   :  { %19959 = vst [vmem:[#allocation75_spill] sm:$0xff] %v14778_v4  ;;  %v14793_v34 = vsel %vm19969_vm5, %v19967_v20, 0.0  ;;  %v14798_v24 = vsel %vm19973_vm15, %v19971_v30, 0.0  ;;  %vm19977_vm8 = vnez %v19976_v6  ;;  %v19980_v4 = vld [vmem:[#allocation32_spill] sm:$0xff]  ;;  %v14813_v20 = vsel %vm19985_vm11, %v19983_v50, 0.0  ;;  %v19995_v6 = vld [vmem:[#allocation123_spill] sm:$0xff] }
 0x465   :  { %19970 = vst [vmem:[#allocation92_spill] sm:$0xff] %v14793_v34  ;;  %19974 = vst [vmem:[#allocation105_spill] sm:$0xff] %v14798_v24  ;;  %v14803_v12 = vsel %vm19977_vm8, %v19975_v58, 0.0  ;;  %vm19981_vm13 = vnez %v19980_v4  ;;  %v19988_v34 = vld [vmem:[#allocation130_spill] sm:$0xff]  ;;  %v19992_v24 = vld [vmem:[#allocation133_spill] sm:$0xff] }
 0x466   :  { %19978 = vst [vmem:[#allocation104_spill] sm:$0xff] %v14803_v12  ;;  %v14808_v39 = vsel %vm19981_vm13, %v19979_v56, 0.0  ;;  %19986 = vst [vmem:[#allocation119_spill] sm:$0xff] %v14813_v20  ;;  %vm19989_vm5 = vnez %v19988_v34  ;;  %vm19993_vm15 = vnez %v19992_v24  ;;  %v19996_v12 = vld [vmem:[#allocation143_spill] sm:$0xff]  ;;  %v19999_v4 = vld [vmem:[#allocation146_spill] sm:$0xff] }
 0x467   :  { %19982 = vst [vmem:[#allocation118_spill] sm:$0xff] %v14808_v39  ;;  %v14818_v30 = vsel %vm19989_vm5, %v19987_v32, 0.0  ;;  %v14823_v58 = vsel %vm19993_vm15, %v19991_v9, 0.0  ;;  %vm19997_vm8 = vnez %v19996_v12  ;;  %vm20000_vm13 = vnez %v19999_v4  ;;  %v20002_v52 = vld [vmem:[#allocation126_spill] sm:$0xff]  ;;  %v20003_v20 = vld [vmem:[#allocation156_spill] sm:$0xff]  ;;  %v20006_v34 = vld [vmem:[#allocation131_spill] sm:$0xff] }
 0x468   :  { %19990 = vst [vmem:[#allocation41_spill] sm:$0xff] %v14818_v30  ;;  %19994 = vst [vmem:[#allocation183_spill] sm:$0xff] %v14823_v58  ;;  %v14828_v56 = vsel %vm19997_vm8, %v19995_v6, 0.0  ;;  %v14833_v50 = vsel %vm20000_vm13, %v14422_v14, 0.0  ;;  %vm20004_vm11 = vnez %v20003_v20  ;;  %v20007_v30 = vld [vmem:[#allocation159_spill] sm:$0xff]  ;;  %v20009_v24 = vld [vmem:[#allocation176_spill] sm:$0xff] }
 0x469   :  { %19998 = vst [vmem:[#allocation136_spill] sm:$0xff] %v14828_v56  ;;  %20001 = vst [vmem:[#allocation141_spill] sm:$0xff] %v14833_v50  ;;  %v14838_v32 = vsel %vm20004_vm11, %v20002_v52, 0.0  ;;  %vm20008_vm5 = vnez %v20007_v30  ;;  %vm20010_vm15 = vnez %v20009_v24  ;;  %v20011_v12 = vld [vmem:[#allocation179_spill] sm:$0xff]  ;;  %v20013_v4 = vld [vmem:[#allocation52_spill] sm:$0xff] }
 0x46a   :  { %20005 = vst [vmem:[#allocation149_spill] sm:$0xff] %v14838_v32  ;;  %v14843_v9 = vsel %vm20008_vm5, %v20006_v34, 0.0  ;;  %v14848_v6 = vsel %vm20010_vm15, %v14437_v53, 0.0  ;;  %vm20012_vm8 = vnez %v20011_v12  ;;  %vm20014_vm13 = vnez %v20013_v4  ;;  %v20015_v20 = vld [vmem:[#allocation48_spill] sm:$0xff]  ;;  %v20018_v30 = vld [vmem:[#allocation54_spill] sm:$0xff]  ;;  %v20024_v12 = vld [vmem:[#allocation61_spill] sm:$0xff] }
 0x46b   :  { %v14853_v14 = vsel %vm20012_vm8, %v14442_v8, 0.0  ;;  %v14858_v52 = vsel %vm20014_vm13, %v14447_v5, 0.0  ;;  %vm20016_vm11 = vnez %v20015_v20  ;;  %vm20019_vm5 = vnez %v20018_v30  ;;  %v20021_v24 = vld [vmem:[#allocation60_spill] sm:$0xff]  ;;  %v20027_v4 = vld [vmem:[#allocation67_spill] sm:$0xff]  ;;  %v20030_v20 = vld [vmem:[#allocation14_spill] sm:$0xff] }
 0x46c   :  { %v14863_v34 = vsel %vm20016_vm11, %v14468_v51, 0.0  ;;  %v14868_v53 = vsel %vm20019_vm5, %v14473_v33, 0.0  ;;  %vm20022_vm15 = vnez %v20021_v24  ;;  %vm20025_vm8 = vnez %v20024_v12  ;;  %v20032_v30 = vld [vmem:[#allocation83_spill] sm:$0xff]  ;;  %v20034_v24 = vld [vmem:[#allocation16_spill] sm:$0xff] }
 0x46d   :  { %20017 = vst [vmem:[#allocation154_spill] sm:$0xff] %v14863_v34  ;;  %20020 = vst [vmem:[#allocation69_spill] sm:$0xff] %v14868_v53  ;;  %v14873_v8 = vsel %vm20022_vm15, %v14478_v42, 0.0  ;;  %v14878_v5 = vsel %vm20025_vm8, %v14483_v13, 0.0  ;;  %vm20028_vm13 = vnez %v20027_v4  ;;  %vm20031_vm11 = vnez %v20030_v20  ;;  %v20036_v12 = vld [vmem:[#allocation96_spill] sm:$0xff]  ;;  %v20038_v4 = vld [vmem:[#allocation27_spill] sm:$0xff] }
 0x46e   :  { %20023 = vst [vmem:[#allocation172_spill] sm:$0xff] %v14873_v8  ;;  %20026 = vst [vmem:[#allocation167_spill] sm:$0xff] %v14878_v5  ;;  %v14883_v51 = vsel %vm20028_vm13, %v14488_v3, 0.0  ;;  %v14888_v33 = vsel %vm20031_vm11, %v14493_v57, 0.0  ;;  %vm20033_vm5 = vnez %v20032_v30  ;;  %vm20035_vm15 = vnez %v20034_v24  ;;  %v20040_v24 = vld [vmem:[#allocation31_spill] sm:$0xff]  ;;  %v20047_v20 = vld [vmem:[#allocation181_spill] sm:$0xff] }
 0x46f   :  { %20029 = vst [vmem:[#allocation173_spill] sm:$0xff] %v14883_v51  ;;  %v14893_v42 = vsel %vm20033_vm5, %v14498_v16, 0.0  ;;  %v14898_v13 = vsel %vm20035_vm15, %v14503_v46, 0.0  ;;  %vm20037_vm8 = vnez %v20036_v12  ;;  %vm20039_vm13 = vnez %v20038_v4  ;;  %v20042_v12 = vld [vmem:[#allocation110_spill] sm:$0xff]  ;;  %v20044_v4 = vld [vmem:[#allocation180_spill] sm:$0xff] }
 0x470   :  { %v14903_v3 = vsel %vm20037_vm8, %v14508_v18, 0.0  ;;  %v14908_v57 = vsel %vm20039_vm13, %v14513_v10, 0.0  ;;  %v5048_v30 = vmul.f32 %v14451_v11, %v14451_v11  ;;  %v5049_v16 = vmul.f32 %v14455_v49, %v14455_v49  ;;  %v20050_v49 = vld [vmem:[#allocation137_spill] sm:$0xff] }
 0x471   :  { %vm20041_vm15 = vnez %v20040_v24  ;;  %vm20043_vm8 = vnez %v20042_v12  ;;  %vm20045_vm13 = vnez %v20044_v4  ;;  %vm20048_vm5 = vnez %v20047_v20  ;;  %v20052_v24 = vld [vmem:[#allocation140_spill] sm:$0xff]  ;;  %v20054_v12 = vld [vmem:[#allocation150_spill] sm:$0xff] }
 0x472   :  { %v14917_v46 = vsel %vm20041_vm15, %v14518_v54, 0.0  ;;  %v14922_v18 = vsel %vm20043_vm8, %v14523_v15, 0.0  ;;  %v14927_v10 = vsel %vm20045_vm13, %v14528_v1, 0.0  ;;  %v14932_v11 = vsel %vm20048_vm5, %v14533_v59, 0.0  ;;  %v20056_v59 = vld [vmem:[#allocation153_spill] sm:$0xff] }
 0x473   :  { %20046 = vst [vmem:[#allocation71_spill] sm:$0xff] %v14927_v10  ;;  %20049 = vst [vmem:[#allocation4_spill] sm:$0xff] %v14932_v11  ;;  %vm20051_vm11 = vnez %v20050_v49  ;;  %vm20053_vm15 = vnez %v20052_v24  ;;  %vm20055_vm8 = vnez %v20054_v12  ;;  %v5050_v20 = vmul.f32 %v14459_v37, %v14459_v37  ;;  %v20063_v37 = vld [vmem:[#allocation57_spill] sm:$0xff] }
 0x474   :  { %v14937_v54 = vsel %vm20051_vm11, %v14538_v27, 0.0  ;;  %v14942_v15 = vsel %vm20053_vm15, %v14543_v61, 0.0  ;;  %v14947_v1 = vsel %vm20055_vm8, %v14548_v21, 0.0  ;;  %vm20057_vm5 = vnez %v20056_v59  ;;  %v20067_v61 = vld [vmem:[#allocation58_spill] sm:$0xff]  ;;  %v20070_v21 = vld [vmem:[#allocation8_spill] sm:$0xff] }
 0x475   :  { %v14954_v4 = vsel %vm20057_vm5, %v14553_v25, 0.0  ;;  %v14959_v49 = vsel %vm14145_vm9, %v14558_v29, 0.0  ;;  %v14964_v24 = vsel %vm14156_vm0, %v14563_v26, 0.0  ;;  %v14969_v12 = vsel %vm14195_vm4, %v14580_v23, 0.0 }
 0x476   :  { %20060 = vst [vmem:[#allocation81_spill] sm:$0xff] %v14964_v24  ;;  %20062 = vst [vmem:[#allocation86_spill] sm:$0xff] %v14969_v12  ;;  %vm20064_vm13 = vnez %v20063_v37  ;;  %v5051_v25 = vmul.f32 %v14463_v0, %v14463_v0  ;;  %vm20065_vm5 = vcmask 261120   ;;  %vm20068_vm0 = vnez %v20067_v61  ;;  %v20079_v61 = vld [vmem:[#allocation84_spill] sm:$0xff] }
 0x477   :  { %v14973_v59 = vsel %vm20064_vm13, %v5006_v7, 0.0  ;;  %v5069_v29 = vsel %vm20065_vm5, %v5048_v30, 0.0  ;;  %vm20066_vm9 = vmmov %vm20065_vm5  ;;  %v14982_v26 = vsel %vm20068_vm0, %v14678_v35, 0.0  ;;  %vm20071_vm4 = vnez %v20070_v21  ;;  %v20073_v7 = vld [vmem:[#allocation68_spill] sm:$0xff]  ;;  %v20076_v30 = vld [vmem:[#allocation74_spill] sm:$0xff] }
 0x478   :  { %v5070_v27 = vsel %vm20066_vm9, %v5049_v16, 0.0  ;;  %20069 = vst [vmem:[#allocation90_spill] sm:$0xff] %v14982_v26  ;;  %v14987_v23 = vsel %vm20071_vm4, %v14683_v40, 0.0  ;;  %vm20074_vm13 = vnez %v20073_v7  ;;  %vm20077_vm5 = vnez %v20076_v30  ;;  %v20083_v7 = vld [vmem:[#allocation97_spill] sm:$0xff]  ;;  %v20092_v30 = vld [vmem:[#allocation108_spill] sm:$0xff] }
 0x479   :  { %20072 = vst [vmem:[#allocation99_spill] sm:$0xff] %v14987_v23  ;;  %v14992_v37 = vsel %vm20074_vm13, %v14688_v41, 0.0  ;;  %v5071_v0 = vadd.f32 %v5070_v27, %v5069_v29  ;;  %v14997_v16 = vsel %vm20077_vm5, %v14693_v36, 0.0  ;;  %vm20080_vm9 = vnez %v20079_v61  ;;  %v20086_v27 = vld [vmem:[#allocation26_spill] sm:$0xff]  ;;  %v20089_v29 = vld [vmem:[#allocation109_spill] sm:$0xff] }
 0x47a   :  { %20075 = vst [vmem:[#allocation102_spill] sm:$0xff] %v14992_v37  ;;  %20078 = vst [vmem:[#allocation113_spill] sm:$0xff] %v14997_v16  ;;  %v15002_v35 = vsel %vm20080_vm9, %v14698_v38, 0.0  ;;  %v5052_v40 = vmul.f32 %v14567_v2, %v14567_v2  ;;  %vm20082_vm4 = vcmask 261120   ;;  %vm20084_vm13 = vnez %v20083_v7  ;;  %v20095_v7 = vld [vmem:[#allocation122_spill] sm:$0xff] }
 0x47b   :  { %20081 = vst [vmem:[#allocation116_spill] sm:$0xff] %v15002_v35  ;;  %v5072_v21 = vsel %vm20082_vm4, %v5050_v20, 0.0  ;;  %v15010_v41 = vsel %vm20084_vm13, %v14703_v31, 0.0  ;;  %vm20087_vm0 = vnez %v20086_v27  ;;  %vm20090_vm5 = vnez %v20089_v29  ;;  %v20099_v29 = vld [vmem:[#allocation35_spill] sm:$0xff]  ;;  %v20119_v2 = vld [vmem:[#allocation142_spill] sm:$0xff] }
 0x47c   :  { %20085 = vst [vmem:[#allocation123_spill] sm:$0xff] %v15010_v41  ;;  %v15015_v36 = vsel %vm20087_vm0, %v14708_v44, 0.0  ;;  %v15020_v38 = vsel %vm20090_vm5, %v14713_v63, 0.0  ;;  %v5073_v61 = vadd.f32 %v5072_v21, %v5071_v0  ;;  %vm20093_vm9 = vnez %v20092_v30  ;;  %v20102_v0 = vld [vmem:[#allocation182_spill] sm:$0xff]  ;;  %v20105_v21 = vld [vmem:[#allocation184_spill] sm:$0xff]  ;;  %v20108_v30 = vld [vmem:[#allocation45_spill] sm:$0xff] }
 0x47d   :  { %20088 = vst [vmem:[#allocation126_spill] sm:$0xff] %v15015_v36  ;;  %20091 = vst [vmem:[#allocation131_spill] sm:$0xff] %v15020_v38  ;;  %v15025_v20 = vsel %vm20093_vm9, %v14718_v17, 0.0  ;;  %vm20096_vm4 = vnez %v20095_v7  ;;  %v5053_v44 = vmul.f32 %v14571_v45, %v14571_v45  ;;  %vm20098_vm0 = vcmask 261120   ;;  %v20117_v45 = vld [vmem:[#allocation79_spill] sm:$0xff]  ;;  %v20129_v38 = vld [vmem:[#allocation36_spill] sm:$0xff] }
 0x47e   :  { %20094 = vst [vmem:[#allocation188_spill] sm:$0xff] %v15025_v20  ;;  %v15030_v31 = vsel %vm20096_vm4, %v14723_v48, 0.0  ;;  %v5074_v27 = vsel %vm20098_vm0, %v5051_v25, 0.0  ;;  %vm20100_vm5 = vnez %v20099_v29  ;;  %vm20103_vm13 = vnez %v20102_v0  ;;  %v20111_v29 = vld [vmem:[#allocation185_spill] sm:$0xff]  ;;  %v20130_v36 = vld [vmem:[#allocation38_spill] sm:$0xff] }
 0x47f   :  { %20097 = vst [vmem:[#allocation189_spill] sm:$0xff] %v15030_v31  ;;  %v15038_v63 = vsel %vm20100_vm5, %v14728_v55, 0.0  ;;  %v15043_v17 = vsel %vm20103_vm13, %v14733_v43, 0.0  ;;  %vm20106_vm9 = vnez %v20105_v21  ;;  %v5075_v7 = vadd.f32 %v5074_v27, %v5073_v61  ;;  %v20115_v21 = vld [vmem:[#allocation70_spill] sm:$0xff]  ;;  %v20116_v27 = vld [vmem:[#allocation76_spill] sm:$0xff]  ;;  %v20127_v31 = vld [vmem:[#allocation155_spill] sm:$0xff] }
 0x480   :  { %20101 = vst [vmem:[#allocation190_spill] sm:$0xff] %v15038_v63  ;;  %20104 = vst [vmem:[#allocation191_spill] sm:$0xff] %v15043_v17  ;;  %v15048_v48 = vsel %vm20106_vm9, %v14738_v62, 0.0  ;;  %vm20109_vm4 = vnez %v20108_v30  ;;  %vm20112_vm0 = vnez %v20111_v29  ;;  %v5054_v43 = vmul.f32 %v14575_v60, %v14575_v60  ;;  %v20123_v17 = vld [vmem:[#allocation22_spill] sm:$0xff]  ;;  %v20128_v20 = vld [vmem:[#allocation33_spill] sm:$0xff] }
 0x481   :  { %20107 = vst [vmem:[#allocation192_spill] sm:$0xff] %v15048_v48  ;;  %v15053_v25 = vsel %vm20109_vm4, %v14743_v47, 0.0  ;;  %v15058_v55 = vsel %vm20112_vm0, %v14748_v22, 0.0  ;;  %vm20114_vm13 = vcmask 261120   ;;  %v5055_v62 = vmul.f32 %v14585_v28, %v14585_v28  ;;  %v20122_v48 = vld [vmem:[#allocation88_spill] sm:$0xff] }
 0x482   :  { %20110 = vst [vmem:[#allocation193_spill] sm:$0xff] %v15053_v25  ;;  %20113 = vst [vmem:[#allocation194_spill] sm:$0xff] %v15058_v55  ;;  %v5076_v0 = vsel %vm20114_vm13, %v5052_v40, 0.0  ;;  %v5056_v61 = vmul.f32 %v20115_v21, %v20115_v21  ;;  %v5057_v47 = vmul.f32 %v20116_v27, %v20116_v27  ;;  %v5058_v29 = vmul.f32 %v20117_v45, %v20117_v45  ;;  %v20120_v55 = vld [vmem:[#allocation46_spill] sm:$0xff]  ;;  %v20121_v25 = vld [vmem:[#allocation23_spill] sm:$0xff] }
 0x483   :  { %v5077_v30 = vadd.f32 %v5076_v0, %v5075_v7  ;;  %vm20118_vm0 = vmmov %vm20114_vm13  ;;  %v5117_v60 = vmul.f32 %v20119_v2, %v20119_v2  ;;  %v5118_v40 = vmul.f32 %v20120_v55, %v20120_v55  ;;  %v5059_v28 = vmul.f32 %v20121_v25, %v20121_v25  ;;  %v20124_v27 = vld [vmem:[#allocation28_spill] sm:$0xff] }
 0x484   :  { %v5078_v22 = vsel %vm20118_vm0, %v5053_v44, 0.0  ;;  %v5060_v21 = vmul.f32 %v20122_v48, %v20122_v48  ;;  %v5061_v7 = vmul.f32 %v20123_v17, %v20123_v17  ;;  %v5062_v45 = vmul.f32 %v20124_v27, %v20124_v27  ;;  %v20125_v44 = vld [vmem:[#allocation111_spill] sm:$0xff]  ;;  %vm20126_vm13 = vmmov %vm20118_vm0 }
 0x485   :  { %v5079_v0 = vadd.f32 %v5078_v22, %v5077_v30  ;;  %v5063_v63 = vmul.f32 %v20125_v44, %v20125_v44  ;;  %v5080_v2 = vsel %vm20126_vm13, %v5054_v43, 0.0  ;;  %v5119_v55 = vmul.f32 %v20127_v31, %v20127_v31  ;;  %v20131_v17 = vld [vmem:[#allocation51_spill] sm:$0xff]  ;;  %vm20132_vm4 = vmmov %vm20118_vm0  ;;  %v20134_v31 = vld [vmem:[#allocation37_spill] sm:$0xff] }
 0x486   :  { %v5064_v25 = vmul.f32 %v20128_v20, %v20128_v20  ;;  %v5065_v48 = vmul.f32 %v20129_v38, %v20129_v38  ;;  %v5066_v30 = vmul.f32 %v20130_v36, %v20130_v36  ;;  %v5082_v27 = vsel %vm20118_vm0, %v5055_v62, 0.0  ;;  %vm20133_vm13 = vmmov %vm20118_vm0  ;;  %v20135_v20 = vld [vmem:[#allocation42_spill] sm:$0xff]  ;;  %v20138_v62 = vld [vmem:[#allocation3_spill] sm:$0xff] }
 0x487   :  { %v5081_v22 = vadd.f32 %v5080_v2, %v5079_v0  ;;  %v5120_v44 = vmul.f32 %v20131_v17, %v20131_v17  ;;  %v5138_v43 = vsel %vm20132_vm4, %v5117_v60, 0.0  ;;  %v5139_v41 = vsel %vm20133_vm13, %v5118_v40, 0.0  ;;  %vm20136_vm9 = vmmov %vm20118_vm0 }
 0x488   :  { %v5067_v35 = vmul.f32 %v20134_v31, %v20134_v31  ;;  %v5068_v16 = vmul.f32 %v20135_v20, %v20135_v20  ;;  %v5140_v12 = vadd.f32 %v5139_v41, %v5138_v43  ;;  %v5084_v36 = vsel %vm20136_vm9, %v5056_v61, 0.0  ;;  %vm20137_vm5 = vmmov %vm20118_vm0 }
 0x489   :  { %v5083_v38 = vadd.f32 %v5082_v27, %v5081_v22  ;;  %v5086_v2 = vsel %vm20137_vm5, %v5057_v47, 0.0  ;;  %v5121_v0 = vmul.f32 %v20138_v62, %v20138_v62  ;;  %v5141_v17 = vsel %vm20118_vm0, %v5119_v55, 0.0  ;;  %vm20139_vm4 = vmmov %vm20118_vm0 }
 0x48a   :  { %v5088_v40 = vsel %vm20139_vm4, %v5058_v29, 0.0  ;;  %vm20140_vm13 = vmmov %vm20118_vm0  ;;  %v5142_v31 = vadd.f32 %v5141_v17, %v5140_v12  ;;  %v5122_v41 = vmul.f32 %v14783_v19, %v14783_v19  ;;  %v5100_v29 = vsel %vm20118_vm0, %v5064_v25, 0.0  ;;  %v20147_v12 = vld [vmem:[#allocation93_spill] sm:$0xff] }
 0x48b   :  { %v5085_v60 = vadd.f32 %v5084_v36, %v5083_v38  ;;  %v5090_v37 = vsel %vm20140_vm13, %v5059_v28, 0.0  ;;  %vm20141_vm8 = vmmov %vm20118_vm0  ;;  %v5123_v38 = vmul.f32 %v20147_v12, %v20147_v12  ;;  %v20153_v25 = vld [vmem:[#allocation105_spill] sm:$0xff] }
 0x48c   :  { %v5092_v24 = vsel %vm20141_vm8, %v5060_v21, 0.0  ;;  %vm20142_vm15 = vmmov %vm20118_vm0  ;;  %v5125_v43 = vmul.f32 %v20153_v25, %v20153_v25 }
 0x48d   :  { %v5094_v27 = vsel %vm20142_vm15, %v5061_v7, 0.0  ;;  %vm20143_vm9 = vmmov %vm20118_vm0  ;;  %v5087_v47 = vadd.f32 %v5086_v2, %v5085_v60  ;;  %v20155_v60 = vld [vmem:[#allocation104_spill] sm:$0xff] }
 0x48e   :  { %v5143_v61 = vsel %vm20143_vm9, %v5120_v44, 0.0  ;;  %vm20144_vm5 = vmmov %vm20118_vm0 }
 0x48f   :  { %v5096_v22 = vsel %vm20144_vm5, %v5062_v45, 0.0  ;;  %vm20145_vm11 = vmmov %vm20118_vm0  ;;  %v5144_v36 = vadd.f32 %v5143_v61, %v5142_v31  ;;  %v5089_v21 = vadd.f32 %v5088_v40, %v5087_v47  ;;  %v20156_v61 = vld [vmem:[#allocation119_spill] sm:$0xff] }
 0x490   :  { %v5098_v55 = vsel %vm20145_vm11, %v5063_v63, 0.0  ;;  %vm20146_vm4 = vmmov %vm20118_vm0  ;;  %vm20151_vm11 = vcmask 254976   ;;  %v20152_v63 = vld [vmem:[#allocation92_spill] sm:$0xff] }
 0x491   :  { %v15120_v28 = vsel %vm20146_vm4, %v5065_v48, 0.0  ;;  %vm20148_vm8 = vmmov %vm20118_vm0  ;;  %v15132_v31 = vsel %vm20151_vm11, %v5068_v16, 0.0  ;;  %v5124_v48 = vmul.f32 %v20152_v63, %v20152_v63  ;;  %v5128_v16 = vmul.f32 %v20156_v61, %v20156_v61 }
 0x492   :  { %v5145_v17 = vsel %vm20148_vm8, %v5121_v0, 0.0  ;;  %vm20149_vm15 = vmmov %vm20118_vm0  ;;  %v5091_v0 = vadd.f32 %v5090_v37, %v5089_v21  ;;  %v20158_v37 = vld [vmem:[#allocation41_spill] sm:$0xff] }
 0x493   :  { %v15126_v7 = vsel %vm20149_vm15, %v5066_v30, 0.0  ;;  %vm20150_vm13 = vmmov %vm20118_vm0  ;;  %v5146_v45 = vadd.f32 %v5145_v17, %v5144_v36  ;;  %v5126_v30 = vmul.f32 %v20155_v60, %v20155_v60  ;;  %v5186_v36 = vmul.f32 %v14863_v34, %v14863_v34 }
 0x494   :  { %v15129_v44 = vsel %vm20150_vm13, %v5067_v35, 0.0  ;;  %vm20154_vm9 = vmmov %vm20118_vm0  ;;  %v5127_v35 = vmul.f32 %v14808_v39, %v14808_v39  ;;  %v5187_v17 = vmul.f32 %v14868_v53, %v14868_v53  ;;  %v5129_v21 = vmul.f32 %v20158_v37, %v20158_v37 }
 0x495   :  { %v5147_v2 = vsel %vm20154_vm9, %v5122_v41, 0.0  ;;  %vm20157_vm5 = vmmov %vm20118_vm0  ;;  %v5093_v41 = vadd.f32 %v5092_v24, %v5091_v0  ;;  %v5130_v60 = vmul.f32 %v14823_v58, %v14823_v58  ;;  %v5188_v34 = vmul.f32 %v14873_v8, %v14873_v8 }
 0x496   :  { %v5148_v40 = vadd.f32 %v5147_v2, %v5146_v45  ;;  %v5149_v47 = vsel %vm20157_vm5, %v5123_v38, 0.0  ;;  %v5131_v45 = vmul.f32 %v14828_v56, %v14828_v56  ;;  %v5132_v38 = vmul.f32 %v14833_v50, %v14833_v50  ;;  %vm20159_vm4 = vmmov %vm20118_vm0 }
 0x497   :  { %v5151_v2 = vsel %vm20118_vm0, %v5124_v48, 0.0  ;;  %v5095_v53 = vadd.f32 %v5094_v27, %v5093_v41  ;;  %v5133_v24 = vmul.f32 %v14838_v32, %v14838_v32  ;;  %v5134_v0 = vmul.f32 %v14843_v9, %v14843_v9  ;;  %vm20160_vm8 = vmmov %vm20118_vm0 }
 0x498   :  { %v5150_v39 = vadd.f32 %v5149_v47, %v5148_v40  ;;  %v5153_v40 = vsel %vm20159_vm4, %v5125_v43, 0.0  ;;  %v5189_v47 = vmul.f32 %v14878_v5, %v14878_v5  ;;  %v5207_v50 = vsel %vm20160_vm8, %v5186_v36, 0.0  ;;  %vm20161_vm15 = vmmov %vm20118_vm0 }
 0x499   :  { %v5208_v48 = vsel %vm20161_vm15, %v5187_v17, 0.0  ;;  %v5097_v56 = vadd.f32 %v5096_v22, %v5095_v53  ;;  %v5135_v27 = vmul.f32 %v14848_v6, %v14848_v6  ;;  %v5136_v32 = vmul.f32 %v14853_v14, %v14853_v14  ;;  %vm20162_vm13 = vmmov %vm20118_vm0 }
 0x49a   :  { %v5152_v58 = vadd.f32 %v5151_v2, %v5150_v39  ;;  %v5209_v8 = vadd.f32 %v5208_v48, %v5207_v50  ;;  %v5155_v39 = vsel %vm20162_vm13, %v5126_v30, 0.0  ;;  %v5190_v43 = vmul.f32 %v14883_v51, %v14883_v51  ;;  %vm20163_vm11 = vmmov %vm20118_vm0 }
 0x49b   :  { %v5210_v2 = vsel %vm20163_vm11, %v5188_v34, 0.0  ;;  %v5099_v5 = vadd.f32 %v5098_v55, %v5097_v56  ;;  %v5137_v36 = vmul.f32 %v14858_v52, %v14858_v52  ;;  %vm20164_vm9 = vmmov %vm20118_vm0  ;;  %v5191_v50 = vmul.f32 %v14888_v33, %v14888_v33 }
 0x49c   :  { %v5154_v41 = vadd.f32 %v5153_v40, %v5152_v58  ;;  %v5211_v22 = vadd.f32 %v5210_v2, %v5209_v8  ;;  %v5157_v17 = vsel %vm20164_vm9, %v5127_v35, 0.0  ;;  %vm20165_vm5 = vmmov %vm20118_vm0  ;;  %v5212_v30 = vsel %vm20118_vm0, %v5189_v47, 0.0 }
 0x49d   :  { %v5159_v58 = vsel %vm20165_vm5, %v5128_v16, 0.0  ;;  %vm20166_vm4 = vmmov %vm20118_vm0  ;;  %v5101_v55 = vadd.f32 %v5100_v29, %v5099_v5  ;;  %v5192_v8 = vmul.f32 %v14893_v42, %v14893_v42  ;;  %v5193_v5 = vmul.f32 %v14898_v13, %v14898_v13 }
 0x49e   :  { %v5156_v53 = vadd.f32 %v5155_v39, %v5154_v41  ;;  %v5161_v48 = vsel %vm20166_vm4, %v5129_v21, 0.0  ;;  %vm20167_vm8 = vmmov %vm20118_vm0  ;;  %v5213_v56 = vadd.f32 %v5212_v30, %v5211_v22  ;;  %v5173_v21 = vsel %vm20118_vm0, %v5135_v27, 0.0 }
 0x49f   :  { %v5163_v34 = vsel %vm20167_vm8, %v5130_v60, 0.0  ;;  %vm20168_vm15 = vmmov %vm20118_vm0  ;;  %v5195_v27 = vmul.f32 %v14908_v57, %v14908_v57  ;;  %v5255_v30 = vmul.f32 %v14973_v59, %v14973_v59 }
 0x4a0   :  { %v5158_v40 = vadd.f32 %v5157_v17, %v5156_v53  ;;  %v5165_v51 = vsel %vm20168_vm15, %v5131_v45, 0.0  ;;  %vm20169_vm13 = vmmov %vm20118_vm0  ;;  %vm20175_vm15 = vcmask 254976   ;;  %v5196_v17 = vmul.f32 %v14917_v46, %v14917_v46 }
 0x4a1   :  { %v5214_v35 = vsel %vm20169_vm13, %v5190_v43, 0.0  ;;  %vm20170_vm11 = vmmov %vm20118_vm0  ;;  %v15202_v43 = vsel %vm20175_vm15, %v5137_v36, 0.0 }
 0x4a2   :  { %v5160_v16 = vadd.f32 %v5159_v58, %v5158_v40  ;;  %v5167_v41 = vsel %vm20170_vm11, %v5132_v38, 0.0  ;;  %vm20171_vm9 = vmmov %vm20118_vm0  ;;  %v5215_v47 = vadd.f32 %v5214_v35, %v5213_v56  ;;  %v5198_v58 = vmul.f32 %v14927_v10, %v14927_v10 }
 0x4a3   :  { %v5169_v39 = vsel %vm20171_vm9, %v5133_v24, 0.0  ;;  %vm20172_vm5 = vmmov %vm20118_vm0  ;;  %v5103_v24 = vadd.f32 %v15120_v28, %v5101_v55  ;;  %v5199_v28 = vmul.f32 %v14932_v11, %v14932_v11  ;;  %v5256_v56 = vmul.f32 %v14982_v26, %v14982_v26 }
 0x4a4   :  { %v5171_v2 = vsel %vm20172_vm5, %v5134_v0, 0.0  ;;  %vm20173_vm4 = vmmov %vm20118_vm0  ;;  %v5162_v60 = vadd.f32 %v5161_v48, %v5160_v16  ;;  %v5194_v0 = vmul.f32 %v14903_v3, %v14903_v3  ;;  %v5200_v48 = vmul.f32 %v14937_v54, %v14937_v54 }
 0x4a5   :  { %v5216_v29 = vsel %vm20173_vm4, %v5191_v50, 0.0  ;;  %vm20174_vm8 = vmmov %vm20118_vm0  ;;  %v5105_v55 = vadd.f32 %v15126_v7, %v5103_v24  ;;  %v5202_v35 = vmul.f32 %v14947_v1, %v14947_v1  ;;  %v20179_v7 = vld [vmem:[#allocation81_spill] sm:$0xff] }
 0x4a6   :  { %v15199_v45 = vsel %vm20174_vm8, %v5136_v32, 0.0  ;;  %v5217_v38 = vadd.f32 %v5216_v29, %v5215_v47  ;;  %vm20176_vm13 = vmmov %vm20118_vm0  ;;  %v5164_v22 = vadd.f32 %v5163_v34, %v5162_v60  ;;  %v5197_v32 = vmul.f32 %v14922_v18, %v14922_v18 }
 0x4a7   :  { %v5218_v53 = vsel %vm20176_vm13, %v5192_v8, 0.0  ;;  %vm20177_vm11 = vmmov %vm20118_vm0  ;;  %v5201_v8 = vmul.f32 %v14942_v15, %v14942_v15  ;;  %v5257_v29 = vmul.f32 %v14987_v23, %v14987_v23  ;;  %v5204_v60 = vmul.f32 %v14959_v49, %v14959_v49 }
 0x4a8   :  { %v5219_v36 = vadd.f32 %v5218_v53, %v5217_v38  ;;  %v5220_v50 = vsel %vm20177_vm11, %v5193_v5, 0.0  ;;  %v5166_v40 = vadd.f32 %v5165_v51, %v5164_v22  ;;  %vm20178_vm9 = vmmov %vm20118_vm0  ;;  %v5203_v51 = vmul.f32 %v14954_v4, %v14954_v4 }
 0x4a9   :  { %v5222_v16 = vsel %vm20178_vm9, %v5194_v0, 0.0  ;;  %v5205_v38 = vmul.f32 %v20179_v7, %v20179_v7  ;;  %vm20180_vm5 = vmmov %vm20118_vm0  ;;  %v5276_v53 = vsel %vm20118_vm0, %v5255_v30, 0.0 }
 0x4aa   :  { %v5221_v34 = vadd.f32 %v5220_v50, %v5219_v36  ;;  %v5168_v47 = vadd.f32 %v5167_v41, %v5166_v40  ;;  %v5224_v24 = vsel %vm20180_vm5, %v5195_v27, 0.0  ;;  %v20181_v41 = vld [vmem:[#allocation102_spill] sm:$0xff]  ;;  %vm20182_vm4 = vmmov %vm20118_vm0  ;;  %v5107_v40 = vadd.f32 %v15129_v44, %v5105_v55  ;;  %v20185_v27 = vld [vmem:[#allocation113_spill] sm:$0xff] }
 0x4ab   :  { %v5258_v36 = vmul.f32 %v20181_v41, %v20181_v41  ;;  %v5277_v50 = vsel %vm20182_vm4, %v5256_v56, 0.0  ;;  %vm20184_vm8 = vmmov %vm20118_vm0  ;;  %v5259_v30 = vmul.f32 %v20185_v27, %v20185_v27  ;;  %v20191_v41 = vld [vmem:[#allocation116_spill] sm:$0xff] }
 0x4ac   :  { %v5223_v5 = vadd.f32 %v5222_v16, %v5221_v34  ;;  %v5170_v22 = vadd.f32 %v5169_v39, %v5168_v47  ;;  %v20183_v34 = vld [vmem:[#allocation86_spill] sm:$0xff]  ;;  %v5226_v11 = vsel %vm20184_vm8, %v5196_v17, 0.0  ;;  %v5278_v10 = vadd.f32 %v5277_v50, %v5276_v53  ;;  %vm20186_vm15 = vmmov %vm20118_vm0 }
 0x4ad   :  { %v5206_v16 = vmul.f32 %v20183_v34, %v20183_v34  ;;  %v5279_v39 = vsel %vm20186_vm15, %v5257_v29, 0.0  ;;  %vm20187_vm13 = vmmov %vm20118_vm0  ;;  %v5260_v17 = vmul.f32 %v20191_v41, %v20191_v41  ;;  %v20193_v29 = vld [vmem:[#allocation123_spill] sm:$0xff] }
 0x4ae   :  { %v5225_v0 = vadd.f32 %v5224_v24, %v5223_v5  ;;  %v5172_v23 = vadd.f32 %v5171_v2, %v5170_v22  ;;  %v5228_v47 = vsel %vm20187_vm13, %v5197_v32, 0.0  ;;  %vm20188_vm11 = vmmov %vm20118_vm0  ;;  %v5280_v44 = vadd.f32 %v5279_v39, %v5278_v10 }
 0x4af   :  { %v5230_v5 = vsel %vm20188_vm11, %v5198_v58, 0.0  ;;  %vm20189_vm9 = vmmov %vm20118_vm0  ;;  %v5109_v2 = vadd.f32 %v15132_v31, %v5107_v40  ;;  %v5261_v32 = vmul.f32 %v20193_v29, %v20193_v29 }
 0x4b0   :  { %v5227_v26 = vadd.f32 %v5226_v11, %v5225_v0  ;;  %v5232_v56 = vsel %vm20189_vm9, %v5199_v28, 0.0  ;;  %vm20190_vm5 = vmmov %vm20118_vm0  ;;  %v5281_v11 = vsel %vm20118_vm0, %v5258_v36, 0.0  ;;  %v5174_v58 = vadd.f32 %v5173_v21, %v5172_v23  ;;  %v20194_v28 = vld [vmem:[#allocation126_spill] sm:$0xff]  ;;  %v20198_v36 = vld [vmem:[#allocation131_spill] sm:$0xff] }
 0x4b1   :  { %v5234_v24 = vsel %vm20190_vm5, %v5200_v48, 0.0  ;;  %vm20192_vm4 = vmmov %vm20118_vm0  ;;  %v5282_v22 = vadd.f32 %v5281_v11, %v5280_v44  ;;  %v5262_v10 = vmul.f32 %v20194_v28, %v20194_v28  ;;  %v5263_v31 = vmul.f32 %v20198_v36, %v20198_v36  ;;  %v20203_v44 = vld [vmem:[#allocation188_spill] sm:$0xff] }
 0x4b2   :  { %v5229_v55 = vadd.f32 %v5228_v47, %v5227_v26  ;;  %v5236_v53 = vsel %vm20192_vm4, %v5201_v8, 0.0  ;;  %vm20195_vm8 = vmmov %vm20118_vm0  ;;  %v5110_v21 = vrot.slane %v5109_v2, 4  ;;  %v5287_v11 = vsel %vm20192_vm4, %v5261_v32, 0.0 }
 0x4b3   :  { %v5283_v26 = vsel %vm20195_vm8, %v5259_v30, 0.0  ;;  %vm20196_vm15 = vmmov %vm20118_vm0  ;;  %v5264_v30 = vmul.f32 %v20203_v44, %v20203_v44 }
 0x4b4   :  { %v5231_v0 = vadd.f32 %v5230_v5, %v5229_v55  ;;  %v5238_v48 = vsel %vm20196_vm15, %v5202_v35, 0.0  ;;  %vm20197_vm13 = vmmov %vm20118_vm0  ;;  %v5284_v40 = vadd.f32 %v5283_v26, %v5282_v22  ;;  %v20207_v26 = vld [vmem:[#allocation190_spill] sm:$0xff] }
 0x4b5   :  { %v5240_v50 = vsel %vm20197_vm13, %v5203_v51, 0.0  ;;  %vm20199_vm11 = vmmov %vm20118_vm0  ;;  %v5176_v51 = vadd.f32 %v15199_v45, %v5174_v58  ;;  %v20208_v58 = vld [vmem:[#allocation191_spill] sm:$0xff] }
 0x4b6   :  { %v5233_v8 = vadd.f32 %v5232_v56, %v5231_v0  ;;  %v5242_v39 = vsel %vm20199_vm11, %v5204_v60, 0.0  ;;  %vm20200_vm9 = vmmov %vm20118_vm0 }
 0x4b7   :  { %v5244_v47 = vsel %vm20200_vm9, %v5205_v38, 0.0  ;;  %vm20201_vm5 = vmmov %vm20118_vm0  ;;  %vm20202_vm0 = vcmask 254976   ;;  %v7868_v38 = vld [vmem:[%s17526_s5 + $0x88] sm:$0xff]  }
 0x4b8   :  { %v5285_v23 = vsel %vm20201_vm5, %v5260_v17, 0.0  ;;  %v5246_v5 = vsel %vm20202_vm0, %v5206_v16, 0.0  ;;  %v5235_v55 = vadd.f32 %v5234_v24, %v5233_v8  ;;  %vm20204_vm8 = vmmov %vm20192_vm4  ;;  %v20206_v16 = vld [vmem:[#allocation189_spill] sm:$0xff]  ;;  %7710 = vmatpush3.bf16.msra.mxu1 %v7868_v38  ;;  %v5178_v24 = vadd.f32 %v15202_v43, %v5176_v51  ;;  %v20214_v38 = vld [vmem:[#allocation192_spill] sm:$0xff] }
 0x4b9   :  { %v5286_v35 = vadd.f32 %v5285_v23, %v5284_v40  ;;  %v5289_v56 = vsel %vm20204_vm8, %v5262_v10, 0.0  ;;  %vm20205_vm15 = vmmov %vm20192_vm4  ;;  %v5265_v0 = vmul.f32 %v20206_v16, %v20206_v16  ;;  %v5266_v40 = vmul.f32 %v20207_v26, %v20207_v26 }
 0x4ba   :  { %v5291_v60 = vsel %vm20205_vm15, %v5263_v31, 0.0  ;;  %v5237_v17 = vadd.f32 %v5236_v53, %v5235_v55  ;;  %v5267_v10 = vmul.f32 %v20208_v58, %v20208_v58  ;;  %vm20209_vm13 = vmmov %vm20192_vm4  ;;  %v20210_v8 = vmov 0.0   ;;  %v7869_v53 = vld [vmem:[%s17526_s5 + $0x80] sm:$0xff]   ;;  %v20215_v58 = vld [vmem:[#allocation193_spill] sm:$0xff] }
 0x4bb   :  { %v5288_v22 = vadd.f32 %v5287_v11, %v5286_v35  ;;  %v5293_v31 = vsel %vm20209_vm13, %v5264_v30, 0.0  ;;  %7711 = vmatprep.subr.bf16.mxu1 %v20210_v8  ;;  %vm20211_vm11 = vmmov %vm20192_vm4  ;;  %v5179_v43 = vrot.slane %v5178_v24, 4 }
 0x4bc   :  { %v5239_v32 = vadd.f32 %v5238_v48, %v5237_v17  ;;  %v5295_v11 = vsel %vm20211_vm11, %v5265_v0, 0.0  ;;  %vm20212_vm9 = vmmov %vm20192_vm4  ;;  %7712 = vmatpush3.bf16.msra.mxu1 %v7869_v53  ;;  %v5268_v17 = vmul.f32 %v20214_v38, %v20214_v38  ;;  %v20222_v53 = vld [vmem:[#allocation186_spill] sm:$0xff] }
 0x4bd   :  { %v5290_v45 = vadd.f32 %v5289_v56, %v5288_v22  ;;  %v5297_v56 = vsel %vm20212_vm9, %v5266_v40, 0.0  ;;  %vm20213_vm5 = vmmov %vm20192_vm4  ;;  %vm20223_vm8 = vnez %v20222_v53 }
 0x4be   :  { %v5241_v35 = vadd.f32 %v5240_v50, %v5239_v32  ;;  %v5299_v51 = vsel %vm20213_vm5, %v5267_v10, 0.0  ;;  %v20216_v50 = vld [vmem:[#allocation175_spill] sm:$0xff]  ;;  %v5301_v10 = vsel %vm20192_vm4, %v5268_v17, 0.0  ;;  %vm20225_vm15 = vmmov %vm20192_vm4 }
 0x4bf   :  { %v5292_v23 = vadd.f32 %v5291_v60, %v5290_v45  ;;  %v5269_v60 = vmul.f32 %v20215_v58, %v20215_v58  ;;  %v20217_v45 = vld [vmem:[#allocation49_spill] sm:$0xff]  ;;  %vm20229_vm13 = vmmov %vm20192_vm4 }
 0x4c0   :  { %v5243_v48 = vadd.f32 %v5242_v39, %v5241_v35  ;;  %vm20218_vm0 = vnez %v20217_v45  ;;  %v5111_v35 = vadd.f32 %v5110_v21, %v5109_v2  ;;  %v20230_v2 = vld [vmem:[#allocation2_spill] sm:$0xff]  ;;  %vm20233_vm11 = vmmov %vm20192_vm4 }
 0x4c1   :  { %v5294_v55 = vadd.f32 %v5293_v31, %v5292_v23  ;;  %v15304_v0 = vsel %vm20218_vm0, %v20216_v50, 0.0  ;;  %v20220_v31 = vld [vmem:[#allocation194_spill] sm:$0xff]  ;;  %vm20236_vm9 = vmmov %vm20192_vm4 }
 0x4c2   :  { %v5245_v30 = vadd.f32 %v5244_v47, %v5243_v48  ;;  %20219 = vst [vmem:[#allocation42_spill] sm:$0xff] %v15304_v0  ;;  %v5270_v39 = vmul.f32 %v20220_v31, %v20220_v31  ;;  %v20221_v47 = vld [vmem:[#allocation178_spill] sm:$0xff]  ;;  %v5303_v48 = vsel %vm20225_vm15, %v5269_v60, 0.0  ;;  %vm20237_vm5 = vmmov %vm20192_vm4  ;;  %vm20238_vm15 = vcmask 254976  }
 0x4c3   :  { %v5296_v22 = vadd.f32 %v5295_v11, %v5294_v55  ;;  %v15312_v23 = vsel %vm20223_vm8, %v20221_v47, 0.0  ;;  %v5180_v55 = vadd.f32 %v5179_v43, %v5178_v24  ;;  %v15328_v24 = vsel %vm14220_vm12, %v20230_v2, 0.0 }
 0x4c4   :  { %v5247_v40 = vadd.f32 %v5246_v5, %v5245_v30  ;;  %20224 = vst [vmem:[#allocation3_spill] sm:$0xff] %v15312_v23  ;;  %v20226_v5 = vld [vmem:[#allocation64_spill] sm:$0xff]  ;;  %v5272_v17 = vmul.f32 %v15312_v23, %v15312_v23  ;;  %v5305_v50 = vsel %vm20229_vm13, %v5270_v39, 0.0  ;;  %20232 = vst [vmem:[#allocation92_spill] sm:$0xff] %v15328_v24  ;;  %v5112_v43 = vrot.slane %v5111_v35, 2 }
 0x4c5   :  { %v5298_v8 = vadd.f32 %v5297_v56, %v5296_v22  ;;  %v5271_v56 = vmul.f32 %v15304_v0, %v15304_v0  ;;  %v5274_v39 = vmul.f32 %v15328_v24, %v15328_v24 }
 0x4c6   :  { %v5248_v22 = vrot.slane %v5247_v40, 4  ;;  %v5309_v2 = vsel %vm20236_vm9, %v5272_v17, 0.0  ;;  %v5113_v21 = vadd.f32 %v5112_v43, %v5111_v35 }
 0x4c7   :  { %v5300_v32 = vadd.f32 %v5299_v51, %v5298_v8  ;;  %v15320_v51 = vsel %vm14182_vm6, %v20226_v5, 0.0  ;;  %v5307_v47 = vsel %vm20233_vm11, %v5271_v56, 0.0  ;;  %v20234_v5 = vld [vmem:[#allocation75_spill] sm:$0xff]  ;;  %v5313_v56 = vsel %vm20192_vm4, %v5274_v39, 0.0 }
 0x4c8   :  { %20228 = vst [vmem:[#allocation93_spill] sm:$0xff] %v15320_v51  ;;  %v5249_v8 = vadd.f32 %v5248_v22, %v5247_v40  ;;  %v5114_v31 = vrot.slane %v5113_v21, 1 }
 0x4c9   :  { %v5302_v11 = vadd.f32 %v5301_v10, %v5300_v32  ;;  %v5181_v32 = vrot.slane %v5180_v55, 2  ;;  %v5273_v10 = vmul.f32 %v15320_v51, %v15320_v51 }
 0x4ca   :  { %v5250_v51 = vrot.slane %v5249_v8, 2 }
 0x4cb   :  { %v5304_v30 = vadd.f32 %v5303_v48, %v5302_v11  ;;  %v5047_v48 = vsel %vm14240_vm1, %v20234_v5, 0.0  ;;  %v5182_v45 = vadd.f32 %v5181_v32, %v5180_v55 }
 0x4cc   :  { %v5251_v22 = vadd.f32 %v5250_v51, %v5249_v8 }
 0x4cd   :  { %v5306_v60 = vadd.f32 %v5305_v50, %v5304_v30  ;;  %v5275_v30 = vmul.f32 %v5047_v48, %v5047_v48  ;;  %v5311_v50 = vsel %vm20237_vm5, %v5273_v10, 0.0  ;;  %v5183_v11 = vrot.slane %v5182_v45, 1 }
 0x4ce   :  { %v5252_v35 = vrot.slane %v5251_v22, 1 }
 0x4cf   :  { %v5308_v53 = vadd.f32 %v5307_v47, %v5306_v60  ;;  %v5315_v40 = vsel %vm20238_vm15, %v5275_v30, 0.0  ;;  %v5115_v47 = vadd.f32 %v5114_v31, %v5113_v21  ;;  %v5184_v24 = vadd.f32 %v5183_v11, %v5182_v45  ;;  %v20239_v31 = vld [vmem:[#allocation59_spill] sm:$0xff]  ;;  %v20241_v11 = vld [vmem:[#allocation134_spill] sm:$0xff] }
 0x4d0   :  { %v5253_v32 = vadd.f32 %v5252_v35, %v5251_v22  ;;  %v18374_v45 = vsub.s32 0, %v20239_v31  ;;  %v20246_v35 = vld [vmem:[#allocation174_spill] sm:$0xff] }
 0x4d1   :  { %v5310_v23 = vadd.f32 %v5309_v2, %v5308_v53  ;;  %v5185_v53 = vadd.f32 %v5184_v24, %v5115_v47  ;;  %v15353_v24 = vld [vmem:[%s17528_s4] ss:$0 sm:$0xff] }
 0x4d3   :  { %v5312_v0 = vadd.f32 %v5311_v50, %v5310_v23  ;;  %v5254_v2 = vadd.f32 %v5253_v32, %v5185_v53  ;;  %v20247_v53 = vld [vmem:[#allocation55_spill] sm:$0xff]  ;;  %v20248_v32 = vld [vmem:[#allocation9_spill] sm:$0xff] }
 0x4d5   :  { %v5314_v5 = vadd.f32 %v5313_v56, %v5312_v0  ;;  %v5327_v0 = vld [vmem:[%s17527_s3] sm:$0x1]  ;;  %v20242_v56 = vld [vmem:[#allocation144_spill] sm:$0xff] }
 0x4d7   :  { %v5316_v60 = vadd.f32 %v5315_v40, %v5314_v5  ;;  %v20243_v40 = vld [vmem:[#allocation147_spill] sm:$0xff] }
 0x4d9   :  { %v5317_v17 = vrot.slane %v5316_v60, 4 }
 0x4db   :  { %v5318_v55 = vadd.f32 %v5317_v17, %v5316_v60  ;;  %v20244_v60 = vld [vmem:[#allocation157_spill] sm:$0xff] }
 0x4dd   :  { %v5319_v43 = vrot.slane %v5318_v55, 2 }
 0x4df   :  { %v5320_v10 = vadd.f32 %v5319_v43, %v5318_v55 }
 0x4e1   :  { %v5321_v23 = vrot.slane %v5320_v10, 1 }
 0x4e3   :  { %v5322_v50 = vadd.f32 %v5321_v23, %v5320_v10 }
 0x4e5   :  { %v5323_v39 = vadd.f32 %v5322_v50, %v5254_v2  ;;  %v20249_v2 = vld [vmem:[#allocation70_spill] sm:$0xff]  ;;  %v20250_v50 = vld [vmem:[#allocation76_spill] sm:$0xff] }
 0x4e7   :  { %v5324_v58 = vmul.f32 0.001953125, %v5323_v39 }
 0x4e9   :  { %v5325_v38 = vadd.f32 1e-05, %v5324_v58 }
 0x4eb   :  { %7886 = vrsqrt.f32 %v5325_v38 }
 0x4f8   :  { %v7887_v8 = vpop.eup %7886 }
 0x4f9   :  { %v5328_v51 = vmul.f32 %v7887_v8, %v5327_v0  ;;  %v20251_v0 = vld [vmem:[#allocation79_spill] sm:$0xff] }
 0x4fb   :  { %v15348_v21 = vrot.slane %v5328_v51, %v18374_v45  ;;  %v20252_v51 = vld [vmem:[#allocation23_spill] sm:$0xff]  ;;  %v20263_v45 = vld [vmem:[#allocation37_spill] sm:$0xff] }
 0x4fd   :  { %v5590_v58 = vmul.f32 %v15348_v21, %v5047_v48  ;;  %v15361_v30 = vmul.f32 %v15348_v21, %v20241_v11  ;;  %v15365_v5 = vmul.f32 %v15348_v21, %v20242_v56  ;;  %v15369_v22 = vmul.f32 %v15348_v21, %v20243_v40  ;;  %v20245_v48 = vld [vmem:[#allocation160_spill] sm:$0xff]  ;;  %v20254_v40 = vld [vmem:[#allocation22_spill] sm:$0xff] }
 0x4fe   :  { %v15373_v47 = vmul.f32 %v15348_v21, %v20244_v60  ;;  %v15377_v17 = vmul.f32 %v15348_v21, %v20245_v48  ;;  %v15381_v55 = vmul.f32 %v15348_v21, %v20246_v35  ;;  %v15385_v43 = vmul.f32 %v15348_v21, %v20247_v53  ;;  %v20253_v11 = vld [vmem:[#allocation88_spill] sm:$0xff]  ;;  %v20256_v53 = vld [vmem:[#allocation111_spill] sm:$0xff] }
 0x4ff   :  { %v15357_v38 = vadd.f32 %v15353_v24, %v5590_v58  ;;  %v15389_v10 = vmul.f32 %v15348_v21, %v20248_v32  ;;  %v15393_v23 = vmul.f32 %v15348_v21, %v20249_v2  ;;  %v15397_v39 = vmul.f32 %v15348_v21, %v20250_v50  ;;  %v20255_v48 = vld [vmem:[#allocation28_spill] sm:$0xff]  ;;  %v20258_v2 = vld [vmem:[#allocation33_spill] sm:$0xff] }
 0x500   :  { %v15401_v8 = vmul.f32 %v15348_v21, %v20251_v0  ;;  %v15405_v58 = vmul.f32 %v15348_v21, %v20252_v51  ;;  %v15409_v56 = vmul.f32 %v15348_v21, %v20253_v11  ;;  %v15413_v60 = vmul.f32 %v15348_v21, %v20254_v40  ;;  %v20260_v0 = vld [vmem:[#allocation36_spill] sm:$0xff]  ;;  %v20262_v11 = vld [vmem:[#allocation38_spill] sm:$0xff] }
 0x501   :  { %20240 = vst [vmem:[#allocation105_spill] sm:$0xff] %v15357_v38  ;;  %v15417_v35 = vmul.f32 %v15348_v21, %v20255_v48  ;;  %v15421_v32 = vmul.f32 %v15348_v21, %v20256_v53  ;;  %v15425_v50 = vmul.f32 %v15348_v21, %v20258_v2  ;;  %v15429_v51 = vmul.f32 %v15348_v21, %v20260_v0  ;;  %v20264_v38 = vld [vmem:[#allocation142_spill] sm:$0xff] }
 0x502   :  { %v5352_v40 = vmul.f32 %v15348_v21, %v20262_v11  ;;  %v5353_v31 = vmul.f32 %v15348_v21, %v20263_v45  ;;  %v5354_v48 = vmul.f32 %v15348_v21, %v20135_v20  ;;  %v15439_v53 = vmul.f32 %v15348_v21, %v20264_v38 }
 0x503   :  { %20257 = vst [vmem:[#allocation119_spill] sm:$0xff] %v15421_v32  ;;  %20259 = vst [vmem:[#allocation41_spill] sm:$0xff] %v15425_v50  ;;  %v20265_v32 = vld [vmem:[#allocation46_spill] sm:$0xff]  ;;  %v20267_v50 = vld [vmem:[#allocation155_spill] sm:$0xff]  ;;  %v15455_v45 = vmul.f32 %v15348_v21, %v20138_v62  ;;  %v15459_v20 = vmul.f32 %v15348_v21, %v14783_v19  ;;  %v15463_v38 = vmul.f32 %v15348_v21, %v20147_v12 }
 0x504   :  { %20261 = vst [vmem:[#allocation81_spill] sm:$0xff] %v15429_v51  ;;  %v15443_v2 = vmul.f32 %v15348_v21, %v20265_v32  ;;  %v15447_v0 = vmul.f32 %v15348_v21, %v20267_v50  ;;  %v20269_v51 = vld [vmem:[#allocation51_spill] sm:$0xff]  ;;  %v15467_v32 = vmul.f32 %v15348_v21, %v20152_v63  ;;  %v15471_v50 = vmul.f32 %v15348_v21, %v20153_v25  ;;  %v7870_v12 = vld [vmem:[%s17526_s5 + $0x78] sm:$0xff]  }
 0x505   :  { %v15451_v11 = vmul.f32 %v15348_v21, %v20269_v51  ;;  %20271 = vst [vmem:[#allocation123_spill] sm:$0xff] %v15455_v45  ;;  %20272 = vst [vmem:[#allocation126_spill] sm:$0xff] %v15459_v20  ;;  %v20276_v51 = vld [vmem:[#allocation104_spill] sm:$0xff]  ;;  %v20278_v45 = vld [vmem:[#allocation118_spill] sm:$0xff]  ;;  %v15486_v63 = vmul.f32 %v15348_v21, %v20156_v61  ;;  %v5430_v25 = vmul.f32 %v15348_v21, %v20158_v37  ;;  %7414 = vmatprep.subr.bf16.mxu0 %v7870_v12 }
 0x506   :  { %20266 = vst [vmem:[#allocation86_spill] sm:$0xff] %v15443_v2  ;;  %20268 = vst [vmem:[#allocation113_spill] sm:$0xff] %v15447_v0  ;;  %v15475_v62 = vmul.f32 %v15348_v21, %v20276_v51  ;;  %v15479_v19 = vmul.f32 %v15348_v21, %v20278_v45  ;;  %v20282_v51 = vld [vmem:[#allocation136_spill] sm:$0xff]  ;;  %v5436_v61 = vmul.f32 %v15348_v21, %v14848_v6  ;;  %v20288_v6 = vld [vmem:[#allocation167_spill] sm:$0xff] }
 0x507   :  { %20270 = vst [vmem:[#allocation116_spill] sm:$0xff] %v15451_v11  ;;  %20273 = vst [vmem:[#allocation131_spill] sm:$0xff] %v15463_v38  ;;  %v20283_v38 = vld [vmem:[#allocation141_spill] sm:$0xff]  ;;  %v5435_v11 = vmul.f32 %v15348_v21, %v14843_v9  ;;  %v5437_v37 = vmul.f32 %v15348_v21, %v14853_v14  ;;  %v20287_v0 = vld [vmem:[#allocation172_spill] sm:$0xff]  ;;  %v15520_v12 = vmul.f32 %v15348_v21, %v20288_v6 }
 0x508   :  { %20274 = vst [vmem:[#allocation188_spill] sm:$0xff] %v15467_v32  ;;  %20275 = vst [vmem:[#allocation189_spill] sm:$0xff] %v15471_v50  ;;  %v20281_v50 = vld [vmem:[#allocation183_spill] sm:$0xff]  ;;  %v5433_v45 = vmul.f32 %v15348_v21, %v20283_v38  ;;  %v20286_v38 = vld [vmem:[#allocation69_spill] sm:$0xff]  ;;  %v15516_v9 = vmul.f32 %v15348_v21, %v20287_v0  ;;  %v15535_v0 = vmul.f32 %v15348_v21, %v14893_v42 }
 0x509   :  { %20277 = vst [vmem:[#allocation190_spill] sm:$0xff] %v15475_v62  ;;  %20279 = vst [vmem:[#allocation175_spill] sm:$0xff] %v15479_v19  ;;  %v5431_v32 = vmul.f32 %v15348_v21, %v20281_v50  ;;  %v5432_v62 = vmul.f32 %v15348_v21, %v20282_v51  ;;  %v20284_v19 = vld [vmem:[#allocation149_spill] sm:$0xff]  ;;  %v5438_v50 = vmul.f32 %v15348_v21, %v14858_v52  ;;  %v20285_v51 = vld [vmem:[#allocation154_spill] sm:$0xff] }
 0x50a   :  { %20280 = vst [vmem:[#allocation178_spill] sm:$0xff] %v15486_v63  ;;  %v5434_v20 = vmul.f32 %v15348_v21, %v20284_v19  ;;  %v15508_v63 = vmul.f32 %v15348_v21, %v20285_v51  ;;  %v15512_v19 = vmul.f32 %v15348_v21, %v20286_v38  ;;  %v20289_v14 = vld [vmem:[#allocation173_spill] sm:$0xff]  ;;  %v15528_v52 = vmul.f32 %v15348_v21, %v14888_v33 }
 0x50b   :  { %v15524_v2 = vmul.f32 %v15348_v21, %v20289_v14  ;;  %v7871_v51 = vld [vmem:[%s17526_s5 + $0x38] sm:$0xff]   ;;  %v15539_v38 = vmul.f32 %v15348_v21, %v14898_v13  ;;  %v15543_v6 = vmul.f32 %v15348_v21, %v14903_v3  ;;  %v15547_v33 = vmul.f32 %v15348_v21, %v14908_v57 }
 0x50c   :  { %v15551_v14 = vmul.f32 %v15348_v21, %v14917_v46  ;;  %v15555_v42 = vmul.f32 %v15348_v21, %v14922_v18  ;;  %v5508_v13 = vmul.f32 %v15348_v21, %v14937_v54  ;;  %7415 = vmatpush3.bf16.msra.mxu0 %v7871_v51  ;;  %v5509_v3 = vmul.f32 %v15348_v21, %v14942_v15 }
 0x50d   :  { %20290 = vst [vmem:[#allocation64_spill] sm:$0xff] %v15539_v38  ;;  %v15560_v38 = vadd.f32 %v15353_v24, %v5352_v40  ;;  %v5510_v57 = vmul.f32 %v15348_v21, %v14947_v1  ;;  %v15567_v46 = vadd.f32 %v15353_v24, %v5353_v31  ;;  %v5511_v18 = vmul.f32 %v15348_v21, %v14954_v4  ;;  %v20295_v31 = vld [vmem:[#allocation90_spill] sm:$0xff] }
 0x50e   :  { %20291 = vst [vmem:[#allocation2_spill] sm:$0xff] %v15551_v14  ;;  %v15570_v14 = vadd.f32 %v15353_v24, %v5354_v48  ;;  %v5512_v54 = vmul.f32 %v15348_v21, %v14959_v49  ;;  %v5513_v40 = vmul.f32 %v15348_v21, %v20179_v7  ;;  %v5514_v15 = vmul.f32 %v15348_v21, %v20183_v34  ;;  %v20296_v48 = vld [vmem:[#allocation99_spill] sm:$0xff] }
 0x50f   :  { %20292 = vst [vmem:[#allocation75_spill] sm:$0xff] %v15560_v38  ;;  %20293 = vst [vmem:[#allocation134_spill] sm:$0xff] %v15567_v46  ;;  %v5570_v1 = vmul.f32 %v15348_v21, %v14973_v59  ;;  %v5571_v51 = vmul.f32 %v15348_v21, %v20295_v31  ;;  %v20297_v46 = vld [vmem:[#allocation102_spill] sm:$0xff]  ;;  %v5574_v49 = vmul.f32 %v15348_v21, %v20185_v27 }
 0x510   :  { %20294 = vst [vmem:[#allocation144_spill] sm:$0xff] %v15570_v14  ;;  %v5572_v14 = vmul.f32 %v15348_v21, %v20296_v48  ;;  %v5573_v4 = vmul.f32 %v15348_v21, %v20297_v46  ;;  %v5575_v7 = vmul.f32 %v15348_v21, %v20191_v41  ;;  %v15593_v34 = vadd.f32 %v15353_v24, %v5430_v25 }
 0x511   :  { %v15596_v59 = vadd.f32 %v15353_v24, %v5431_v32  ;;  %v15599_v31 = vadd.f32 %v15353_v24, %v5432_v62  ;;  %v15602_v48 = vadd.f32 %v15353_v24, %v5433_v45  ;;  %v15605_v46 = vadd.f32 %v15353_v24, %v5434_v20  ;;  %v7872_v20 = vld [vmem:[%s17526_s5 + $0x70] sm:$0xff]  }
 0x512   :  { %20298 = vst [vmem:[#allocation147_spill] sm:$0xff] %v15593_v34  ;;  %v15608_v27 = vadd.f32 %v15353_v24, %v5435_v11  ;;  %v5576_v41 = vmul.f32 %v15348_v21, %v20193_v29  ;;  %v15613_v25 = vadd.f32 %v15353_v24, %v5436_v61  ;;  %v15616_v32 = vadd.f32 %v15353_v24, %v5437_v37  ;;  %v7873_v11 = vld [vmem:[%s17526_s5 + $0x30] sm:$0xff]  }
 0x513   :  { %20299 = vst [vmem:[#allocation157_spill] sm:$0xff] %v15596_v59  ;;  %20300 = vst [vmem:[#allocation160_spill] sm:$0xff] %v15599_v31  ;;  %v15619_v62 = vadd.f32 %v15353_v24, %v5438_v50  ;;  %v5577_v29 = vmul.f32 %v15348_v21, %v20194_v28  ;;  %v5578_v45 = vmul.f32 %v15348_v21, %v20198_v36  ;;  %7416 = vmatprep.subr.bf16.mxu0 %v7872_v20  ;;  %v20310_v36 = vld [vmem:[#allocation194_spill] sm:$0xff] }
 0x514   :  { %20301 = vst [vmem:[#allocation174_spill] sm:$0xff] %v15602_v48  ;;  %20302 = vst [vmem:[#allocation55_spill] sm:$0xff] %v15605_v46  ;;  %v5579_v61 = vmul.f32 %v15348_v21, %v20203_v44  ;;  %v5580_v37 = vmul.f32 %v15348_v21, %v20206_v16  ;;  %v5581_v50 = vmul.f32 %v15348_v21, %v20207_v26  ;;  %v20309_v46 = vld [vmem:[#allocation193_spill] sm:$0xff]  ;;  %v20311_v44 = vld [vmem:[#allocation42_spill] sm:$0xff]  ;;  %7417 = vmatpush3.bf16.msra.mxu0 %v7873_v11 }
 0x515   :  { %20303 = vst [vmem:[#allocation9_spill] sm:$0xff] %v15608_v27  ;;  %20304 = vst [vmem:[#allocation70_spill] sm:$0xff] %v15613_v25  ;;  %v20308_v25 = vld [vmem:[#allocation192_spill] sm:$0xff]  ;;  %v5584_v28 = vmul.f32 %v15348_v21, %v20309_v46  ;;  %v5585_v48 = vmul.f32 %v15348_v21, %v20310_v36  ;;  %v5586_v31 = vmul.f32 %v15348_v21, %v20311_v44  ;;  %v20312_v16 = vld [vmem:[#allocation3_spill] sm:$0xff] }
 0x516   :  { %20305 = vst [vmem:[#allocation76_spill] sm:$0xff] %v15616_v32  ;;  %20306 = vst [vmem:[#allocation79_spill] sm:$0xff] %v15619_v62  ;;  %v20307_v62 = vld [vmem:[#allocation191_spill] sm:$0xff]  ;;  %v5583_v27 = vmul.f32 %v15348_v21, %v20308_v25  ;;  %v5587_v59 = vmul.f32 %v15348_v21, %v20312_v16  ;;  %v20313_v26 = vld [vmem:[#allocation93_spill] sm:$0xff]  ;;  %v15654_v38 = vadd.f32 %v15353_v24, %v5508_v13 }
 0x517   :  { %v5582_v32 = vmul.f32 %v15348_v21, %v20307_v62  ;;  %v5588_v34 = vmul.f32 %v15348_v21, %v20313_v26  ;;  %v20314_v62 = vld [vmem:[#allocation92_spill] sm:$0xff]  ;;  %v15657_v46 = vadd.f32 %v15353_v24, %v5509_v3  ;;  %v15660_v20 = vadd.f32 %v15353_v24, %v5510_v57 }
 0x518   :  { %v5589_v25 = vmul.f32 %v15348_v21, %v20314_v62  ;;  %v15663_v36 = vadd.f32 %v15353_v24, %v5511_v18  ;;  %v15666_v44 = vadd.f32 %v15353_v24, %v5512_v54  ;;  %v15669_v11 = vadd.f32 %v15353_v24, %v5513_v40 }
 0x519   :  { %v15672_v16 = vadd.f32 %v15353_v24, %v5514_v15  ;;  %v15675_v13 = vadd.f32 %v15353_v24, %v5570_v1  ;;  %v15678_v3 = vadd.f32 %v15353_v24, %v5571_v51  ;;  %v15681_v57 = vadd.f32 %v15353_v24, %v5572_v14 }
 0x51a   :  { %v15684_v18 = vadd.f32 %v15353_v24, %v5573_v4  ;;  %v15687_v54 = vadd.f32 %v15353_v24, %v5574_v49  ;;  %v15690_v40 = vadd.f32 %v15353_v24, %v5575_v7  ;;  %v15693_v15 = vadd.f32 %v15353_v24, %v5576_v41 }
 0x51b   :  { %20315 = vst [vmem:[#allocation23_spill] sm:$0xff] %v15672_v16  ;;  %20316 = vst [vmem:[#allocation88_spill] sm:$0xff] %v15675_v13  ;;  %v15696_v1 = vadd.f32 %v15353_v24, %v5577_v29  ;;  %v15699_v51 = vadd.f32 %v15353_v24, %v5578_v45  ;;  %v15702_v14 = vadd.f32 %v15353_v24, %v5579_v61  ;;  %v20385_v13 = vld [vmem:[#allocation134_spill] sm:$0xff]  ;;  %v20386_v16 = vld [vmem:[#allocation177_spill] sm:$0xff] }
 0x51c   :  { %20317 = vst [vmem:[#allocation22_spill] sm:$0xff] %v15678_v3  ;;  %20318 = vst [vmem:[#allocation28_spill] sm:$0xff] %v15681_v57  ;;  %v15705_v4 = vadd.f32 %v15353_v24, %v5580_v37  ;;  %v15708_v49 = vadd.f32 %v15353_v24, %v5581_v50  ;;  %v15711_v7 = vadd.f32 %v15353_v24, %v5582_v32  ;;  %v20376_v3 = vld [vmem:[#allocation114_spill] sm:$0xff]  ;;  %vm20387_vm9 = vnez %v20386_v16 }
 0x51d   :  { %20319 = vst [vmem:[#allocation111_spill] sm:$0xff] %v15684_v18  ;;  %20320 = vst [vmem:[#allocation33_spill] sm:$0xff] %v15687_v54  ;;  %v15714_v41 = vadd.f32 %v15353_v24, %v5583_v27  ;;  %v15717_v29 = vadd.f32 %v15353_v24, %v5584_v28  ;;  %v15720_v45 = vadd.f32 %v15353_v24, %v5585_v48  ;;  %v20336_v27 = vld [vmem:[#allocation71_spill] sm:$0xff]  ;;  %v20337_v28 = vld [vmem:[#allocation4_spill] sm:$0xff] }
 0x51e   :  { %20321 = vst [vmem:[#allocation36_spill] sm:$0xff] %v15690_v40  ;;  %20322 = vst [vmem:[#allocation38_spill] sm:$0xff] %v15693_v15  ;;  %v15723_v61 = vadd.f32 %v15353_v24, %v5586_v31  ;;  %v15726_v37 = vadd.f32 %v15353_v24, %v5587_v59  ;;  %v15729_v50 = vadd.f32 %v15353_v24, %v5588_v34 }
 0x51f   :  { %20323 = vst [vmem:[#allocation37_spill] sm:$0xff] %v15696_v1  ;;  %20324 = vst [vmem:[#allocation142_spill] sm:$0xff] %v15699_v51  ;;  %v15732_v32 = vadd.f32 %v15353_v24, %v5589_v25  ;;  %v5506_v26 = vmul.f32 %v15348_v21, %v20336_v27  ;;  %v5507_v62 = vmul.f32 %v15348_v21, %v20337_v28  ;;  %v20341_v28 = vld [vmem:[#allocation119_spill] sm:$0xff]  ;;  %v20357_v51 = vld [vmem:[#allocation64_spill] sm:$0xff] }
 0x520   :  { %20325 = vst [vmem:[#allocation46_spill] sm:$0xff] %v15702_v14  ;;  %20326 = vst [vmem:[#allocation155_spill] sm:$0xff] %v15705_v4  ;;  %v15740_v48 = vadd.f32 %v15353_v24, %v15361_v30  ;;  %v15744_v59 = vadd.f32 %v15353_v24, %v15365_v5  ;;  %v15748_v34 = vadd.f32 %v15353_v24, %v15369_v22  ;;  %v7874_v30 = vld [vmem:[%s17526_s5 + $0x68] sm:$0xff]   ;;  %v20355_v14 = vld [vmem:[#allocation178_spill] sm:$0xff] }
 0x521   :  { %20327 = vst [vmem:[#allocation51_spill] sm:$0xff] %v15708_v49  ;;  %20328 = vst [vmem:[#allocation104_spill] sm:$0xff] %v15711_v7  ;;  %v15752_v31 = vadd.f32 %v15353_v24, %v15373_v47  ;;  %v15756_v25 = vadd.f32 %v15353_v24, %v15377_v17  ;;  %v15760_v21 = vadd.f32 %v15353_v24, %v15381_v55  ;;  %v7875_v5 = vld [vmem:[%s17526_s5 + $0x28] sm:$0xff]   ;;  %7418 = vmatprep.subr.bf16.mxu0 %v7874_v30  ;;  %v20344_v30 = vld [vmem:[#allocation86_spill] sm:$0xff] }
 0x522   :  { %20329 = vst [vmem:[#allocation118_spill] sm:$0xff] %v15714_v41  ;;  %20330 = vst [vmem:[#allocation183_spill] sm:$0xff] %v15717_v29  ;;  %v15770_v22 = vadd.f32 %v15353_v24, %v15385_v43  ;;  %v15774_v47 = vadd.f32 %v15353_v24, %v15389_v10  ;;  %v15778_v17 = vadd.f32 %v15353_v24, %v15393_v23  ;;  %7419 = vmatpush3.bf16.msra.mxu0 %v7875_v5  ;;  %v20348_v5 = vld [vmem:[#allocation126_spill] sm:$0xff]  ;;  %v20349_v29 = vld [vmem:[#allocation131_spill] sm:$0xff] }
 0x523   :  { %20331 = vst [vmem:[#allocation136_spill] sm:$0xff] %v15720_v45  ;;  %20332 = vst [vmem:[#allocation141_spill] sm:$0xff] %v15723_v61  ;;  %v15782_v55 = vadd.f32 %v15353_v24, %v15397_v39  ;;  %v15786_v27 = vadd.f32 %v15353_v24, %v15401_v8  ;;  %v15790_v43 = vadd.f32 %v15353_v24, %v15405_v58  ;;  %v20346_v61 = vld [vmem:[#allocation116_spill] sm:$0xff]  ;;  %v20347_v45 = vld [vmem:[#allocation123_spill] sm:$0xff]  ;;  %v5382_v18 = vsel %vm10059_vm3, %v15740_v48, 0.0 }
 0x524   :  { %20333 = vst [vmem:[#allocation149_spill] sm:$0xff] %v15726_v37  ;;  %20334 = vst [vmem:[#allocation154_spill] sm:$0xff] %v15729_v50  ;;  %v15794_v10 = vadd.f32 %v15353_v24, %v15409_v56  ;;  %v15798_v23 = vadd.f32 %v15353_v24, %v15413_v60  ;;  %v15802_v39 = vadd.f32 %v15353_v24, %v15417_v35  ;;  %v20343_v50 = vld [vmem:[#allocation81_spill] sm:$0xff]  ;;  %v20350_v41 = vld [vmem:[#allocation188_spill] sm:$0xff]  ;;  %v5383_v57 = vsel %vm10100_vm14, %v15744_v59, 0.0 }
 0x525   :  { %20335 = vst [vmem:[#allocation69_spill] sm:$0xff] %v15732_v32  ;;  %20338 = vst [vmem:[#allocation172_spill] sm:$0xff] %v15778_v17  ;;  %v15806_v8 = vadd.f32 %v15353_v24, %v20341_v28  ;;  %v20342_v32 = vld [vmem:[#allocation41_spill] sm:$0xff]  ;;  %v15814_v56 = vadd.f32 %v15353_v24, %v20343_v50  ;;  %v15818_v60 = vadd.f32 %v15353_v24, %v15439_v53  ;;  %v20352_v49 = vld [vmem:[#allocation190_spill] sm:$0xff] }
 0x526   :  { %20339 = vst [vmem:[#allocation167_spill] sm:$0xff] %v15782_v55  ;;  %20340 = vst [vmem:[#allocation173_spill] sm:$0xff] %v15786_v27  ;;  %v15810_v58 = vadd.f32 %v15353_v24, %v20342_v32  ;;  %v15822_v35 = vadd.f32 %v15353_v24, %v20344_v30  ;;  %v20345_v37 = vld [vmem:[#allocation113_spill] sm:$0xff]  ;;  %v15830_v32 = vadd.f32 %v15353_v24, %v20346_v61  ;;  %v20353_v4 = vld [vmem:[#allocation175_spill] sm:$0xff] }
 0x527   :  { %v15826_v28 = vadd.f32 %v15353_v24, %v20345_v37  ;;  %v15834_v50 = vadd.f32 %v15353_v24, %v20347_v45  ;;  %v15838_v53 = vadd.f32 %v15353_v24, %v20348_v5  ;;  %v15842_v30 = vadd.f32 %v15353_v24, %v20349_v29  ;;  %v20351_v7 = vld [vmem:[#allocation189_spill] sm:$0xff]  ;;  %v20360_v1 = vld [vmem:[#allocation2_spill] sm:$0xff]  ;;  %v20372_v59 = vld [vmem:[#allocation100_spill] sm:$0xff] }
 0x528   :  { %v15846_v37 = vadd.f32 %v15353_v24, %v20350_v41  ;;  %v15850_v61 = vadd.f32 %v15353_v24, %v20351_v7  ;;  %v15854_v45 = vadd.f32 %v15353_v24, %v20352_v49  ;;  %v15858_v5 = vadd.f32 %v15353_v24, %v20353_v4  ;;  %v20397_v27 = vld [vmem:[#allocation174_spill] sm:$0xff]  ;;  %v20401_v55 = vld [vmem:[#allocation156_spill] sm:$0xff] }
 0x529   :  { %v15862_v29 = vadd.f32 %v15353_v24, %v20355_v14  ;;  %v15866_v41 = vadd.f32 %v15353_v24, %v15508_v63  ;;  %v15870_v7 = vadd.f32 %v15353_v24, %v15512_v19  ;;  %v15874_v49 = vadd.f32 %v15353_v24, %v15516_v9 }
 0x52a   :  { %20354 = vst [vmem:[#allocation90_spill] sm:$0xff] %v15858_v5  ;;  %v15878_v4 = vadd.f32 %v15353_v24, %v15520_v12  ;;  %v15882_v14 = vadd.f32 %v15353_v24, %v15524_v2  ;;  %v15886_v63 = vadd.f32 %v15353_v24, %v15528_v52  ;;  %v15890_v19 = vadd.f32 %v15353_v24, %v15535_v0  ;;  %v7876_v12 = vld [vmem:[%s17526_s5 + $0x60] sm:$0xff]   ;;  %v20395_v5 = vld [vmem:[#allocation143_spill] sm:$0xff] }
 0x52b   :  { %20356 = vst [vmem:[#allocation99_spill] sm:$0xff] %v15862_v29  ;;  %v15894_v9 = vadd.f32 %v15353_v24, %v20357_v51  ;;  %v7877_v2 = vld [vmem:[%s17526_s5 + $0x20] sm:$0xff]   ;;  %v15904_v52 = vadd.f32 %v15353_v24, %v15543_v6  ;;  %v15908_v0 = vadd.f32 %v15353_v24, %v15547_v33  ;;  %v15912_v51 = vadd.f32 %v15353_v24, %v20360_v1  ;;  %v20370_v6 = vld [vmem:[#allocation24_spill] sm:$0xff]  ;;  %v20374_v33 = vld [vmem:[#allocation29_spill] sm:$0xff] }
 0x52c   :  { %v15916_v15 = vadd.f32 %v15353_v24, %v15555_v42  ;;  %v15919_v40 = vadd.f32 %v15353_v24, %v5506_v26  ;;  %v15922_v54 = vadd.f32 %v15353_v24, %v5507_v62  ;;  %7420 = vmatprep.subr.bf16.mxu0 %v7876_v12  ;;  %v5384_v42 = vsel %vm10336_vm2, %v15748_v34, 0.0  ;;  %v20378_v1 = vld [vmem:[#allocation117_spill] sm:$0xff]  ;;  %v20380_v24 = vld [vmem:[#allocation124_spill] sm:$0xff]  ;;  %v20382_v34 = vld [vmem:[#allocation75_spill] sm:$0xff] }
 0x52d   :  { %20358 = vst [vmem:[#allocation102_spill] sm:$0xff] %v15904_v52  ;;  %20359 = vst [vmem:[#allocation191_spill] sm:$0xff] %v15908_v0  ;;  %v5385_v26 = vsel %vm10412_vm10, %v15752_v31, 0.0  ;;  %v5386_v62 = vsel %vm19849_vm7, %v15756_v25, 0.0  ;;  %vm20371_vm3 = vnez %v20370_v6  ;;  %7421 = vmatpush3.bf16.msra.mxu0 %v7877_v2  ;;  %vm20373_vm14 = vnez %v20372_v59  ;;  %v7879_v2 = vld [vmem:[%s17526_s5 + $0x18] sm:$0xff]   ;;  %v20383_v12 = vld [vmem:[#allocation50_spill] sm:$0xff] }
 0x52e   :  { %20361 = vst [vmem:[#allocation192_spill] sm:$0xff] %v15912_v51  ;;  %20362 = vst [vmem:[#allocation193_spill] sm:$0xff] %v15916_v15  ;;  %v5387_v48 = vsel %vm20371_vm3, %v15760_v21, 0.0  ;;  %vm20375_vm2 = vnez %v20374_v33  ;;  %vm20377_vm10 = vnez %v20376_v3  ;;  %vm20379_vm7 = vnez %v20378_v1  ;;  %v7878_v21 = vld [vmem:[%s17526_s5 + $0x58] sm:$0xff]   ;;  %v20394_v29 = vld [vmem:[#allocation160_spill] sm:$0xff] }
 0x52f   :  { %20363 = vst [vmem:[#allocation194_spill] sm:$0xff] %v15919_v40  ;;  %20364 = vst [vmem:[#allocation42_spill] sm:$0xff] %v15922_v54  ;;  %vm20381_vm13 = vnez %v20380_v24  ;;  %vm20384_vm11 = vnez %v20383_v12  ;;  %v5401_v25 = vsel %vm20387_vm9, %v20385_v13, 0.0  ;;  %v20388_v54 = vld [vmem:[#allocation147_spill] sm:$0xff]  ;;  %v20389_v40 = vld [vmem:[#allocation130_spill] sm:$0xff]  ;;  %vm20396_vm15 = vnez %v20395_v5  ;;  %7422 = vmatprep.subr.bf16.mxu0 %v7878_v21 }
 0x530   :  { %v5400_v31 = vsel %vm20384_vm11, %v20382_v34, 0.0  ;;  %vm20390_vm5 = vnez %v20389_v40  ;;  %v20391_v51 = vld [vmem:[#allocation157_spill] sm:$0xff]  ;;  %v5474_v6 = vsel %vm20396_vm15, %v20394_v29, 0.0  ;;  %v20398_v24 = vld [vmem:[#allocation146_spill] sm:$0xff]  ;;  %v20400_v34 = vld [vmem:[#allocation55_spill] sm:$0xff]  ;;  %vm20402_vm11 = vnez %v20401_v55 }
 0x531   :  { %v5472_v15 = vsel %vm20390_vm5, %v20388_v54, 0.0  ;;  %v20392_v0 = vld [vmem:[#allocation133_spill] sm:$0xff]  ;;  %vm20399_vm3 = vnez %v20398_v24  ;;  %v5476_v16 = vsel %vm20402_vm11, %v20400_v34, 0.0  ;;  %vm18379_vm9 = vcmask 1042432   ;;  %v20404_v54 = vld [vmem:[#allocation159_spill] sm:$0xff]  ;;  %v20409_v5 = vld [vmem:[#allocation76_spill] sm:$0xff]  ;;  %7423 = vmatpush3.bf16.msra.mxu0 %v7879_v2 }
 0x532   :  { %vm20393_vm4 = vnez %v20392_v0  ;;  %v5475_v12 = vsel %vm20399_vm3, %v20397_v27, 0.0  ;;  %v20403_v13 = vld [vmem:[#allocation9_spill] sm:$0xff]  ;;  %vm20405_vm5 = vnez %v20404_v54  ;;  %v20406_v0 = vld [vmem:[#allocation70_spill] sm:$0xff]  ;;  %v20410_v29 = vld [vmem:[#allocation179_spill] sm:$0xff] }
 0x533   :  { %v5473_v52 = vsel %vm20393_vm4, %v20391_v51, 0.0  ;;  %v5477_v40 = vsel %vm20405_vm5, %v20403_v13, 0.0  ;;  %v20407_v51 = vld [vmem:[#allocation176_spill] sm:$0xff]  ;;  %vm20411_vm15 = vnez %v20410_v29  ;;  %v20414_v55 = vld [vmem:[#allocation54_spill] sm:$0xff]  ;;  %v20418_v54 = vld [vmem:[#allocation61_spill] sm:$0xff] }
 0x534   :  { %vm20408_vm4 = vnez %v20407_v51  ;;  %v5479_v17 = vsel %vm20411_vm15, %v20409_v5, 0.0  ;;  %v20412_v27 = vld [vmem:[#allocation48_spill] sm:$0xff]  ;;  %vm20415_vm11 = vnez %v20414_v55  ;;  %v20420_v51 = vld [vmem:[#allocation137_spill] sm:$0xff]  ;;  %v20424_v29 = vld [vmem:[#allocation150_spill] sm:$0xff]  ;;  %v16023_v55 = vpack.c.bf16 %v5401_v25, %v5400_v31 }
 0x535   :  { %v5478_v1 = vsel %vm20408_vm4, %v20406_v0, 0.0  ;;  %vm20413_vm3 = vnez %v20412_v27  ;;  %v5537_v21 = vsel %vm20415_vm11, %v15870_v7, 0.0  ;;  %v20416_v34 = vld [vmem:[#allocation60_spill] sm:$0xff]  ;;  %vm20419_vm4 = vnez %v20418_v54  ;;  %v20426_v27 = vld [vmem:[#allocation153_spill] sm:$0xff]  ;;  %v20461_v33 = vld [vmem:[#allocation43_spill] sm:$0xff] }
 0x536   :  { %v5536_v24 = vsel %vm20413_vm3, %v15866_v41, 0.0  ;;  %vm20417_vm5 = vnez %v20416_v34  ;;  %v5539_v0 = vsel %vm20419_vm4, %v15878_v4, 0.0  ;;  %vm20421_vm15 = vnez %v20420_v51  ;;  %v7880_v41 = vld [vmem:[%s17526_s5 + $0x50] sm:$0xff]  }
 0x537   :  { %v5538_v13 = vsel %vm20417_vm5, %v15874_v49, 0.0  ;;  %v5550_v5 = vsel %vm20421_vm15, %v15654_v38, 0.0  ;;  %v7881_v7 = vld [vmem:[%s17526_s5 + $0x10] sm:$0xff]   ;;  %vm20425_vm11 = vnez %v20424_v29  ;;  %vm20427_vm5 = vnez %v20426_v27  ;;  %7424 = vmatprep.subr.bf16.mxu0 %v7880_v41 }
 0x538   :  { %v20422_v2 = vld [vmem:[#allocation140_spill] sm:$0xff]  ;;  %v5552_v4 = vsel %vm20425_vm11, %v15660_v20, 0.0  ;;  %v5553_v38 = vsel %vm20427_vm5, %v15663_v36, 0.0  ;;  %v16035_v20 = vpack.c.bf16 %v5385_v26, %v5384_v42  ;;  %v16037_v29 = vpack.c.bf16 %v5475_v12, %v5474_v6  ;;  %7425 = vmatpush3.bf16.msra.mxu0 %v7881_v7  ;;  %v20436_v42 = vld [vmem:[#allocation77_spill] sm:$0xff] }
 0x539   :  { %vm20423_vm3 = vnez %v20422_v2  ;;  %v20428_v34 = vld [vmem:[#allocation164_spill] sm:$0xff]  ;;  %v16031_v2 = vpack.c.bf16 %v5383_v57, %v5382_v18  ;;  %v16039_v36 = vpack.c.bf16 %v5477_v40, %v5476_v16  ;;  %v16041_v31 = vpack.c.bf16 %v5479_v17, %v5478_v1  ;;  %v7883_v17 = vld [vmem:[%s17526_s5 + $0x8] sm:$0xff]   ;;  %v20440_v1 = vld [vmem:[#allocation85_spill] sm:$0xff] }
 0x53a   :  { %v5551_v49 = vsel %vm20423_vm3, %v15657_v46, 0.0  ;;  %vm20429_vm4 = vnez %v20428_v34  ;;  %v20430_v51 = vld [vmem:[#allocation168_spill] sm:$0xff]  ;;  %v16033_v46 = vpack.c.bf16 %v5473_v52, %v5472_v15  ;;  %v16049_v18 = vpack.c.bf16 %v5537_v21, %v5536_v24  ;;  %v7882_v52 = vld [vmem:[%s17526_s5 + $0x48] sm:$0xff]   ;;  %v20442_v16 = vld [vmem:[#allocation89_spill] sm:$0xff] }
 0x53b   :  { %v5554_v54 = vsel %vm20429_vm4, %v15666_v44, 0.0  ;;  %vm20431_vm15 = vnez %v20430_v51  ;;  %v20432_v44 = vld [vmem:[#allocation11_spill] sm:$0xff]  ;;  %v16051_v15 = vpack.c.bf16 %v5539_v0, %v5538_v13  ;;  %vm20437_vm5 = vnez %v20436_v42  ;;  %v20438_v26 = vld [vmem:[#allocation80_spill] sm:$0xff]  ;;  %7426 = vmatprep.subr.bf16.mxu0 %v7882_v52 }
 0x53c   :  { %v5555_v3 = vsel %vm20431_vm15, %v15669_v11, 0.0  ;;  %vm20433_vm3 = vnez %v20432_v44  ;;  %v20434_v11 = vld [vmem:[#allocation15_spill] sm:$0xff]  ;;  %vm20439_vm4 = vnez %v20438_v26  ;;  %vm20441_vm15 = vnez %v20440_v1  ;;  %7427 = vmatpush3.bf16.msra.mxu0 %v7883_v17 }
 0x53d   :  { %v5460_v25 = vsel %vm20433_vm3, %v15818_v60, 0.0  ;;  %vm20435_vm11 = vnez %v20434_v11  ;;  %v5462_v60 = vsel %vm20437_vm5, %v15826_v28, 0.0  ;;  %v5464_v6 = vsel %vm20441_vm15, %v15834_v50, 0.0  ;;  %v20444_v24 = vld [vmem:[#allocation67_spill] sm:$0xff] }
 0x53e   :  { %v5461_v57 = vsel %vm20435_vm11, %v15822_v35, 0.0  ;;  %v5463_v35 = vsel %vm20439_vm4, %v15830_v32, 0.0  ;;  %v16068_v12 = vpack.c.bf16 %v5551_v49, %v5550_v5  ;;  %vm20443_vm3 = vnez %v20442_v16 }
 0x53f   :  { %v5465_v40 = vsel %vm20443_vm3, %v15838_v53, 0.0  ;;  %vm20445_vm11 = vnez %v20444_v24  ;;  %v16076_v13 = vpack.c.bf16 %v5553_v38, %v5552_v4  ;;  %v16078_v28 = vpack.c.bf16 %v5555_v3, %v5554_v54  ;;  %v20446_v53 = vld [vmem:[#allocation14_spill] sm:$0xff] }
 0x540   :  { %v5540_v21 = vsel %vm20445_vm11, %v15882_v14, 0.0  ;;  %v16080_v32 = vpack.c.bf16 %v5387_v48, %v5386_v62  ;;  %v5481_v0 = vpack.c.bf16 %v5461_v57, %v5460_v25  ;;  %v6125_v50 = vrot.slane %v16031_v2, 5  ;;  %v7884_v62 = vld [vmem:[%s17526_s5 + $0x40] sm:$0xff]  }
 0x541   :  { %v6126_v5 = vrot.slane %v16035_v20, 5  ;;  %vm20447_vm4 = vnez %v20446_v53  ;;  %v16087_v7 = vpack.c.bf16 %v5463_v35, %v5462_v60  ;;  %v5823_v14 = vshll.u32 %v16049_v18, 16  ;;  %v7885_v48 = vld [vmem:[%s17526_s5] sm:$0xff]   ;;  %7428 = vmatprep.subr.bf16.mxu0 %v7884_v62  ;;  %v20452_v62 = vld [vmem:[#allocation39_spill] sm:$0xff]  ;;  %s7935_s5 = smov 64  }
 0x542   :  { %v5541_v41 = vsel %vm20447_vm4, %v15886_v63, 0.0  ;;  %v5828_v3 = vshll.u32 %v16051_v15, 16  ;;  %5657 = vrot.lane.b32.xlu1 %v5481_v0, %s7932_s28  ;;  %v5680_v63 = vshrl.u32 %v16031_v2, 16  ;;  %v5682_v4 = vshll.u32 %v16031_v2, 16  ;;  %7429 = vmatpush3.bf16.msra.mxu0 %v7885_v48 }
 0x543   :  { %v6127_v49 = vsel %vm18379_vm9, %v6125_v50, %v6126_v5  ;;  %v5687_v27 = vshll.u32 %v16035_v20, 16  ;;  %vm20448_vm15 = vcmask 261120   ;;  %v5821_v38 = vshrl.u32 %v16049_v18, 16 }
 0x544   :  { %7714 = vmatmul.mubr.msk.bf16.vlgmr.msra.gmra.mxu1 %vm20448_vm15, %v6127_v49  ;;  %v5825_v34 = vrot.slane %v5823_v14, 1  ;;  %v5830_v54 = vrot.slane %v5828_v3, 1  ;;  %v5691_v51 = vshrl.u32 %v16035_v20, 16  ;;  %v5684_v44 = vrot.slane %v5682_v4, 1 }
 0x545   :  { %v20449_v25 = vmov 0.0   ;;  %vm20450_vm3 = vmmov 0   ;;  %v6128_v11 = vrot.slane %v16080_v32, 5  ;;  %v5929_v57 = vrot.slane %v5680_v63, 4 }
 0x546   :  { %7717 = vmatprep.mubr.msk.bf16.mxu1 %vm20450_vm3, %v20449_v25  ;;  %v5930_v52 = vrot.slane %v5682_v4, 5  ;;  %v5826_v17 = vor.u32 %v5825_v34, %v5821_v38  ;;  %v5689_v42 = vrot.slane %v5687_v27, 1  ;;  %v5932_v60 = vrot.slane %v5691_v51, 4 }
 0x547   :  { %v5933_v26 = vrot.slane %v5687_v27, 5  ;;  %v5685_v35 = vor.u32 %v5684_v44, %v5680_v63  ;;  %v5995_v16 = vshrl.u32 %v5481_v0, 16  ;;  %v5998_v24 = vshll.u32 %v5481_v0, 16  ;;  %v20455_v0 = vld [vmem:[#allocation132_spill] sm:$0xff] }
 0x548   :  { %v5931_v1 = vor.u32 %v5930_v52, %v5929_v57  ;;  %vm20451_vm11 = vsmask.f32 7424  ;;  %v6003_v14 = vshrl.u32 %v16087_v7, 16  ;;  %v6006_v3 = vshll.u32 %v16087_v7, 16 }
 0x549   :  { %v5831_v50 = vsel %vm20451_vm11, %v5826_v17, %v5830_v54  ;;  %v16111_v53 = vor.u32 %v5933_v26, %v5932_v60  ;;  %vm20453_vm4 = vnez %v20452_v62  ;;  %vm20454_vm15 = vmmov %vm20451_vm11  ;;  %v5997_v63 = vrot.slane %v5995_v16, 4  ;;  %v20467_v16 = vld [vmem:[#allocation158_spill] sm:$0xff] }
 0x54a   :  { %v5393_v48 = vsel %vm20453_vm4, %v15790_v43, 0.0  ;;  %5906 = vrot.lane.b32.xlu0 %v5831_v50, %s7932_s28  ;;  %v5690_v49 = vsel %vm20454_vm15, %v5685_v35, %v5689_v42  ;;  %v6000_v4 = vrot.slane %v5998_v24, 5  ;;  %vm20456_vm5 = vnez %v20455_v0  ;;  %v20465_v35 = vld [vmem:[#allocation47_spill] sm:$0xff]  ;;  %v20469_v50 = vld [vmem:[#allocation161_spill] sm:$0xff] }
 0x54b   :  { %v5394_v27 = vsel %vm20456_vm5, %v15794_v10, 0.0  ;;  %v16123_v38 = vpack.c.bf16 %v5541_v41, %v5540_v21  ;;  %5765 = vrot.lane.b32.xlu1 %v5690_v49, %s7935_s5  ;;  %v6005_v34 = vrot.slane %v6003_v14, 4  ;;  %v6008_v44 = vrot.slane %v6006_v3, 5  ;;  %v20471_v14 = vld [vmem:[#allocation144_spill] sm:$0xff] }
 0x54c   :  { %v20457_v57 = vsel %vm20373_vm14, %v15770_v22, 0.0  ;;  %v20458_v52 = vsel %vm20375_vm2, %v15774_v47, 0.0  ;;  %v16136_v60 = vpack.c.bf16 %v5465_v40, %v5464_v6  ;;  %v6129_v21 = vsel %vm18379_vm9, %v6126_v5, %v6128_v11  ;;  %v20463_v40 = vld [vmem:[#allocation145_spill] sm:$0xff]  ;;  %v20472_v3 = vld [vmem:[#allocation56_spill] sm:$0xff] }
 0x54d   :  { %v16134_v17 = vpack.c.bf16 %v20458_v52, %v20457_v57  ;;  %vm20459_vm11 = vsmask.f32 3328  ;;  %vm20460_vm15 = vcmask 261120   ;;  %v6001_v59 = vor.u32 %v6000_v4, %v5997_v63  ;;  %v20474_v63 = vld [vmem:[#allocation98_spill] sm:$0xff] }
 0x54e   :  { %v5935_v41 = vsel %vm20459_vm11, %v5931_v1, %v16111_v53  ;;  %7718 = vmatmul.mubr.msk.bf16.gmra.mxu1 %vm20460_vm15, %v6129_v21  ;;  %v16144_v26 = vor.u32 %v6008_v44, %v6005_v34  ;;  %v5695_v22 = vshll.u32 %v16080_v32, 16  ;;  %v18380_v47 = vshrl.u32 %v16080_v32, 16 }
 0x54f   :  { %vm20462_vm14 = vnez %v20461_v33  ;;  %vm20464_vm2 = vnez %v20463_v40  ;;  %vm20466_vm11 = vnez %v20465_v35  ;;  %vm20468_vm15 = vnez %v20467_v16  ;;  %5972 = vrot.lane.b32.xlu0 %v5935_v41, %s7935_s5  ;;  %7721 = vmatprep.mubr.msk.bf16.mxu1 %vm20450_vm3, %v20449_v25  ;;  %v20477_v41 = vld [vmem:[#allocation101_spill] sm:$0xff]  ;;  %v20481_v16 = vld [vmem:[#allocation115_spill] sm:$0xff] }
 0x550   :  { %v5395_v6 = vsel %vm20462_vm14, %v15798_v23, 0.0  ;;  %v5397_v1 = vsel %vm20466_vm11, %v15806_v8, 0.0  ;;  %v5398_v24 = vsel %vm20468_vm15, %v15810_v58, 0.0  ;;  %vm20470_vm14 = vnez %v20469_v50  ;;  %5798 = vrot.lane.b32.xlu1 %v16049_v18, %s7936_s11 }
 0x551   :  { %v5399_v23 = vsel %vm20470_vm14, %v15814_v56, 0.0  ;;  %vm20473_vm9 = vnez %v20472_v3  ;;  %v5832_v8 = vshrl.u32 %v16051_v15, 16  ;;  %v5836_v58 = vshll.u32 %v16123_v38, 16  ;;  %v20485_v3 = vld [vmem:[#allocation16_spill] sm:$0xff] }
 0x552   :  { %v16169_v49 = vsel %vm20473_vm9, %v20471_v14, 0.0  ;;  %vm20475_vm11 = vnez %v20474_v63  ;;  %v6130_v34 = vrot.slane %v16134_v17, 5  ;;  %v6012_v56 = vshrl.u32 %v16136_v60, 16 }
 0x553   :  { %v5466_v4 = vsel %vm20475_vm11, %v15842_v30, 0.0  ;;  %v6015_v44 = vshll.u32 %v16136_v60, 16  ;;  %vm20476_vm9 = vsmask.f32 3328  ;;  %v5834_v52 = vor.u32 %v5832_v8, %v5830_v54  ;;  %v20479_v30 = vld [vmem:[#allocation112_spill] sm:$0xff] }
 0x554   :  { %v6010_v57 = vsel %vm20476_vm9, %v6001_v59, %v16144_v26  ;;  %v5936_v18 = vrot.slane %v18380_v47, 4  ;;  %v5937_v21 = vrot.slane %v5695_v22, 5  ;;  %vm20478_vm15 = vnez %v20477_v41  ;;  %v20483_v59 = vld [vmem:[#allocation83_spill] sm:$0xff]  ;;  %5659 = vrot.lane.b32.xlu1 %v16087_v7, %s7932_s28  ;;  %v20498_v41 = vld [vmem:[#allocation125_spill] sm:$0xff] }
 0x555   :  { %v5467_v33 = vsel %vm20478_vm15, %v15846_v37, 0.0  ;;  %vm20480_vm14 = vnez %v20479_v30  ;;  %vm20482_vm11 = vnez %v20481_v16  ;;  %6091 = vrot.lane.b32.xlu0 %v6010_v57, %s7936_s11  ;;  %v5693_v54 = vor.u32 %v5691_v51, %v5689_v42 }
 0x556   :  { %v5468_v35 = vsel %vm20480_vm14, %v15850_v61, 0.0  ;;  %v5469_v50 = vsel %vm20482_vm11, %v15854_v45, 0.0  ;;  %vm20484_vm9 = vnez %v20483_v59  ;;  %vm20486_vm15 = vnez %v20485_v3  ;;  %v20488_v61 = vld [vmem:[#allocation172_spill] sm:$0xff]  ;;  %v20491_v45 = vld [vmem:[#allocation167_spill] sm:$0xff]  ;;  %v20494_v59 = vld [vmem:[#allocation90_spill] sm:$0xff] }
 0x557   :  { %v5542_v14 = vsel %vm20484_vm9, %v15890_v19, 0.0  ;;  %v5543_v37 = vsel %vm20486_vm15, %v15894_v9, 0.0  ;;  %v20489_v63 = vsel %vm20377_vm10, %v20488_v61, 0.0  ;;  %v20492_v30 = vsel %vm20379_vm7, %v20491_v45, 0.0  ;;  %v20495_v3 = vld [vmem:[#allocation32_spill] sm:$0xff]  ;;  %v20497_v61 = vld [vmem:[#allocation99_spill] sm:$0xff] }
 0x558   :  { %v16211_v57 = vpack.c.bf16 %v20492_v30, %v20489_v63  ;;  %v5838_v51 = vrot.slane %v5836_v58, 1  ;;  %vm20493_vm14 = vcmask 1042432   ;;  %v5697_v42 = vrot.slane %v5695_v22, 1  ;;  %v20502_v45 = vld [vmem:[#allocation79_spill] sm:$0xff] }
 0x559   :  { %v6131_v19 = vsel %vm20493_vm14, %v6128_v11, %v6130_v34  ;;  %v6014_v9 = vrot.slane %v6012_v56, 4  ;;  %v6017_v16 = vrot.slane %v6015_v44, 5  ;;  %vm20496_vm10 = vnez %v20495_v3  ;;  %v20503_v11 = vld [vmem:[#allocation52_spill] sm:$0xff]  ;;  %v20505_v56 = vld [vmem:[#allocation102_spill] sm:$0xff] }
 0x55a   :  { %v5470_v8 = vsel %vm20496_vm10, %v20494_v59, 0.0  ;;  %vm20499_vm7 = vnez %v20498_v41  ;;  %vm20500_vm9 = vcmask 261120   ;;  %vm20501_vm15 = vsmask.f32 7424  ;;  %v20506_v44 = vld [vmem:[#allocation96_spill] sm:$0xff] }
 0x55b   :  { %v5471_v63 = vsel %vm20499_vm7, %v20497_v61, 0.0  ;;  %7722 = vmatmul.mubr.msk.bf16.gmra.mxu1 %vm20500_vm9, %v6131_v19  ;;  %v5839_v7 = vsel %vm20501_vm15, %v5834_v52, %v5838_v51  ;;  %v16226_v58 = vor.u32 %v5937_v21, %v5936_v18  ;;  %vm20504_vm14 = vnez %v20503_v11  ;;  %vm20508_vm10 = vmmov %vm20501_vm15  ;;  %v20509_v52 = vld [vmem:[#allocation191_spill] sm:$0xff]  ;;  %v20512_v19 = vld [vmem:[#allocation192_spill] sm:$0xff] }
 0x55c   :  { %v16231_v22 = vsel %vm20504_vm14, %v20502_v45, 0.0  ;;  %vm20507_vm11 = vnez %v20506_v44  ;;  %v16236_v59 = vpack.c.bf16 %v5543_v37, %v5542_v14  ;;  %5908 = vrot.lane.b32.xlu0 %v5839_v7, %s7932_s28  ;;  %v5698_v3 = vsel %vm20508_vm10, %v5693_v54, %v5697_v42  ;;  %7725 = vmatprep.mubr.msk.bf16.mxu1 %vm20450_vm3, %v20449_v25  ;;  %v20510_v18 = vld [vmem:[#allocation27_spill] sm:$0xff]  ;;  %v20515_v45 = vld [vmem:[#allocation193_spill] sm:$0xff]  ;;  %v20516_v11 = vld [vmem:[#allocation110_spill] sm:$0xff] }
 0x55d   :  { %v5544_v30 = vsel %vm20507_vm11, %v20505_v56, 0.0  ;;  %vm20511_vm7 = vnez %v20510_v18  ;;  %v20513_v61 = vld [vmem:[#allocation31_spill] sm:$0xff]  ;;  %vm20517_vm11 = vnez %v20516_v11  ;;  %v20518_v37 = vld [vmem:[#allocation194_spill] sm:$0xff]  ;;  %v20519_v56 = vld [vmem:[#allocation180_spill] sm:$0xff]  ;;  %5767 = vrot.lane.b32.xlu1 %v5698_v3, %s7935_s5  ;;  %v16264_v11 = vpack.c.bf16 %v5467_v33, %v5466_v4 }
 0x55e   :  { %v5545_v21 = vsel %vm20511_vm7, %v20509_v52, 0.0  ;;  %vm20514_vm9 = vnez %v20513_v61  ;;  %v5547_v14 = vsel %vm20517_vm11, %v20515_v45, 0.0  ;;  %vm20520_vm15 = vnez %v20519_v56  ;;  %v20521_v54 = vld [vmem:[#allocation42_spill] sm:$0xff]  ;;  %v20522_v44 = vld [vmem:[#allocation181_spill] sm:$0xff]  ;;  %v20524_v18 = vld [vmem:[#allocation23_spill] sm:$0xff] }
 0x55f   :  { %v5546_v41 = vsel %vm20514_vm9, %v20512_v19, 0.0  ;;  %v5548_v7 = vsel %vm20520_vm15, %v20518_v37, 0.0  ;;  %vm20523_vm14 = vnez %v20522_v44  ;;  %v20525_v52 = vld [vmem:[#allocation53_spill] sm:$0xff]  ;;  %v6132_v19 = vrot.slane %v16211_v57, 5 }
 0x560   :  { %v5549_v47 = vsel %vm20523_vm14, %v20521_v54, 0.0  ;;  %vm20526_vm10 = vnez %v20525_v52  ;;  %v16262_v61 = vor.u32 %v6017_v16, %v6014_v9  ;;  %vm20527_vm7 = vsmask.f32 3328  ;;  %v20529_v54 = vld [vmem:[#allocation173_spill] sm:$0xff] }
 0x561   :  { %v5556_v5 = vsel %vm20526_vm10, %v20524_v18, 0.0  ;;  %v5939_v45 = vsel %vm20527_vm7, %v16111_v53, %v16226_v58  ;;  %v5703_v3 = vshll.u32 %v16134_v17, 16  ;;  %v5707_v37 = vshrl.u32 %v16134_v17, 16  ;;  %5800 = vrot.lane.b32.xlu1 %v16051_v15, %s7936_s11  ;;  %vm20533_vm5 = vmmov %vm20527_vm7 }
 0x562   :  { %v20530_v44 = vsel %vm20381_vm13, %v20529_v54, 0.0  ;;  %v16285_v4 = vpack.c.bf16 %v5395_v6, %v5394_v27  ;;  %5974 = vrot.lane.b32.xlu0 %v5939_v45, %s7935_s5  ;;  %v5840_v53 = vshrl.u32 %v16123_v38, 16  ;;  %v5844_v33 = vshll.u32 %v16236_v59, 16 }
 0x563   :  { %v16279_v9 = vpack.c.bf16 %v5393_v48, %v20530_v44  ;;  %v20531_v62 = vsel %vm20464_vm2, %v15802_v39, 0.0  ;;  %v16296_v43 = vpack.c.bf16 %v5399_v23, %v5398_v24  ;;  %v5413_v48 = vpack.c.bf16 %v16169_v49, %v16169_v49 }
 0x564   :  { %v16294_v16 = vpack.c.bf16 %v5397_v1, %v20531_v62  ;;  %v16300_v10 = vpack.c.bf16 %v5469_v50, %v5468_v35  ;;  %v16304_v0 = vpack.c.bf16 %v5471_v63, %v5470_v8  ;;  %vm20532_vm13 = vcmask 1042432  }
 0x565   :  { %v6133_v27 = vsel %vm20532_vm13, %v6130_v34, %v6132_v19  ;;  %v6019_v39 = vsel %vm20533_vm5, %v16144_v26, %v16262_v61  ;;  %v5842_v6 = vor.u32 %v5840_v53, %v5838_v51  ;;  %vm20534_vm4 = vcmask 261120   ;;  %5661 = vrot.lane.b32.xlu1 %v16136_v60, %s7932_s28  ;;  %vm20541_vm10 = vmmov %vm20532_vm13 }
 0x566   :  { %7726 = vmatmul.mubr.msk.bf16.gmra.mxu1 %vm20534_vm4, %v6133_v27  ;;  %v5940_v40 = vrot.slane %v5707_v37, 4  ;;  %v5941_v1 = vrot.slane %v5703_v3, 5  ;;  %v6021_v24 = vshrl.u32 %v16264_v11, 16  ;;  %v6024_v23 = vshll.u32 %v16264_v11, 16  ;;  %6093 = vrot.lane.b32.xlu0 %v6019_v39, %s7936_s11  ;;  %vm20542_vm7 = vmmov %vm20534_vm4 }
 0x567   :  { %v5491_v15 = vpack.c.bf16 %v16231_v22, %v16231_v22  ;;  %v16315_v49 = vpack.c.bf16 %v5549_v47, %v5548_v7  ;;  %v5846_v34 = vrot.slane %v5844_v33, 1  ;;  %v20535_v35 = vshrl.u32 %v16080_v32, 16  ;;  %7729 = vmatprep.mubr.msk.bf16.mxu1 %vm20450_vm3, %v20449_v25  ;;  %vm20543_vm13 = vmmov %vm20533_vm5 }
 0x568   :  { %v16322_v50 = vpack.c.bf16 %v5545_v21, %v5544_v30  ;;  %v16324_v51 = vpack.c.bf16 %v5547_v14, %v5546_v41  ;;  %v5567_v8 = vpack.c.bf16 %v5556_v5, %v5556_v5  ;;  %v6134_v47 = vrot.slane %v16279_v9, 5  ;;  %vm20544_vm5 = vmmov %vm20541_vm10 }
 0x569   :  { %v5701_v26 = vor.u32 %v20535_v35, %v5697_v42  ;;  %vm20536_vm2 = vcmask 1040384   ;;  %vm20537_vm9 = vsmask.f32 7424  ;;  %v5705_v7 = vrot.slane %v5703_v3, 1  ;;  %vm20545_vm4 = vmmov %vm20543_vm13 }
 0x56a   :  { %v16330_v63 = vsel %vm20536_vm2, %v5413_v48, 0  ;;  %v5847_v22 = vsel %vm20537_vm9, %v5842_v6, %v5846_v34  ;;  %v6039_v42 = vshrl.u32 %v16304_v0, 16  ;;  %v16334_v18 = vor.u32 %v5941_v1, %v5940_v40  ;;  %vm20538_vm11 = vmmov %vm20537_vm9 }
 0x56b   :  { %v6023_v30 = vrot.slane %v6021_v24, 4  ;;  %v6026_v21 = vrot.slane %v6024_v23, 5  ;;  %v6042_v41 = vshll.u32 %v16304_v0, 16  ;;  %5910 = vrot.lane.b32.xlu0 %v5847_v22, %s7932_s28  ;;  %v5706_v60 = vsel %vm20538_vm11, %v5701_v26, %v5705_v7  ;;  %vm20539_vm15 = vmmov %vm20536_vm2 }
 0x56c   :  { %v6136_v5 = vrot.slane %v16285_v4, 5  ;;  %v5711_v14 = vshll.u32 %v16211_v57, 16  ;;  %v5868_v52 = vshll.u32 %v16315_v49, 16  ;;  %v16343_v45 = vsel %vm20539_vm15, %v5491_v15, 0  ;;  %vm20540_vm14 = vmmov %vm20536_vm2  ;;  %5769 = vrot.lane.b32.xlu1 %v5706_v60, %s7935_s5 }
 0x56d   :  { %v16346_v3 = vsel %vm20540_vm14, %v5567_v8, 0  ;;  %v6135_v56 = vsel %vm20541_vm10, %v6132_v19, %v6134_v47  ;;  %v5715_v54 = vshrl.u32 %v16211_v57, 16  ;;  %v5848_v44 = vshrl.u32 %v16236_v59, 16  ;;  %vm20546_vm2 = vmmov %vm20545_vm4 }
 0x56e   :  { %v5852_v53 = vshll.u32 %v16322_v50, 16  ;;  %v6041_v33 = vrot.slane %v6039_v42, 4  ;;  %v6044_v62 = vrot.slane %v6042_v41, 5  ;;  %7730 = vmatmul.mubr.msk.bf16.gmra.mxu1 %vm20542_vm7, %v6135_v56  ;;  %v5943_v48 = vsel %vm20543_vm13, %v16226_v58, %v16334_v18  ;;  %vm20547_vm11 = vmmov %vm20542_vm7 }
 0x56f   :  { %v16357_v27 = vor.u32 %v6026_v21, %v6023_v30  ;;  %v5709_v39 = vor.u32 %v5707_v37, %v5705_v7  ;;  %v16359_v6 = vrot.slane %v5868_v52, 1  ;;  %5976 = vrot.lane.b32.xlu0 %v5943_v48, %s7935_s5  ;;  %7733 = vmatprep.mubr.msk.bf16.mxu1 %vm20450_vm3, %v20449_v25  ;;  %v6137_v19 = vsel %vm20544_vm5, %v6134_v47, %v6136_v5  ;;  %vm20548_vm15 = vmmov %vm20537_vm9 }
 0x570   :  { %v5945_v40 = vrot.slane %v5711_v14, 5  ;;  %v6048_v1 = vshrl.u32 %v16033_v46, 16  ;;  %v6051_v24 = vshll.u32 %v16033_v46, 16  ;;  %5802 = vrot.lane.b32.xlu1 %v16123_v38, %s7936_s11  ;;  %v5944_v58 = vrot.slane %v5715_v54, 4  ;;  %vm20549_vm14 = vmmov %vm20537_vm9 }
 0x571   :  { %v6030_v37 = vshrl.u32 %v16300_v10, 16  ;;  %v6033_v23 = vshll.u32 %v16300_v10, 16  ;;  %v5872_v15 = vshrl.u32 %v16315_v49, 16  ;;  %v16376_v35 = vor.u32 %v6044_v62, %v6041_v33  ;;  %vm20550_vm10 = vmmov %vm20546_vm2 }
 0x572   :  { %v6050_v26 = vrot.slane %v6048_v1, 4  ;;  %v6053_v8 = vrot.slane %v6051_v24, 5  ;;  %v5876_v47 = vshll.u32 %v16068_v12, 16  ;;  %v6028_v22 = vsel %vm20545_vm4, %v16262_v61, %v16357_v27  ;;  %vm20551_vm7 = vmmov %vm20546_vm2 }
 0x573   :  { %v5850_v38 = vor.u32 %v5848_v44, %v5846_v34  ;;  %v5854_v7 = vrot.slane %v5852_v53, 1  ;;  %v5874_v42 = vor.u32 %v5872_v15, %v16359_v6  ;;  %6095 = vrot.lane.b32.xlu0 %v6028_v22, %s7936_s11  ;;  %v5713_v30 = vrot.slane %v5711_v14, 1  ;;  %vm20552_vm13 = vmmov %vm20537_vm9 }
 0x574   :  { %v6054_v21 = vor.u32 %v6053_v8, %v6050_v26  ;;  %v5878_v41 = vrot.slane %v5876_v47, 1  ;;  %v6057_v60 = vshrl.u32 %v16037_v29, 16  ;;  %5663 = vrot.lane.b32.xlu1 %v16264_v11, %s7932_s28  ;;  %v16387_v52 = vor.u32 %v5945_v40, %v5944_v58  ;;  %vm20553_vm4 = vmmov %vm20547_vm11 }
 0x575   :  { %v6032_v56 = vrot.slane %v6030_v37, 4  ;;  %v6035_v33 = vrot.slane %v6033_v23, 5  ;;  %v6060_v61 = vshll.u32 %v16037_v29, 16  ;;  %v5880_v53 = vshrl.u32 %v16068_v12, 16 }
 0x576   :  { %v16392_v34 = vsel %vm20546_vm2, %v16376_v35, %v6054_v21  ;;  %v16395_v44 = vsel %vm20537_vm9, %v5874_v42, %v5878_v41  ;;  %v6059_v14 = vrot.slane %v6057_v60, 4  ;;  %7734 = vmatmul.mubr.msk.bf16.gmra.mxu1 %vm20547_vm11, %v6137_v19  ;;  %v5855_v11 = vsel %vm20548_vm15, %v5850_v38, %v5854_v7  ;;  %vm20554_vm9 = vmmov %vm20546_vm2 }
 0x577   :  { %v6138_v62 = vrot.slane %v16294_v16, 5  ;;  %v6062_v48 = vrot.slane %v6060_v61, 5  ;;  %v5884_v40 = vshll.u32 %v16076_v13, 16  ;;  %5912 = vrot.lane.b32.xlu0 %v5855_v11, %s7932_s28  ;;  %v5714_v1 = vsel %vm20549_vm14, %v5709_v39, %v5713_v30  ;;  %7737 = vmatprep.mubr.msk.bf16.mxu1 %vm20450_vm3, %v20449_v25  ;;  %vm20555_vm11 = vmmov %vm20552_vm13 }
 0x578   :  { %v5856_v24 = vshrl.u32 %v16322_v50, 16  ;;  %v5860_v58 = vshll.u32 %v16324_v51, 16  ;;  %v5882_v37 = vor.u32 %v5880_v53, %v5878_v41  ;;  %5771 = vrot.lane.b32.xlu1 %v5714_v1, %s7935_s5  ;;  %v5719_v19 = vshll.u32 %v16279_v9, 16  ;;  %vm20556_vm15 = vmmov %vm20555_vm11 }
 0x579   :  { %v6063_v23 = vor.u32 %v6062_v48, %v6059_v14  ;;  %v5886_v15 = vrot.slane %v5884_v40, 1  ;;  %v6066_v26 = vshrl.u32 %v16039_v36, 16  ;;  %v5947_v39 = vsel %vm20550_vm10, %v16334_v18, %v16387_v52  ;;  %vm20560_vm10 = vmmov %vm20555_vm11 }
 0x57a   :  { %v16414_v8 = vor.u32 %v6035_v33, %v6032_v56  ;;  %v5723_v47 = vshrl.u32 %v16279_v9, 16  ;;  %v6069_v22 = vshll.u32 %v16039_v36, 16  ;;  %v5888_v60 = vshrl.u32 %v16076_v13, 16 }
 0x57b   :  { %v16419_v38 = vsel %vm20551_vm7, %v6054_v21, %v6063_v23  ;;  %v16422_v42 = vsel %vm20552_vm13, %v5882_v37, %v5886_v15  ;;  %v6068_v41 = vrot.slane %v6066_v26, 4  ;;  %5978 = vrot.lane.b32.xlu0 %v5947_v39, %s7935_s5  ;;  %v6139_v18 = vsel %vm20544_vm5, %v6136_v5, %v6138_v62  ;;  %vm20561_vm7 = vmmov %vm20544_vm5 }
 0x57c   :  { %v5717_v56 = vor.u32 %v5715_v54, %v5713_v30  ;;  %v6071_v33 = vrot.slane %v6069_v22, 5  ;;  %v5892_v21 = vshll.u32 %v16078_v28, 16  ;;  %5804 = vrot.lane.b32.xlu1 %v16236_v59, %s7936_s11  ;;  %v5858_v61 = vor.u32 %v5856_v24, %v5854_v7 }
 0x57d   :  { %v5862_v14 = vrot.slane %v5860_v58, 1  ;;  %v5949_v53 = vrot.slane %v5719_v19, 5  ;;  %v5890_v11 = vor.u32 %v5888_v60, %v5886_v15  ;;  %v5948_v48 = vrot.slane %v5723_v47, 4 }
 0x57e   :  { %v6072_v40 = vor.u32 %v6071_v33, %v6068_v41  ;;  %v5894_v1 = vrot.slane %v5892_v21, 1  ;;  %v6075_v37 = vshrl.u32 %v16041_v31, 16  ;;  %7738 = vmatmul.mubr.msk.bf16.gmra.mxu1 %vm20553_vm4, %v6139_v18  ;;  %v6037_v5 = vsel %vm20546_vm2, %v16357_v27, %v16414_v8  ;;  %vm20565_vm4 = vmmov %vm20546_vm2 }
 0x57f   :  { %v5721_v54 = vrot.slane %v5719_v19, 1  ;;  %v6140_v30 = vrot.slane %v16296_v43, 5  ;;  %v6078_v59 = vshll.u32 %v16041_v31, 16  ;;  %6097 = vrot.lane.b32.xlu0 %v6037_v5, %s7936_s11  ;;  %7741 = vmatprep.mubr.msk.bf16.mxu1 %vm20450_vm3, %v20449_v25  ;;  %v5896_v15 = vshrl.u32 %v16078_v28, 16  ;;  %vm20566_vm2 = vmmov %vm20560_vm10 }
 0x580   :  { %v16447_v7 = vsel %vm20554_vm9, %v6063_v23, %v6072_v40  ;;  %v16450_v24 = vsel %vm20555_vm11, %v5890_v11, %v5894_v1  ;;  %v6077_v58 = vrot.slane %v6075_v37, 4  ;;  %5665 = vrot.lane.b32.xlu1 %v16300_v10, %s7932_s28  ;;  %v18382_v27 = vrot.slane %v16023_v55, 5  ;;  %v20557_v11 = vld [vmem:[#allocation88_spill] sm:$0xff]  ;;  %v20558_v10 = vld [vmem:[#allocation57_spill] sm:$0xff]  ;;  %vm20567_vm9 = vmmov %vm20565_vm4 }
 0x581   :  { %v5864_v19 = vshrl.u32 %v16324_v51, 16  ;;  %v6080_v26 = vrot.slane %v6078_v59, 5  ;;  %v5899_v39 = vshll.u32 %v16346_v3, 16  ;;  %v5863_v22 = vsel %vm20556_vm15, %v5858_v61, %v5862_v14  ;;  %vm20569_vm15 = vmmov %vm20566_vm2 }
 0x582   :  { %v16459_v23 = vor.u32 %v5949_v53, %v5948_v48  ;;  %v5727_v41 = vshll.u32 %v16285_v4, 16  ;;  %v5898_v60 = vor.u32 %v5896_v15, %v5894_v1  ;;  %vm20559_vm14 = vnez %v20558_v10  ;;  %v20562_v48 = vld [vmem:[#allocation22_spill] sm:$0xff] }
 0x583   :  { %v5866_v18 = vor.u32 %v5864_v19, %v5862_v14  ;;  %v6081_v33 = vor.u32 %v6080_v26, %v6077_v58  ;;  %v16462_v21 = vrot.slane %v5899_v39, 1  ;;  %v5612_v37 = vsel %vm20559_vm14, %v20557_v11, 0.0  ;;  %5914 = vrot.lane.b32.xlu0 %v5863_v22, %s7932_s28  ;;  %v20563_v1 = vld [vmem:[#allocation58_spill] sm:$0xff]  ;;  %v20571_v11 = vld [vmem:[#allocation8_spill] sm:$0xff] }
 0x584   :  { %v5722_v5 = vsel %vm20560_vm10, %v5717_v56, %v5721_v54  ;;  %v6141_v61 = vsel %vm20561_vm7, %v6138_v62, %v6140_v30  ;;  %v18381_v53 = vshrl.u32 %v16285_v4, 16  ;;  %vm20564_vm13 = vnez %v20563_v1  ;;  %vm20576_vm7 = vmmov %vm20565_vm4 }
 0x585   :  { %v5613_v14 = vsel %vm20564_vm13, %v20562_v48, 0.0  ;;  %5773 = vrot.lane.b32.xlu1 %v5722_v5, %s7935_s5  ;;  %v6143_v59 = vsel %vm20544_vm5, %v6140_v30, %v18382_v27  ;;  %v16481_v58 = vsel %vm20565_vm4, %v6072_v40, %v6081_v33  ;;  %v16485_v56 = vsel %vm20566_vm2, %v5898_v60, %v16462_v21  ;;  %v20570_v60 = vld [vmem:[#allocation28_spill] sm:$0xff]  ;;  %v20578_v48 = vld [vmem:[#allocation74_spill] sm:$0xff] }
 0x586   :  { %v16487_v62 = vpack.c.bf16 %v5613_v14, %v5612_v37  ;;  %v5951_v15 = vsel %vm20567_vm9, %v16387_v52, %v16459_v23  ;;  %v5725_v19 = vor.u32 %v5723_v47, %v5721_v54  ;;  %v6083_v26 = vshrl.u32 %v16343_v45, 16  ;;  %v20573_v37 = vld [vmem:[#allocation111_spill] sm:$0xff]  ;;  %v20574_v5 = vld [vmem:[#allocation68_spill] sm:$0xff] }
 0x587   :  { %v6086_v39 = vshll.u32 %v16343_v45, 16  ;;  %vm20568_vm11 = vcmask 261120   ;;  %v5871_v40 = vsel %vm20569_vm15, %v5866_v18, %v16359_v6  ;;  %v5729_v30 = vrot.slane %v5727_v41, 1  ;;  %5980 = vrot.lane.b32.xlu0 %v5951_v15, %s7935_s5  ;;  %v20580_v14 = vld [vmem:[#allocation36_spill] sm:$0xff] }
 0x588   :  { %7742 = vmatmul.mubr.msk.bf16.gmra.mxu1 %vm20568_vm11, %v6141_v61  ;;  %v5953_v22 = vrot.slane %v5727_v41, 5  ;;  %vm20572_vm14 = vnez %v20571_v11  ;;  %v5952_v52 = vrot.slane %v18381_v53, 4  ;;  %v6085_v47 = vrot.slane %v6083_v26, 4  ;;  %v20577_v61 = vld [vmem:[#allocation33_spill] sm:$0xff]  ;;  %v20581_v15 = vld [vmem:[#allocation84_spill] sm:$0xff]  ;;  %v20583_v11 = vld [vmem:[#allocation38_spill] sm:$0xff] }
 0x589   :  { %v5614_v10 = vsel %vm20572_vm14, %v20570_v60, 0.0  ;;  %7745 = vmatprep.mubr.msk.bf16.mxu1 %vm20450_vm3, %v20449_v25  ;;  %v6088_v54 = vrot.slane %v6086_v39, 5  ;;  %vm20575_vm10 = vnez %v20574_v5  ;;  %5806 = vrot.lane.b32.xlu1 %v16322_v50, %s7936_s11  ;;  %v6046_v41 = vsel %vm20576_vm7, %v16414_v8, %v16376_v35  ;;  %v20584_v50 = vld [vmem:[#allocation97_spill] sm:$0xff]  ;;  %v20587_v35 = vld [vmem:[#allocation26_spill] sm:$0xff]  ;;  %vm20598_vm14 = vmmov %vm20576_vm7 }
 0x58a   :  { %v5615_v6 = vsel %vm20575_vm10, %v20573_v37, 0.0  ;;  %vm20579_vm13 = vnez %v20578_v48  ;;  %vm20582_vm5 = vnez %v20581_v15  ;;  %vm20585_vm4 = vnez %v20584_v50  ;;  %v20586_v5 = vld [vmem:[#allocation37_spill] sm:$0xff]  ;;  %v20592_v15 = vld [vmem:[#allocation46_spill] sm:$0xff] }
 0x58b   :  { %v16513_v18 = vpack.c.bf16 %v5615_v6, %v5614_v10  ;;  %v5616_v1 = vsel %vm20579_vm13, %v20577_v61, 0.0  ;;  %v5617_v26 = vsel %vm20582_vm5, %v20580_v14, 0.0  ;;  %v16521_v39 = vor.u32 %v6088_v54, %v6085_v47  ;;  %v20589_v6 = vld [vmem:[#allocation142_spill] sm:$0xff]  ;;  %v20590_v61 = vld [vmem:[#allocation109_spill] sm:$0xff]  ;;  %v20593_v14 = vld [vmem:[#allocation108_spill] sm:$0xff]  ;;  %6099 = vrot.lane.b32.xlu0 %v6046_v41, %s7936_s11 }
 0x58c   :  { %v16523_v60 = vpack.c.bf16 %v5617_v26, %v5616_v1  ;;  %v5618_v37 = vsel %vm20585_vm4, %v20583_v11, 0.0  ;;  %vm20588_vm2 = vnez %v20587_v35  ;;  %vm20591_vm9 = vnez %v20590_v61  ;;  %v20595_v54 = vld [vmem:[#allocation155_spill] sm:$0xff]  ;;  %v20596_v1 = vld [vmem:[#allocation122_spill] sm:$0xff] }
 0x58d   :  { %v5619_v8 = vsel %vm20588_vm2, %v20586_v5, 0.0  ;;  %v5620_v48 = vsel %vm20591_vm9, %v20589_v6, 0.0  ;;  %vm20594_vm11 = vnez %v20593_v14  ;;  %vm20597_vm15 = vnez %v20596_v1  ;;  %v20600_v5 = vld [vmem:[#allocation35_spill] sm:$0xff]  ;;  %v20603_v6 = vld [vmem:[#allocation182_spill] sm:$0xff]  ;;  %5667 = vrot.lane.b32.xlu1 %v16304_v0, %s7932_s28  ;;  %v20606_v14 = vld [vmem:[#allocation184_spill] sm:$0xff] }
 0x58e   :  { %v16531_v10 = vpack.c.bf16 %v5619_v8, %v5618_v37  ;;  %v5621_v47 = vsel %vm20594_vm11, %v20592_v15, 0.0  ;;  %v5622_v26 = vsel %vm20597_vm15, %v20595_v54, 0.0  ;;  %v16545_v11 = vsel %vm20598_vm14, %v6081_v33, %v16521_v39  ;;  %v20599_v37 = vld [vmem:[#allocation51_spill] sm:$0xff]  ;;  %v20602_v8 = vld [vmem:[#allocation104_spill] sm:$0xff]  ;;  %v20605_v41 = vld [vmem:[#allocation118_spill] sm:$0xff] }
 0x58f   :  { %v16547_v50 = vpack.c.bf16 %v5621_v47, %v5620_v48  ;;  %vm20601_vm10 = vnez %v20600_v5  ;;  %vm20604_vm7 = vnez %v20603_v6  ;;  %vm20607_vm13 = vnez %v20606_v14  ;;  %v20608_v54 = vld [vmem:[#allocation183_spill] sm:$0xff]  ;;  %v20609_v48 = vld [vmem:[#allocation45_spill] sm:$0xff]  ;;  %v20611_v1 = vld [vmem:[#allocation136_spill] sm:$0xff]  ;;  %5916 = vrot.lane.b32.xlu0 %v5871_v40, %s7932_s28 }
 0x590   :  { %v5623_v35 = vsel %vm20601_vm10, %v20599_v37, 0.0  ;;  %v5624_v61 = vsel %vm20604_vm7, %v20602_v8, 0.0  ;;  %v5625_v33 = vsel %vm20607_vm13, %v20605_v41, 0.0  ;;  %vm20610_vm5 = vnez %v20609_v48  ;;  %v20612_v5 = vld [vmem:[#allocation185_spill] sm:$0xff]  ;;  %v20619_v48 = vld [vmem:[#allocation154_spill] sm:$0xff] }
 0x591   :  { %v16557_v15 = vpack.c.bf16 %v5623_v35, %v5622_v26  ;;  %v5626_v47 = vsel %vm20610_vm5, %v20608_v54, 0.0  ;;  %vm20613_vm4 = vnez %v20612_v5  ;;  %v16568_v53 = vpack.c.bf16 %v5625_v33, %v5624_v61  ;;  %v20614_v6 = vld [vmem:[#allocation141_spill] sm:$0xff] }
 0x592   :  { %v5627_v37 = vsel %vm20613_vm4, %v20611_v1, 0.0  ;;  %v5628_v26 = vsel %vm20218_vm0, %v20614_v6, 0.0  ;;  %v20616_v35 = vld [vmem:[#allocation149_spill] sm:$0xff]  ;;  %vm20618_vm2 = vcmask 261120   ;;  %v5954_v14 = vor.u32 %v5953_v22, %v5952_v52 }
 0x593   :  { %v16570_v8 = vpack.c.bf16 %v5627_v37, %v5626_v47  ;;  %v5629_v41 = vsel %vm20223_vm8, %v20616_v35, 0.0  ;;  %7746 = vmatmul.mubr.msk.bf16.gmra.mxu1 %vm20618_vm2, %v6143_v59  ;;  %v5630_v61 = vsel %vm14182_vm6, %v20619_v48, 0.0  ;;  %v20621_v33 = vld [vmem:[#allocation69_spill] sm:$0xff]  ;;  %vm20623_vm0 = vsmask.f32 7424  ;;  %vm20624_vm8 = vmmov %vm20598_vm14 }
 0x594   :  { %v16579_v54 = vpack.c.bf16 %v5629_v41, %v5628_v26  ;;  %v5631_v1 = vsel %vm14220_vm12, %v20621_v33, 0.0  ;;  %v5730_v37 = vsel %vm20623_vm0, %v5725_v19, %v5729_v30  ;;  %7749 = vmatprep.mubr.msk.bf16.mxu1 %vm20450_vm3, %v20449_v25  ;;  %v6144_v59 = vrot.slane %v16330_v63, 5  ;;  %vm20627_vm12 = vmmov %vm20618_vm2 }
 0x595   :  { %v16591_v27 = vpack.c.bf16 %v5631_v1, %v5630_v61  ;;  %5775 = vrot.lane.b32.xlu1 %v5730_v37, %s7935_s5  ;;  %v5955_v22 = vsel %vm20624_vm8, %v16459_v23, %v5954_v14  ;;  %v5735_v52 = vshll.u32 %v16294_v16, 16  ;;  %v5739_v6 = vshrl.u32 %v16294_v16, 16  ;;  %vm20629_vm9 = vmmov %vm20623_vm0 }
 0x596   :  { %5982 = vrot.lane.b32.xlu0 %v5955_v22, %s7935_s5  ;;  %v20625_v19 = vrot.slane %v16023_v55, 5  ;;  %vm20626_vm6 = vcmask 1042432   ;;  %v20628_v23 = vshrl.u32 %v16285_v4, 16  ;;  %vm20630_vm11 = vmmov %vm20618_vm2  ;;  %v5751_v47 = vshll.u32 %v16023_v55, 16 }
 0x597   :  { %v5956_v0 = vrot.slane %v5739_v6, 4  ;;  %v5957_v26 = vrot.slane %v5735_v52, 5  ;;  %vm20631_vm15 = vmmov %vm20624_vm8  ;;  %v5755_v1 = vshrl.u32 %v16023_v55, 16  ;;  %vm6168_vm4 = vcmask 523264  }
 0x598   :  { %v6145_v40 = vsel %vm20626_vm6, %v20625_v19, %v6144_v59  ;;  %v5733_v35 = vor.u32 %v20628_v23, %v5729_v30  ;;  %v5743_v30 = vshll.u32 %v16296_v43, 16  ;;  %vm20633_vm14 = vmmov %vm20624_vm8  ;;  %v5753_v37 = vrot.slane %v5751_v47, 1 }
 0x599   :  { %5808 = vrot.lane.b32.xlu1 %v16324_v51, %s7936_s11  ;;  %v5737_v51 = vrot.slane %v5735_v52, 1  ;;  %v5958_v41 = vor.u32 %v5957_v26, %v5956_v0  ;;  %vm20634_vm10 = vmmov %vm20623_vm0  ;;  %v5758_v52 = vshll.u32 %v16330_v63, 16 }
 0x59a   :  { %6101 = vrot.lane.b32.xlu0 %v16392_v34, %s7936_s11  ;;  %v5961_v5 = vrot.slane %v5743_v30, 5  ;;  %v5745_v61 = vrot.slane %v5743_v30, 1  ;;  %vm20635_vm7 = vmmov %vm20624_vm8 }
 0x59b   :  { %7750 = vmatmul.mubr.msk.bf16.gmra.mxu1 %vm20627_vm12, %v6145_v40  ;;  %v5738_v48 = vsel %vm20629_vm9, %v5733_v35, %v5737_v51  ;;  %v5959_v34 = vsel %vm20631_vm15, %v5954_v14, %v5958_v41  ;;  %v5760_v19 = vrot.slane %v5758_v52, 1  ;;  %vm20636_vm13 = vmmov %vm20623_vm0 }
 0x59c   :  { %7753 = vmatprep.mubr.msk.bf16.mxu1 %vm20450_vm3, %v20449_v25  ;;  %v5747_v25 = vshrl.u32 %v16296_v43, 16  ;;  %vm20632_vm3 = vmmov %vm20623_vm0  ;;  %vm6191_vm0 = vcmask 785408  }
 0x59d   :  { %5669 = vrot.lane.b32.xlu1 %v16033_v46, %s7932_s28  ;;  %vm20637_vm5 = vmmov %vm20635_vm7 }
 0x59e   :  { %5918 = vrot.lane.b32.xlu0 %v16395_v44, %s7932_s28  ;;  %v5960_v46 = vrot.slane %v5747_v25, 4  ;;  %v5741_v44 = vor.u32 %v5739_v6, %v5737_v51  ;;  %v5762_v6 = vshrl.u32 %v16330_v63, 16  ;;  %vm20638_vm8 = vmmov %vm20618_vm2 }
 0x59f   :  { %vm20639_vm6 = vmmov %vm20618_vm2 }
 0x5a0   :  { %v5962_v14 = vor.u32 %v5961_v5, %v5960_v46  ;;  %v5746_v33 = vsel %vm20632_vm3, %v5741_v44, %v5745_v61  ;;  %vm20640_vm12 = vmmov %vm20618_vm2 }
 0x5a1   :  { %5777 = vrot.lane.b32.xlu1 %v5738_v48, %s7935_s5  ;;  %vm20641_vm9 = vmmov %vm20618_vm2 }
 0x5a2   :  { %5984 = vrot.lane.b32.xlu0 %v5959_v34, %s7935_s5  ;;  %vm20643_vm15 = vmmov %vm20618_vm2 }
 0x5a3   :  { %7754 = vmatmul.mubr.msk.bf16.gmra.mxu1 %vm20630_vm11, %v6144_v59  ;;  %vm20642_vm11 = vmmov %vm20618_vm2 }
 0x5a4   :  { %vm20644_vm3 = vmmov %vm20618_vm2 }
 0x5a5   :  { %5810 = vrot.lane.b32.xlu1 %v16315_v49, %s7936_s11  ;;  %v5963_v49 = vsel %vm20633_vm14, %v5958_v41, %v5962_v14  ;;  %v5764_v41 = vor.u32 %v5762_v6, %v5760_v19  ;;  %vm20645_vm14 = vmmov %vm20618_vm2 }
 0x5a6   :  { %6103 = vrot.lane.b32.xlu0 %v16419_v38, %s7936_s11  ;;  %v5965_v38 = vrot.slane %v5751_v47, 5 }
 0x5a9   :  { %5671 = vrot.lane.b32.xlu1 %v16037_v29, %s7932_s28  ;;  %v5964_v29 = vrot.slane %v5755_v1, 4 }
 0x5aa   :  { %5920 = vrot.lane.b32.xlu0 %v16422_v42, %s7932_s28  ;;  %v5749_v42 = vor.u32 %v5747_v25, %v5745_v61 }
 0x5ab   :  { %v5966_v59 = vor.u32 %v5965_v38, %v5964_v29 }
 0x5ac   :  { %v5754_v22 = vsel %vm20634_vm10, %v5749_v42, %v5753_v37  ;;  %vm20646_vm10 = vmmov %vm20618_vm2 }
 0x5ad   :  { %5779 = vrot.lane.b32.xlu1 %v5746_v33, %s7935_s5 }
 0x5ae   :  { %5986 = vrot.lane.b32.xlu0 %v5963_v49, %s7935_s5 }
 0x5b1   :  { %5812 = vrot.lane.b32.xlu1 %v16068_v12, %s7936_s11  ;;  %v5967_v12 = vsel %vm20635_vm7, %v5962_v14, %v5966_v59  ;;  %vm20647_vm7 = vmmov %vm20618_vm2 }
 0x5b2   :  { %6105 = vrot.lane.b32.xlu0 %v16447_v7, %s7936_s11  ;;  %v5969_v7 = vrot.slane %v5758_v52, 5 }
 0x5b4   :  { %v5658_v26 = vpop.permute.xlu1 %5657 }
 0x5b5   :  { %5673 = vrot.lane.b32.xlu1 %v16039_v36, %s7932_s28  ;;  %v5968_v36 = vrot.slane %v5762_v6, 4 }
 0x5b6   :  { %5922 = vrot.lane.b32.xlu0 %v16450_v24, %s7932_s28  ;;  %v5757_v24 = vor.u32 %v5755_v1, %v5753_v37 }
 0x5b7   :  { %v5970_v40 = vor.u32 %v5969_v7, %v5968_v36 }
 0x5b8   :  { %v5761_v0 = vsel %vm20636_vm13, %v5757_v24, %v5760_v19  ;;  %vm20648_vm13 = vmmov %vm20618_vm2 }
 0x5b9   :  { %5781 = vrot.lane.b32.xlu1 %v5754_v22, %s7935_s5 }
 0x5ba   :  { %5988 = vrot.lane.b32.xlu0 %v5967_v12, %s7935_s5 }
 0x5bd   :  { %5814 = vrot.lane.b32.xlu1 %v16076_v13, %s7936_s11  ;;  %v5971_v13 = vsel %vm20637_vm5, %v5966_v59, %v5970_v40  ;;  %v5766_v23 = vpop.permute.xlu1 %5765  ;;  %vm20649_vm5 = vmmov %vm20618_vm2 }
 0x5be   :  { %6107 = vrot.lane.b32.xlu0 %v16481_v58, %s7936_s11  ;;  %v5907_v58 = vpop.permute.xlu0 %5906 }
 0x5c1   :  { %5675 = vrot.lane.b32.xlu1 %v16041_v31, %s7932_s28  ;;  %v5903_v31 = vshrl.u32 %v16346_v3, 16 }
 0x5c2   :  { %5924 = vrot.lane.b32.xlu0 %v16485_v56, %s7932_s28  ;;  %v5973_v56 = vpop.permute.xlu0 %5972  ;;  %v5799_v51 = vpop.permute.xlu1 %5798 }
 0x5c3   :  { %v5905_v35 = vor.u32 %v5903_v31, %v16462_v21 }
 0x5c5   :  { %5783 = vrot.lane.b32.xlu1 %v5761_v0, %s7935_s5 }
 0x5c6   :  { %5990 = vrot.lane.b32.xlu0 %v5971_v13, %s7935_s5  ;;  %v5660_v21 = vpop.permute.xlu1 %5659 }
 0x5c7   :  { %v6149_v61 = vsel %vm20640_vm12, %v16035_v20, %v5660_v21  ;;  %vm20652_vm12 = vmmov %vm20618_vm2 }
 0x5c9   :  { %5816 = vrot.lane.b32.xlu1 %v16078_v28, %s7936_s11  ;;  %v6227_v28 = vsel %vm20618_vm2, %v16487_v62, %v5907_v58 }
 0x5ca   :  { %6109 = vrot.lane.b32.xlu0 %v16545_v11, %s7936_s11  ;;  %v6147_v11 = vsel %vm20638_vm8, %v16031_v2, %v5658_v26  ;;  %v6258_v48 = vsel %vm6168_vm4, %v6227_v28, %v5973_v56  ;;  %vm20650_vm8 = vmmov %vm20618_vm2 }
 0x5cb   :  { %v6170_v34 = vsel %vm6168_vm4, %v6147_v11, %v5766_v23 }
 0x5cc   :  { %v6193_v25 = vsel %vm6191_vm0, %v6170_v34, %v5799_v51 }
 0x5cd   :  { %5677 = vrot.lane.b32.xlu1 %v16343_v45, %s7932_s28  ;;  %v6092_v45 = vpop.permute.xlu0 %6091 }
 0x5ce   :  { %5926 = vrot.lane.b32.xlu0 %v5905_v35, %s7932_s28  ;;  %v6280_v30 = vsel %vm6191_vm0, %v6258_v48, %v6092_v45 }
 0x5cf   :  { %6491 = vmatprep.mubr.bf16.mxu0 %v6280_v30  ;;  %v5768_v46 = vpop.permute.xlu1 %5767 }
 0x5d0   :  { %6492 = vmatmul.mubr.bf16.vlgmr.msra.gmra.mxu0 %v6193_v25  ;;  %v6172_v49 = vsel %vm6168_vm4, %v6149_v61, %v5768_v46 }
 0x5d1   :  { %5785 = vrot.lane.b32.xlu1 %v5764_v41, %s7935_s5  ;;  %v5909_v62 = vpop.permute.xlu0 %5908 }
 0x5d2   :  { %5992 = vrot.lane.b32.xlu0 %v5970_v40, %s7935_s5  ;;  %v6230_v44 = vsel %vm20639_vm6, %v16513_v18, %v5909_v62  ;;  %vm20651_vm6 = vmmov %vm20618_vm2 }
 0x5d3   :  { %v5801_v5 = vpop.permute.xlu1 %5800 }
 0x5d4   :  { %v6196_v1 = vsel %vm6191_vm0, %v6172_v49, %v5801_v5 }
 0x5d5   :  { %5818 = vrot.lane.b32.xlu1 %v16346_v3, %s7936_s11  ;;  %v5975_v2 = vpop.permute.xlu0 %5974 }
 0x5d6   :  { %6111 = vrot.lane.b32.xlu0 %v16521_v39, %s7936_s11  ;;  %v6260_v14 = vsel %vm6168_vm4, %v6230_v44, %v5975_v2 }
 0x5d7   :  { %v5662_v3 = vpop.permute.xlu1 %5661 }
 0x5d8   :  { %v6151_v20 = vsel %vm20642_vm11, %v16080_v32, %v5662_v3  ;;  %vm20654_vm11 = vmmov %vm20618_vm2 }
 0x5d9   :  { %v6094_v33 = vpop.permute.xlu0 %6093 }
 0x5da   :  { %v6283_v47 = vsel %vm6191_vm0, %v6260_v14, %v6094_v33 }
 0x5db   :  { %6499 = vmatprep.mubr.bf16.mxu0 %v6283_v47 }
 0x5dc   :  { %6500 = vmatmul.mubr.bf16.gmra.mxu0 %v6196_v1 }
 0x5dd   :  { %v5911_v39 = vpop.permute.xlu0 %5910 }
 0x5de   :  { %v5770_v29 = vpop.permute.xlu1 %5769  ;;  %v6233_v18 = vsel %vm20641_vm9, %v16523_v60, %v5911_v39  ;;  %vm20653_vm9 = vmmov %vm20618_vm2 }
 0x5df   :  { %v6174_v22 = vsel %vm6168_vm4, %v6151_v20, %v5770_v29 }
 0x5e1   :  { %v5977_v38 = vpop.permute.xlu0 %5976 }
 0x5e2   :  { %v5803_v42 = vpop.permute.xlu1 %5802  ;;  %v6262_v37 = vsel %vm6168_vm4, %v6233_v18, %v5977_v38 }
 0x5e3   :  { %v6199_v6 = vsel %vm6191_vm0, %v6174_v22, %v5803_v42 }
 0x5e5   :  { %v6096_v59 = vpop.permute.xlu0 %6095 }
 0x5e6   :  { %v5664_v12 = vpop.permute.xlu1 %5663  ;;  %v6286_v52 = vsel %vm6191_vm0, %v6262_v37, %v6096_v59 }
 0x5e7   :  { %6507 = vmatprep.mubr.bf16.mxu0 %v6286_v52  ;;  %v6153_v32 = vsel %vm20644_vm3, %v16134_v17, %v5664_v12  ;;  %vm20658_vm3 = vcmask 1040384  }
 0x5e8   :  { %6508 = vmatmul.mubr.bf16.gmra.mxu0 %v6199_v6 }
 0x5e9   :  { %v5913_v36 = vpop.permute.xlu0 %5912 }
 0x5ea   :  { %v5772_v7 = vpop.permute.xlu1 %5771  ;;  %v6236_v60 = vsel %vm20643_vm15, %v16531_v10, %v5913_v36  ;;  %vm20655_vm15 = vmmov %vm20618_vm2 }
 0x5eb   :  { %v6176_v26 = vsel %vm6168_vm4, %v6153_v32, %v5772_v7 }
 0x5ed   :  { %v5979_v24 = vpop.permute.xlu0 %5978 }
 0x5ee   :  { %v5805_v19 = vpop.permute.xlu1 %5804  ;;  %v6264_v40 = vsel %vm6168_vm4, %v6236_v60, %v5979_v24 }
 0x5ef   :  { %v6202_v23 = vsel %vm6191_vm0, %v6176_v26, %v5805_v19 }
 0x5f1   :  { %v6098_v0 = vpop.permute.xlu0 %6097 }
 0x5f2   :  { %v5666_v13 = vpop.permute.xlu1 %5665  ;;  %v6289_v58 = vsel %vm6191_vm0, %v6264_v40, %v6098_v0 }
 0x5f3   :  { %6515 = vmatprep.mubr.bf16.mxu0 %v6289_v58  ;;  %v6155_v17 = vsel %vm20646_vm10, %v16211_v57, %v5666_v13  ;;  %vm20660_vm10 = vmmov %vm20618_vm2 }
 0x5f4   :  { %6516 = vmatmul.mubr.bf16.gmra.mxu0 %v6202_v23 }
 0x5f5   :  { %v5915_v31 = vpop.permute.xlu0 %5914 }
 0x5f6   :  { %v6239_v10 = vsel %vm20645_vm14, %v16547_v50, %v5915_v31  ;;  %vm20659_vm14 = vmmov %vm20618_vm2 }
 0x5f7   :  { %v5774_v56 = vpop.permute.xlu1 %5773 }
 0x5f8   :  { %v6178_v11 = vsel %vm6168_vm4, %v6155_v17, %v5774_v56 }
 0x5f9   :  { %v5981_v35 = vpop.permute.xlu0 %5980 }
 0x5fa   :  { %v6266_v41 = vsel %vm6168_vm4, %v6239_v10, %v5981_v35 }
 0x5fb   :  { %v5807_v51 = vpop.permute.xlu1 %5806 }
 0x5fc   :  { %v6205_v34 = vsel %vm6191_vm0, %v6178_v11, %v5807_v51 }
 0x5fd   :  { %v6100_v28 = vpop.permute.xlu0 %6099 }
 0x5fe   :  { %v6292_v45 = vsel %vm6191_vm0, %v6266_v41, %v6100_v28 }
 0x5ff   :  { %v5668_v48 = vpop.permute.xlu1 %5667  ;;  %6523 = vmatprep.mubr.bf16.mxu0 %v6292_v45 }
 0x600   :  { %6524 = vmatmul.mubr.bf16.gmra.mxu0 %v6205_v34  ;;  %v6157_v57 = vsel %vm20648_vm13, %v16279_v9, %v5668_v48 }
 0x601   :  { %v5917_v21 = vpop.permute.xlu0 %5916 }
 0x602   :  { %v6242_v50 = vsel %vm20647_vm7, %v16557_v15, %v5917_v21 }
 0x604   :  { %v16726_v3 = vpop.f32.mrf.mxu1 }
 0x606   :  { %v7715_v15 = vpop.f32.mrf.mxu1 }
 0x607   :  { %v5776_v30 = vpop.permute.xlu1 %5775 }
 0x608   :  { %v5983_v25 = vpop.permute.xlu0 %5982  ;;  %v6180_v5 = vsel %vm6168_vm4, %v6157_v57, %v5776_v30  ;;  %v16728_v9 = vpop.f32.mrf.mxu1 }
 0x609   :  { %v6268_v46 = vsel %vm6168_vm4, %v6242_v50, %v5983_v25 }
 0x60a   :  { %v7716_v29 = vpop.f32.mrf.mxu1 }
 0x60b   :  { %v5809_v62 = vpop.permute.xlu1 %5808 }
 0x60c   :  { %v6102_v2 = vpop.permute.xlu0 %6101  ;;  %v6208_v14 = vsel %vm6191_vm0, %v6180_v5, %v5809_v62 }
 0x60d   :  { %v6295_v61 = vsel %vm6191_vm0, %v6268_v46, %v6102_v2 }
 0x60e   :  { %6531 = vmatprep.mubr.bf16.mxu0 %v6295_v61  ;;  %v16737_v22 = vpop.f32.mrf.mxu1 }
 0x60f   :  { %v5670_v44 = vpop.permute.xlu1 %5669  ;;  %6532 = vmatmul.mubr.bf16.gmra.mxu0 %v6208_v14 }
 0x610   :  { %v5919_v33 = vpop.permute.xlu0 %5918  ;;  %v6159_v38 = vsel %vm20618_vm2, %v16285_v4, %v5670_v44  ;;  %v7719_v52 = vpop.f32.mrf.mxu1 }
 0x611   :  { %v6245_v39 = vsel %vm20649_vm5, %v16568_v53, %v5919_v33 }
 0x612   :  { %v16740_v36 = vpop.f32.mrf.mxu1 }
 0x613   :  { %v5778_v49 = vpop.permute.xlu1 %5777 }
 0x614   :  { %v5985_v47 = vpop.permute.xlu0 %5984  ;;  %v6182_v20 = vsel %vm6168_vm4, %v6159_v38, %v5778_v49  ;;  %v7720_v4 = vpop.f32.mrf.mxu1 }
 0x615   :  { %v6270_v42 = vsel %vm6168_vm4, %v6245_v39, %v5985_v47 }
 0x617   :  { %v5811_v1 = vpop.permute.xlu1 %5810 }
 0x618   :  { %v6104_v18 = vpop.permute.xlu0 %6103  ;;  %v6211_v12 = vsel %vm6191_vm0, %v6182_v20, %v5811_v1  ;;  %v20656_v20 = vld [vmem:[#allocation105_spill] sm:$0xff] }
 0x619   :  { %v6298_v59 = vsel %vm6191_vm0, %v6270_v42, %v6104_v18 }
 0x61a   :  { %6539 = vmatprep.mubr.bf16.mxu0 %v6298_v59 }
 0x61b   :  { %v5672_v37 = vpop.permute.xlu1 %5671  ;;  %6540 = vmatmul.mubr.bf16.gmra.mxu0 %v6211_v12  ;;  %v16742_v19 = vpop.f32.mrf.mxu1 }
 0x61c   :  { %v5921_v53 = vpop.permute.xlu0 %5920  ;;  %v6161_v40 = vsel %vm20651_vm6, %v16294_v16, %v5672_v37  ;;  %v5632_v37 = vsel %vm14240_vm1, %v20656_v20, 0.0 }
 0x61d   :  { %v6248_v60 = vsel %vm20650_vm8, %v16570_v8, %v5921_v53  ;;  %v7723_v32 = vpop.f32.mrf.mxu1  ;;  %v5643_v53 = vpack.c.bf16 %v5632_v37, %v5632_v37 }
 0x61f   :  { %v5780_v6 = vpop.permute.xlu1 %5779  ;;  %v16751_v31 = vpop.f32.mrf.mxu1 }
 0x620   :  { %v5987_v7 = vpop.permute.xlu0 %5986  ;;  %v6184_v13 = vsel %vm6168_vm4, %v6161_v40, %v5780_v6 }
 0x621   :  { %v6272_v0 = vsel %vm6168_vm4, %v6248_v60, %v5987_v7  ;;  %v7724_v35 = vpop.f32.mrf.mxu1 }
 0x623   :  { %v5813_v24 = vpop.permute.xlu1 %5812 }
 0x624   :  { %v6106_v26 = vpop.permute.xlu0 %6105  ;;  %v6214_v56 = vsel %vm6191_vm0, %v6184_v13, %v5813_v24  ;;  %v5645_v24 = vsel %vm20658_vm3, %v5643_v53, 0 }
 0x625   :  { %v6301_v23 = vsel %vm6191_vm0, %v6272_v0, %v6106_v26 }
 0x626   :  { %6547 = vmatprep.mubr.bf16.mxu0 %v6301_v23  ;;  %v16754_v10 = vpop.f32.mrf.mxu1 }
 0x627   :  { %v5674_v58 = vpop.permute.xlu1 %5673  ;;  %6548 = vmatmul.mubr.bf16.gmra.mxu0 %v6214_v56 }
 0x628   :  { %v5923_v8 = vpop.permute.xlu0 %5922  ;;  %v7727_v16 = vpop.f32.mrf.mxu1  ;;  %v6163_v45 = vsel %vm20653_vm9, %v16296_v43, %v5674_v58 }
 0x629   :  { %v6251_v11 = vsel %vm20652_vm12, %v16579_v54, %v5923_v8 }
 0x62a   :  { %v16756_v28 = vpop.f32.mrf.mxu1 }
 0x62b   :  { %v5782_v51 = vpop.permute.xlu1 %5781 }
 0x62c   :  { %v5989_v17 = vpop.permute.xlu0 %5988  ;;  %v7728_v48 = vpop.f32.mrf.mxu1  ;;  %v6186_v30 = vsel %vm6168_vm4, %v6163_v45, %v5782_v51 }
 0x62d   :  { %v6274_v34 = vsel %vm6168_vm4, %v6251_v11, %v5989_v17 }
 0x62e   :  { %v16765_v50 = vpop.f32.mrf.mxu1 }
 0x62f   :  { %v5815_v41 = vpop.permute.xlu1 %5814 }
 0x630   :  { %v6108_v21 = vpop.permute.xlu0 %6107  ;;  %v6217_v57 = vsel %vm6191_vm0, %v6186_v30, %v5815_v41  ;;  %v7731_v46 = vpop.f32.mrf.mxu1 }
 0x631   :  { %v6304_v62 = vsel %vm6191_vm0, %v6274_v34, %v6108_v21 }
 0x632   :  { %6555 = vmatprep.mubr.bf16.mxu0 %v6304_v62  ;;  %v16768_v5 = vpop.f32.mrf.mxu1 }
 0x633   :  { %v5676_v25 = vpop.permute.xlu1 %5675  ;;  %6556 = vmatmul.mubr.bf16.gmra.mxu0 %v6217_v57 }
 0x634   :  { %v5925_v54 = vpop.permute.xlu0 %5924  ;;  %v7732_v43 = vpop.f32.mrf.mxu1  ;;  %v6165_v15 = vsel %vm20655_vm15, %v16023_v55, %v5676_v25 }
 0x635   :  { %v6254_v33 = vsel %vm20654_vm11, %v16591_v27, %v5925_v54 }
 0x636   :  { %v16770_v14 = vpop.f32.mrf.mxu1 }
 0x637   :  { %v5784_v2 = vpop.permute.xlu1 %5783 }
 0x638   :  { %v5991_v44 = vpop.permute.xlu0 %5990  ;;  %v7735_v49 = vpop.f32.mrf.mxu1  ;;  %v6188_v39 = vsel %vm6168_vm4, %v6165_v15, %v5784_v2 }
 0x639   :  { %v6276_v47 = vsel %vm6168_vm4, %v6254_v33, %v5991_v44 }
 0x63a   :  { %v16779_v42 = vpop.f32.mrf.mxu1 }
 0x63b   :  { %v5817_v61 = vpop.permute.xlu1 %5816 }
 0x63c   :  { %v6110_v1 = vpop.permute.xlu0 %6109  ;;  %v6220_v18 = vsel %vm6191_vm0, %v6188_v39, %v5817_v61  ;;  %v7736_v59 = vpop.f32.mrf.mxu1 }
 0x63d   :  { %v6307_v38 = vsel %vm6191_vm0, %v6276_v47, %v6110_v1 }
 0x63e   :  { %6563 = vmatprep.mubr.bf16.mxu0 %v6307_v38  ;;  %v16785_v52 = vpop.f32.mrf.mxu1 }
 0x63f   :  { %v5678_v29 = vpop.permute.xlu1 %5677  ;;  %6564 = vmatmul.mubr.bf16.gmra.mxu0 %v6220_v18 }
 0x640   :  { %v5927_v55 = vpop.permute.xlu0 %5926  ;;  %v7739_v6 = vpop.f32.mrf.mxu1  ;;  %v6167_v0 = vsel %vm20660_vm10, %v16330_v63, %v5678_v29 }
 0x641   :  { %v6256_v60 = vsel %vm20659_vm14, %v5645_v24, %v5927_v55  ;;  %v16820_v24 = vld [vmem:[%s17529_s6] ss:$0 sm:$0xff] }
 0x642   :  { %v16787_v7 = vpop.f32.mrf.mxu1 }
 0x643   :  { %v5786_v12 = vpop.permute.xlu1 %5785 }
 0x644   :  { %v5993_v4 = vpop.permute.xlu0 %5992  ;;  %v7740_v40 = vpop.f32.mrf.mxu1  ;;  %v6190_v58 = vsel %vm6168_vm4, %v6167_v0, %v5786_v12 }
 0x645   :  { %v6278_v26 = vsel %vm6168_vm4, %v6256_v60, %v5993_v4 }
 0x647   :  { %v5819_v32 = vpop.permute.xlu1 %5818 }
 0x648   :  { %v6112_v13 = vpop.permute.xlu0 %6111  ;;  %v16796_v56 = vpop.f32.mrf.mxu1  ;;  %v6223_v35 = vsel %vm6191_vm0, %v6190_v58, %v5819_v32 }
 0x649   :  { %v6310_v23 = vsel %vm6191_vm0, %v6278_v26, %v6112_v13 }
 0x64a   :  { %6571 = vmatprep.mubr.bf16.mxu0 %v6310_v23  ;;  %v7743_v8 = vpop.f32.mrf.mxu1 }
 0x64b   :  { %6572 = vmatmul.mubr.bf16.gmra.mxu0 %v6223_v35 }
 0x64c   :  { %v16799_v51 = vpop.f32.mrf.mxu1 }
 0x64e   :  { %v7744_v16 = vpop.f32.mrf.mxu1 }
 0x653   :  { %v16801_v17 = vpop.f32.mrf.mxu1 }
 0x655   :  { %v7747_v63 = vpop.f32.mrf.mxu1 }
 0x657   :  { %v16803_v41 = vpop.f32.mrf.mxu1 }
 0x659   :  { %v7748_v11 = vpop.f32.mrf.mxu1 }
 0x65b   :  { %v16805_v48 = vpop.f32.mrf.mxu1 }
 0x65d   :  { %v7751_v45 = vpop.f32.mrf.mxu1 }
 0x65f   :  { %v16807_v34 = vpop.f32.mrf.mxu1 }
 0x661   :  { %v7752_v21 = vpop.f32.mrf.mxu1 }
 0x663   :  { %v16809_v30 = vpop.f32.mrf.mxu1 }
 0x665   :  { %v7755_v25 = vpop.f32.mrf.mxu1 }
 0x666   :  { %v20661_v25 = vld [vmem:[#allocation63_spill] sm:$0xff] }
 0x667   :  { %v6696_v62 = vpop.f32.mrf.mxu1  ;;  %vm6720_vm1 = vcmp.lt.s32.totalorder %v20661_v25, 8 }
 0x668   :  { %v20662_v62 = vld [vmem:[#allocation62_spill] sm:$0xff] }
 0x669   :  { %v7756_v57 = vpop.f32.mrf.mxu1  ;;  %vm6741_vm4 = vcmp.lt.s32.totalorder %v20662_v62, 8 }
 0x66a   :  { %vm16851_vm2 = vmand %vm6720_vm1, %vm6741_vm4  ;;  %vm20683_vm4 = vcmask 261120  }
 0x690   :  { %v7430_v46 = vpop.f32.mrf.mxu0 }
 0x692   :  { %v7431_v54 = vpop.f32.mrf.mxu0 }
 0x693   :  { %v7432_v4 = vadd.f32 %v7431_v54, %v7430_v46  ;;  %v20663_v54 = vld [vmem:[#allocation66_spill] sm:$0xff] }
 0x694   :  { %v7433_v2 = vpop.f32.mrf.mxu0  ;;  %vm6721_vm0 = vcmp.lt.s32.totalorder %v20663_v54, 8  ;;  %v20681_v54 = vld [vmem:[#allocation82_spill] sm:$0xff] }
 0x695   :  { %v6494_v0 = vadd.f32 %v7432_v4, %v16820_v24  ;;  %vm6725_vm10 = vcmp.lt.s32.totalorder %v20681_v54, 8 }
 0x696   :  { %v7434_v43 = vpop.f32.mrf.mxu0 }
 0x697   :  { %v7435_v60 = vadd.f32 %v7434_v43, %v7433_v2  ;;  %v16832_v16 = vadd.f32 %v16726_v3, %v6494_v0  ;;  %v20664_v3 = vld [vmem:[#allocation65_spill] sm:$0xff]  ;;  %v20665_v2 = vld [vmem:[#allocation72_spill] sm:$0xff] }
 0x698   :  { %vm6742_vm7 = vcmp.lt.s32.totalorder %v20664_v3, 8  ;;  %vm6722_vm13 = vcmp.lt.s32.totalorder %v20665_v2, 8  ;;  %v20666_v43 = vld [vmem:[#allocation17_spill] sm:$0xff] }
 0x699   :  { %v6497_v13 = vadd.f32 %v7435_v60, %v16820_v24  ;;  %vm6743_vm5 = vcmp.lt.s32.totalorder %v20666_v43, 8  ;;  %vm16863_vm8 = vmand %vm6721_vm0, %vm6742_vm7  ;;  %v20682_v3 = vld [vmem:[#allocation21_spill] sm:$0xff] }
 0x69a   :  { %vm16870_vm9 = vmand %vm6722_vm13, %vm6743_vm5  ;;  %vm6746_vm1 = vcmp.lt.s32.totalorder %v20682_v3, 8 }
 0x69b   :  { %v16835_v63 = vadd.f32 %v16728_v9, %v6497_v13  ;;  %v6699_v9 = vmax.f32 %v16832_v16, 0.0  ;;  %vm20684_vm0 = vmmov %vm20683_vm4 }
 0x69c   :  { %v7436_v44 = vpop.f32.mrf.mxu0  ;;  %vm20686_vm13 = vmmov %vm20684_vm0 }
 0x69d   :  { %v6825_v13 = vsel %vm16851_vm2, %v6699_v9, 0.0  ;;  %vm16920_vm5 = vmand %vm6725_vm10, %vm6746_vm1 }
 0x69e   :  { %v7437_v61 = vpop.f32.mrf.mxu0  ;;  %v6846_v2 = vsel %vm20683_vm4, %v6825_v13, 0.0  ;;  %vm20694_vm1 = vmmov %vm20684_vm0 }
 0x69f   :  { %v7438_v32 = vadd.f32 %v7437_v61, %v7436_v44  ;;  %v6700_v61 = vmax.f32 %v16835_v63, 0.0 }
 0x6a0   :  { %v7439_v33 = vpop.f32.mrf.mxu0 }
 0x6a1   :  { %v6502_v35 = vadd.f32 %v7438_v32, %v16820_v24  ;;  %v20676_v32 = vld [vmem:[#allocation6_spill] sm:$0xff] }
 0x6a2   :  { %v7440_v49 = vpop.f32.mrf.mxu0  ;;  %vm6745_vm15 = vcmp.lt.s32.totalorder %v20676_v32, 8 }
 0x6a3   :  { %v7441_v58 = vadd.f32 %v7440_v49, %v7439_v33  ;;  %v16842_v57 = vadd.f32 %v16737_v22, %v6502_v35 }
 0x6a5   :  { %v6505_v11 = vadd.f32 %v7441_v58, %v16820_v24 }
 0x6a7   :  { %v16857_v22 = vadd.f32 %v16740_v36, %v6505_v11 }
 0x6a8   :  { %v7442_v15 = vpop.f32.mrf.mxu0 }
 0x6aa   :  { %v7443_v47 = vpop.f32.mrf.mxu0 }
 0x6ab   :  { %v7444_v23 = vadd.f32 %v7443_v47, %v7442_v15  ;;  %v6701_v47 = vmax.f32 %v16842_v57, 0.0 }
 0x6ac   :  { %v7445_v1 = vpop.f32.mrf.mxu0 }
 0x6ad   :  { %v6510_v45 = vadd.f32 %v7444_v23, %v16820_v24  ;;  %v6827_v35 = vsel %vm16870_vm9, %v6701_v47, 0.0 }
 0x6ae   :  { %v7446_v39 = vpop.f32.mrf.mxu0 }
 0x6af   :  { %v7447_v21 = vadd.f32 %v7446_v39, %v7445_v1  ;;  %v16860_v33 = vadd.f32 %v16742_v19, %v6510_v45  ;;  %v20671_v1 = vld [vmem:[#allocation73_spill] sm:$0xff]  ;;  %v20672_v39 = vld [vmem:[#allocation18_spill] sm:$0xff]  ;;  %v20675_v19 = vld [vmem:[#allocation20_spill] sm:$0xff] }
 0x6b0   :  { %vm6723_vm6 = vcmp.lt.s32.totalorder %v20671_v1, 8  ;;  %vm6744_vm12 = vcmp.lt.s32.totalorder %v20672_v39, 8  ;;  %vm6724_vm11 = vcmp.lt.s32.totalorder %v20675_v19, 8  ;;  %v6849_v1 = vsel %vm20686_vm13, %v6827_v35, 0.0 }
 0x6b1   :  { %v6513_v49 = vadd.f32 %v7447_v21, %v16820_v24  ;;  %vm16887_vm3 = vmand %vm6723_vm6, %vm6744_vm12  ;;  %v20776_v63 = vmax.f32 %v16860_v33, 0.0 }
 0x6b2   :  { %vm16899_vm14 = vmand %vm6724_vm11, %vm6745_vm15 }
 0x6b3   :  { %vm20690_vm12 = vmmov %vm20684_vm0 }
 0x6b4   :  { %v7448_v29 = vpop.f32.mrf.mxu0 }
 0x6b6   :  { %v7449_v38 = vpop.f32.mrf.mxu0 }
 0x6b7   :  { %v7450_v4 = vadd.f32 %v7449_v38, %v7448_v29  ;;  %v6826_v29 = vsel %vm16863_vm8, %v6700_v61, 0.0  ;;  %v6702_v38 = vmax.f32 %v16857_v22, 0.0 }
 0x6b8   :  { %v7451_v18 = vpop.f32.mrf.mxu0  ;;  %v6847_v43 = vsel %vm20684_vm0, %v6826_v29, 0.0  ;;  %v20689_v29 = vld [vmem:[#allocation10_spill] sm:$0xff] }
 0x6b9   :  { %v6518_v45 = vadd.f32 %v7450_v4, %v16820_v24  ;;  %v6848_v13 = vadd.f32 %v6847_v43, %v6846_v2  ;;  %vm6747_vm6 = vcmp.lt.s32.totalorder %v20689_v29, 8 }
 0x6ba   :  { %v7452_v20 = vpop.f32.mrf.mxu0 }
 0x6bb   :  { %v7453_v0 = vadd.f32 %v7452_v20, %v7451_v18  ;;  %v18406_v18 = vmax.f32 %v16860_v33, 0.0  ;;  %v16893_v20 = vadd.f32 %v16751_v31, %v6513_v49  ;;  %v20685_v49 = vld [vmem:[#allocation91_spill] sm:$0xff]  ;;  %v16925_v39 = vadd.f32 %v16754_v10, %v6518_v45 }
 0x6bc   :  { %vm6726_vm7 = vcmp.lt.s32.totalorder %v20685_v49, 8  ;;  %v20691_v45 = vld [vmem:[#allocation95_spill] sm:$0xff]  ;;  %v6850_v3 = vadd.f32 %v6849_v1, %v6848_v13 }
 0x6bd   :  { %v6521_v31 = vadd.f32 %v7453_v0, %v16820_v24  ;;  %vm6727_vm11 = vcmp.lt.s32.totalorder %v20691_v45, 8  ;;  %vm16959_vm0 = vmand %vm6726_vm7, %vm6747_vm6  ;;  %v20700_v49 = vld [vmem:[#allocation107_spill] sm:$0xff]  ;;  %v20777_v22 = vmax.f32 %v16893_v20, 0.0  ;;  %v20778_v36 = vmax.f32 %v16925_v39, 0.0 }
 0x6be   :  { %vm6729_vm7 = vcmp.lt.s32.totalorder %v20700_v49, 8 }
 0x6bf   :  { %v16933_v35 = vadd.f32 %v16756_v28, %v6521_v31 }
 0x6c0   :  { %v7454_v27 = vpop.f32.mrf.mxu0 }
 0x6c2   :  { %v7455_v37 = vpop.f32.mrf.mxu0 }
 0x6c3   :  { %v7456_v21 = vadd.f32 %v7455_v37, %v7454_v27  ;;  %v6828_v27 = vsel %vm16887_vm3, %v6702_v38, 0.0  ;;  %v6829_v37 = vsel %vm16899_vm14, %v18406_v18, 0.0 }
 0x6c4   :  { %v7457_v59 = vpop.f32.mrf.mxu0  ;;  %v6851_v10 = vsel %vm20690_vm12, %v6828_v27, 0.0  ;;  %vm20702_vm12 = vmmov %vm20694_vm1 }
 0x6c5   :  { %v6526_v4 = vadd.f32 %v7456_v21, %v16820_v24  ;;  %v20692_v21 = vld [vmem:[#allocation94_spill] sm:$0xff]  ;;  %v6852_v1 = vadd.f32 %v6851_v10, %v6850_v3  ;;  %v20703_v10 = vmov 0  ;;  %v20705_v3 = vmov 0 }
 0x6c6   :  { %v7458_v55 = vpop.f32.mrf.mxu0  ;;  %vm6748_vm15 = vcmp.lt.s32.totalorder %v20692_v21, 8 }
 0x6c7   :  { %v7459_v25 = vadd.f32 %v7458_v55, %v7457_v59  ;;  %v18405_v59 = vmax.f32 %v16893_v20, 0.0  ;;  %vm16971_vm13 = vmand %vm6727_vm11, %vm6748_vm15 }
 0x6c9   :  { %v6529_v19 = vadd.f32 %v7459_v25, %v16820_v24  ;;  %v20693_v25 = vld [vmem:[#allocation103_spill] sm:$0xff]  ;;  %v6830_v28 = vsel %vm16920_vm5, %v18405_v59, 0.0 }
 0x6ca   :  { %vm6728_vm10 = vcmp.lt.s32.totalorder %v20693_v25, 8  ;;  %v6855_v29 = vsel %vm20702_vm12, %v6830_v28, 0.0 }
 0x6cb   :  { %v16952_v31 = vadd.f32 %v16768_v5, %v6529_v19  ;;  %v20701_v19 = vld [vmem:[#allocation106_spill] sm:$0xff] }
 0x6cc   :  { %vm6750_vm6 = vcmp.lt.s32.totalorder %v20701_v19, 8 }
 0x6cd   :  { %v18385_v45 = vmax.f32 %v16952_v31, 0.0  ;;  %vm17000_vm15 = vmand %vm6729_vm7, %vm6750_vm6  ;;  %vm20711_vm7 = vcmask 261120  }
 0x6ce   :  { %v20706_v3 = vsel %vm17000_vm15, 4294967295, %v20705_v3  ;;  %vm20712_vm6 = vmmov %vm20711_vm7 }
 0x6cf   :  { %v16811_v12 = vpop.f32.mrf.mxu0 }
 0x6d1   :  { %v16813_v53 = vpop.f32.mrf.mxu0 }
 0x6d2   :  { %v7462_v32 = vadd.f32 %v16813_v53, %v16811_v12  ;;  %v6853_v12 = vsel %vm20694_vm1, %v6829_v37, 0.0  ;;  %v20695_v53 = vld [vmem:[#allocation19_spill] sm:$0xff]  ;;  %v18383_v37 = vmax.f32 %v16933_v35, 0.0 }
 0x6d3   :  { %v16815_v6 = vpop.f32.mrf.mxu0  ;;  %vm6749_vm4 = vcmp.lt.s32.totalorder %v20695_v53, 8  ;;  %v6854_v13 = vadd.f32 %v6853_v12, %v6852_v1  ;;  %v20707_v53 = vld [vmem:[#allocation25_spill] sm:$0xff]  ;;  %v20710_v1 = vld [vmem:[#allocation120_spill] sm:$0xff] }
 0x6d4   :  { %v6534_v2 = vadd.f32 %v7462_v32, %v16820_v24  ;;  %vm16988_vm11 = vmand %vm6728_vm10, %vm6749_vm4  ;;  %vm6730_vm10 = vcmp.lt.s32.totalorder %v20707_v53, 8  ;;  %vm6752_vm12 = vcmp.lt.s32.totalorder %v20710_v1, 8  ;;  %v20716_v53 = vmov 0  ;;  %v20723_v1 = vld [vmem:[#allocation128_spill] sm:$0xff] }
 0x6d5   :  { %v16822_v40 = vpop.f32.mrf.mxu0  ;;  %v20704_v10 = vsel %vm16988_vm11, 4294967295, %v20703_v10  ;;  %v6856_v19 = vadd.f32 %v6855_v29, %v6854_v13  ;;  %v20713_v29 = vmov 0 }
 0x6d6   :  { %v7465_v54 = vadd.f32 %v16822_v40, %v16815_v6  ;;  %v18384_v6 = vmax.f32 %v16925_v39, 0.0  ;;  %v16949_v40 = vadd.f32 %v16765_v50, %v6526_v4  ;;  %v20698_v4 = vmov 0 }
 0x6d7   :  { %v20699_v4 = vsel %vm16971_vm13, 4294967295, %v20698_v4  ;;  %v16994_v21 = vadd.f32 %v16770_v14, %v6534_v2  ;;  %v20708_v14 = vld [vmem:[#allocation12_spill] sm:$0xff]  ;;  %v20709_v2 = vld [vmem:[#allocation121_spill] sm:$0xff] }
 0x6d8   :  { %v6537_v50 = vadd.f32 %v7465_v54, %v16820_v24  ;;  %vm6751_vm1 = vcmp.lt.s32.totalorder %v20708_v14, 8  ;;  %v20718_v14 = vld [vmem:[#allocation127_spill] sm:$0xff] }
 0x6d9   :  { %vm17025_vm4 = vmand %vm6730_vm10, %vm6751_vm1  ;;  %vm6732_vm10 = vcmp.lt.s32.totalorder %v20718_v14, 8 }
 0x6da   :  { %v17005_v25 = vadd.f32 %v16779_v42, %v6537_v50  ;;  %v20714_v29 = vsel %vm17025_vm4, 4294967295, %v20713_v29 }
 0x6db   :  { %v16825_v26 = vpop.f32.mrf.mxu0 }
 0x6dd   :  { %v16829_v8 = vpop.f32.mrf.mxu0 }
 0x6de   :  { %v7468_v5 = vadd.f32 %v16829_v8, %v16825_v26  ;;  %v6831_v26 = vsel %vm16959_vm0, %v18384_v6, 0.0  ;;  %v18386_v8 = vmax.f32 %v16949_v40, 0.0 }
 0x6df   :  { %v16844_v46 = vpop.f32.mrf.mxu0 }
 0x6e0   :  { %v6542_v12 = vadd.f32 %v7468_v5, %v16820_v24  ;;  %v18395_v5 = vmax.f32 %v16994_v21, 0.0 }
 0x6e1   :  { %v7470_v60 = vpop.f32.mrf.mxu0 }
 0x6e2   :  { %v7471_v54 = vadd.f32 %v7470_v60, %v16844_v46  ;;  %v6832_v60 = vsel %vm16971_vm13, %v18383_v37, 0.0  ;;  %v6857_v37 = vsel %vm20711_vm7, %v6831_v26, 0.0  ;;  %vm20715_vm7 = vcmp.lt.s32.totalorder %v20709_v2, 8 }
 0x6e3   :  { %v6859_v50 = vsel %vm20712_vm6, %v6832_v60, 0.0  ;;  %v6858_v60 = vadd.f32 %v6857_v37, %v6856_v19  ;;  %vm17038_vm6 = vmand %vm20715_vm7, %vm6752_vm12  ;;  %v6835_v2 = vsel %vm17025_vm4, %v18395_v5, 0.0 }
 0x6e4   :  { %v6545_v6 = vadd.f32 %v7471_v54, %v16820_v24  ;;  %v20717_v53 = vsel %vm17038_vm6, 4294967295, %v20716_v53 }
 0x6e7   :  { %v16880_v58 = vpop.f32.mrf.mxu0 }
 0x6e9   :  { %v7473_v62 = vpop.f32.mrf.mxu0 }
 0x6ea   :  { %v7474_v28 = vadd.f32 %v7473_v62, %v16880_v58  ;;  %v6833_v58 = vsel %vm16988_vm11, %v18386_v8, 0.0  ;;  %v6834_v62 = vsel %vm17000_vm15, %v18385_v45, 0.0  ;;  %v20719_v45 = vld [vmem:[#allocation30_spill] sm:$0xff]  ;;  %v20720_v8 = vld [vmem:[#allocation129_spill] sm:$0xff]  ;;  %vm20721_vm11 = vcmask 261120  }
 0x6eb   :  { %v7475_v0 = vpop.f32.mrf.mxu0  ;;  %vm6753_vm1 = vcmp.lt.s32.totalorder %v20719_v45, 8  ;;  %vm20722_vm13 = vmmov %vm20721_vm11 }
 0x6ec   :  { %v6550_v54 = vadd.f32 %v7474_v28, %v16820_v24  ;;  %v6863_v28 = vsel %vm20722_vm13, %v6834_v62, 0.0  ;;  %vm17069_vm13 = vmand %vm6732_vm10, %vm6753_vm1  ;;  %v20727_v62 = vld [vmem:[#allocation34_spill] sm:$0xff]  ;;  %vm20730_vm10 = vcmp.lt.s32.totalorder %v20723_v1, 8  ;;  %vm20731_vm1 = vcmp.lt.s32.totalorder %v20720_v8, 8 }
 0x6ed   :  { %v7476_v43 = vpop.f32.mrf.mxu0  ;;  %vm20728_vm15 = vmmov %vm20721_vm11  ;;  %v20738_v1 = vmov 0 }
 0x6ee   :  { %v7477_v42 = vadd.f32 %v7476_v43, %v7475_v0  ;;  %v18390_v0 = vmax.f32 %v17005_v25, 0.0  ;;  %v17031_v43 = vadd.f32 %v16785_v52, %v6542_v12  ;;  %v6861_v52 = vsel %vm20721_vm11, %v6833_v58, 0.0  ;;  %v20726_v58 = vld [vmem:[#allocation135_spill] sm:$0xff]  ;;  %vm20729_vm12 = vmmov %vm20721_vm11 }
 0x6ef   :  { %v17047_v12 = vadd.f32 %v16787_v7, %v6545_v6  ;;  %v17062_v6 = vadd.f32 %v16796_v56, %v6550_v54  ;;  %vm17086_vm11 = vmand %vm20731_vm1, %vm20730_vm10  ;;  %vm20737_vm10 = vcmp.lt.s32.totalorder %v20726_v58, 8 }
 0x6f0   :  { %v6553_v37 = vadd.f32 %v7477_v42, %v16820_v24  ;;  %v6836_v19 = vsel %vm17038_vm6, %v18390_v0, 0.0  ;;  %v18391_v7 = vmax.f32 %v17031_v43, 0.0 }
 0x6f1   :  { %v18393_v56 = vmax.f32 %v17047_v12, 0.0  ;;  %v6867_v14 = vsel %vm20729_vm12, %v6836_v19, 0.0  ;;  %vm20736_vm12 = vcmp.lt.s32.totalorder %v20727_v62, 8  ;;  %v20740_v19 = vld [vmem:[#allocation148_spill] sm:$0xff] }
 0x6f2   :  { %v17078_v54 = vadd.f32 %v16799_v51, %v6553_v37  ;;  %v6837_v51 = vsel %vm17069_vm13, %v18391_v7, 0.0  ;;  %v18397_v37 = vmax.f32 %v17062_v6, 0.0  ;;  %vm17104_vm1 = vmand %vm20737_vm10, %vm20736_vm12 }
 0x6f3   :  { %v7478_v32 = vpop.f32.mrf.mxu0  ;;  %v20739_v1 = vsel %vm17104_vm1, 4294967295, %v20738_v1  ;;  %vm20742_vm12 = vmmov %vm20728_vm15 }
 0x6f5   :  { %v7479_v46 = vpop.f32.mrf.mxu0 }
 0x6f6   :  { %v7480_v26 = vadd.f32 %v7479_v46, %v7478_v32  ;;  %v6860_v46 = vadd.f32 %v6859_v50, %v6858_v60  ;;  %v20724_v50 = vmov 0  ;;  %v6865_v60 = vsel %vm20728_vm15, %v6835_v2, 0.0  ;;  %v20735_v2 = vld [vmem:[#allocation138_spill] sm:$0xff] }
 0x6f7   :  { %v7481_v49 = vpop.f32.mrf.mxu0  ;;  %v20725_v50 = vsel %vm17069_vm13, 4294967295, %v20724_v50  ;;  %vm20743_vm10 = vcmp.lt.s32.totalorder %v20735_v2, 8 }
 0x6f8   :  { %v6862_v42 = vadd.f32 %v6861_v52, %v6860_v46  ;;  %v20732_v52 = vmov 0  ;;  %v20734_v46 = vld [vmem:[#allocation139_spill] sm:$0xff] }
 0x6f9   :  { %v7482_v13 = vpop.f32.mrf.mxu0  ;;  %v20733_v52 = vsel %vm17086_vm11, 4294967295, %v20732_v52  ;;  %vm20744_vm15 = vcmp.lt.s32.totalorder %v20734_v46, 8 }
 0x6fa   :  { %v7483_v32 = vadd.f32 %v7482_v13, %v7481_v49  ;;  %v6558_v49 = vadd.f32 %v7480_v26, %v16820_v24  ;;  %v6864_v26 = vadd.f32 %v6863_v28, %v6862_v42  ;;  %v20741_v42 = vld [vmem:[#allocation40_spill] sm:$0xff]  ;;  %vm17124_vm7 = vmand %vm20744_vm15, %vm20743_vm10  ;;  %vm20751_vm10 = vcmp.lt.s32.totalorder %v20740_v19, 8 }
 0x6fb   :  { %vm20749_vm15 = vmmov %vm20742_vm12 }
 0x6fc   :  { %v6561_v45 = vadd.f32 %v7483_v32, %v16820_v24  ;;  %v17098_v32 = vadd.f32 %v16801_v17, %v6558_v49  ;;  %v6866_v28 = vadd.f32 %v6865_v60, %v6864_v26  ;;  %v6838_v17 = vsel %vm17086_vm11, %v18393_v56, 0.0  ;;  %v20747_v26 = vld [vmem:[#allocation152_spill] sm:$0xff]  ;;  %v20748_v56 = vld [vmem:[#allocation151_spill] sm:$0xff] }
 0x6fd   :  { %v20745_v60 = vmov 0  ;;  %v6871_v2 = vsel %vm20749_vm15, %v6838_v17, 0.0  ;;  %v20760_v17 = vld [vmem:[#allocation166_spill] sm:$0xff] }
 0x6fe   :  { %v17116_v49 = vadd.f32 %v16803_v41, %v6561_v45  ;;  %v6868_v62 = vadd.f32 %v6867_v14, %v6866_v28  ;;  %v20746_v60 = vsel %vm17124_vm7, 4294967295, %v20745_v60  ;;  %v6839_v41 = vsel %vm17104_vm1, %v18397_v37, 0.0  ;;  %v20755_v28 = vld [vmem:[#allocation44_spill] sm:$0xff] }
 0x6ff   :  { %v7484_v13 = vpop.f32.mrf.mxu0  ;;  %v18402_v45 = vmax.f32 %v17098_v32, 0.0  ;;  %vm6759_vm1 = vcmp.lt.s32.totalorder %v20755_v28, 8  ;;  %v6873_v19 = vsel %vm20749_vm15, %v6839_v41, 0.0  ;;  %vm6739_vm13 = vcmp.lt.s32.totalorder %v20760_v17, 8 }
 0x701   :  { %v7485_v0 = vpop.f32.mrf.mxu0 }
 0x702   :  { %v7486_v8 = vadd.f32 %v7485_v0, %v7484_v13  ;;  %v18404_v0 = vmax.f32 %v17078_v54, 0.0  ;;  %v6869_v13 = vsel %vm20742_vm12, %v6837_v51, 0.0  ;;  %vm20750_vm12 = vcmp.lt.s32.totalorder %v20741_v42, 8 }
 0x703   :  { %v7487_v7 = vpop.f32.mrf.mxu0  ;;  %vm17143_vm11 = vmand %vm20751_vm10, %vm20750_vm12  ;;  %v20752_v51 = vmov 0  ;;  %v6870_v37 = vadd.f32 %v6869_v13, %v6868_v62  ;;  %vm20756_vm12 = vcmp.lt.s32.totalorder %v20748_v56, 8  ;;  %vm20757_vm10 = vcmp.lt.s32.totalorder %v20747_v26, 8 }
 0x704   :  { %v6566_v58 = vadd.f32 %v7486_v8, %v16820_v24  ;;  %v20753_v51 = vsel %vm17143_vm11, 4294967295, %v20752_v51  ;;  %v20754_v8 = vld [vmem:[#allocation162_spill] sm:$0xff]  ;;  %vm17160_vm6 = vmand %vm20757_vm10, %vm20756_vm12  ;;  %v6841_v13 = vsel %vm17143_vm11, %v18402_v45, 0.0 }
 0x705   :  { %v7488_v5 = vpop.f32.mrf.mxu0  ;;  %v6872_v62 = vadd.f32 %v6871_v2, %v6870_v37  ;;  %vm20762_vm12 = vcmp.lt.s32.totalorder %v20754_v8, 8  ;;  %vm20765_vm11 = vmmov %vm20749_vm15  ;;  %v20769_v45 = vld [vmem:[#allocation170_spill] sm:$0xff] }
 0x706   :  { %v17136_v14 = vadd.f32 %v16805_v48, %v6566_v58  ;;  %v7489_v46 = vadd.f32 %v7488_v5, %v7487_v7  ;;  %v6840_v48 = vsel %vm17124_vm7, %v18404_v0, 0.0  ;;  %v18403_v5 = vmax.f32 %v17116_v49, 0.0  ;;  %v20761_v58 = vld [vmem:[#allocation165_spill] sm:$0xff]  ;;  %vm17177_vm10 = vmand %vm20762_vm12, %vm6759_vm1 }
 0x707   :  { %vm6760_vm4 = vcmp.lt.s32.totalorder %v20761_v58, 8  ;;  %v6875_v26 = vsel %vm20749_vm15, %v6840_v48, 0.0  ;;  %v6874_v37 = vadd.f32 %v6873_v19, %v6872_v62  ;;  %vm20768_vm1 = vmmov %vm20765_vm11  ;;  %vm6740_vm15 = vcmp.lt.s32.totalorder %v20769_v45, 8 }
 0x708   :  { %v6569_v7 = vadd.f32 %v7489_v46, %v16820_v24  ;;  %v18407_v41 = vmax.f32 %v17136_v14, 0.0  ;;  %v6842_v2 = vsel %vm17160_vm6, %v18403_v5, 0.0  ;;  %vm17187_vm7 = vmand %vm6739_vm13, %vm6760_vm4 }
 0x709   :  { %v6876_v48 = vadd.f32 %v6875_v26, %v6874_v37  ;;  %v6879_v62 = vsel %vm20768_vm1, %v6842_v2, 0.0  ;;  %v20770_v26 = vld [vmem:[#allocation169_spill] sm:$0xff]  ;;  %vm20771_vm13 = vmmov %vm20768_vm1 }
 0x70a   :  { %v17172_v56 = vadd.f32 %v16807_v34, %v6569_v7  ;;  %v6877_v34 = vsel %vm20765_vm11, %v6841_v13, 0.0  ;;  %v6843_v19 = vsel %vm17177_vm10, %v18407_v41, 0.0  ;;  %vm6761_vm4 = vcmp.lt.s32.totalorder %v20770_v26, 8  ;;  %vm20772_vm11 = vmmov %vm20768_vm1 }
 0x70b   :  { %v7490_v28 = vpop.f32.mrf.mxu0  ;;  %v6878_v0 = vadd.f32 %v6877_v34, %v6876_v48  ;;  %v6881_v37 = vsel %vm20771_vm13, %v6843_v19, 0.0  ;;  %vm17208_vm12 = vmand %vm6740_vm15, %vm6761_vm4  ;;  %vm20775_vm1 = vcmask 254976   ;;  %vm20792_vm4 = vnez %v20706_v3 }
 0x70c   :  { %v6718_v17 = vmax.f32 %v17172_v56, 0.0 }
 0x70d   :  { %v7491_v8 = vpop.f32.mrf.mxu0  ;;  %v6880_v41 = vadd.f32 %v6879_v62, %v6878_v0 }
 0x70e   :  { %v7492_v58 = vadd.f32 %v7491_v8, %v7490_v28  ;;  %v6844_v13 = vsel %vm17187_vm7, %v6718_v17, 0.0 }
 0x70f   :  { %v7493_v5 = vpop.f32.mrf.mxu0  ;;  %v6883_v45 = vsel %vm20772_vm11, %v6844_v13, 0.0  ;;  %v6882_v2 = vadd.f32 %v6881_v37, %v6880_v41 }
 0x710   :  { %v6574_v59 = vadd.f32 %v7492_v58, %v16820_v24 }
 0x711   :  { %v7494_v18 = vpop.f32.mrf.mxu0  ;;  %v6884_v8 = vadd.f32 %v6883_v45, %v6882_v2 }
 0x712   :  { %v17205_v28 = vadd.f32 %v16809_v30, %v6574_v59 }
 0x714   :  { %v6719_v34 = vmax.f32 %v17205_v28, 0.0 }
 0x716   :  { %v6845_v24 = vsel %vm17208_vm12, %v6719_v34, 0.0 }
 0x717   :  { %v6885_v18 = vsel %vm20775_vm1, %v6845_v24, 0.0 }
 0x718   :  { %v6886_v0 = vadd.f32 %v6885_v18, %v6884_v8  ;;  %v20781_v18 = vmax.f32 %v16933_v35, 0.0 }
 0x71a   :  { %v6887_v30 = vrot.slane %v6886_v0, 4 }
 0x71c   :  { %v6888_v59 = vadd.f32 %v6887_v30, %v6886_v0 }
 0x71e   :  { %v6889_v48 = vrot.slane %v6888_v59, 2 }
 0x720   :  { %v6890_v19 = vadd.f32 %v6889_v48, %v6888_v59  ;;  %v20783_v48 = vmax.f32 %v16949_v40, 0.0 }
 0x722   :  { %v6891_v58 = vrot.slane %v6890_v19, 1 }
 0x724   :  { %v6892_v62 = vadd.f32 %v6891_v58, %v6890_v19 }
 0x726   :  { %v17218_v13 = vmul.f32 0.0078125, %v6892_v62 }
 0x728   :  { %v6894_v41 = vsub.f32 %v6699_v9, %v17218_v13  ;;  %v6895_v26 = vsub.f32 %v6700_v61, %v17218_v13  ;;  %v6896_v37 = vsub.f32 %v6701_v47, %v17218_v13  ;;  %v6897_v2 = vsub.f32 %v6702_v38, %v17218_v13 }
 0x729   :  { %v6898_v9 = vsub.f32 %v20776_v63, %v17218_v13  ;;  %v6899_v15 = vsub.f32 %v20777_v22, %v17218_v13  ;;  %v6900_v38 = vsub.f32 %v20778_v36, %v17218_v13  ;;  %v6901_v0 = vsub.f32 %v20781_v18, %v17218_v13 }
 0x72a   :  { %v17231_v45 = vsel %vm16851_vm2, %v6894_v41, 0.0  ;;  %v17238_v16 = vsel %vm16863_vm8, %v6895_v26, 0.0  ;;  %v17245_v57 = vsel %vm16870_vm9, %v6896_v37, 0.0  ;;  %v17256_v47 = vsel %vm16887_vm3, %v6897_v2, 0.0  ;;  %vm20779_vm2 = vmmov %vm20772_vm11 }
 0x72b   :  { %v6936_v44 = vmul.f32 %v17231_v45, %v17231_v45  ;;  %v6937_v61 = vmul.f32 %v17238_v16, %v17238_v16  ;;  %v6938_v33 = vmul.f32 %v17245_v57, %v17245_v57  ;;  %v17265_v8 = vsel %vm16899_vm14, %v6898_v9, 0.0  ;;  %vm20780_vm8 = vmmov %vm20779_vm2 }
 0x72c   :  { %v6939_v20 = vmul.f32 %v17256_v47, %v17256_v47  ;;  %v17276_v30 = vsel %vm16920_vm5, %v6899_v15, 0.0  ;;  %v6940_v11 = vmul.f32 %v17265_v8, %v17265_v8  ;;  %vm20782_vm9 = vmmov %vm20779_vm2  ;;  %v6902_v19 = vsub.f32 %v20783_v48, %v17218_v13 }
 0x72d   :  { %v6957_v24 = vsel %vm20779_vm2, %v6936_v44, 0.0  ;;  %v6958_v23 = vsel %vm20780_vm8, %v6937_v61, 0.0  ;;  %v6960_v59 = vsel %vm20782_vm9, %v6938_v33, 0.0  ;;  %v17286_v58 = vsel %vm16959_vm0, %v6900_v38, 0.0  ;;  %vm20784_vm3 = vmmov %vm20779_vm2 }
 0x72e   :  { %v6959_v39 = vadd.f32 %v6958_v23, %v6957_v24  ;;  %v6941_v55 = vmul.f32 %v17276_v30, %v17276_v30  ;;  %v6962_v62 = vsel %vm20784_vm3, %v6939_v20, 0.0  ;;  %v20785_v41 = vmax.f32 %v16952_v31, 0.0  ;;  %vm20787_vm5 = vmmov %vm20779_vm2 }
 0x72f   :  { %vm20786_vm14 = vnez %v20699_v4  ;;  %v6942_v27 = vmul.f32 %v17286_v58, %v17286_v58  ;;  %v6964_v2 = vsel %vm20787_vm5, %v6940_v11, 0.0  ;;  %v20788_v63 = vmax.f32 %v16994_v21, 0.0  ;;  %vm20790_vm15 = vmmov %vm20779_vm2 }
 0x730   :  { %v6961_v35 = vadd.f32 %v6960_v59, %v6959_v39  ;;  %v6903_v26 = vsub.f32 %v20785_v41, %v17218_v13  ;;  %v17296_v37 = vsel %vm20786_vm14, %v6901_v0, 0.0  ;;  %vm20789_vm0 = vnez %v20704_v10  ;;  %vm20793_vm13 = vmmov %vm20779_vm2 }
 0x731   :  { %v6904_v9 = vsub.f32 %v20788_v63, %v17218_v13  ;;  %v17306_v44 = vsel %vm20789_vm0, %v6902_v19, 0.0  ;;  %v6943_v4 = vmul.f32 %v17296_v37, %v17296_v37  ;;  %v6966_v61 = vsel %vm20790_vm15, %v6941_v55, 0.0  ;;  %vm20796_vm1 = vmmov %vm20779_vm2 }
 0x732   :  { %v6963_v40 = vadd.f32 %v6962_v62, %v6961_v35  ;;  %v20791_v22 = vmax.f32 %v17005_v25, 0.0  ;;  %v17316_v33 = vsel %vm20792_vm4, %v6903_v26, 0.0  ;;  %v6944_v10 = vmul.f32 %v17306_v44, %v17306_v44  ;;  %vm20799_vm8 = vmmov %vm20796_vm1 }
 0x733   :  { %v6968_v36 = vsel %vm20793_vm13, %v6942_v27, 0.0  ;;  %v20794_v38 = vmax.f32 %v17031_v43, 0.0  ;;  %vm20795_vm11 = vnez %v20714_v29  ;;  %v6945_v3 = vmul.f32 %v17316_v33, %v17316_v33  ;;  %vm20802_vm3 = vmmov %vm20796_vm1 }
 0x734   :  { %v6965_v31 = vadd.f32 %v6964_v2, %v6963_v40  ;;  %v6905_v15 = vsub.f32 %v20791_v22, %v17218_v13  ;;  %v17326_v20 = vsel %vm20795_vm11, %v6904_v9, 0.0  ;;  %v6970_v23 = vsel %vm20796_vm1, %v6943_v4, 0.0  ;;  %vm20805_vm5 = vmmov %vm20796_vm1 }
 0x735   :  { %v6906_v24 = vsub.f32 %v20794_v38, %v17218_v13  ;;  %v20797_v18 = vmax.f32 %v17047_v12, 0.0  ;;  %vm20798_vm2 = vnez %v20717_v53  ;;  %v6946_v29 = vmul.f32 %v17326_v20, %v17326_v20  ;;  %vm20808_vm15 = vmmov %vm20796_vm1 }
 0x736   :  { %v6967_v21 = vadd.f32 %v6966_v61, %v6965_v31  ;;  %v17336_v39 = vsel %vm20798_vm2, %v6905_v15, 0.0  ;;  %v6972_v11 = vsel %vm20799_vm8, %v6944_v10, 0.0  ;;  %v20800_v59 = vmax.f32 %v17062_v6, 0.0  ;;  %vm20811_vm13 = vmmov %vm20796_vm1 }
 0x737   :  { %v6907_v0 = vsub.f32 %v20797_v18, %v17218_v13  ;;  %vm20801_vm9 = vnez %v20725_v50  ;;  %v6947_v53 = vmul.f32 %v17336_v39, %v17336_v39  ;;  %v6974_v35 = vsel %vm20802_vm3, %v6945_v3, 0.0  ;;  %vm20814_vm2 = vmmov %vm20796_vm1 }
 0x738   :  { %v6969_v25 = vadd.f32 %v6968_v36, %v6967_v21  ;;  %v6908_v48 = vsub.f32 %v20800_v59, %v17218_v13  ;;  %v17346_v19 = vsel %vm20801_vm9, %v6906_v24, 0.0  ;;  %v20803_v55 = vmax.f32 %v17078_v54, 0.0  ;;  %vm20815_vm8 = vmmov %vm20796_vm1 }
 0x739   :  { %vm20804_vm14 = vnez %v20733_v52  ;;  %v6948_v50 = vmul.f32 %v17346_v19, %v17346_v19  ;;  %v6976_v26 = vsel %vm20805_vm5, %v6946_v29, 0.0  ;;  %v20806_v40 = vmax.f32 %v17098_v32, 0.0  ;;  %vm20817_vm9 = vmmov %vm20796_vm1 }
 0x73a   :  { %v6971_v43 = vadd.f32 %v6970_v23, %v6969_v25  ;;  %v6909_v62 = vsub.f32 %v20803_v55, %v17218_v13  ;;  %v17356_v41 = vsel %vm20804_vm14, %v6907_v0, 0.0  ;;  %vm20807_vm0 = vnez %v20739_v1  ;;  %vm20819_vm3 = vmmov %vm20796_vm1 }
 0x73b   :  { %v6910_v27 = vsub.f32 %v20806_v40, %v17218_v13  ;;  %v17366_v2 = vsel %vm20807_vm0, %v6908_v48, 0.0  ;;  %v6949_v52 = vmul.f32 %v17356_v41, %v17356_v41  ;;  %v6978_v63 = vsel %vm20808_vm15, %v6947_v53, 0.0  ;;  %vm20824_vm14 = vmmov %vm20796_vm1 }
 0x73c   :  { %v6973_v12 = vadd.f32 %v6972_v11, %v6971_v43  ;;  %v20809_v9 = vmax.f32 %v17116_v49, 0.0  ;;  %vm20810_vm4 = vnez %v20746_v60  ;;  %v6950_v1 = vmul.f32 %v17366_v2, %v17366_v2  ;;  %vm20825_vm5 = vmmov %vm20796_vm1 }
 0x73d   :  { %v17376_v4 = vsel %vm20810_vm4, %v6909_v62, 0.0  ;;  %v6980_v61 = vsel %vm20811_vm13, %v6948_v50, 0.0  ;;  %v20812_v22 = vmax.f32 %v17136_v14, 0.0  ;;  %vm20813_vm11 = vnez %v20753_v51  ;;  %vm20826_vm0 = vmmov %vm20796_vm1 }
 0x73e   :  { %v6975_v6 = vadd.f32 %v6974_v35, %v6973_v12  ;;  %v6911_v31 = vsub.f32 %v20809_v9, %v17218_v13  ;;  %v17386_v21 = vsel %vm20813_vm11, %v6910_v27, 0.0  ;;  %v6951_v60 = vmul.f32 %v17376_v4, %v17376_v4  ;;  %v20821_v9 = vld [vmem:[#allocation59_spill] sm:$0xff]  ;;  %vm20827_vm15 = vmmov %vm20826_vm0 }
 0x73f   :  { %v6912_v15 = vsub.f32 %v20812_v22, %v17218_v13  ;;  %v6982_v10 = vsel %vm20796_vm1, %v6949_v52, 0.0  ;;  %v6913_v36 = vsub.f32 %v6718_v17, %v17218_v13  ;;  %v6952_v14 = vmul.f32 %v17386_v21, %v17386_v21  ;;  %vm20828_vm4 = vmmov %vm20826_vm0 }
 0x740   :  { %v6977_v54 = vadd.f32 %v6976_v26, %v6975_v6  ;;  %v6932_v38 = vsel %vm17160_vm6, %v6911_v31, 0.0  ;;  %v6984_v51 = vsel %vm20814_vm2, %v6950_v1, 0.0  ;;  %v6914_v25 = vsub.f32 %v6719_v34, %v17218_v13  ;;  %vm20816_vm6 = vmmov %vm20796_vm1 }
 0x741   :  { %v6933_v3 = vsel %vm17177_vm10, %v6912_v15, 0.0  ;;  %v6953_v18 = vmul.f32 %v6932_v38, %v6932_v38  ;;  %v6986_v56 = vsel %vm20815_vm8, %v6951_v60, 0.0  ;;  %v6934_v42 = vsel %vm17187_vm7, %v6913_v36, 0.0  ;;  %vm20818_vm10 = vmmov %vm20796_vm1 }
 0x742   :  { %v6979_v32 = vadd.f32 %v6978_v63, %v6977_v54  ;;  %v6954_v0 = vmul.f32 %v6933_v3, %v6933_v3  ;;  %v6988_v43 = vsel %vm20816_vm6, %v6952_v14, 0.0  ;;  %v6935_v29 = vsel %vm17208_vm12, %v6914_v25, 0.0  ;;  %v7007_v54 = vld [vmem:[%s17530_s7] sm:$0x1]  ;;  %vm20823_vm12 = vmmov %vm20796_vm1 }
 0x743   :  { %v6955_v28 = vmul.f32 %v6934_v42, %v6934_v42  ;;  %v6990_v34 = vsel %vm20817_vm9, %v6953_v18, 0.0  ;;  %v6956_v13 = vmul.f32 %v6935_v29, %v6935_v29  ;;  %vm20820_vm7 = vcmask 254976   ;;  %vm20829_vm13 = vmmov %vm20826_vm0 }
 0x744   :  { %v6981_v49 = vadd.f32 %v6980_v61, %v6979_v32  ;;  %v6992_v59 = vsel %vm20818_vm10, %v6954_v0, 0.0  ;;  %v20822_v31 = vsub.s32 0, %v20821_v9  ;;  %vm20830_vm11 = vmmov %vm20826_vm0 }
 0x745   :  { %v6994_v12 = vsel %vm20819_vm3, %v6955_v28, 0.0  ;;  %v6996_v53 = vsel %vm20820_vm7, %v6956_v13, 0.0  ;;  %vm20831_vm1 = vmmov %vm20826_vm0 }
 0x746   :  { %v6983_v24 = vadd.f32 %v6982_v10, %v6981_v49  ;;  %vm20832_vm2 = vmmov %vm20826_vm0 }
 0x747   :  { %vm20833_vm8 = vmmov %vm20826_vm0 }
 0x748   :  { %v6985_v23 = vadd.f32 %v6984_v51, %v6983_v24  ;;  %vm20834_vm6 = vmmov %vm20826_vm0 }
 0x749   :  { %vm20835_vm9 = vmmov %vm20826_vm0 }
 0x74a   :  { %v6987_v17 = vadd.f32 %v6986_v56, %v6985_v23  ;;  %vm20836_vm10 = vmmov %vm20826_vm0 }
 0x74b   :  { %vm20837_vm3 = vmmov %vm20826_vm0 }
 0x74c   :  { %v6989_v11 = vadd.f32 %v6988_v43, %v6987_v17  ;;  %vm20838_vm7 = vmmov %vm20826_vm0 }
 0x74e   :  { %v6991_v46 = vadd.f32 %v6990_v34, %v6989_v11 }
 0x750   :  { %v6993_v48 = vadd.f32 %v6992_v59, %v6991_v46 }
 0x752   :  { %v6995_v7 = vadd.f32 %v6994_v12, %v6993_v48 }
 0x754   :  { %v6997_v35 = vadd.f32 %v6996_v53, %v6995_v7 }
 0x756   :  { %v6998_v55 = vrot.slane %v6997_v35, 4 }
 0x758   :  { %v6999_v62 = vadd.f32 %v6998_v55, %v6997_v35 }
 0x75a   :  { %v7000_v6 = vrot.slane %v6999_v62, 2 }
 0x75c   :  { %v7001_v5 = vadd.f32 %v7000_v6, %v6999_v62 }
 0x75e   :  { %v7002_v50 = vrot.slane %v7001_v5, 1 }
 0x760   :  { %v7003_v26 = vadd.f32 %v7002_v50, %v7001_v5 }
 0x762   :  { %v7004_v40 = vmul.f32 0.0078125, %v7003_v26 }
 0x764   :  { %v7005_v27 = vadd.f32 1e-05, %v7004_v40 }
 0x766   :  { %7888 = vrsqrt.f32 %v7005_v27 }
 0x773   :  { %v7889_v52 = vpop.eup %7888 }
 0x774   :  { %v7008_v63 = vmul.f32 %v7889_v52, %v7007_v54 }
 0x776   :  { %v7012_v32 = vrot.slane %v7008_v63, %v20822_v31 }
 0x778   :  { %v7013_v1 = vmul.f32 %v7012_v32, %v17231_v45  ;;  %v7014_v61 = vmul.f32 %v7012_v32, %v17238_v16  ;;  %v7015_v22 = vmul.f32 %v7012_v32, %v17245_v57  ;;  %v7016_v15 = vmul.f32 %v7012_v32, %v17256_v47  ;;  %v7357_v57 = vld [vmem:[%s17531_s8] ss:$0 sm:$0xff] }
 0x779   :  { %v7017_v49 = vmul.f32 %v7012_v32, %v17265_v8  ;;  %v7018_v60 = vmul.f32 %v7012_v32, %v17276_v30  ;;  %v7019_v10 = vmul.f32 %v7012_v32, %v17286_v58  ;;  %v7020_v36 = vmul.f32 %v7012_v32, %v17296_v37 }
 0x77a   :  { %v7021_v24 = vmul.f32 %v7012_v32, %v17306_v44  ;;  %v7022_v14 = vmul.f32 %v7012_v32, %v17316_v33  ;;  %v7023_v45 = vmul.f32 %v7012_v32, %v17326_v20  ;;  %v7024_v16 = vmul.f32 %v7012_v32, %v17336_v39 }
 0x77b   :  { %v7025_v47 = vmul.f32 %v7012_v32, %v17346_v19  ;;  %v7026_v8 = vmul.f32 %v7012_v32, %v17356_v41  ;;  %v7027_v30 = vmul.f32 %v7012_v32, %v17366_v2  ;;  %v7028_v58 = vmul.f32 %v7012_v32, %v17376_v4 }
 0x77c   :  { %v7029_v37 = vmul.f32 %v7012_v32, %v17386_v21  ;;  %v7030_v44 = vmul.f32 %v7012_v32, %v6932_v38  ;;  %v7031_v33 = vmul.f32 %v7012_v32, %v6933_v3  ;;  %v7032_v51 = vmul.f32 %v7012_v32, %v6934_v42 }
 0x77d   :  { %v7033_v20 = vmul.f32 %v7012_v32, %v6935_v29  ;;  %v7041_v25 = vadd.f32 %v7357_v57, %v7013_v1  ;;  %v7042_v39 = vadd.f32 %v7357_v57, %v7014_v61  ;;  %v7043_v23 = vadd.f32 %v7357_v57, %v7015_v22 }
 0x77e   :  { %v7044_v18 = vadd.f32 %v7357_v57, %v7016_v15  ;;  %v7045_v56 = vadd.f32 %v7357_v57, %v7017_v49  ;;  %v7046_v17 = vadd.f32 %v7357_v57, %v7018_v60  ;;  %v7047_v0 = vadd.f32 %v7357_v57, %v7019_v10 }
 0x77f   :  { %v7048_v19 = vadd.f32 %v7357_v57, %v7020_v36  ;;  %v7049_v43 = vadd.f32 %v7357_v57, %v7021_v24  ;;  %v7050_v41 = vadd.f32 %v7357_v57, %v7022_v14  ;;  %v7051_v11 = vadd.f32 %v7357_v57, %v7023_v45  ;;  %7062 = vst.msk [vmem:[%s17532_s9] sm:$0xff] %vm20823_vm12, %v7041_v25  ;;  %vm20839_vm12 = vmmov %vm20826_vm0 }
 0x780   :  { %7063 = vst.msk [vmem:[%s17532_s9 + $0x8] sm:$0xff] %vm20824_vm14, %v7042_v39  ;;  %v7052_v2 = vadd.f32 %v7357_v57, %v7024_v16  ;;  %v7053_v4 = vadd.f32 %v7357_v57, %v7025_v47  ;;  %v7054_v21 = vadd.f32 %v7357_v57, %v7026_v8  ;;  %v7055_v38 = vadd.f32 %v7357_v57, %v7027_v30  ;;  %vm20840_vm14 = vmmov %vm20826_vm0 }
 0x781   :  { %7064 = vst.msk [vmem:[%s17532_s9 + $0x10] sm:$0xff] %vm20825_vm5, %v7043_v23  ;;  %v7056_v3 = vadd.f32 %v7357_v57, %v7028_v58  ;;  %v7057_v42 = vadd.f32 %v7357_v57, %v7029_v37  ;;  %v7058_v29 = vadd.f32 %v7357_v57, %v7030_v44  ;;  %v7059_v28 = vadd.f32 %v7357_v57, %v7031_v33  ;;  %vm20841_vm5 = vmmov %vm20826_vm0 }
 0x782   :  { %7065 = vst.msk [vmem:[%s17532_s9 + $0x18] sm:$0xff] %vm20826_vm0, %v7044_v18  ;;  %v7060_v34 = vadd.f32 %v7357_v57, %v7032_v51  ;;  %v7061_v46 = vadd.f32 %v7357_v57, %v7033_v20 }
 0x783   :  { %7066 = vst.msk [vmem:[%s17532_s9 + $0x20] sm:$0xff] %vm20827_vm15, %v7045_v56  ;;  %vm20842_vm15 = vcmask 254976  }
 0x784   :  { %7067 = vst.msk [vmem:[%s17532_s9 + $0x28] sm:$0xff] %vm20828_vm4, %v7046_v17 }
 0x785   :  { %7068 = vst.msk [vmem:[%s17532_s9 + $0x30] sm:$0xff] %vm20829_vm13, %v7047_v0 }
 0x786   :  { %7069 = vst.msk [vmem:[%s17532_s9 + $0x38] sm:$0xff] %vm20830_vm11, %v7048_v19 }
 0x787   :  { %7070 = vst.msk [vmem:[%s17532_s9 + $0x40] sm:$0xff] %vm20831_vm1, %v7049_v43 }
 0x788   :  { %7071 = vst.msk [vmem:[%s17532_s9 + $0x48] sm:$0xff] %vm20832_vm2, %v7050_v41 }
 0x789   :  { %7072 = vst.msk [vmem:[%s17532_s9 + $0x50] sm:$0xff] %vm20833_vm8, %v7051_v11 }
 0x78a   :  { %7073 = vst.msk [vmem:[%s17532_s9 + $0x58] sm:$0xff] %vm20834_vm6, %v7052_v2 }
 0x78b   :  { %7074 = vst.msk [vmem:[%s17532_s9 + $0x60] sm:$0xff] %vm20835_vm9, %v7053_v4 }
 0x78c   :  { %7075 = vst.msk [vmem:[%s17532_s9 + $0x68] sm:$0xff] %vm20836_vm10, %v7054_v21 }
 0x78d   :  { %7076 = vst.msk [vmem:[%s17532_s9 + $0x70] sm:$0xff] %vm20837_vm3, %v7055_v38 }
 0x78e   :  { %7077 = vst.msk [vmem:[%s17532_s9 + $0x78] sm:$0xff] %vm20838_vm7, %v7056_v3 }
 0x78f   :  { %7078 = vst.msk [vmem:[%s17532_s9 + $0x80] sm:$0xff] %vm20839_vm12, %v7057_v42 }
 0x790   :  { %7079 = vst.msk [vmem:[%s17532_s9 + $0x88] sm:$0xff] %vm20840_vm14, %v7058_v29 }
 0x791   :  { %7080 = vst.msk [vmem:[%s17532_s9 + $0x90] sm:$0xff] %vm20841_vm5, %v7059_v28 }
 0x792   :  { %7081 = vst.msk [vmem:[%s17532_s9 + $0x98] sm:$0xff] %vm20826_vm0, %v7060_v34 }
 0x793   :  { %7082 = vst.msk [vmem:[%s17532_s9 + $0xa0] sm:$0x3] %vm20842_vm15, %v7061_v46 }

</bundles_post_ra>
